<compile_context>
chip_gen: v6e
topology: v6e:2x2x1
jax: 0.10.0
libtpu: 0.0.40
codegen_flags: <defaults>
</compile_context>

<pallas_src>
import functools

import jax
import jax.numpy as jnp
from jax.experimental import pallas as pl
from jax.experimental.pallas import tpu as pltpu

VMEM_LIMIT = 64 * 1024 * 1024  # <= v7x physical (64 MiB), above v6e's 32 MiB scoped default


# ----------------------------- Pallas kernels ------------------------------

def cv12_kernel(x_ref, w_ref, b_ref, y1_ref, y2_ref):
    """Fused cv1+cv2: one (tm,Cin)@(Cin,2c_) bf16 MXU dot + bias + SiLU, split outputs."""
    xb = x_ref[...].astype(jnp.bfloat16)
    y = jnp.dot(xb, w_ref[...], preferred_element_type=jnp.float32)
    y = y + b_ref[...]
    y = y * jax.nn.sigmoid(y)                       # SiLU in f32
    c_ = y1_ref.shape[1]
    yb = y.astype(jnp.bfloat16)
    y1_ref[...] = yb[:, :c_]
    y2_ref[...] = yb[:, c_:]


def bottleneck_kernel(y_ref, w1_ref, b1_ref, w2_ref, b2_ref, o_ref,
                      hpad_ref, acc_ref, *, add):
    """Fused Bottleneck for one image:
         h = SiLU(y @ w1 + b1)  -> zero-padded VMEM halo scratch
         o = SiLU(conv3x3(h) + b2) (+ y if add)
    y_ref : (1, H, W, C)   bf16
    w1_ref: (C, C)         bf16     b1_ref: (1, C) f32
    w2_ref: (3, 3C, C)     bf16     b2_ref: (1, C) f32
    o_ref : (1, H, W, C)   bf16
    hpad  : (H+2, W+2, C)  bf16 scratch     acc: (H*W, C) f32 scratch
    """
    H, W, C = o_ref.shape[1], o_ref.shape[2], o_ref.shape[3]
    xin = y_ref[0].reshape(H * W, C)                # (H*W, C) bf16, stays resident

    # --- bottleneck cv1: 1x1 conv + SiLU, written into interior of halo scratch ---
    h = jnp.dot(xin, w1_ref[...], preferred_element_type=jnp.float32)
    h = h + b1_ref[...]
    h = h * jax.nn.sigmoid(h)
    hpad_ref[...] = jnp.zeros_like(hpad_ref)        # in-kernel zero padding (no jnp.pad in HBM)
    hpad_ref[1:H + 1, 1:W + 1, :] = h.reshape(H, W, C).astype(hpad_ref.dtype)

    # --- bottleneck cv2: 3x3 "same" conv; fold the 3 kx taps into K -> 3 MXU dots ---
    acc_ref[...] = jnp.zeros_like(acc_ref)
    for ky in range(3):
        win = jnp.concatenate(
            [hpad_ref[ky:ky + H, 0:W, :],
             hpad_ref[ky:ky + H, 1:W + 1, :],
             hpad_ref[ky:ky + H, 2:W + 2, :]],
            axis=-1).reshape(H * W, 3 * C)          # (H*W, 3C) bf16
        acc_ref[...] += jnp.dot(win, w2_ref[ky],
                                preferred_element_type=jnp.float32)

    y = acc_ref[...] + b2_ref[...]
    y = y * jax.nn.sigmoid(y)                       # SiLU
    if add:
        y = y + xin.astype(jnp.float32)             # residual (resident input, no extra DMA)
    o_ref[0] = y.reshape(H, W, C).astype(o_ref.dtype)


def cv3_kernel(y1_ref, y2_ref, wa_ref, wb_ref, b_ref, o_ref):
    """Fused concat+cv3: y1@w3a + y2@w3b + b, SiLU — the concat tensor never exists."""
    acc = jnp.dot(y1_ref[...], wa_ref[...], preferred_element_type=jnp.float32)
    acc = acc + jnp.dot(y2_ref[...], wb_ref[...], preferred_element_type=jnp.float32)
    acc = acc + b_ref[...]
    o_ref[...] = acc * jax.nn.sigmoid(acc)


# ------------------------------ JAX wrappers --------------------------------

def fused_cv1_cv2(x_nhwc, w_cat, b_cat, c_, tm=1024):
    """x: (N,H,W,Cin) f32; w_cat: (Cin,2c_) bf16; b_cat: (1,2c_) f32 -> two (N,H,W,c_) bf16."""
    N, H, W, Cin = x_nhwc.shape
    M = N * H * W
    tm = min(tm, M)
    x2d = x_nhwc.reshape(M, Cin)
    y1, y2 = pl.pallas_call(
        cv12_kernel,
        out_shape=(jax.ShapeDtypeStruct((M, c_), jnp.bfloat16),
                   jax.ShapeDtypeStruct((M, c_), jnp.bfloat16)),
        grid=(pl.cdiv(M, tm),),
        in_specs=[
            pl.BlockSpec((tm, Cin), lambda i: (i, 0)),
            pl.BlockSpec((Cin, 2 * c_), lambda i: (0, 0)),
            pl.BlockSpec((1, 2 * c_), lambda i: (0, 0)),
        ],
        out_specs=(pl.BlockSpec((tm, c_), lambda i: (i, 0)),
                   pl.BlockSpec((tm, c_), lambda i: (i, 0))),
        compiler_params=pltpu.CompilerParams(
            dimension_semantics=("parallel",),
            vmem_limit_bytes=VMEM_LIMIT),
    )(x2d, w_cat, b_cat)
    return y1.reshape(N, H, W, c_), y2.reshape(N, H, W, c_)


def fused_bottleneck(y1, w1, b1, w2, b2, add):
    """y1: (N,H,W,C) bf16; w1: (C,C) bf16; w2: (3,3C,C) bf16; biases f32 -> (N,H,W,C) bf16."""
    N, H, W, C = y1.shape
    kern = functools.partial(bottleneck_kernel, add=add)
    # TODO(synk): for very large H*W on v7x (64 MiB VMEM), switch to row-strip
    # tiling with a manual 1-row halo DMA instead of whole-image blocks.
    return pl.pallas_call(
        kern,
        out_shape=jax.ShapeDtypeStruct((N, H, W, C), jnp.bfloat16),
        grid=(N,),
        in_specs=[
            pl.BlockSpec((1, H, W, C), lambda n: (n, 0, 0, 0)),
            pl.BlockSpec((C, C), lambda n: (0, 0)),
            pl.BlockSpec((1, C), lambda n: (0, 0)),
            pl.BlockSpec((3, 3 * C, C), lambda n: (0, 0, 0)),
            pl.BlockSpec((1, C), lambda n: (0, 0)),
        ],
        out_specs=pl.BlockSpec((1, H, W, C), lambda n: (n, 0, 0, 0)),
        scratch_shapes=[pltpu.VMEM((H + 2, W + 2, C), jnp.bfloat16),
                        pltpu.VMEM((H * W, C), jnp.float32)],
        compiler_params=pltpu.CompilerParams(
            dimension_semantics=("parallel",),
            vmem_limit_bytes=VMEM_LIMIT),
    )(y1, w1, b1, w2, b2)


def fused_concat_cv3(y1, y2, wa, wb, b, tm=1024):
    """y1,y2: (N,H,W,c_) bf16; wa,wb: (c_,c2) bf16; b: (1,c2) f32 -> (N,H,W,c2) f32."""
    N, H, W, C = y1.shape
    c2 = wa.shape[1]
    M = N * H * W
    tm = min(tm, M)
    out = pl.pallas_call(
        cv3_kernel,
        out_shape=jax.ShapeDtypeStruct((M, c2), jnp.float32),
        grid=(pl.cdiv(M, tm),),
        in_specs=[
            pl.BlockSpec((tm, C), lambda i: (i, 0)),
            pl.BlockSpec((tm, C), lambda i: (i, 0)),
            pl.BlockSpec((C, c2), lambda i: (0, 0)),
            pl.BlockSpec((C, c2), lambda i: (0, 0)),
            pl.BlockSpec((1, c2), lambda i: (0, 0)),
        ],
        out_specs=pl.BlockSpec((tm, c2), lambda i: (i, 0)),
        compiler_params=pltpu.CompilerParams(
            dimension_semantics=("parallel",),
            vmem_limit_bytes=VMEM_LIMIT),
    )(y1.reshape(M, C), y2.reshape(M, C), wa, wb, b)
    return out.reshape(N, H, W, c2)


# --------------------------- parameter construction -------------------------

def make_conv_params(key, cin, cout, k):
    """Deterministic Conv2d + BN params; BN folded into (weight, bias) in f32.

    Returns:
      k == 1 -> weight (cin, cout)
      k == 3 -> weight (3, 3*cin, cout)   (rows ordered kx-major, cin-minor per ky)
    """
    kw, kg, kb, km, kv = jax.random.split(key, 5)
    w = 0.1 * jax.random.normal(kw, (k, k, cin, cout), jnp.float32)
    gamma = 1.0 + 0.1 * jax.random.normal(kg, (cout,), jnp.float32)
    beta = 0.1 * jax.random.normal(kb, (cout,), jnp.float32)
    mean = 0.1 * jax.random.normal(km, (cout,), jnp.float32)
    var = jnp.abs(jax.random.normal(kv, (cout,), jnp.float32)) + 0.5
    eps = 1e-3  # ultralytics BatchNorm2d(eps=0.001)
    s = gamma / jnp.sqrt(var + eps)
    bias = (beta - mean * s).reshape(1, cout)
    w_folded = w * s
    if k == 1:
        return w_folded.reshape(cin, cout), bias
    return w_folded.reshape(3, 3 * cin, cout), bias


def init_c3_params(key, c1, c2, n=1, e=0.5):
    c_ = int(c2 * e)
    keys = jax.random.split(key, 3 + 2 * n)
    w1, b1 = make_conv_params(keys[0], c1, c_, 1)
    w2, b2 = make_conv_params(keys[1], c1, c_, 1)
    w3, b3 = make_conv_params(keys[2], 2 * c_, c2, 1)
    params = {
        # cv1 + cv2 fused along Cout -> one (c1, 2c_) matrix, x read once.
        "cv12_w": jnp.concatenate([w1, w2], axis=1).astype(jnp.bfloat16),
        "cv12_b": jnp.concatenate([b1, b2], axis=1),
        # cv3 split so the channel concat is never materialized.
        "cv3_wa": w3[:c_].astype(jnp.bfloat16),
        "cv3_wb": w3[c_:].astype(jnp.bfloat16),
        "cv3_b": b3,
        "m": [],
    }
    for i in range(n):
        bw1, bb1 = make_conv_params(keys[3 + 2 * i], c_, c_, 1)   # k=(1,1), e=1.0
        bw2, bb2 = make_conv_params(keys[4 + 2 * i], c_, c_, 3)   # k=(3,3)
        params["m"].append((bw1.astype(jnp.bfloat16), bb1,
                            bw2.astype(jnp.bfloat16), bb2))
    return params


def c3_forward(params, x_nchw, shortcut=True):
    """Full C3 forward. Input/output are NCHW f32 (PyTorch convention)."""
    x = jnp.transpose(x_nchw, (0, 2, 3, 1))                  # NCHW -> NHWC
    c_ = params["cv3_wa"].shape[0]

    y1, y2 = fused_cv1_cv2(x, params["cv12_w"], params["cv12_b"], c_)   # cv1 & cv2

    for bw1, bb1, bw2, bb2 in params["m"]:                   # n fused bottlenecks
        y1 = fused_bottleneck(y1, bw1, bb1, bw2, bb2, add=shortcut)

    out = fused_concat_cv3(y1, y2, params["cv3_wa"], params["cv3_wb"],
                           params["cv3_b"])                  # concat + cv3
    return jnp.transpose(out, (0, 3, 1, 2))                  # NHWC -> NCHW


# ----------------------------------- main ------------------------------------

if __name__ == "__main__":
    c1, c2, n = 4, 4, 1
    N, H, W = 2, 16, 16

    key = jax.random.PRNGKey(0)
    kx, kp = jax.random.split(key)
    x = jax.random.normal(kx, (N, c1, H, W), jnp.float32)    # NCHW like PyTorch
    params = init_c3_params(kp, c1, c2, n=n, e=0.5)

    fwd = jax.jit(functools.partial(c3_forward, shortcut=True))
    out = jax.block_until_ready(fwd(params, x))

    assert out.shape == (N, c2, H, W), out.shape
    assert bool(jnp.all(jnp.isfinite(out)))
    print("KERNEL_OK")
</pallas_src>

<mosaic_0001>
module attributes {stable_mosaic.version = 11 : i64} {
  func.func @bottleneck_kernel(%arg0: i32, %arg1: memref<1x16x16x2xbf16, #tpu.memory_space<vmem>>, %arg2: memref<2x2xbf16, #tpu.memory_space<vmem>>, %arg3: memref<1x2xf32, #tpu.memory_space<vmem>>, %arg4: memref<3x6x2xbf16, #tpu.memory_space<vmem>>, %arg5: memref<1x2xf32, #tpu.memory_space<vmem>>, %arg6: memref<1x16x16x2xbf16, #tpu.memory_space<vmem>>, %arg7: memref<18x18x2xbf16, #tpu.memory_space<vmem>>, %arg8: memref<256x2xf32, #tpu.memory_space<vmem>>) attributes {dimension_semantics = [#tpu.dimension_semantics<parallel>], iteration_bounds = array<i64: 2>, scalar_prefetch = 0 : i64, scratch_operands = 2 : i64, tpu.core_type = #tpu.core_type<tc>, window_params = [{transform_indices = @transform_0, window_bounds = array<i64: 1, 16, 16, 2>}, {pipeline_mode = #tpu.pipeline_mode<synchronous>, transform_indices = @transform_1, window_bounds = array<i64: 2, 2>}, {pipeline_mode = #tpu.pipeline_mode<synchronous>, transform_indices = @transform_2, window_bounds = array<i64: 1, 2>}, {pipeline_mode = #tpu.pipeline_mode<synchronous>, transform_indices = @transform_3, window_bounds = array<i64: 3, 6, 2>}, {pipeline_mode = #tpu.pipeline_mode<synchronous>, transform_indices = @transform_4, window_bounds = array<i64: 1, 2>}, {transform_indices = @transform_5, window_bounds = array<i64: 1, 16, 16, 2>}]} {
    %c0 = arith.constant 0 : index
    %c0_0 = arith.constant 0 : index
    %c0_1 = arith.constant 0 : index
    %c0_2 = arith.constant 0 : index
    %0 = vector.load %arg1[%c0, %c0_0, %c0_1, %c0_2] : memref<1x16x16x2xbf16, #tpu.memory_space<vmem>>, vector<1x16x16x2xbf16>
    %1 = vector.shape_cast %0 : vector<1x16x16x2xbf16> to vector<16x16x2xbf16>
    %2 = vector.shape_cast %1 : vector<16x16x2xbf16> to vector<256x2xbf16>
    %c0_3 = arith.constant 0 : index
    %c0_4 = arith.constant 0 : index
    %3 = vector.load %arg2[%c0_3, %c0_4] : memref<2x2xbf16, #tpu.memory_space<vmem>>, vector<2x2xbf16>
    %cst = arith.constant dense<0.000000e+00> : vector<256x2xf32>
    %4 = tpu.matmul %2, %3, %cst {dimension_numbers = #tpu.dot_dimension_numbers<[1], [0], [0], [1], [0, 0, 1, 1], [], []>} : vector<256x2xbf16>, vector<2x2xbf16>, vector<256x2xf32> -> vector<256x2xf32>
    %c0_5 = arith.constant 0 : index
    %c0_6 = arith.constant 0 : index
    %5 = vector.load %arg3[%c0_5, %c0_6] : memref<1x2xf32, #tpu.memory_space<vmem>>, vector<1x2xf32>
    %6 = vector.broadcast %5 : vector<1x2xf32> to vector<256x2xf32>
    %7 = arith.addf %4, %6 : vector<256x2xf32>
    %8 = arith.negf %7 : vector<256x2xf32>
    %9 = math.exp %8 : vector<256x2xf32>
    %cst_7 = arith.constant 1.000000e+00 : f32
    %10 = vector.broadcast %cst_7 : f32 to vector<256x2xf32>
    %11 = arith.addf %10, %9 : vector<256x2xf32>
    %12 = arith.divf %10, %11 : vector<256x2xf32>
    %13 = arith.mulf %7, %12 : vector<256x2xf32>
    %cst_8 = arith.constant 0.000000e+00 : bf16
    %14 = vector.broadcast %cst_8 : bf16 to vector<18x18x2xbf16>
    %c0_9 = arith.constant 0 : index
    %c0_10 = arith.constant 0 : index
    %c0_11 = arith.constant 0 : index
    %15 = vector.load %arg7[%c0_9, %c0_10, %c0_11] : memref<18x18x2xbf16, #tpu.memory_space<vmem>>, vector<18x18x2xbf16>
    tpu.vector_store %arg7[%c0_9, %c0_10, %c0_11], %14 {strides = array<i32>} : memref<18x18x2xbf16, #tpu.memory_space<vmem>>, vector<18x18x2xbf16>,
    %16 = vector.shape_cast %13 : vector<256x2xf32> to vector<16x16x2xf32>
    %17 = arith.truncf %16 : vector<16x16x2xf32> to vector<16x16x2xbf16>
    %c1 = arith.constant 1 : index
    %c1_12 = arith.constant 1 : index
    %c0_13 = arith.constant 0 : index
    %18 = vector.load %arg7[%c1, %c1_12, %c0_13] : memref<18x18x2xbf16, #tpu.memory_space<vmem>>, vector<16x16x2xbf16>
    tpu.vector_store %arg7[%c1, %c1_12, %c0_13], %17 {strides = array<i32>} : memref<18x18x2xbf16, #tpu.memory_space<vmem>>, vector<16x16x2xbf16>,
    %cst_14 = arith.constant 0.000000e+00 : f32
    %19 = vector.broadcast %cst_14 : f32 to vector<256x2xf32>
    %c0_15 = arith.constant 0 : index
    %c0_16 = arith.constant 0 : index
    %20 = vector.load %arg8[%c0_15, %c0_16] : memref<256x2xf32, #tpu.memory_space<vmem>>, vector<256x2xf32>
    tpu.vector_store %arg8[%c0_15, %c0_16], %19 {strides = array<i32>} : memref<256x2xf32, #tpu.memory_space<vmem>>, vector<256x2xf32>,
    %c0_17 = arith.constant 0 : index
    %c0_18 = arith.constant 0 : index
    %c0_19 = arith.constant 0 : index
    %21 = vector.load %arg7[%c0_17, %c0_18, %c0_19] : memref<18x18x2xbf16, #tpu.memory_space<vmem>>, vector<16x16x2xbf16>
    %c0_20 = arith.constant 0 : index
    %c1_21 = arith.constant 1 : index
    %c0_22 = arith.constant 0 : index
    %22 = vector.load %arg7[%c0_20, %c1_21, %c0_22] : memref<18x18x2xbf16, #tpu.memory_space<vmem>>, vector<16x16x2xbf16>
    %c0_23 = arith.constant 0 : index
    %c2 = arith.constant 2 : index
    %c0_24 = arith.constant 0 : index
    %23 = vector.load %arg7[%c0_23, %c2, %c0_24] : memref<18x18x2xbf16, #tpu.memory_space<vmem>>, vector<16x16x2xbf16>
    %24 = tpu.concatenate %21, %22, %23 in 2 : vector<16x16x2xbf16>, vector<16x16x2xbf16>, vector<16x16x2xbf16> -> vector<16x16x6xbf16>
    %25 = vector.shape_cast %24 : vector<16x16x6xbf16> to vector<256x6xbf16>
    %c0_25 = arith.constant 0 : index
    %c0_26 = arith.constant 0 : index
    %26 = vector.load %arg8[%c0_25, %c0_26] : memref<256x2xf32, #tpu.memory_space<vmem>>, vector<256x2xf32>
    %c0_27 = arith.constant 0 : index
    %c0_28 = arith.constant 0 : index
    %c0_29 = arith.constant 0 : index
    %27 = vector.load %arg4[%c0_27, %c0_28, %c0_29] : memref<3x6x2xbf16, #tpu.memory_space<vmem>>, vector<1x6x2xbf16>
    %28 = vector.shape_cast %27 : vector<1x6x2xbf16> to vector<6x2xbf16>
    %cst_30 = arith.constant dense<0.000000e+00> : vector<256x2xf32>
    %29 = tpu.matmul %25, %28, %cst_30 {dimension_numbers = #tpu.dot_dimension_numbers<[1], [0], [0], [1], [0, 0, 1, 1], [], []>} : vector<256x6xbf16>, vector<6x2xbf16>, vector<256x2xf32> -> vector<256x2xf32>
    %30 = arith.addf %26, %29 : vector<256x2xf32>
    %c0_31 = arith.constant 0 : index
    %c0_32 = arith.constant 0 : index
    %31 = vector.load %arg8[%c0_31, %c0_32] : memref<256x2xf32, #tpu.memory_space<vmem>>, vector<256x2xf32>
    tpu.vector_store %arg8[%c0_31, %c0_32], %30 {strides = array<i32>} : memref<256x2xf32, #tpu.memory_space<vmem>>, vector<256x2xf32>,
    %c1_33 = arith.constant 1 : index
    %c0_34 = arith.constant 0 : index
    %c0_35 = arith.constant 0 : index
    %32 = vector.load %arg7[%c1_33, %c0_34, %c0_35] : memref<18x18x2xbf16, #tpu.memory_space<vmem>>, vector<16x16x2xbf16>
    %c1_36 = arith.constant 1 : index
    %c1_37 = arith.constant 1 : index
    %c0_38 = arith.constant 0 : index
    %33 = vector.load %arg7[%c1_36, %c1_37, %c0_38] : memref<18x18x2xbf16, #tpu.memory_space<vmem>>, vector<16x16x2xbf16>
    %c1_39 = arith.constant 1 : index
    %c2_40 = arith.constant 2 : index
    %c0_41 = arith.constant 0 : index
    %34 = vector.load %arg7[%c1_39, %c2_40, %c0_41] : memref<18x18x2xbf16, #tpu.memory_space<vmem>>, vector<16x16x2xbf16>
    %35 = tpu.concatenate %32, %33, %34 in 2 : vector<16x16x2xbf16>, vector<16x16x2xbf16>, vector<16x16x2xbf16> -> vector<16x16x6xbf16>
    %36 = vector.shape_cast %35 : vector<16x16x6xbf16> to vector<256x6xbf16>
    %c0_42 = arith.constant 0 : index
    %c0_43 = arith.constant 0 : index
    %37 = vector.load %arg8[%c0_42, %c0_43] : memref<256x2xf32, #tpu.memory_space<vmem>>, vector<256x2xf32>
    %c1_44 = arith.constant 1 : index
    %c0_45 = arith.constant 0 : index
    %c0_46 = arith.constant 0 : index
    %38 = vector.load %arg4[%c1_44, %c0_45, %c0_46] : memref<3x6x2xbf16, #tpu.memory_space<vmem>>, vector<1x6x2xbf16>
    %39 = vector.shape_cast %38 : vector<1x6x2xbf16> to vector<6x2xbf16>
    %cst_47 = arith.constant dense<0.000000e+00> : vector<256x2xf32>
    %40 = tpu.matmul %36, %39, %cst_47 {dimension_numbers = #tpu.dot_dimension_numbers<[1], [0], [0], [1], [0, 0, 1, 1], [], []>} : vector<256x6xbf16>, vector<6x2xbf16>, vector<256x2xf32> -> vector<256x2xf32>
    %41 = arith.addf %37, %40 : vector<256x2xf32>
    %c0_48 = arith.constant 0 : index
    %c0_49 = arith.constant 0 : index
    %42 = vector.load %arg8[%c0_48, %c0_49] : memref<256x2xf32, #tpu.memory_space<vmem>>, vector<256x2xf32>
    tpu.vector_store %arg8[%c0_48, %c0_49], %41 {strides = array<i32>} : memref<256x2xf32, #tpu.memory_space<vmem>>, vector<256x2xf32>,
    %c2_50 = arith.constant 2 : index
    %c0_51 = arith.constant 0 : index
    %c0_52 = arith.constant 0 : index
    %43 = vector.load %arg7[%c2_50, %c0_51, %c0_52] : memref<18x18x2xbf16, #tpu.memory_space<vmem>>, vector<16x16x2xbf16>
    %c2_53 = arith.constant 2 : index
    %c1_54 = arith.constant 1 : index
    %c0_55 = arith.constant 0 : index
    %44 = vector.load %arg7[%c2_53, %c1_54, %c0_55] : memref<18x18x2xbf16, #tpu.memory_space<vmem>>, vector<16x16x2xbf16>
    %c2_56 = arith.constant 2 : index
    %c2_57 = arith.constant 2 : index
    %c0_58 = arith.constant 0 : index
    %45 = vector.load %arg7[%c2_56, %c2_57, %c0_58] : memref<18x18x2xbf16, #tpu.memory_space<vmem>>, vector<16x16x2xbf16>
    %46 = tpu.concatenate %43, %44, %45 in 2 : vector<16x16x2xbf16>, vector<16x16x2xbf16>, vector<16x16x2xbf16> -> vector<16x16x6xbf16>
    %47 = vector.shape_cast %46 : vector<16x16x6xbf16> to vector<256x6xbf16>
    %c0_59 = arith.constant 0 : index
    %c0_60 = arith.constant 0 : index
    %48 = vector.load %arg8[%c0_59, %c0_60] : memref<256x2xf32, #tpu.memory_space<vmem>>, vector<256x2xf32>
    %c2_61 = arith.constant 2 : index
    %c0_62 = arith.constant 0 : index
    %c0_63 = arith.constant 0 : index
    %49 = vector.load %arg4[%c2_61, %c0_62, %c0_63] : memref<3x6x2xbf16, #tpu.memory_space<vmem>>, vector<1x6x2xbf16>
    %50 = vector.shape_cast %49 : vector<1x6x2xbf16> to vector<6x2xbf16>
    %cst_64 = arith.constant dense<0.000000e+00> : vector<256x2xf32>
    %51 = tpu.matmul %47, %50, %cst_64 {dimension_numbers = #tpu.dot_dimension_numbers<[1], [0], [0], [1], [0, 0, 1, 1], [], []>} : vector<256x6xbf16>, vector<6x2xbf16>, vector<256x2xf32> -> vector<256x2xf32>
    %52 = arith.addf %48, %51 : vector<256x2xf32>
    %c0_65 = arith.constant 0 : index
    %c0_66 = arith.constant 0 : index
    %53 = vector.load %arg8[%c0_65, %c0_66] : memref<256x2xf32, #tpu.memory_space<vmem>>, vector<256x2xf32>
    tpu.vector_store %arg8[%c0_65, %c0_66], %52 {strides = array<i32>} : memref<256x2xf32, #tpu.memory_space<vmem>>, vector<256x2xf32>,
    %c0_67 = arith.constant 0 : index
    %c0_68 = arith.constant 0 : index
    %54 = vector.load %arg8[%c0_67, %c0_68] : memref<256x2xf32, #tpu.memory_space<vmem>>, vector<256x2xf32>
    %c0_69 = arith.constant 0 : index
    %c0_70 = arith.constant 0 : index
    %55 = vector.load %arg5[%c0_69, %c0_70] : memref<1x2xf32, #tpu.memory_space<vmem>>, vector<1x2xf32>
    %56 = vector.broadcast %55 : vector<1x2xf32> to vector<256x2xf32>
    %57 = arith.addf %54, %56 : vector<256x2xf32>
    %58 = arith.negf %57 : vector<256x2xf32>
    %59 = math.exp %58 : vector<256x2xf32>
    %cst_71 = arith.constant 1.000000e+00 : f32
    %60 = vector.broadcast %cst_71 : f32 to vector<256x2xf32>
    %61 = arith.addf %60, %59 : vector<256x2xf32>
    %62 = arith.divf %60, %61 : vector<256x2xf32>
    %63 = arith.mulf %57, %62 : vector<256x2xf32>
    %64 = arith.extf %2 : vector<256x2xbf16> to vector<256x2xf32>
    %65 = arith.addf %63, %64 : vector<256x2xf32>
    %66 = vector.shape_cast %65 : vector<256x2xf32> to vector<16x16x2xf32>
    %67 = arith.truncf %66 : vector<16x16x2xf32> to vector<16x16x2xbf16>
    %c0_72 = arith.constant 0 : index
    %c0_73 = arith.constant 0 : index
    %c0_74 = arith.constant 0 : index
    %c0_75 = arith.constant 0 : index
    %68 = vector.load %arg6[%c0_72, %c0_73, %c0_74, %c0_75] : memref<1x16x16x2xbf16, #tpu.memory_space<vmem>>, vector<1x16x16x2xbf16>
    %69 = vector.shape_cast %68 : vector<1x16x16x2xbf16> to vector<16x16x2xbf16>
    %70 = vector.shape_cast %67 : vector<16x16x2xbf16> to vector<1x16x16x2xbf16>
    tpu.vector_store %arg6[%c0_72, %c0_73, %c0_74, %c0_75], %70 {strides = array<i32>} : memref<1x16x16x2xbf16, #tpu.memory_space<vmem>>, vector<1x16x16x2xbf16>,
    return
  }
  func.func @transform_0(%arg0: i32) -> (i32, i32, i32, i32) {
    %c0_i32 = arith.constant 0 : i32
    %c0_i32_0 = arith.constant 0 : i32
    %c0_i32_1 = arith.constant 0 : i32
    %c0_i32_2 = arith.constant 0 : i32
    return %arg0, %c0_i32, %c0_i32_0, %c0_i32_1 : i32, i32, i32, i32
  }
  func.func @transform_1(%arg0: i32) -> (i32, i32) {
    %c0_i32 = arith.constant 0 : i32
    %c0_i32_0 = arith.constant 0 : i32
    %c0_i32_1 = arith.constant 0 : i32
    return %c0_i32, %c0_i32_0 : i32, i32
  }
  func.func @transform_2(%arg0: i32) -> (i32, i32) {
    %c0_i32 = arith.constant 0 : i32
    %c0_i32_0 = arith.constant 0 : i32
    %c0_i32_1 = arith.constant 0 : i32
    return %c0_i32, %c0_i32_0 : i32, i32
  }
  func.func @transform_3(%arg0: i32) -> (i32, i32, i32) {
    %c0_i32 = arith.constant 0 : i32
    %c0_i32_0 = arith.constant 0 : i32
    %c0_i32_1 = arith.constant 0 : i32
    %c0_i32_2 = arith.constant 0 : i32
    return %c0_i32, %c0_i32_0, %c0_i32_1 : i32, i32, i32
  }
  func.func @transform_4(%arg0: i32) -> (i32, i32) {
    %c0_i32 = arith.constant 0 : i32
    %c0_i32_0 = arith.constant 0 : i32
    %c0_i32_1 = arith.constant 0 : i32
    return %c0_i32, %c0_i32_0 : i32, i32
  }
  func.func @transform_5(%arg0: i32) -> (i32, i32, i32, i32) {
    %c0_i32 = arith.constant 0 : i32
    %c0_i32_0 = arith.constant 0 : i32
    %c0_i32_1 = arith.constant 0 : i32
    %c0_i32_2 = arith.constant 0 : i32
    return %arg0, %c0_i32, %c0_i32_0, %c0_i32_1 : i32, i32, i32, i32
  }
}

module attributes {stable_mosaic.version = 11 : i64} {
  func.func @cv12_kernel(%arg0: i32, %arg1: memref<512x4xf32, #tpu.memory_space<vmem>>, %arg2: memref<4x4xbf16, #tpu.memory_space<vmem>>, %arg3: memref<1x4xf32, #tpu.memory_space<vmem>>, %arg4: memref<512x2xbf16, #tpu.memory_space<vmem>>, %arg5: memref<512x2xbf16, #tpu.memory_space<vmem>>) attributes {dimension_semantics = [#tpu.dimension_semantics<parallel>], iteration_bounds = array<i64: 1>, scalar_prefetch = 0 : i64, scratch_operands = 0 : i64, tpu.core_type = #tpu.core_type<tc>, window_params = [{transform_indices = @transform_0, window_bounds = array<i64: 512, 4>}, {pipeline_mode = #tpu.pipeline_mode<synchronous>, transform_indices = @transform_1, window_bounds = array<i64: 4, 4>}, {pipeline_mode = #tpu.pipeline_mode<synchronous>, transform_indices = @transform_2, window_bounds = array<i64: 1, 4>}, {transform_indices = @transform_3, window_bounds = array<i64: 512, 2>}, {transform_indices = @transform_4, window_bounds = array<i64: 512, 2>}]} {
    %c0 = arith.constant 0 : index
    %c0_0 = arith.constant 0 : index
    %0 = vector.load %arg1[%c0, %c0_0] : memref<512x4xf32, #tpu.memory_space<vmem>>, vector<512x4xf32>
    %1 = arith.truncf %0 : vector<512x4xf32> to vector<512x4xbf16>
    %c0_1 = arith.constant 0 : index
    %c0_2 = arith.constant 0 : index
    %2 = vector.load %arg2[%c0_1, %c0_2] : memref<4x4xbf16, #tpu.memory_space<vmem>>, vector<4x4xbf16>
    %cst = arith.constant dense<0.000000e+00> : vector<512x4xf32>
    %3 = tpu.matmul %1, %2, %cst {dimension_numbers = #tpu.dot_dimension_numbers<[1], [0], [0], [1], [0, 0, 1, 1], [], []>} : vector<512x4xbf16>, vector<4x4xbf16>, vector<512x4xf32> -> vector<512x4xf32>
    %c0_3 = arith.constant 0 : index
    %c0_4 = arith.constant 0 : index
    %4 = vector.load %arg3[%c0_3, %c0_4] : memref<1x4xf32, #tpu.memory_space<vmem>>, vector<1x4xf32>
    %5 = vector.broadcast %4 : vector<1x4xf32> to vector<512x4xf32>
    %6 = arith.addf %3, %5 : vector<512x4xf32>
    %7 = arith.negf %6 : vector<512x4xf32>
    %8 = math.exp %7 : vector<512x4xf32>
    %cst_5 = arith.constant 1.000000e+00 : f32
    %9 = vector.broadcast %cst_5 : f32 to vector<512x4xf32>
    %10 = arith.addf %9, %8 : vector<512x4xf32>
    %11 = arith.divf %9, %10 : vector<512x4xf32>
    %12 = arith.mulf %6, %11 : vector<512x4xf32>
    %13 = arith.truncf %12 : vector<512x4xf32> to vector<512x4xbf16>
    %14 = vector.extract_strided_slice %13 {offsets = [0, 0], sizes = [512, 2], strides = [1, 1]} : vector<512x4xbf16> to vector<512x2xbf16>
    %c0_6 = arith.constant 0 : index
    %c0_7 = arith.constant 0 : index
    %15 = vector.load %arg4[%c0_6, %c0_7] : memref<512x2xbf16, #tpu.memory_space<vmem>>, vector<512x2xbf16>
    tpu.vector_store %arg4[%c0_6, %c0_7], %14 {strides = array<i32>} : memref<512x2xbf16, #tpu.memory_space<vmem>>, vector<512x2xbf16>,
    %16 = vector.extract_strided_slice %13 {offsets = [0, 2], sizes = [512, 2], strides = [1, 1]} : vector<512x4xbf16> to vector<512x2xbf16>
    %c0_8 = arith.constant 0 : index
    %c0_9 = arith.constant 0 : index
    %17 = vector.load %arg5[%c0_8, %c0_9] : memref<512x2xbf16, #tpu.memory_space<vmem>>, vector<512x2xbf16>
    tpu.vector_store %arg5[%c0_8, %c0_9], %16 {strides = array<i32>} : memref<512x2xbf16, #tpu.memory_space<vmem>>, vector<512x2xbf16>,
    return
  }
  func.func @transform_0(%arg0: i32) -> (i32, i32) {
    %c0_i32 = arith.constant 0 : i32
    %c0_i32_0 = arith.constant 0 : i32
    return %arg0, %c0_i32 : i32, i32
  }
  func.func @transform_1(%arg0: i32) -> (i32, i32) {
    %c0_i32 = arith.constant 0 : i32
    %c0_i32_0 = arith.constant 0 : i32
    %c0_i32_1 = arith.constant 0 : i32
    return %c0_i32, %c0_i32_0 : i32, i32
  }
  func.func @transform_2(%arg0: i32) -> (i32, i32) {
    %c0_i32 = arith.constant 0 : i32
    %c0_i32_0 = arith.constant 0 : i32
    %c0_i32_1 = arith.constant 0 : i32
    return %c0_i32, %c0_i32_0 : i32, i32
  }
  func.func @transform_3(%arg0: i32) -> (i32, i32) {
    %c0_i32 = arith.constant 0 : i32
    %c0_i32_0 = arith.constant 0 : i32
    return %arg0, %c0_i32 : i32, i32
  }
  func.func @transform_4(%arg0: i32) -> (i32, i32) {
    %c0_i32 = arith.constant 0 : i32
    %c0_i32_0 = arith.constant 0 : i32
    return %arg0, %c0_i32 : i32, i32
  }
}

module attributes {stable_mosaic.version = 11 : i64} {
  func.func @cv3_kernel(%arg0: i32, %arg1: memref<512x2xbf16, #tpu.memory_space<vmem>>, %arg2: memref<512x2xbf16, #tpu.memory_space<vmem>>, %arg3: memref<2x4xbf16, #tpu.memory_space<vmem>>, %arg4: memref<2x4xbf16, #tpu.memory_space<vmem>>, %arg5: memref<1x4xf32, #tpu.memory_space<vmem>>, %arg6: memref<512x4xf32, #tpu.memory_space<vmem>>) attributes {dimension_semantics = [#tpu.dimension_semantics<parallel>], iteration_bounds = array<i64: 1>, scalar_prefetch = 0 : i64, scratch_operands = 0 : i64, tpu.core_type = #tpu.core_type<tc>, window_params = [{transform_indices = @transform_0, window_bounds = array<i64: 512, 2>}, {transform_indices = @transform_1, window_bounds = array<i64: 512, 2>}, {pipeline_mode = #tpu.pipeline_mode<synchronous>, transform_indices = @transform_2, window_bounds = array<i64: 2, 4>}, {pipeline_mode = #tpu.pipeline_mode<synchronous>, transform_indices = @transform_3, window_bounds = array<i64: 2, 4>}, {pipeline_mode = #tpu.pipeline_mode<synchronous>, transform_indices = @transform_4, window_bounds = array<i64: 1, 4>}, {transform_indices = @transform_5, window_bounds = array<i64: 512, 4>}]} {
    %c0 = arith.constant 0 : index
    %c0_0 = arith.constant 0 : index
    %0 = vector.load %arg1[%c0, %c0_0] : memref<512x2xbf16, #tpu.memory_space<vmem>>, vector<512x2xbf16>
    %c0_1 = arith.constant 0 : index
    %c0_2 = arith.constant 0 : index
    %1 = vector.load %arg3[%c0_1, %c0_2] : memref<2x4xbf16, #tpu.memory_space<vmem>>, vector<2x4xbf16>
    %cst = arith.constant dense<0.000000e+00> : vector<512x4xf32>
    %2 = tpu.matmul %0, %1, %cst {dimension_numbers = #tpu.dot_dimension_numbers<[1], [0], [0], [1], [0, 0, 1, 1], [], []>} : vector<512x2xbf16>, vector<2x4xbf16>, vector<512x4xf32> -> vector<512x4xf32>
    %c0_3 = arith.constant 0 : index
    %c0_4 = arith.constant 0 : index
    %3 = vector.load %arg2[%c0_3, %c0_4] : memref<512x2xbf16, #tpu.memory_space<vmem>>, vector<512x2xbf16>
    %c0_5 = arith.constant 0 : index
    %c0_6 = arith.constant 0 : index
    %4 = vector.load %arg4[%c0_5, %c0_6] : memref<2x4xbf16, #tpu.memory_space<vmem>>, vector<2x4xbf16>
    %cst_7 = arith.constant dense<0.000000e+00> : vector<512x4xf32>
    %5 = tpu.matmul %3, %4, %cst_7 {dimension_numbers = #tpu.dot_dimension_numbers<[1], [0], [0], [1], [0, 0, 1, 1], [], []>} : vector<512x2xbf16>, vector<2x4xbf16>, vector<512x4xf32> -> vector<512x4xf32>
    %6 = arith.addf %2, %5 : vector<512x4xf32>
    %c0_8 = arith.constant 0 : index
    %c0_9 = arith.constant 0 : index
    %7 = vector.load %arg5[%c0_8, %c0_9] : memref<1x4xf32, #tpu.memory_space<vmem>>, vector<1x4xf32>
    %8 = vector.broadcast %7 : vector<1x4xf32> to vector<512x4xf32>
    %9 = arith.addf %6, %8 : vector<512x4xf32>
    %10 = arith.negf %9 : vector<512x4xf32>
    %11 = math.exp %10 : vector<512x4xf32>
    %cst_10 = arith.constant 1.000000e+00 : f32
    %12 = vector.broadcast %cst_10 : f32 to vector<512x4xf32>
    %13 = arith.addf %12, %11 : vector<512x4xf32>
    %14 = arith.divf %12, %13 : vector<512x4xf32>
    %15 = arith.mulf %9, %14 : vector<512x4xf32>
    %c0_11 = arith.constant 0 : index
    %c0_12 = arith.constant 0 : index
    %16 = vector.load %arg6[%c0_11, %c0_12] : memref<512x4xf32, #tpu.memory_space<vmem>>, vector<512x4xf32>
    tpu.vector_store %arg6[%c0_11, %c0_12], %15 {strides = array<i32>} : memref<512x4xf32, #tpu.memory_space<vmem>>, vector<512x4xf32>,
    return
  }
  func.func @transform_0(%arg0: i32) -> (i32, i32) {
    %c0_i32 = arith.constant 0 : i32
    %c0_i32_0 = arith.constant 0 : i32
    return %arg0, %c0_i32 : i32, i32
  }
  func.func @transform_1(%arg0: i32) -> (i32, i32) {
    %c0_i32 = arith.constant 0 : i32
    %c0_i32_0 = arith.constant 0 : i32
    return %arg0, %c0_i32 : i32, i32
  }
  func.func @transform_2(%arg0: i32) -> (i32, i32) {
    %c0_i32 = arith.constant 0 : i32
    %c0_i32_0 = arith.constant 0 : i32
    %c0_i32_1 = arith.constant 0 : i32
    return %c0_i32, %c0_i32_0 : i32, i32
  }
  func.func @transform_3(%arg0: i32) -> (i32, i32) {
    %c0_i32 = arith.constant 0 : i32
    %c0_i32_0 = arith.constant 0 : i32
    %c0_i32_1 = arith.constant 0 : i32
    return %c0_i32, %c0_i32_0 : i32, i32
  }
  func.func @transform_4(%arg0: i32) -> (i32, i32) {
    %c0_i32 = arith.constant 0 : i32
    %c0_i32_0 = arith.constant 0 : i32
    %c0_i32_1 = arith.constant 0 : i32
    return %c0_i32, %c0_i32_0 : i32, i32
  }
  func.func @transform_5(%arg0: i32) -> (i32, i32) {
    %c0_i32 = arith.constant 0 : i32
    %c0_i32_0 = arith.constant 0 : i32
    return %arg0, %c0_i32 : i32, i32
  }
}

</mosaic_0001>

<bundles_post_ra>
// kernel: c3_forward.3
= control target key start
LH: loop header
LB: loop body
LE: loop exit
PB: predicated region body
PF: predicated region fallthrough
CT: control target
= control target key end

     0   :  { %vm218_vm0 = vcmask 1041408   ;;  %vm121_vm1 = vcmask 31744   ;;  %vm1215_vm2 = vcmask 11264   ;;  %s2130_s23 = smov 126   ;;  %s3498_s1 = inlined_call_operand.vmem [shape: bf16[4,4], index: 1, kind: input, shape index: {}]   ;;  %s3499_s0 = inlined_call_operand.vmem [shape: f32[512,4], index: 0, kind: input, shape index: {}]   ;;  %s3500_s2 = inlined_call_operand.vmem [shape: f32[1,4], index: 2, kind: input, shape index: {}]   ;;  %s3501_s3 = inlined_call_operand.vmem [shape: bf16[512,2], index: 3, kind: output, shape index: {0}]   ;;  %s3502_s4 = inlined_call_operand.vmem [shape: bf16[512,2], index: 4, kind: output, shape index: {1}]  }
   0x1   :  { %v113_v0 = vld [vmem:[%s3498_s1] sm:$0x3]  ;;  %v18_v2 = vld [vmem:[%s3499_s0 + $0x8] sm:$0xff]  ;;  %v19_v7 = vld [vmem:[%s3499_s0 + $0x10] sm:$0xff] }
   0x2   :  { %v17_v1 = vld [vmem:[%s3499_s0] sm:$0xff]  ;;  %1870 = vmatprep.subr.msk.bf16.mxu0 %vm218_vm0, %v113_v0  ;;  %1871 = vmatprep.subr.msk.bf16.mxu1 %vm218_vm0, %v113_v0  ;;  %v220_v3 = vsel %vm218_vm0, %v113_v0, 0  ;;  %v50_v6 = vld [vmem:[%s3499_s0 + $0x108] sm:$0xff]  ;;  %v20_v9 = vld [vmem:[%s3499_s0 + $0x18] sm:$0xff] }
   0x3   :  { %v81_v4 = vpack.c.bf16 %v18_v2, %v17_v1  ;;  %v49_v5 = vld [vmem:[%s3499_s0 + $0x100] sm:$0xff]  ;;  %1803 = vmatpush3.bf16.msra.mxu0 %v220_v3  ;;  %1869 = vmatpush3.bf16.msra.mxu1 %v220_v3  ;;  %v51_v10 = vld [vmem:[%s3499_s0 + $0x110] sm:$0xff]  ;;  %v52_v11 = vld [vmem:[%s3499_s0 + $0x118] sm:$0xff]  ;;  %v82_v12 = vpack.c.bf16 %v20_v9, %v19_v7 }
   0x4   :  { %v97_v8 = vpack.c.bf16 %v50_v6, %v49_v5  ;;  %v98_v13 = vpack.c.bf16 %v52_v11, %v51_v10  ;;  %v21_v14 = vld [vmem:[%s3499_s0 + $0x20] sm:$0xff]  ;;  %v22_v15 = vld [vmem:[%s3499_s0 + $0x28] sm:$0xff]  ;;  %v23_v20 = vld [vmem:[%s3499_s0 + $0x30] sm:$0xff] }
   0x5   :  { %1804 = vmatprep.mubr.msk.bf16.mxu0 %vm121_vm1, %v81_v4  ;;  %v53_v16 = vld [vmem:[%s3499_s0 + $0x120] sm:$0xff]  ;;  %v83_v17 = vpack.c.bf16 %v22_v15, %v21_v14  ;;  %v54_v18 = vld [vmem:[%s3499_s0 + $0x128] sm:$0xff]  ;;  %v24_v21 = vld [vmem:[%s3499_s0 + $0x38] sm:$0xff] }
   0x6   :  { %1836 = vmatprep.mubr.msk.bf16.mxu1 %vm121_vm1, %v97_v8  ;;  %1805 = vmatmul.mubr.msk.bf16.vlgmr.msra.gmra.mxu0 %vm121_vm1, %v82_v12  ;;  %v99_v19 = vpack.c.bf16 %v54_v18, %v53_v16  ;;  %v55_v22 = vld [vmem:[%s3499_s0 + $0x130] sm:$0xff]  ;;  %v56_v23 = vld [vmem:[%s3499_s0 + $0x138] sm:$0xff]  ;;  %v25_v24 = vld [vmem:[%s3499_s0 + $0x40] sm:$0xff]  ;;  %v84_v28 = vpack.c.bf16 %v24_v21, %v23_v20 }
   0x7   :  { %1837 = vmatmul.mubr.msk.bf16.vlgmr.msra.gmra.mxu1 %vm121_vm1, %v98_v13  ;;  %1808 = vmatprep.mubr.msk.bf16.mxu0 %vm121_vm1, %v83_v17  ;;  %v26_v25 = vld [vmem:[%s3499_s0 + $0x48] sm:$0xff]  ;;  %v57_v26 = vld [vmem:[%s3499_s0 + $0x140] sm:$0xff]  ;;  %v100_v29 = vpack.c.bf16 %v56_v23, %v55_v22  ;;  %v27_v32 = vld [vmem:[%s3499_s0 + $0x50] sm:$0xff] }
   0x8   :  { %1840 = vmatprep.mubr.msk.bf16.mxu1 %vm121_vm1, %v99_v19  ;;  %v58_v27 = vld [vmem:[%s3499_s0 + $0x148] sm:$0xff]  ;;  %v85_v30 = vpack.c.bf16 %v26_v25, %v25_v24  ;;  %v28_v33 = vld [vmem:[%s3499_s0 + $0x58] sm:$0xff]  ;;  %v59_v34 = vld [vmem:[%s3499_s0 + $0x150] sm:$0xff] }
   0x9   :  { %v101_v31 = vpack.c.bf16 %v58_v27, %v57_v26  ;;  %v60_v35 = vld [vmem:[%s3499_s0 + $0x158] sm:$0xff]  ;;  %v29_v36 = vld [vmem:[%s3499_s0 + $0x60] sm:$0xff]  ;;  %v30_v37 = vld [vmem:[%s3499_s0 + $0x68] sm:$0xff]  ;;  %v86_v40 = vpack.c.bf16 %v28_v33, %v27_v32 }
   0xa   :  { %v61_v38 = vld [vmem:[%s3499_s0 + $0x160] sm:$0xff]  ;;  %v62_v39 = vld [vmem:[%s3499_s0 + $0x168] sm:$0xff]  ;;  %v102_v41 = vpack.c.bf16 %v60_v35, %v59_v34  ;;  %v87_v42 = vpack.c.bf16 %v30_v37, %v29_v36  ;;  %v31_v44 = vld [vmem:[%s3499_s0 + $0x70] sm:$0xff] }
   0xb   :  { %v103_v43 = vpack.c.bf16 %v62_v39, %v61_v38  ;;  %v32_v45 = vld [vmem:[%s3499_s0 + $0x78] sm:$0xff]  ;;  %v63_v46 = vld [vmem:[%s3499_s0 + $0x170] sm:$0xff]  ;;  %v33_v48 = vld [vmem:[%s3499_s0 + $0x80] sm:$0xff] }
   0xc   :  { %v64_v47 = vld [vmem:[%s3499_s0 + $0x178] sm:$0xff]  ;;  %v34_v49 = vld [vmem:[%s3499_s0 + $0x88] sm:$0xff]  ;;  %v65_v50 = vld [vmem:[%s3499_s0 + $0x180] sm:$0xff]  ;;  %v88_v52 = vpack.c.bf16 %v32_v45, %v31_v44 }
   0xd   :  { %v66_v51 = vld [vmem:[%s3499_s0 + $0x188] sm:$0xff]  ;;  %v104_v53 = vpack.c.bf16 %v64_v47, %v63_v46  ;;  %v89_v54 = vpack.c.bf16 %v34_v49, %v33_v48  ;;  %v35_v56 = vld [vmem:[%s3499_s0 + $0x90] sm:$0xff]  ;;  %v36_v57 = vld [vmem:[%s3499_s0 + $0x98] sm:$0xff] }
   0xe   :  { %1809 = vmatmul.mubr.msk.bf16.gmra.mxu0 %vm121_vm1, %v84_v28  ;;  %v105_v55 = vpack.c.bf16 %v66_v51, %v65_v50  ;;  %v67_v58 = vld [vmem:[%s3499_s0 + $0x190] sm:$0xff]  ;;  %v68_v59 = vld [vmem:[%s3499_s0 + $0x198] sm:$0xff]  ;;  %v37_v60 = vld [vmem:[%s3499_s0 + $0xa0] sm:$0xff]  ;;  %v90_v0 = vpack.c.bf16 %v36_v57, %v35_v56 }
   0xf   :  { %1841 = vmatmul.mubr.msk.bf16.gmra.mxu1 %vm121_vm1, %v100_v29  ;;  %1812 = vmatprep.mubr.msk.bf16.mxu0 %vm121_vm1, %v85_v30  ;;  %v38_v61 = vld [vmem:[%s3499_s0 + $0xa8] sm:$0xff]  ;;  %v69_v62 = vld [vmem:[%s3499_s0 + $0x1a0] sm:$0xff]  ;;  %v106_v1 = vpack.c.bf16 %v68_v59, %v67_v58  ;;  %v39_v4 = vld [vmem:[%s3499_s0 + $0xb0] sm:$0xff] }
  0x10   :  { %1844 = vmatprep.mubr.msk.bf16.mxu1 %vm121_vm1, %v101_v31  ;;  %v70_v63 = vld [vmem:[%s3499_s0 + $0x1a8] sm:$0xff]  ;;  %v91_v2 = vpack.c.bf16 %v38_v61, %v37_v60  ;;  %v40_v5 = vld [vmem:[%s3499_s0 + $0xb8] sm:$0xff]  ;;  %v71_v6 = vld [vmem:[%s3499_s0 + $0x1b0] sm:$0xff] }
  0x11   :  { %v107_v3 = vpack.c.bf16 %v70_v63, %v69_v62  ;;  %v72_v7 = vld [vmem:[%s3499_s0 + $0x1b8] sm:$0xff]  ;;  %v41_v8 = vld [vmem:[%s3499_s0 + $0xc0] sm:$0xff]  ;;  %v42_v9 = vld [vmem:[%s3499_s0 + $0xc8] sm:$0xff]  ;;  %v92_v12 = vpack.c.bf16 %v40_v5, %v39_v4 }
  0x12   :  { %v73_v10 = vld [vmem:[%s3499_s0 + $0x1c0] sm:$0xff]  ;;  %v74_v11 = vld [vmem:[%s3499_s0 + $0x1c8] sm:$0xff]  ;;  %v108_v13 = vpack.c.bf16 %v72_v7, %v71_v6  ;;  %v93_v14 = vpack.c.bf16 %v42_v9, %v41_v8  ;;  %v43_v16 = vld [vmem:[%s3499_s0 + $0xd0] sm:$0xff] }
  0x13   :  { %v109_v15 = vpack.c.bf16 %v74_v11, %v73_v10  ;;  %v44_v17 = vld [vmem:[%s3499_s0 + $0xd8] sm:$0xff]  ;;  %v75_v18 = vld [vmem:[%s3499_s0 + $0x1d0] sm:$0xff]  ;;  %v45_v20 = vld [vmem:[%s3499_s0 + $0xe0] sm:$0xff] }
  0x14   :  { %v76_v19 = vld [vmem:[%s3499_s0 + $0x1d8] sm:$0xff]  ;;  %v46_v21 = vld [vmem:[%s3499_s0 + $0xe8] sm:$0xff]  ;;  %v77_v22 = vld [vmem:[%s3499_s0 + $0x1e0] sm:$0xff]  ;;  %v94_v24 = vpack.c.bf16 %v44_v17, %v43_v16 }
  0x15   :  { %v78_v23 = vld [vmem:[%s3499_s0 + $0x1e8] sm:$0xff]  ;;  %v110_v25 = vpack.c.bf16 %v76_v19, %v75_v18  ;;  %v95_v26 = vpack.c.bf16 %v46_v21, %v45_v20  ;;  %v47_v28 = vld [vmem:[%s3499_s0 + $0xf0] sm:$0xff]  ;;  %v48_v29 = vld [vmem:[%s3499_s0 + $0xf8] sm:$0xff] }
  0x16   :  { %1813 = vmatmul.mubr.msk.bf16.gmra.mxu0 %vm121_vm1, %v86_v40  ;;  %v111_v27 = vpack.c.bf16 %v78_v23, %v77_v22  ;;  %v79_v30 = vld [vmem:[%s3499_s0 + $0x1f0] sm:$0xff]  ;;  %v80_v31 = vld [vmem:[%s3499_s0 + $0x1f8] sm:$0xff]  ;;  %v96_v32 = vpack.c.bf16 %v48_v29, %v47_v28  ;;  %v2386_v34 = vld [vmem:[%s3500_s2] ss:$0 sm:$0xff] }
  0x17   :  { %1845 = vmatmul.mubr.msk.bf16.gmra.mxu1 %vm121_vm1, %v102_v41  ;;  %1816 = vmatprep.mubr.msk.bf16.mxu0 %vm121_vm1, %v87_v42  ;;  %v112_v33 = vpack.c.bf16 %v80_v31, %v79_v30 }
  0x18   :  { %1848 = vmatprep.mubr.msk.bf16.mxu1 %vm121_vm1, %v103_v43 }
  0x1e   :  { %1817 = vmatmul.mubr.msk.bf16.gmra.mxu0 %vm121_vm1, %v88_v52 }
  0x1f   :  { %1849 = vmatmul.mubr.msk.bf16.gmra.mxu1 %vm121_vm1, %v104_v53  ;;  %1820 = vmatprep.mubr.msk.bf16.mxu0 %vm121_vm1, %v89_v54 }
  0x20   :  { %1852 = vmatprep.mubr.msk.bf16.mxu1 %vm121_vm1, %v105_v55 }
  0x26   :  { %1821 = vmatmul.mubr.msk.bf16.gmra.mxu0 %vm121_vm1, %v90_v0 }
  0x27   :  { %1853 = vmatmul.mubr.msk.bf16.gmra.mxu1 %vm121_vm1, %v106_v1  ;;  %1824 = vmatprep.mubr.msk.bf16.mxu0 %vm121_vm1, %v91_v2 }
  0x28   :  { %1856 = vmatprep.mubr.msk.bf16.mxu1 %vm121_vm1, %v107_v3 }
  0x2e   :  { %1825 = vmatmul.mubr.msk.bf16.gmra.mxu0 %vm121_vm1, %v92_v12 }
  0x2f   :  { %1857 = vmatmul.mubr.msk.bf16.gmra.mxu1 %vm121_vm1, %v108_v13  ;;  %1828 = vmatprep.mubr.msk.bf16.mxu0 %vm121_vm1, %v93_v14 }
  0x30   :  { %1860 = vmatprep.mubr.msk.bf16.mxu1 %vm121_vm1, %v109_v15 }
  0x36   :  { %1829 = vmatmul.mubr.msk.bf16.gmra.mxu0 %vm121_vm1, %v94_v24 }
  0x37   :  { %1861 = vmatmul.mubr.msk.bf16.gmra.mxu1 %vm121_vm1, %v110_v25  ;;  %1832 = vmatprep.mubr.msk.bf16.mxu0 %vm121_vm1, %v95_v26 }
  0x38   :  { %1864 = vmatprep.mubr.msk.bf16.mxu1 %vm121_vm1, %v111_v27 }
  0x3e   :  { %1833 = vmatmul.mubr.msk.bf16.gmra.mxu0 %vm121_vm1, %v96_v32 }
  0x3f   :  { %1865 = vmatmul.mubr.msk.bf16.gmra.mxu1 %vm121_vm1, %v112_v33 }
  0xc6   :  { %v1806_v35 = vpop.f32.mrf.mxu0 }
  0xc7   :  { %v1838_v36 = vpop.f32.mrf.mxu1  ;;  %v2389_v37 = vadd.f32 %v1806_v35, %v2386_v34 }
  0xc8   :  { %v2392_v38 = vadd.f32 %v1838_v36, %v2386_v34  ;;  %v256_v39 = vpop.f32.mrf.mxu0 }
  0xc9   :  { %v384_v40 = vpop.f32.mrf.mxu1  ;;  %v1579_v41 = vmul.f32 -1.442695, %v2389_v37  ;;  %v2397_v43 = vadd.f32 %v2386_v34, %v256_v39 }
  0xca   :  { %v1611_v42 = vmul.f32 -1.442695, %v2392_v38  ;;  %v2400_v44 = vadd.f32 %v2386_v34, %v384_v40  ;;  %v1807_v45 = vpop.f32.mrf.mxu0 }
  0xcb   :  { %v1839_v46 = vpop.f32.mrf.mxu1  ;;  %1873 = vpow2.f32 %v1579_v41  ;;  %v1577_v47 = vmul.f32 -1.442695, %v2397_v43  ;;  %v2405_v49 = vadd.f32 %v1807_v45, %v2386_v34 }
  0xcc   :  { %v1609_v48 = vmul.f32 -1.442695, %v2400_v44  ;;  %1875 = vpow2.f32 %v1611_v42  ;;  %v2408_v50 = vadd.f32 %v1839_v46, %v2386_v34  ;;  %v259_v51 = vpop.f32.mrf.mxu0 }
  0xcd   :  { %v387_v52 = vpop.f32.mrf.mxu1  ;;  %1877 = vpow2.f32 %v1577_v47  ;;  %v1580_v53 = vmul.f32 -1.442695, %v2405_v49  ;;  %v2412_v54 = vadd.f32 %v2386_v34, %v259_v51 }
  0xce   :  { %v2415_v55 = vadd.f32 %v2386_v34, %v387_v52  ;;  %1879 = vpow2.f32 %v1609_v48  ;;  %v1612_v56 = vmul.f32 -1.442695, %v2408_v50  ;;  %v1810_v57 = vpop.f32.mrf.mxu0 }
  0xcf   :  { %v1842_v58 = vpop.f32.mrf.mxu1  ;;  %1881 = vpow2.f32 %v1580_v53  ;;  %v1578_v59 = vmul.f32 -1.442695, %v2412_v54  ;;  %v2421_v61 = vadd.f32 %v1810_v57, %v2386_v34 }
  0xd0   :  { %v1610_v60 = vmul.f32 -1.442695, %v2415_v55  ;;  %1883 = vpow2.f32 %v1612_v56  ;;  %v2424_v62 = vadd.f32 %v1842_v58, %v2386_v34  ;;  %v272_v63 = vpop.f32.mrf.mxu0 }
  0xd1   :  { %v400_v0 = vpop.f32.mrf.mxu1  ;;  %1885 = vpow2.f32 %v1578_v59  ;;  %v1583_v1 = vmul.f32 -1.442695, %v2421_v61  ;;  %v2428_v2 = vadd.f32 %v2386_v34, %v272_v63 }
  0xd2   :  { %v2431_v3 = vadd.f32 %v2386_v34, %v400_v0  ;;  %1887 = vpow2.f32 %v1610_v60  ;;  %v1615_v4 = vmul.f32 -1.442695, %v2424_v62  ;;  %v1811_v5 = vpop.f32.mrf.mxu0 }
  0xd3   :  { %v1843_v6 = vpop.f32.mrf.mxu1  ;;  %1889 = vpow2.f32 %v1583_v1  ;;  %v1581_v7 = vmul.f32 -1.442695, %v2428_v2  ;;  %v2437_v9 = vadd.f32 %v1811_v5, %v2386_v34 }
  0xd4   :  { %v1613_v8 = vmul.f32 -1.442695, %v2431_v3  ;;  %1891 = vpow2.f32 %v1615_v4  ;;  %v2440_v10 = vadd.f32 %v1843_v6, %v2386_v34  ;;  %v275_v11 = vpop.f32.mrf.mxu0 }
  0xd5   :  { %v403_v12 = vpop.f32.mrf.mxu1  ;;  %1893 = vpow2.f32 %v1581_v7  ;;  %v1584_v13 = vmul.f32 -1.442695, %v2437_v9  ;;  %v2444_v14 = vadd.f32 %v2386_v34, %v275_v11 }
  0xd6   :  { %v2447_v15 = vadd.f32 %v2386_v34, %v403_v12  ;;  %1895 = vpow2.f32 %v1613_v8  ;;  %v1616_v16 = vmul.f32 -1.442695, %v2440_v10  ;;  %v1814_v17 = vpop.f32.mrf.mxu0 }
  0xd7   :  { %v1846_v18 = vpop.f32.mrf.mxu1  ;;  %1897 = vpow2.f32 %v1584_v13  ;;  %v1582_v19 = vmul.f32 -1.442695, %v2444_v14  ;;  %v2453_v45 = vadd.f32 %v1814_v17, %v2386_v34 }
  0xd8   :  { %v1614_v20 = vmul.f32 -1.442695, %v2447_v15  ;;  %v1874_v21 = vpop.eup %1873  ;;  %1899 = vpow2.f32 %v1616_v16  ;;  %v288_v22 = vpop.f32.mrf.mxu0  ;;  %v2456_v51 = vadd.f32 %v1846_v18, %v2386_v34 }
  0xd9   :  { %v416_v23 = vpop.f32.mrf.mxu1  ;;  %v1876_v24 = vpop.eup %1875  ;;  %v705_v25 = vadd.f32 1.0, %v1874_v21  ;;  %1901 = vpow2.f32 %v1582_v19  ;;  %v2459_v56 = vadd.f32 %v2386_v34, %v288_v22  ;;  %v1587_v0 = vmul.f32 -1.442695, %v2453_v45 }
  0xda   :  { %v1878_v26 = vpop.eup %1877  ;;  %v737_v27 = vadd.f32 1.0, %v1876_v24  ;;  %1903 = vpow2.f32 %v1614_v20  ;;  %v1815_v28 = vpop.f32.mrf.mxu0  ;;  %v1619_v6 = vmul.f32 -1.442695, %v2456_v51  ;;  %v2464_v7 = vadd.f32 %v2386_v34, %v416_v23 }
  0xdb   :  { %v1847_v29 = vpop.f32.mrf.mxu1  ;;  %v1880_v30 = vpop.eup %1879  ;;  %1905 = vrcp.f32 %v705_v25  ;;  %v703_v31 = vadd.f32 1.0, %v1878_v26  ;;  %v1585_v12 = vmul.f32 -1.442695, %v2459_v56  ;;  %v2468_v13 = vadd.f32 %v1815_v28, %v2386_v34 }
  0xdc   :  { %v1882_v32 = vpop.eup %1881  ;;  %1907 = vrcp.f32 %v737_v27  ;;  %v735_v33 = vadd.f32 1.0, %v1880_v30  ;;  %v291_v35 = vpop.f32.mrf.mxu0  ;;  %v2471_v18 = vadd.f32 %v1847_v29, %v2386_v34 }
  0xdd   :  { %v1884_v36 = vpop.eup %1883  ;;  %1909 = vrcp.f32 %v703_v31  ;;  %v706_v39 = vadd.f32 1.0, %v1882_v32  ;;  %v419_v40 = vpop.f32.mrf.mxu1  ;;  %v2474_v19 = vadd.f32 %v2386_v34, %v291_v35  ;;  %v1617_v32 = vmul.f32 -1.442695, %v2464_v7 }
  0xde   :  { %v1886_v41 = vpop.eup %1885  ;;  %1911 = vrcp.f32 %v735_v33  ;;  %v738_v42 = vadd.f32 1.0, %v1884_v36  ;;  %v1818_v46 = vpop.f32.mrf.mxu0  ;;  %v2477_v23 = vadd.f32 %v2386_v34, %v419_v40  ;;  %v1588_v36 = vmul.f32 -1.442695, %v2468_v13 }
  0xdf   :  { %v1888_v47 = vpop.eup %1887  ;;  %1913 = vrcp.f32 %v706_v39  ;;  %v704_v48 = vadd.f32 1.0, %v1886_v41  ;;  %v1850_v59 = vpop.f32.mrf.mxu1  ;;  %v2480_v24 = vadd.f32 %v1818_v46, %v2386_v34  ;;  %v1620_v39 = vmul.f32 -1.442695, %v2471_v18 }
  0xe0   :  { %v1890_v52 = vpop.eup %1889  ;;  %1915 = vrcp.f32 %v738_v42  ;;  %v736_v53 = vadd.f32 1.0, %v1888_v47  ;;  %v304_v1 = vpop.f32.mrf.mxu0  ;;  %v2483_v28 = vadd.f32 %v1850_v59, %v2386_v34  ;;  %v1586_v46 = vmul.f32 -1.442695, %v2474_v19 }
  0xe1   :  { %v1892_v57 = vpop.eup %1891  ;;  %1917 = vrcp.f32 %v704_v48  ;;  %v709_v58 = vadd.f32 1.0, %v1890_v52  ;;  %v432_v20 = vpop.f32.mrf.mxu1  ;;  %v2486_v29 = vadd.f32 %v2386_v34, %v304_v1  ;;  %v1618_v47 = vmul.f32 -1.442695, %v2477_v23 }
  0xe2   :  { %v1894_v60 = vpop.eup %1893  ;;  %1919 = vrcp.f32 %v736_v53  ;;  %v741_v63 = vadd.f32 1.0, %v1892_v57  ;;  %v1819_v25 = vpop.f32.mrf.mxu0  ;;  %v2490_v33 = vadd.f32 %v2386_v34, %v432_v20  ;;  %v1591_v48 = vmul.f32 -1.442695, %v2480_v24 }
  0xe3   :  { %v1896_v4 = vpop.eup %1895  ;;  %1921 = vrcp.f32 %v709_v58  ;;  %v707_v5 = vadd.f32 1.0, %v1894_v60  ;;  %v2495_v40 = vadd.f32 %v1819_v25, %v2386_v34  ;;  %v1851_v41 = vpop.f32.mrf.mxu1  ;;  %v1623_v57 = vmul.f32 -1.442695, %v2483_v28 }
  0xe4   :  { %v1898_v8 = vpop.eup %1897  ;;  %1923 = vrcp.f32 %v741_v63  ;;  %v739_v11 = vadd.f32 1.0, %v1896_v4  ;;  %v2503_v58 = vmul.f32 -1.442695, %v2486_v29  ;;  %v307_v59 = vpop.f32.mrf.mxu0  ;;  %v2507_v1 = vmul.f32 -1.442695, %v2490_v33 }
  0xe5   :  { %v1900_v16 = vpop.eup %1899  ;;  %1925 = vrcp.f32 %v707_v5  ;;  %v710_v17 = vadd.f32 1.0, %v1898_v8  ;;  %v2510_v4 = vadd.f32 %v1851_v41, %v2386_v34 }
  0xe6   :  { %v1902_v21 = vpop.eup %1901  ;;  %1927 = vrcp.f32 %v739_v11  ;;  %v742_v22 = vadd.f32 1.0, %v1900_v16 }
  0xe7   :  { %v1904_v26 = vpop.eup %1903  ;;  %1929 = vrcp.f32 %v710_v17  ;;  %v708_v27 = vadd.f32 1.0, %v1902_v21  ;;  %v2531_v21 = vadd.f32 %v2386_v34, %v307_v59  ;;  %v1624_v41 = vmul.f32 -1.442695, %v2510_v4 }
  0xe8   :  { %v1906_v30 = vpop.eup %1905  ;;  %1931 = vrcp.f32 %v742_v22  ;;  %v740_v31 = vadd.f32 1.0, %v1904_v26 }
  0xe9   :  { %v1908_v35 = vpop.eup %1907  ;;  %1933 = vrcp.f32 %v708_v27 }
  0xea   :  { %v1910_v42 = vpop.eup %1909  ;;  %1935 = vrcp.f32 %v740_v31  ;;  %v929_v17 = vmul.f32 %v1908_v35, %v2392_v38 }
  0xeb   :  { %v1912_v52 = vpop.eup %1911  ;;  %v895_v53 = vmul.f32 %v1910_v42, %v2397_v43  ;;  %1937 = vpow2.f32 %v1587_v0  ;;  %v2516_v0 = vmul.f32 -1.442695, %v2495_v40 }
  0xec   :  { %v1914_v60 = vpop.eup %1913  ;;  %v927_v63 = vmul.f32 %v1912_v52, %v2400_v44  ;;  %1939 = vpow2.f32 %v1619_v6  ;;  %v435_v6 = vpop.f32.mrf.mxu1 }
  0xed   :  { %v1916_v5 = vpop.eup %1915  ;;  %v2512_v8 = vpack.c.bf16 %v895_v53, %v895_v53  ;;  %v898_v43 = vmul.f32 %v1914_v60, %v2405_v49  ;;  %1941 = vpow2.f32 %v1585_v12  ;;  %v1590_v53 = vmul.f32 -1.442695, %v2531_v21 }
  0xee   :  { %v1918_v11 = vpop.eup %1917  ;;  %v2518_v16 = vpack.c.bf16 %v927_v63, %v927_v63  ;;  %v930_v44 = vmul.f32 %v1916_v5, %v2408_v50  ;;  %1943 = vpow2.f32 %v1617_v32  ;;  %v2533_v50 = vpop.f32.mrf.mxu0  ;;  %v2553_v32 = vadd.f32 %v2386_v34, %v435_v6 }
  0xef   :  { %v1920_v20 = vpop.eup %1919  ;;  %1216 = vst.msk [vmem:[%s3501_s3] sm:$0xf] %vm1215_vm2, %v2512_v8  ;;  %v2527_v49 = vpack.c.bf16 %v898_v43, %v898_v43  ;;  %v896_v12 = vmul.f32 %v1918_v11, %v2412_v54  ;;  %1945 = vpow2.f32 %v1588_v36  ;;  %v897_v54 = vmul.f32 %v1906_v30, %v2389_v37 }
  0xf0   :  { %v1922_v22 = vpop.eup %1921  ;;  %1248 = vst.msk [vmem:[%s3501_s3 + $0x80] sm:$0xf] %vm1215_vm2, %v2518_v16  ;;  %v2540_v38 = vpack.c.bf16 %v930_v44, %v930_v44  ;;  %v928_v25 = vmul.f32 %v1920_v20, %v2415_v55  ;;  %1947 = vpow2.f32 %v1620_v39  ;;  %v1739_v30 = vpack.c.bf16 %v929_v17, %v929_v17  ;;  %v2572_v42 = vpop.f32.mrf.mxu0 }
  0xf1   :  { %v1924_v26 = vpop.eup %1923  ;;  %1219 = vst.msk [vmem:[%s3501_s3 + $0xc] sm:$0xf] %vm1215_vm2, %v2527_v49  ;;  %v2549_v27 = vpack.c.bf16 %v896_v12, %v896_v12  ;;  %v901_v31 = vmul.f32 %v1922_v22, %v2421_v61  ;;  %1949 = vpow2.f32 %v1586_v46 }
  0xf2   :  { %v1926_v35 = vpop.eup %1925  ;;  %1251 = vst.msk [vmem:[%s3501_s3 + $0x8c] sm:$0xf] %vm1215_vm2, %v2540_v38  ;;  %v2560_v37 = vpack.c.bf16 %v928_v25, %v928_v25  ;;  %v933_v55 = vmul.f32 %v1924_v26, %v2424_v62  ;;  %1951 = vpow2.f32 %v1618_v47  ;;  %1348 = vrot.lane.b32.xlu0 %v1739_v30, %s2130_s23  ;;  %1250 = vst.msk [vmem:[%s3501_s3 + $0x88] sm:$0xf] %vm1215_vm2, %v1739_v30 }
  0xf3   :  { %v1928_v36 = vpop.eup %1927  ;;  %1217 = vst.msk [vmem:[%s3501_s3 + $0x4] sm:$0xf] %vm1215_vm2, %v2549_v27  ;;  %v2568_v61 = vpack.c.bf16 %v901_v31, %v901_v31  ;;  %v899_v39 = vmul.f32 %v1926_v35, %v2428_v2  ;;  %1953 = vpow2.f32 %v1591_v48  ;;  %v1707_v2 = vpack.c.bf16 %v897_v54, %v897_v54 }
  0xf4   :  { %v1930_v46 = vpop.eup %1929  ;;  %1249 = vst.msk [vmem:[%s3501_s3 + $0x84] sm:$0xf] %vm1215_vm2, %v2560_v37  ;;  %v2579_v62 = vpack.c.bf16 %v933_v55, %v933_v55  ;;  %v931_v47 = vmul.f32 %v1928_v36, %v2431_v3  ;;  %1955 = vpow2.f32 %v1623_v57  ;;  %v1854_v57 = vpop.f32.mrf.mxu1  ;;  %v2661_v36 = vadd.f32 %v2533_v50, %v2386_v34 }
  0xf5   :  { %v1932_v48 = vpop.eup %1931  ;;  %1222 = vst.msk [vmem:[%s3501_s3 + $0x18] sm:$0xf] %vm1215_vm2, %v2568_v61  ;;  %v2592_v52 = vpack.c.bf16 %v899_v39, %v899_v39  ;;  %v902_v3 = vmul.f32 %v1930_v46, %v2437_v9  ;;  %1957 = vpow2.f32 %v2503_v58  ;;  %v1622_v9 = vmul.f32 -1.442695, %v2553_v32  ;;  %1284 = vrot.lane.b32.xlu1 %v1707_v2, %s2130_s23  ;;  %1218 = vst.msk [vmem:[%s3501_s3 + $0x8] sm:$0xf] %vm1215_vm2, %v1707_v2 }
  0xf6   :  { %v1934_v59 = vpop.eup %1933  ;;  %1254 = vst.msk [vmem:[%s3501_s3 + $0x98] sm:$0xf] %vm1215_vm2, %v2579_v62  ;;  %v2602_v60 = vpack.c.bf16 %v931_v47, %v931_v47  ;;  %v934_v63 = vmul.f32 %v1932_v48, %v2440_v10  ;;  %1959 = vpow2.f32 %v2507_v1  ;;  %v1823_v1 = vpop.f32.mrf.mxu0  ;;  %1280 = vrot.lane.b32.xlu0 %v2512_v8, %s2130_s23  ;;  %v2666_v2 = vadd.f32 %v1854_v57, %v2386_v34 }
  0xf7   :  { %v1936_v58 = vpop.eup %1935  ;;  %1220 = vst.msk [vmem:[%s3501_s3 + $0x10] sm:$0xf] %vm1215_vm2, %v2592_v52  ;;  %v2617_v5 = vpack.c.bf16 %v902_v3, %v902_v3  ;;  %v900_v10 = vmul.f32 %v1934_v59, %v2444_v14  ;;  %1961 = vpow2.f32 %v2516_v0  ;;  %v448_v17 = vpop.f32.mrf.mxu1  ;;  %v2672_v3 = vadd.f32 %v2386_v34, %v2572_v42 }
  0xf8   :  { %v1938_v43 = vpop.eup %1937  ;;  %1252 = vst.msk [vmem:[%s3501_s3 + $0x90] sm:$0xf] %vm1215_vm2, %v2602_v60  ;;  %v2626_v11 = vpack.c.bf16 %v934_v63, %v934_v63  ;;  %v932_v44 = vmul.f32 %v1936_v58, %v2447_v15  ;;  %1963 = vpow2.f32 %v1624_v41  ;;  %v323_v25 = vpop.f32.mrf.mxu0  ;;  %v1595_v63 = vmul.f32 -1.442695, %v2661_v36 }
  0xf9   :  { %v1940_v6 = vpop.eup %1939  ;;  %1223 = vst.msk [vmem:[%s3501_s3 + $0x1c] sm:$0xf] %vm1215_vm2, %v2617_v5  ;;  %v2636_v14 = vpack.c.bf16 %v900_v10, %v900_v10  ;;  %v713_v0 = vadd.f32 1.0, %v1938_v43  ;;  %1965 = vpow2.f32 %v1590_v53  ;;  %1286 = vrot.lane.b32.xlu1 %v2527_v49, %s2130_s23  ;;  %v1855_v35 = vpop.f32.mrf.mxu1  ;;  %v2681_v58 = vadd.f32 %v1823_v1, %v2386_v34 }
  0xfa   :  { %v1942_v20 = vpop.eup %1941  ;;  %1255 = vst.msk [vmem:[%s3501_s3 + $0x9c] sm:$0xf] %vm1215_vm2, %v2626_v11  ;;  %v2643_v15 = vpack.c.bf16 %v932_v44, %v932_v44  ;;  %v745_v8 = vadd.f32 1.0, %v1940_v6  ;;  %1967 = vpow2.f32 %v1622_v9  ;;  %1344 = vrot.lane.b32.xlu0 %v2518_v16, %s2130_s23  ;;  %v1826_v46 = vpop.f32.mrf.mxu0  ;;  %v1627_v6 = vmul.f32 -1.442695, %v2666_v2 }
  0xfb   :  { %v1944_v12 = vpop.eup %1943  ;;  %1221 = vst.msk [vmem:[%s3501_s3 + $0x14] sm:$0xf] %vm1215_vm2, %v2636_v14  ;;  %1969 = vrcp.f32 %v713_v0  ;;  %v711_v22 = vadd.f32 1.0, %v1942_v20  ;;  %v2685_v0 = vadd.f32 %v1855_v35, %v2386_v34  ;;  %v1593_v20 = vmul.f32 -1.442695, %v2672_v3 }
  0xfc   :  { %v1946_v54 = vpop.eup %1945  ;;  %1253 = vst.msk [vmem:[%s3501_s3 + $0x94] sm:$0xf] %vm1215_vm2, %v2643_v15  ;;  %1971 = vrcp.f32 %v745_v8  ;;  %v743_v26 = vadd.f32 1.0, %v1944_v12  ;;  %v336_v42 = vpop.f32.mrf.mxu0  ;;  %v2691_v1 = vadd.f32 %v2386_v34, %v323_v25  ;;  %v1596_v25 = vmul.f32 -1.442695, %v2681_v58 }
  0xfd   :  { %v1948_v49 = vpop.eup %1947  ;;  %1973 = vrcp.f32 %v711_v22  ;;  %v714_v31 = vadd.f32 1.0, %v1946_v54  ;;  %1350 = vrot.lane.b32.xlu1 %v2540_v38, %s2130_s23  ;;  %v451_v38 = vpop.f32.mrf.mxu1  ;;  %v2697_v54 = vadd.f32 %v1826_v46, %v2386_v34 }
  0xfe   :  { %v1950_v55 = vpop.eup %1949  ;;  %1975 = vrcp.f32 %v743_v26  ;;  %v746_v30 = vadd.f32 1.0, %v1948_v49  ;;  %1282 = vrot.lane.b32.xlu0 %v2549_v27, %s2130_s23  ;;  %v2678_v27 = vadd.f32 %v2386_v34, %v448_v17  ;;  %v2694_v22 = vadd.f32 %v2386_v34, %v451_v38 }
  0xff   :  { %v1952_v39 = vpop.eup %1951  ;;  %1977 = vrcp.f32 %v714_v31  ;;  %v712_v41 = vadd.f32 1.0, %v1950_v55  ;;  %v1858_v10 = vpop.f32.mrf.mxu1 }
 0x100   :  { %v1954_v47 = vpop.eup %1953  ;;  %1979 = vrcp.f32 %v746_v30  ;;  %v744_v16 = vadd.f32 1.0, %v1952_v39  ;;  %v1625_v49 = vmul.f32 -1.442695, %v2678_v27  ;;  %v1827_v31 = vpop.f32.mrf.mxu0  ;;  %v1628_v39 = vmul.f32 -1.442695, %v2685_v0 }
 0x101   :  { %v1956_v48 = vpop.eup %1955  ;;  %1981 = vrcp.f32 %v712_v41  ;;  %v717_v50 = vadd.f32 1.0, %v1954_v47  ;;  %1346 = vrot.lane.b32.xlu1 %v2560_v37, %s2130_s23  ;;  %v464_v35 = vpop.f32.mrf.mxu1  ;;  %v2705_v41 = vadd.f32 %v2386_v34, %v336_v42  ;;  %v1594_v47 = vmul.f32 -1.442695, %v2691_v1 }
 0x102   :  { %v1958_v53 = vpop.eup %1957  ;;  %1983 = vrcp.f32 %v744_v16  ;;  %v749_v59 = vadd.f32 1.0, %v1956_v48  ;;  %1292 = vrot.lane.b32.xlu0 %v2568_v61, %s2130_s23  ;;  %v2712_v16 = vadd.f32 %v1858_v10, %v2386_v34  ;;  %v1626_v38 = vmul.f32 -1.442695, %v2694_v22 }
 0x103   :  { %v1960_v57 = vpop.eup %1959  ;;  %1985 = vrcp.f32 %v717_v50  ;;  %v715_v9 = vadd.f32 1.0, %v1958_v53  ;;  %v1599_v53 = vmul.f32 -1.442695, %v2697_v54  ;;  %v1859_v42 = vpop.f32.mrf.mxu1 }
 0x104   :  { %v1962_v43 = vpop.eup %1961  ;;  %1987 = vrcp.f32 %v749_v59  ;;  %v747_v44 = vadd.f32 1.0, %v1960_v57  ;;  %v2723_v57 = vadd.f32 %v1827_v31, %v2386_v34 }
 0x105   :  { %v1964_v37 = vpop.eup %1963  ;;  %1989 = vrcp.f32 %v715_v9  ;;  %v718_v17 = vadd.f32 1.0, %v1962_v43  ;;  %1294 = vrot.lane.b32.xlu1 %v2617_v5, %s2130_s23  ;;  %v339_v9 = vpop.f32.mrf.mxu0 }
 0x106   :  { %v1966_v8 = vpop.eup %1965  ;;  %1991 = vrcp.f32 %v747_v44  ;;  %v750_v12 = vadd.f32 1.0, %v1964_v37  ;;  %1356 = vrot.lane.b32.xlu0 %v2579_v62, %s2130_s23  ;;  %v1597_v44 = vmul.f32 -1.442695, %v2705_v41  ;;  %v2771_v31 = vadd.f32 %v2386_v34, %v339_v9 }
 0x107   :  { %v1968_v61 = vpop.eup %1967  ;;  %1993 = vrcp.f32 %v718_v17  ;;  %v716_v26 = vadd.f32 1.0, %v1966_v8  ;;  %v2751_v8 = vadd.f32 %v2386_v34, %v464_v35 }
 0x108   :  { %v1970_v55 = vpop.eup %1969  ;;  %1995 = vrcp.f32 %v750_v12  ;;  %v748_v30 = vadd.f32 1.0, %v1968_v61  ;;  %v467_v61 = vpop.f32.mrf.mxu1 }
 0x109   :  { %v1972_v5 = vpop.eup %1971  ;;  %v905_v46 = vmul.f32 %v1970_v55, %v2453_v45  ;;  %1997 = vrcp.f32 %v716_v26  ;;  %1358 = vrot.lane.b32.xlu1 %v2626_v11, %s2130_s23 }
 0x10a   :  { %v1974_v48 = vpop.eup %1973  ;;  %v937_v50 = vmul.f32 %v1972_v5, %v2456_v51  ;;  %1999 = vrcp.f32 %v748_v30  ;;  %1288 = vrot.lane.b32.xlu0 %v2592_v52, %s2130_s23  ;;  %v2831_v9 = vpop.f32.mrf.mxu1 }
 0x10b   :  { %v1976_v62 = vpop.eup %1975  ;;  %v2719_v59 = vpack.c.bf16 %v905_v46, %v905_v46  ;;  %v903_v45 = vmul.f32 %v1974_v48, %v2459_v56  ;;  %2001 = vpow2.f32 %v1595_v63 }
 0x10c   :  { %v1978_v51 = vpop.eup %1977  ;;  %v2725_v10 = vpack.c.bf16 %v937_v50, %v937_v50  ;;  %v935_v43 = vmul.f32 %v1976_v62, %v2464_v7  ;;  %2003 = vpow2.f32 %v1627_v6  ;;  %v1631_v7 = vmul.f32 -1.442695, %v2712_v16  ;;  %v2740_v6 = vpop.f32.mrf.mxu0 }
 0x10d   :  { %v1980_v11 = vpop.eup %1979  ;;  %1226 = vst.msk [vmem:[%s3501_s3 + $0x28] sm:$0xf] %vm1215_vm2, %v2719_v59  ;;  %v2736_v56 = vpack.c.bf16 %v903_v45, %v903_v45  ;;  %v906_v63 = vmul.f32 %v1978_v51, %v2468_v13  ;;  %2005 = vpow2.f32 %v1593_v20  ;;  %1290 = vrot.lane.b32.xlu1 %v2636_v14, %s2130_s23 }
 0x10e   :  { %v1982_v37 = vpop.eup %1981  ;;  %1258 = vst.msk [vmem:[%s3501_s3 + $0xa8] sm:$0xf] %vm1215_vm2, %v2725_v10  ;;  %v2747_v52 = vpack.c.bf16 %v935_v43, %v935_v43  ;;  %v938_v17 = vmul.f32 %v1980_v11, %v2471_v18  ;;  %2007 = vpow2.f32 %v1625_v49  ;;  %v1600_v18 = vmul.f32 -1.442695, %v2723_v57  ;;  %1352 = vrot.lane.b32.xlu0 %v2602_v60, %s2130_s23  ;;  %v2785_v55 = vpop.f32.mrf.mxu0 }
 0x10f   :  { %v1984_v13 = vpop.eup %1983  ;;  %1224 = vst.msk [vmem:[%s3501_s3 + $0x20] sm:$0xf] %vm1215_vm2, %v2736_v56  ;;  %v1716_v20 = vpack.c.bf16 %v906_v63, %v906_v63  ;;  %v904_v12 = vmul.f32 %v1982_v37, %v2474_v19  ;;  %2009 = vpow2.f32 %v1596_v25 }
 0x110   :  { %v1986_v26 = vpop.eup %1985  ;;  %1256 = vst.msk [vmem:[%s3501_s3 + $0xa0] sm:$0xf] %vm1215_vm2, %v2747_v52  ;;  %v2767_v14 = vpack.c.bf16 %v938_v17, %v938_v17  ;;  %v936_v49 = vmul.f32 %v1984_v13, %v2477_v23  ;;  %2011 = vpow2.f32 %v1628_v39  ;;  %v2783_v23 = vadd.f32 %v1859_v42, %v2386_v34  ;;  %v2829_v45 = vpop.f32.mrf.mxu0 }
 0x111   :  { %v1988_v19 = vpop.eup %1987  ;;  %1227 = vst.msk [vmem:[%s3501_s3 + $0x2c] sm:$0xf] %vm1215_vm2, %v1716_v20  ;;  %v2779_v25 = vpack.c.bf16 %v904_v12, %v904_v12  ;;  %v909_v35 = vmul.f32 %v1986_v26, %v2480_v24  ;;  %2013 = vpow2.f32 %v1594_v47  ;;  %v2796_v24 = vadd.f32 %v2386_v34, %v467_v61  ;;  %1354 = vrot.lane.b32.xlu1 %v2643_v15, %s2130_s23 }
 0x112   :  { %v1990_v30 = vpop.eup %1989  ;;  %1259 = vst.msk [vmem:[%s3501_s3 + $0xac] sm:$0xf] %vm1215_vm2, %v2767_v14  ;;  %v2792_v60 = vpack.c.bf16 %v936_v49, %v936_v49  ;;  %v941_v39 = vmul.f32 %v1988_v19, %v2483_v28  ;;  %2015 = vpow2.f32 %v1626_v38  ;;  %v1629_v28 = vmul.f32 -1.442695, %v2751_v8  ;;  %1300 = vrot.lane.b32.xlu0 %v2719_v59, %s2130_s23  ;;  %v355_v13 = vpop.f32.mrf.mxu0 }
 0x113   :  { %v1992_v5 = vpop.eup %1991  ;;  %1225 = vst.msk [vmem:[%s3501_s3 + $0x24] sm:$0xf] %vm1215_vm2, %v2779_v25  ;;  %v2805_v46 = vpack.c.bf16 %v909_v35, %v909_v35  ;;  %v907_v47 = vmul.f32 %v1990_v30, %v2486_v29  ;;  %2017 = vpow2.f32 %v1599_v53  ;;  %v1598_v38 = vmul.f32 -1.442695, %v2771_v31 }
 0x114   :  { %v1994_v48 = vpop.eup %1993  ;;  %1257 = vst.msk [vmem:[%s3501_s3 + $0xa4] sm:$0xf] %vm1215_vm2, %v2792_v60  ;;  %v2814_v15 = vpack.c.bf16 %v941_v39, %v941_v39  ;;  %v939_v50 = vmul.f32 %v1992_v5, %v2490_v33  ;;  %2019 = vpow2.f32 %v1597_v44  ;;  %v1632_v33 = vmul.f32 -1.442695, %v2783_v23  ;;  %v2882_v26 = vpop.f32.mrf.mxu0 }
 0x115   :  { %v1996_v29 = vpop.eup %1995  ;;  %1230 = vst.msk [vmem:[%s3501_s3 + $0x38] sm:$0xf] %vm1215_vm2, %v2805_v46  ;;  %v2825_v53 = vpack.c.bf16 %v907_v47, %v907_v47  ;;  %v910_v62 = vmul.f32 %v1994_v48, %v2495_v40  ;;  %2021 = vpow2.f32 %v1631_v7  ;;  %v1630_v40 = vmul.f32 -1.442695, %v2796_v24  ;;  %1302 = vrot.lane.b32.xlu1 %v1716_v20, %s2130_s23  ;;  %v480_v20 = vpop.f32.mrf.mxu1 }
 0x116   :  { %v1998_v42 = vpop.eup %1997  ;;  %1262 = vst.msk [vmem:[%s3501_s3 + $0xb8] sm:$0xf] %vm1215_vm2, %v2814_v15  ;;  %v2838_v59 = vpack.c.bf16 %v939_v50, %v939_v50  ;;  %v942_v51 = vmul.f32 %v1996_v29, %v2510_v4  ;;  %2023 = vpow2.f32 %v1600_v18  ;;  %1364 = vrot.lane.b32.xlu0 %v2725_v10, %s2130_s23  ;;  %v2895_v48 = vadd.f32 %v2740_v6, %v2386_v34  ;;  %v368_v50 = vpop.f32.mrf.mxu0 }
 0x117   :  { %v2000_v43 = vpop.eup %1999  ;;  %1228 = vst.msk [vmem:[%s3501_s3 + $0x30] sm:$0xf] %vm1215_vm2, %v2825_v53  ;;  %v2848_v44 = vpack.c.bf16 %v910_v62, %v910_v62  ;;  %v908_v11 = vmul.f32 %v1998_v42, %v2531_v21  ;;  %2025 = vpow2.f32 %v1629_v28  ;;  %v1863_v30 = vpop.f32.mrf.mxu1  ;;  %v2899_v29 = vadd.f32 %v2386_v34, %v2785_v55 }
 0x118   :  { %v2002_v63 = vpop.eup %2001  ;;  %1260 = vst.msk [vmem:[%s3501_s3 + $0xb0] sm:$0xf] %vm1215_vm2, %v2838_v59  ;;  %v2856_v4 = vpack.c.bf16 %v942_v51, %v942_v51  ;;  %v940_v7 = vmul.f32 %v2000_v43, %v2553_v32  ;;  %2027 = vpow2.f32 %v1598_v38  ;;  %v1603_v43 = vmul.f32 -1.442695, %v2895_v48 }
 0x119   :  { %v2004_v37 = vpop.eup %2003  ;;  %1231 = vst.msk [vmem:[%s3501_s3 + $0x3c] sm:$0xf] %vm1215_vm2, %v2848_v44  ;;  %v2866_v21 = vpack.c.bf16 %v908_v11, %v908_v11  ;;  %v721_v17 = vadd.f32 1.0, %v2002_v63  ;;  %2029 = vpow2.f32 %v1632_v33  ;;  %1366 = vrot.lane.b32.xlu1 %v2767_v14, %s2130_s23  ;;  %v2905_v33 = vadd.f32 %v2829_v45, %v2386_v34  ;;  %v483_v6 = vpop.f32.mrf.mxu1 }
 0x11a   :  { %v2006_v12 = vpop.eup %2005  ;;  %1263 = vst.msk [vmem:[%s3501_s3 + $0xbc] sm:$0xf] %vm1215_vm2, %v2856_v4  ;;  %v2873_v32 = vpack.c.bf16 %v940_v7, %v940_v7  ;;  %v753_v10 = vadd.f32 1.0, %v2004_v37  ;;  %2031 = vpow2.f32 %v1630_v40  ;;  %1296 = vrot.lane.b32.xlu0 %v2736_v56, %s2130_s23  ;;  %v2909_v40 = vadd.f32 %v2831_v9, %v2386_v34  ;;  %v1835_v45 = vpop.f32.mrf.mxu0 }
 0x11b   :  { %v2008_v18 = vpop.eup %2007  ;;  %1229 = vst.msk [vmem:[%s3501_s3 + $0x34] sm:$0xf] %vm1215_vm2, %v2866_v21  ;;  %2033 = vrcp.f32 %v721_v17  ;;  %v719_v61 = vadd.f32 1.0, %v2006_v12  ;;  %v2915_v11 = vadd.f32 %v2386_v34, %v355_v13  ;;  %v2917_v63 = vpop.f32.mrf.mxu1  ;;  %v1601_v9 = vmul.f32 -1.442695, %v2899_v29 }
 0x11c   :  { %v2010_v49 = vpop.eup %2009  ;;  %1261 = vst.msk [vmem:[%s3501_s3 + $0xb4] sm:$0xf] %vm1215_vm2, %v2873_v32  ;;  %2035 = vrcp.f32 %v753_v10  ;;  %v751_v14 = vadd.f32 1.0, %v2008_v18  ;;  %v2921_v17 = vadd.f32 %v2386_v34, %v480_v20  ;;  %v1604_v13 = vmul.f32 -1.442695, %v2905_v33 }
 0x11d   :  { %v2012_v19 = vpop.eup %2011  ;;  %2037 = vrcp.f32 %v719_v61  ;;  %v722_v35 = vadd.f32 1.0, %v2010_v49  ;;  %1298 = vrot.lane.b32.xlu1 %v2779_v25, %s2130_s23  ;;  %v2927_v10 = vadd.f32 %v1863_v30, %v2386_v34  ;;  %v1635_v49 = vmul.f32 -1.442695, %v2909_v40 }
 0x11e   :  { %v2014_v39 = vpop.eup %2013  ;;  %2039 = vrcp.f32 %v751_v14  ;;  %v754_v5 = vadd.f32 1.0, %v2012_v19  ;;  %1360 = vrot.lane.b32.xlu0 %v2747_v52, %s2130_s23  ;;  %v2931_v14 = vadd.f32 %v2386_v34, %v483_v6  ;;  %v1602_v19 = vmul.f32 -1.442695, %v2915_v11  ;;  %v496_v34 = vpop.f32.mrf.mxu1 }
 0x11f   :  { %v2016_v47 = vpop.eup %2015  ;;  %2041 = vrcp.f32 %v722_v35  ;;  %v720_v28 = vadd.f32 1.0, %v2014_v39  ;;  %v2939_v35 = vld [vmem:[%s3500_s2] ss:$0 sm:$0xff]  ;;  %v371_v39 = vpop.f32.mrf.mxu0 }
 0x120   :  { %v2018_v38 = vpop.eup %2017  ;;  %2043 = vrcp.f32 %v754_v5  ;;  %v752_v56 = vadd.f32 1.0, %v2016_v47  ;;  %v2943_v30 = vadd.f32 %v2939_v35, %v2882_v26  ;;  %v1636_v26 = vmul.f32 -1.442695, %v2927_v10 }
 0x121   :  { %v2020_v62 = vpop.eup %2019  ;;  %2045 = vrcp.f32 %v720_v28  ;;  %v725_v25 = vadd.f32 1.0, %v2018_v38  ;;  %1362 = vrot.lane.b32.xlu1 %v2792_v60, %s2130_s23  ;;  %v2947_v28 = vadd.f32 %v2939_v35, %v368_v50  ;;  %v2959_v50 = vadd.f32 %v2939_v35, %v371_v39 }
 0x122   :  { %v2022_v42 = vpop.eup %2021  ;;  %2047 = vrcp.f32 %v752_v56  ;;  %v723_v51 = vadd.f32 1.0, %v2020_v62  ;;  %1308 = vrot.lane.b32.xlu0 %v2805_v46, %s2130_s23  ;;  %v2954_v62 = vadd.f32 %v2939_v35, %v1835_v45 }
 0x123   :  { %v2024_v55 = vpop.eup %2023  ;;  %2049 = vrcp.f32 %v725_v25  ;;  %v757_v52 = vadd.f32 1.0, %v2022_v42  ;;  %v1634_v42 = vmul.f32 -1.442695, %v2931_v14 }
 0x124   :  { %v2026_v7 = vpop.eup %2025  ;;  %2051 = vrcp.f32 %v723_v51  ;;  %v726_v37 = vadd.f32 1.0, %v2024_v55  ;;  %v1607_v55 = vmul.f32 -1.442695, %v2943_v30 }
 0x125   :  { %v2028_v60 = vpop.eup %2027  ;;  %2053 = vrcp.f32 %v757_v52  ;;  %v755_v12 = vadd.f32 1.0, %v2026_v7  ;;  %1310 = vrot.lane.b32.xlu1 %v2848_v44, %s2130_s23  ;;  %v1633_v44 = vmul.f32 -1.442695, %v2921_v17  ;;  %v1867_v52 = vpop.f32.mrf.mxu1 }
 0x126   :  { %v2030_v18 = vpop.eup %2029  ;;  %2055 = vrcp.f32 %v726_v37  ;;  %v724_v61 = vadd.f32 1.0, %v2028_v60  ;;  %1372 = vrot.lane.b32.xlu0 %v2814_v15, %s2130_s23  ;;  %v1605_v37 = vmul.f32 -1.442695, %v2947_v28  ;;  %v1608_v60 = vmul.f32 -1.442695, %v2954_v62 }
 0x127   :  { %v2032_v46 = vpop.eup %2031  ;;  %2057 = vrcp.f32 %v755_v12  ;;  %v758_v20 = vadd.f32 1.0, %v2030_v18  ;;  %v1606_v12 = vmul.f32 -1.442695, %v2959_v50 }
 0x128   :  { %v2034_v5 = vpop.eup %2033  ;;  %2059 = vrcp.f32 %v724_v61  ;;  %v756_v47 = vadd.f32 1.0, %v2032_v46  ;;  %v499_v61 = vpop.f32.mrf.mxu1 }
 0x129   :  { %v2036_v38 = vpop.eup %2035  ;;  %v913_v56 = vmul.f32 %v2034_v5, %v2661_v36  ;;  %2061 = vrcp.f32 %v758_v20  ;;  %1374 = vrot.lane.b32.xlu1 %v2856_v4, %s2130_s23  ;;  %v3032_v5 = vadd.f32 %v2939_v35, %v499_v61 }
 0x12a   :  { %v2038_v25 = vpop.eup %2037  ;;  %v945_v6 = vmul.f32 %v2036_v38, %v2666_v2  ;;  %2063 = vrcp.f32 %v756_v47  ;;  %1304 = vrot.lane.b32.xlu0 %v2825_v53, %s2130_s23 }
 0x12b   :  { %v2040_v15 = vpop.eup %2039  ;;  %v1723_v36 = vpack.c.bf16 %v913_v56, %v913_v56  ;;  %v911_v51 = vmul.f32 %v2038_v25, %v2672_v3  ;;  %2065 = vpow2.f32 %v1603_v43 }
 0x12c   :  { %v2042_v45 = vpop.eup %2041  ;;  %v2965_v7 = vpack.c.bf16 %v945_v6, %v945_v6  ;;  %v943_v2 = vmul.f32 %v2040_v15, %v2678_v27  ;;  %2067 = vpow2.f32 %v1601_v9 }
 0x12d   :  { %v2044_v4 = vpop.eup %2043  ;;  %1234 = vst.msk [vmem:[%s3501_s3 + $0x48] sm:$0xf] %vm1215_vm2, %v1723_v36  ;;  %v2975_v3 = vpack.c.bf16 %v911_v51, %v911_v51  ;;  %v914_v43 = vmul.f32 %v2042_v45, %v2681_v58  ;;  %2069 = vpow2.f32 %v1604_v13  ;;  %1306 = vrot.lane.b32.xlu1 %v2866_v21, %s2130_s23 }
 0x12e   :  { %v2046_v27 = vpop.eup %2045  ;;  %1266 = vst.msk [vmem:[%s3501_s3 + $0xc8] sm:$0xf] %vm1215_vm2, %v2965_v7  ;;  %v2984_v53 = vpack.c.bf16 %v943_v2, %v943_v2  ;;  %v946_v9 = vmul.f32 %v2044_v4, %v2685_v0  ;;  %2071 = vpow2.f32 %v1635_v49  ;;  %v2998_v0 = vadd.f32 %v2939_v35, %v2917_v63  ;;  %1368 = vrot.lane.b32.xlu0 %v2838_v59, %s2130_s23 }
 0x12f   :  { %v2048_v58 = vpop.eup %2047  ;;  %1232 = vst.msk [vmem:[%s3501_s3 + $0x40] sm:$0xf] %vm1215_vm2, %v2975_v3  ;;  %v1724_v13 = vpack.c.bf16 %v914_v43, %v914_v43  ;;  %v912_v18 = vmul.f32 %v2046_v27, %v2691_v1  ;;  %2073 = vpow2.f32 %v1602_v19  ;;  %v3009_v1 = vadd.f32 %v2939_v35, %v496_v34 }
 0x130   :  { %v2050_v49 = vpop.eup %2049  ;;  %1264 = vst.msk [vmem:[%s3501_s3 + $0xc0] sm:$0xf] %vm1215_vm2, %v2984_v53  ;;  %v3005_v21 = vpack.c.bf16 %v946_v9, %v946_v9  ;;  %v944_v46 = vmul.f32 %v2048_v58, %v2694_v22  ;;  %2075 = vpow2.f32 %v1633_v44  ;;  %v3021_v22 = vadd.f32 %v2939_v35, %v1867_v52 }
 0x131   :  { %v2052_v63 = vpop.eup %2051  ;;  %1235 = vst.msk [vmem:[%s3501_s3 + $0x4c] sm:$0xf] %vm1215_vm2, %v1724_v13  ;;  %v3017_v20 = vpack.c.bf16 %v912_v18, %v912_v18  ;;  %v917_v19 = vmul.f32 %v2050_v49, %v2697_v54  ;;  %2077 = vpow2.f32 %v1636_v26  ;;  %1370 = vrot.lane.b32.xlu1 %v2873_v32, %s2130_s23  ;;  %v1637_v56 = vmul.f32 -1.442695, %v3009_v1 }
 0x132   :  { %v2054_v39 = vpop.eup %2053  ;;  %1267 = vst.msk [vmem:[%s3501_s3 + $0xcc] sm:$0xf] %vm1215_vm2, %v3005_v21  ;;  %v3028_v59 = vpack.c.bf16 %v944_v46, %v944_v46  ;;  %v915_v34 = vmul.f32 %v2052_v63, %v2705_v41  ;;  %2079 = vpow2.f32 %v1634_v42  ;;  %v1639_v41 = vmul.f32 -1.442695, %v2998_v0  ;;  %1316 = vrot.lane.b32.xlu0 %v1723_v36, %s2130_s23 }
 0x133   :  { %v2056_v54 = vpop.eup %2055  ;;  %1233 = vst.msk [vmem:[%s3501_s3 + $0x44] sm:$0xf] %vm1215_vm2, %v3017_v20  ;;  %v3041_v47 = vpack.c.bf16 %v917_v19, %v917_v19  ;;  %v949_v44 = vmul.f32 %v2054_v39, %v2712_v16  ;;  %2081 = vpow2.f32 %v1607_v55  ;;  %v1640_v6 = vmul.f32 -1.442695, %v3021_v22 }
 0x134   :  { %v2058_v38 = vpop.eup %2057  ;;  %1265 = vst.msk [vmem:[%s3501_s3 + $0xc4] sm:$0xf] %vm1215_vm2, %v3028_v59  ;;  %v3050_v32 = vpack.c.bf16 %v915_v34, %v915_v34  ;;  %v918_v35 = vmul.f32 %v2056_v54, %v2723_v57  ;;  %2083 = vpow2.f32 %v1605_v37  ;;  %v1638_v36 = vmul.f32 -1.442695, %v3032_v5 }
 0x135   :  { %v2060_v16 = vpop.eup %2059  ;;  %1238 = vst.msk [vmem:[%s3501_s3 + $0x58] sm:$0xf] %vm1215_vm2, %v3041_v47  ;;  %v3060_v26 = vpack.c.bf16 %v949_v44, %v949_v44  ;;  %v947_v25 = vmul.f32 %v2058_v38, %v2751_v8  ;;  %2085 = vpow2.f32 %v1608_v60  ;;  %1318 = vrot.lane.b32.xlu1 %v1724_v13, %s2130_s23 }
 0x136   :  { %v2062_v57 = vpop.eup %2061  ;;  %1236 = vst.msk [vmem:[%s3501_s3 + $0x50] sm:$0xf] %vm1215_vm2, %v3050_v32  ;;  %v3069_v42 = vpack.c.bf16 %v918_v35, %v918_v35  ;;  %v916_v15 = vmul.f32 %v2060_v16, %v2771_v31  ;;  %2087 = vpow2.f32 %v1606_v12  ;;  %1380 = vrot.lane.b32.xlu0 %v2965_v7, %s2130_s23 }
 0x137   :  { %v2064_v8 = vpop.eup %2063  ;;  %1270 = vst.msk [vmem:[%s3501_s3 + $0xd8] sm:$0xf] %vm1215_vm2, %v3060_v26  ;;  %v3079_v51 = vpack.c.bf16 %v947_v25, %v947_v25  ;;  %v950_v55 = vmul.f32 %v2062_v57, %v2783_v23  ;;  %2089 = vpow2.f32 %v1639_v41 }
 0x138   :  { %v2066_v52 = vpop.eup %2065  ;;  %1239 = vst.msk [vmem:[%s3501_s3 + $0x5c] sm:$0xf] %vm1215_vm2, %v3069_v42  ;;  %v3087_v31 = vpack.c.bf16 %v916_v15, %v916_v15  ;;  %v948_v45 = vmul.f32 %v2064_v8, %v2796_v24  ;;  %2091 = vpow2.f32 %v1637_v56 }
 0x139   :  { %v2068_v2 = vpop.eup %2067  ;;  %1268 = vst.msk [vmem:[%s3501_s3 + $0xd0] sm:$0xf] %vm1215_vm2, %v3079_v51  ;;  %v3097_v23 = vpack.c.bf16 %v950_v55, %v950_v55  ;;  %v729_v37 = vadd.f32 1.0, %v2066_v52  ;;  %2093 = vpow2.f32 %v1640_v6  ;;  %1382 = vrot.lane.b32.xlu1 %v3005_v21, %s2130_s23 }
 0x13a   :  { %v2070_v4 = vpop.eup %2069  ;;  %1237 = vst.msk [vmem:[%s3501_s3 + $0x54] sm:$0xf] %vm1215_vm2, %v3087_v31  ;;  %v3104_v24 = vpack.c.bf16 %v948_v45, %v948_v45  ;;  %v727_v7 = vadd.f32 1.0, %v2068_v2  ;;  %2095 = vpow2.f32 %v1638_v36  ;;  %1312 = vrot.lane.b32.xlu0 %v2975_v3, %s2130_s23 }
 0x13b   :  { %v2072_v43 = vpop.eup %2071  ;;  %1271 = vst.msk [vmem:[%s3501_s3 + $0xdc] sm:$0xf] %vm1215_vm2, %v3097_v23  ;;  %2097 = vrcp.f32 %v729_v37  ;;  %v730_v60 = vadd.f32 1.0, %v2070_v4 }
 0x13c   :  { %v2074_v27 = vpop.eup %2073  ;;  %1269 = vst.msk [vmem:[%s3501_s3 + $0xd4] sm:$0xf] %vm1215_vm2, %v3104_v24  ;;  %2099 = vrcp.f32 %v727_v7  ;;  %v761_v9 = vadd.f32 1.0, %v2072_v43 }
 0x13d   :  { %v2076_v12 = vpop.eup %2075  ;;  %2101 = vrcp.f32 %v730_v60  ;;  %v728_v58 = vadd.f32 1.0, %v2074_v27  ;;  %1314 = vrot.lane.b32.xlu1 %v3017_v20, %s2130_s23 }
 0x13e   :  { %v2078_v13 = vpop.eup %2077  ;;  %2103 = vrcp.f32 %v761_v9  ;;  %v759_v18 = vadd.f32 1.0, %v2076_v12  ;;  %1376 = vrot.lane.b32.xlu0 %v2984_v53, %s2130_s23 }
 0x13f   :  { %v2080_v61 = vpop.eup %2079  ;;  %2105 = vrcp.f32 %v728_v58  ;;  %v762_v49 = vadd.f32 1.0, %v2078_v13 }
 0x140   :  { %v2082_v21 = vpop.eup %2081  ;;  %2107 = vrcp.f32 %v759_v18  ;;  %v760_v46 = vadd.f32 1.0, %v2080_v61 }
 0x141   :  { %v2084_v63 = vpop.eup %2083  ;;  %2109 = vrcp.f32 %v762_v49  ;;  %v733_v3 = vadd.f32 1.0, %v2082_v21  ;;  %1378 = vrot.lane.b32.xlu1 %v3028_v59, %s2130_s23 }
 0x142   :  { %v2086_v19 = vpop.eup %2085  ;;  %2111 = vrcp.f32 %v760_v46  ;;  %v731_v39 = vadd.f32 1.0, %v2084_v63  ;;  %1324 = vrot.lane.b32.xlu0 %v3041_v47, %s2130_s23 }
 0x143   :  { %v2088_v34 = vpop.eup %2087  ;;  %2113 = vrcp.f32 %v733_v3  ;;  %v734_v20 = vadd.f32 1.0, %v2086_v19 }
 0x144   :  { %v2090_v54 = vpop.eup %2089  ;;  %2115 = vrcp.f32 %v731_v39  ;;  %v732_v44 = vadd.f32 1.0, %v2088_v34 }
 0x145   :  { %v2092_v41 = vpop.eup %2091  ;;  %2117 = vrcp.f32 %v734_v20  ;;  %v765_v53 = vadd.f32 1.0, %v2090_v54  ;;  %1326 = vrot.lane.b32.xlu1 %v3069_v42, %s2130_s23 }
 0x146   :  { %v2094_v38 = vpop.eup %2093  ;;  %2119 = vrcp.f32 %v732_v44  ;;  %v763_v35 = vadd.f32 1.0, %v2092_v41  ;;  %1388 = vrot.lane.b32.xlu0 %v3060_v26, %s2130_s23 }
 0x147   :  { %v2096_v56 = vpop.eup %2095  ;;  %2121 = vrcp.f32 %v765_v53  ;;  %v766_v59 = vadd.f32 1.0, %v2094_v38 }
 0x148   :  { %v2098_v16 = vpop.eup %2097  ;;  %2123 = vrcp.f32 %v763_v35  ;;  %v764_v25 = vadd.f32 1.0, %v2096_v56 }
 0x149   :  { %v2100_v6 = vpop.eup %2099  ;;  %v921_v47 = vmul.f32 %v2098_v16, %v2895_v48  ;;  %2125 = vrcp.f32 %v766_v59  ;;  %1390 = vrot.lane.b32.xlu1 %v3097_v23, %s2130_s23 }
 0x14a   :  { %v2102_v57 = vpop.eup %2101  ;;  %v919_v15 = vmul.f32 %v2100_v6, %v2899_v29  ;;  %2127 = vrcp.f32 %v764_v25  ;;  %1320 = vrot.lane.b32.xlu0 %v3050_v32, %s2130_s23 }
 0x14b   :  { %v2104_v42 = vpop.eup %2103  ;;  %v1731_v36 = vpack.c.bf16 %v921_v47, %v921_v47  ;;  %v922_v8 = vmul.f32 %v2102_v57, %v2905_v33 }
 0x14c   :  { %v2106_v55 = vpop.eup %2105  ;;  %v3137_v52 = vpack.c.bf16 %v919_v15, %v919_v15  ;;  %v953_v26 = vmul.f32 %v2104_v42, %v2909_v40 }
 0x14d   :  { %v2108_v48 = vpop.eup %2107  ;;  %1242 = vst.msk [vmem:[%s3501_s3 + $0x68] sm:$0xf] %vm1215_vm2, %v1731_v36  ;;  %v1732_v29 = vpack.c.bf16 %v922_v8, %v922_v8  ;;  %v920_v45 = vmul.f32 %v2106_v55, %v2915_v11  ;;  %1322 = vrot.lane.b32.xlu1 %v3087_v31, %s2130_s23 }
 0x14e   :  { %v2110_v2 = vpop.eup %2109  ;;  %1240 = vst.msk [vmem:[%s3501_s3 + $0x60] sm:$0xf] %vm1215_vm2, %v3137_v52  ;;  %v1763_v33 = vpack.c.bf16 %v953_v26, %v953_v26  ;;  %v951_v40 = vmul.f32 %v2108_v48, %v2921_v17  ;;  %1384 = vrot.lane.b32.xlu0 %v3079_v51, %s2130_s23 }
 0x14f   :  { %v2112_v32 = vpop.eup %2111  ;;  %1243 = vst.msk [vmem:[%s3501_s3 + $0x6c] sm:$0xf] %vm1215_vm2, %v1732_v29  ;;  %v1730_v11 = vpack.c.bf16 %v920_v45, %v920_v45  ;;  %v954_v23 = vmul.f32 %v2110_v2, %v2927_v10 }
 0x150   :  { %v2114_v37 = vpop.eup %2113  ;;  %1274 = vst.msk [vmem:[%s3501_s3 + $0xe8] sm:$0xf] %vm1215_vm2, %v1763_v33  ;;  %v1761_v4 = vpack.c.bf16 %v951_v40, %v951_v40  ;;  %v952_v17 = vmul.f32 %v2112_v32, %v2931_v14 }
 0x151   :  { %v2116_v31 = vpop.eup %2115  ;;  %1241 = vst.msk [vmem:[%s3501_s3 + $0x64] sm:$0xf] %vm1215_vm2, %v1730_v11  ;;  %v1764_v7 = vpack.c.bf16 %v954_v23, %v954_v23  ;;  %v925_v10 = vmul.f32 %v2114_v37, %v2943_v30  ;;  %1386 = vrot.lane.b32.xlu1 %v3104_v24, %s2130_s23 }
 0x152   :  { %v2118_v43 = vpop.eup %2117  ;;  %1272 = vst.msk [vmem:[%s3501_s3 + $0xe0] sm:$0xf] %vm1215_vm2, %v1761_v4  ;;  %v1762_v60 = vpack.c.bf16 %v952_v17, %v952_v17  ;;  %v923_v14 = vmul.f32 %v2116_v31, %v2947_v28  ;;  %1332 = vrot.lane.b32.xlu0 %v1731_v36, %s2130_s23 }
 0x153   :  { %v2120_v51 = vpop.eup %2119  ;;  %1275 = vst.msk [vmem:[%s3501_s3 + $0xec] sm:$0xf] %vm1215_vm2, %v1764_v7  ;;  %v1735_v27 = vpack.c.bf16 %v925_v10, %v925_v10  ;;  %v926_v30 = vmul.f32 %v2118_v43, %v2954_v62 }
 0x154   :  { %v2122_v9 = vpop.eup %2121  ;;  %1273 = vst.msk [vmem:[%s3501_s3 + $0xe4] sm:$0xf] %vm1215_vm2, %v1762_v60  ;;  %v1733_v12 = vpack.c.bf16 %v923_v14, %v923_v14  ;;  %v924_v28 = vmul.f32 %v2120_v51, %v2959_v50 }
 0x155   :  { %v2124_v24 = vpop.eup %2123  ;;  %1246 = vst.msk [vmem:[%s3501_s3 + $0x78] sm:$0xf] %vm1215_vm2, %v1735_v27  ;;  %v1736_v58 = vpack.c.bf16 %v926_v30, %v926_v30  ;;  %v957_v62 = vmul.f32 %v2122_v9, %v2998_v0  ;;  %1334 = vrot.lane.b32.xlu1 %v1732_v29, %s2130_s23 }
 0x156   :  { %v2126_v13 = vpop.eup %2125  ;;  %1244 = vst.msk [vmem:[%s3501_s3 + $0x70] sm:$0xf] %vm1215_vm2, %v1733_v12  ;;  %v1734_v18 = vpack.c.bf16 %v924_v28, %v924_v28  ;;  %v955_v50 = vmul.f32 %v2124_v24, %v3009_v1  ;;  %1396 = vrot.lane.b32.xlu0 %v1763_v33, %s2130_s23 }
 0x157   :  { %v2128_v61 = vpop.eup %2127  ;;  %1247 = vst.msk [vmem:[%s3501_s3 + $0x7c] sm:$0xf] %vm1215_vm2, %v1736_v58  ;;  %v1767_v49 = vpack.c.bf16 %v957_v62, %v957_v62  ;;  %v958_v0 = vmul.f32 %v2126_v13, %v3021_v22 }
 0x158   :  { %1245 = vst.msk [vmem:[%s3501_s3 + $0x74] sm:$0xf] %vm1215_vm2, %v1734_v18  ;;  %v1765_v21 = vpack.c.bf16 %v955_v50, %v955_v50  ;;  %v956_v46 = vmul.f32 %v2128_v61, %v3032_v5 }
 0x159   :  { %1278 = vst.msk [vmem:[%s3501_s3 + $0xf8] sm:$0xf] %vm1215_vm2, %v1767_v49  ;;  %v1768_v1 = vpack.c.bf16 %v958_v0, %v958_v0  ;;  %1398 = vrot.lane.b32.xlu1 %v1764_v7, %s2130_s23 }
 0x15a   :  { %1276 = vst.msk [vmem:[%s3501_s3 + $0xf0] sm:$0xf] %vm1215_vm2, %v1765_v21  ;;  %v1766_v22 = vpack.c.bf16 %v956_v46, %v956_v46  ;;  %1328 = vrot.lane.b32.xlu0 %v3137_v52, %s2130_s23 }
 0x15b   :  { %1279 = vst.msk [vmem:[%s3501_s3 + $0xfc] sm:$0xf] %vm1215_vm2, %v1768_v1 }
 0x15c   :  { %1277 = vst.msk [vmem:[%s3501_s3 + $0xf4] sm:$0xf] %vm1215_vm2, %v1766_v22 }
 0x15d   :  { %1330 = vrot.lane.b32.xlu1 %v1730_v11, %s2130_s23 }
 0x15e   :  { %1392 = vrot.lane.b32.xlu0 %v1761_v4, %s2130_s23 }
 0x161   :  { %1394 = vrot.lane.b32.xlu1 %v1762_v60, %s2130_s23 }
 0x162   :  { %1340 = vrot.lane.b32.xlu0 %v1735_v27, %s2130_s23 }
 0x164   :  { %v1349_v5 = vpop.permute.xlu0 %1348 }
 0x165   :  { %1342 = vrot.lane.b32.xlu1 %v1736_v58, %s2130_s23  ;;  %1506 = vst.msk [vmem:[%s3502_s4 + $0x88] sm:$0xf] %vm1215_vm2, %v1349_v5 }
 0x166   :  { %1336 = vrot.lane.b32.xlu0 %v1733_v12, %s2130_s23 }
 0x167   :  { %v1285_v63 = vpop.permute.xlu1 %1284 }
 0x168   :  { %1474 = vst.msk [vmem:[%s3502_s4 + $0x8] sm:$0xf] %vm1215_vm2, %v1285_v63  ;;  %v1281_v3 = vpop.permute.xlu0 %1280 }
 0x169   :  { %1338 = vrot.lane.b32.xlu1 %v1734_v18, %s2130_s23  ;;  %1472 = vst.msk [vmem:[%s3502_s4] sm:$0xf] %vm1215_vm2, %v1281_v3 }
 0x16a   :  { %1400 = vrot.lane.b32.xlu0 %v1765_v21, %s2130_s23 }
 0x16b   :  { %v1287_v19 = vpop.permute.xlu1 %1286 }
 0x16c   :  { %1475 = vst.msk [vmem:[%s3502_s4 + $0xc] sm:$0xf] %vm1215_vm2, %v1287_v19  ;;  %v1345_v39 = vpop.permute.xlu0 %1344 }
 0x16d   :  { %1402 = vrot.lane.b32.xlu1 %v1766_v22, %s2130_s23  ;;  %1504 = vst.msk [vmem:[%s3502_s4 + $0x80] sm:$0xf] %vm1215_vm2, %v1345_v39 }
 0x16e   :  { %1404 = vrot.lane.b32.xlu0 %v1767_v49, %s2130_s23 }
 0x16f   :  { %v1351_v34 = vpop.permute.xlu1 %1350 }
 0x170   :  { %1507 = vst.msk [vmem:[%s3502_s4 + $0x8c] sm:$0xf] %vm1215_vm2, %v1351_v34  ;;  %v1283_v20 = vpop.permute.xlu0 %1282 }
 0x171   :  { %1406 = vrot.lane.b32.xlu1 %v1768_v1, %s2130_s23  ;;  %1473 = vst.msk [vmem:[%s3502_s4 + $0x4] sm:$0xf] %vm1215_vm2, %v1283_v20 }
 0x173   :  { %v1347_v54 = vpop.permute.xlu1 %1346 }
 0x174   :  { %1505 = vst.msk [vmem:[%s3502_s4 + $0x84] sm:$0xf] %vm1215_vm2, %v1347_v54  ;;  %v1293_v44 = vpop.permute.xlu0 %1292 }
 0x175   :  { %1478 = vst.msk [vmem:[%s3502_s4 + $0x18] sm:$0xf] %vm1215_vm2, %v1293_v44 }
 0x177   :  { %v1295_v41 = vpop.permute.xlu1 %1294 }
 0x178   :  { %1479 = vst.msk [vmem:[%s3502_s4 + $0x1c] sm:$0xf] %vm1215_vm2, %v1295_v41  ;;  %v1357_v53 = vpop.permute.xlu0 %1356 }
 0x179   :  { %1510 = vst.msk [vmem:[%s3502_s4 + $0x98] sm:$0xf] %vm1215_vm2, %v1357_v53 }
 0x17b   :  { %v1359_v38 = vpop.permute.xlu1 %1358 }
 0x17c   :  { %1511 = vst.msk [vmem:[%s3502_s4 + $0x9c] sm:$0xf] %vm1215_vm2, %v1359_v38  ;;  %v1289_v35 = vpop.permute.xlu0 %1288 }
 0x17d   :  { %1476 = vst.msk [vmem:[%s3502_s4 + $0x10] sm:$0xf] %vm1215_vm2, %v1289_v35 }
 0x17f   :  { %v1291_v56 = vpop.permute.xlu1 %1290 }
 0x180   :  { %1477 = vst.msk [vmem:[%s3502_s4 + $0x14] sm:$0xf] %vm1215_vm2, %v1291_v56  ;;  %v1353_v59 = vpop.permute.xlu0 %1352 }
 0x181   :  { %1508 = vst.msk [vmem:[%s3502_s4 + $0x90] sm:$0xf] %vm1215_vm2, %v1353_v59 }
 0x183   :  { %v1355_v16 = vpop.permute.xlu1 %1354 }
 0x184   :  { %1509 = vst.msk [vmem:[%s3502_s4 + $0x94] sm:$0xf] %vm1215_vm2, %v1355_v16  ;;  %v1301_v25 = vpop.permute.xlu0 %1300 }
 0x185   :  { %1482 = vst.msk [vmem:[%s3502_s4 + $0x28] sm:$0xf] %vm1215_vm2, %v1301_v25 }
 0x187   :  { %v1303_v6 = vpop.permute.xlu1 %1302 }
 0x188   :  { %1483 = vst.msk [vmem:[%s3502_s4 + $0x2c] sm:$0xf] %vm1215_vm2, %v1303_v6  ;;  %v1365_v47 = vpop.permute.xlu0 %1364 }
 0x189   :  { %1514 = vst.msk [vmem:[%s3502_s4 + $0xa8] sm:$0xf] %vm1215_vm2, %v1365_v47 }
 0x18b   :  { %v1367_v57 = vpop.permute.xlu1 %1366 }
 0x18c   :  { %1515 = vst.msk [vmem:[%s3502_s4 + $0xac] sm:$0xf] %vm1215_vm2, %v1367_v57  ;;  %v1297_v15 = vpop.permute.xlu0 %1296 }
 0x18d   :  { %1480 = vst.msk [vmem:[%s3502_s4 + $0x20] sm:$0xf] %vm1215_vm2, %v1297_v15 }
 0x18f   :  { %v1299_v42 = vpop.permute.xlu1 %1298 }
 0x190   :  { %1481 = vst.msk [vmem:[%s3502_s4 + $0x24] sm:$0xf] %vm1215_vm2, %v1299_v42  ;;  %v1361_v36 = vpop.permute.xlu0 %1360 }
 0x191   :  { %1512 = vst.msk [vmem:[%s3502_s4 + $0xa0] sm:$0xf] %vm1215_vm2, %v1361_v36 }
 0x193   :  { %v1363_v8 = vpop.permute.xlu1 %1362 }
 0x194   :  { %1513 = vst.msk [vmem:[%s3502_s4 + $0xa4] sm:$0xf] %vm1215_vm2, %v1363_v8  ;;  %v1309_v55 = vpop.permute.xlu0 %1308 }
 0x195   :  { %1486 = vst.msk [vmem:[%s3502_s4 + $0x38] sm:$0xf] %vm1215_vm2, %v1309_v55 }
 0x197   :  { %v1311_v52 = vpop.permute.xlu1 %1310 }
 0x198   :  { %1487 = vst.msk [vmem:[%s3502_s4 + $0x3c] sm:$0xf] %vm1215_vm2, %v1311_v52  ;;  %v1373_v26 = vpop.permute.xlu0 %1372 }
 0x199   :  { %1518 = vst.msk [vmem:[%s3502_s4 + $0xb8] sm:$0xf] %vm1215_vm2, %v1373_v26 }
 0x19b   :  { %v1375_v48 = vpop.permute.xlu1 %1374 }
 0x19c   :  { %1519 = vst.msk [vmem:[%s3502_s4 + $0xbc] sm:$0xf] %vm1215_vm2, %v1375_v48  ;;  %v1305_v29 = vpop.permute.xlu0 %1304 }
 0x19d   :  { %1484 = vst.msk [vmem:[%s3502_s4 + $0x30] sm:$0xf] %vm1215_vm2, %v1305_v29 }
 0x19f   :  { %v1307_v45 = vpop.permute.xlu1 %1306 }
 0x1a0   :  { %1485 = vst.msk [vmem:[%s3502_s4 + $0x34] sm:$0xf] %vm1215_vm2, %v1307_v45  ;;  %v1369_v2 = vpop.permute.xlu0 %1368 }
 0x1a1   :  { %1516 = vst.msk [vmem:[%s3502_s4 + $0xb0] sm:$0xf] %vm1215_vm2, %v1369_v2 }
 0x1a3   :  { %v1371_v33 = vpop.permute.xlu1 %1370 }
 0x1a4   :  { %1517 = vst.msk [vmem:[%s3502_s4 + $0xb4] sm:$0xf] %vm1215_vm2, %v1371_v33  ;;  %v1317_v40 = vpop.permute.xlu0 %1316 }
 0x1a5   :  { %1490 = vst.msk [vmem:[%s3502_s4 + $0x48] sm:$0xf] %vm1215_vm2, %v1317_v40 }
 0x1a7   :  { %v1319_v32 = vpop.permute.xlu1 %1318 }
 0x1a8   :  { %1491 = vst.msk [vmem:[%s3502_s4 + $0x4c] sm:$0xf] %vm1215_vm2, %v1319_v32  ;;  %v1381_v11 = vpop.permute.xlu0 %1380 }
 0x1a9   :  { %1522 = vst.msk [vmem:[%s3502_s4 + $0xc8] sm:$0xf] %vm1215_vm2, %v1381_v11 }
 0x1ab   :  { %v1383_v23 = vpop.permute.xlu1 %1382 }
 0x1ac   :  { %1523 = vst.msk [vmem:[%s3502_s4 + $0xcc] sm:$0xf] %vm1215_vm2, %v1383_v23  ;;  %v1313_v37 = vpop.permute.xlu0 %1312 }
 0x1ad   :  { %1488 = vst.msk [vmem:[%s3502_s4 + $0x40] sm:$0xf] %vm1215_vm2, %v1313_v37 }
 0x1af   :  { %v1315_v4 = vpop.permute.xlu1 %1314 }
 0x1b0   :  { %1489 = vst.msk [vmem:[%s3502_s4 + $0x44] sm:$0xf] %vm1215_vm2, %v1315_v4  ;;  %v1377_v17 = vpop.permute.xlu0 %1376 }
 0x1b1   :  { %1520 = vst.msk [vmem:[%s3502_s4 + $0xc0] sm:$0xf] %vm1215_vm2, %v1377_v17 }
 0x1b3   :  { %v1379_v31 = vpop.permute.xlu1 %1378 }
 0x1b4   :  { %1521 = vst.msk [vmem:[%s3502_s4 + $0xc4] sm:$0xf] %vm1215_vm2, %v1379_v31  ;;  %v1325_v7 = vpop.permute.xlu0 %1324 }
 0x1b5   :  { %1494 = vst.msk [vmem:[%s3502_s4 + $0x58] sm:$0xf] %vm1215_vm2, %v1325_v7 }
 0x1b7   :  { %v1327_v10 = vpop.permute.xlu1 %1326 }
 0x1b8   :  { %1495 = vst.msk [vmem:[%s3502_s4 + $0x5c] sm:$0xf] %vm1215_vm2, %v1327_v10  ;;  %v1389_v43 = vpop.permute.xlu0 %1388 }
 0x1b9   :  { %1526 = vst.msk [vmem:[%s3502_s4 + $0xd8] sm:$0xf] %vm1215_vm2, %v1389_v43 }
 0x1bb   :  { %v1391_v60 = vpop.permute.xlu1 %1390 }
 0x1bc   :  { %1527 = vst.msk [vmem:[%s3502_s4 + $0xdc] sm:$0xf] %vm1215_vm2, %v1391_v60  ;;  %v1321_v14 = vpop.permute.xlu0 %1320 }
 0x1bd   :  { %1492 = vst.msk [vmem:[%s3502_s4 + $0x50] sm:$0xf] %vm1215_vm2, %v1321_v14 }
 0x1bf   :  { %v1323_v51 = vpop.permute.xlu1 %1322 }
 0x1c0   :  { %1493 = vst.msk [vmem:[%s3502_s4 + $0x54] sm:$0xf] %vm1215_vm2, %v1323_v51  ;;  %v1385_v27 = vpop.permute.xlu0 %1384 }
 0x1c1   :  { %1524 = vst.msk [vmem:[%s3502_s4 + $0xd0] sm:$0xf] %vm1215_vm2, %v1385_v27 }
 0x1c3   :  { %v1387_v30 = vpop.permute.xlu1 %1386 }
 0x1c4   :  { %1525 = vst.msk [vmem:[%s3502_s4 + $0xd4] sm:$0xf] %vm1215_vm2, %v1387_v30  ;;  %v1333_v9 = vpop.permute.xlu0 %1332 }
 0x1c5   :  { %1498 = vst.msk [vmem:[%s3502_s4 + $0x68] sm:$0xf] %vm1215_vm2, %v1333_v9 }
 0x1c7   :  { %v1335_v12 = vpop.permute.xlu1 %1334 }
 0x1c8   :  { %1499 = vst.msk [vmem:[%s3502_s4 + $0x6c] sm:$0xf] %vm1215_vm2, %v1335_v12  ;;  %v1397_v28 = vpop.permute.xlu0 %1396 }
 0x1c9   :  { %1530 = vst.msk [vmem:[%s3502_s4 + $0xe8] sm:$0xf] %vm1215_vm2, %v1397_v28 }
 0x1cb   :  { %v1399_v24 = vpop.permute.xlu1 %1398 }
 0x1cc   :  { %1531 = vst.msk [vmem:[%s3502_s4 + $0xec] sm:$0xf] %vm1215_vm2, %v1399_v24  ;;  %v1329_v58 = vpop.permute.xlu0 %1328 }
 0x1cd   :  { %1496 = vst.msk [vmem:[%s3502_s4 + $0x60] sm:$0xf] %vm1215_vm2, %v1329_v58 }
 0x1cf   :  { %v1331_v62 = vpop.permute.xlu1 %1330 }
 0x1d0   :  { %1497 = vst.msk [vmem:[%s3502_s4 + $0x64] sm:$0xf] %vm1215_vm2, %v1331_v62  ;;  %v1393_v13 = vpop.permute.xlu0 %1392 }
 0x1d1   :  { %1528 = vst.msk [vmem:[%s3502_s4 + $0xe0] sm:$0xf] %vm1215_vm2, %v1393_v13 }
 0x1d3   :  { %v1395_v18 = vpop.permute.xlu1 %1394 }
 0x1d4   :  { %1529 = vst.msk [vmem:[%s3502_s4 + $0xe4] sm:$0xf] %vm1215_vm2, %v1395_v18  ;;  %v1341_v50 = vpop.permute.xlu0 %1340 }
 0x1d5   :  { %1502 = vst.msk [vmem:[%s3502_s4 + $0x78] sm:$0xf] %vm1215_vm2, %v1341_v50 }
 0x1d7   :  { %v1343_v61 = vpop.permute.xlu1 %1342 }
 0x1d8   :  { %1503 = vst.msk [vmem:[%s3502_s4 + $0x7c] sm:$0xf] %vm1215_vm2, %v1343_v61  ;;  %v1337_v49 = vpop.permute.xlu0 %1336 }
 0x1d9   :  { %1500 = vst.msk [vmem:[%s3502_s4 + $0x70] sm:$0xf] %vm1215_vm2, %v1337_v49 }
 0x1db   :  { %v1339_v0 = vpop.permute.xlu1 %1338 }
 0x1dc   :  { %1501 = vst.msk [vmem:[%s3502_s4 + $0x74] sm:$0xf] %vm1215_vm2, %v1339_v0  ;;  %v1401_v21 = vpop.permute.xlu0 %1400 }
 0x1dd   :  { %1532 = vst.msk [vmem:[%s3502_s4 + $0xf0] sm:$0xf] %vm1215_vm2, %v1401_v21 }
 0x1df   :  { %v1403_v46 = vpop.permute.xlu1 %1402 }
 0x1e0   :  { %1533 = vst.msk [vmem:[%s3502_s4 + $0xf4] sm:$0xf] %vm1215_vm2, %v1403_v46  ;;  %v1405_v1 = vpop.permute.xlu0 %1404 }
 0x1e1   :  { %1534 = vst.msk [vmem:[%s3502_s4 + $0xf8] sm:$0xf] %vm1215_vm2, %v1405_v1 }
 0x1e3   :  { %v1407_v22 = vpop.permute.xlu1 %1406 }
 0x1e4   :  { %1535 = vst.msk [vmem:[%s3502_s4 + $0xfc] sm:$0xf] %vm1215_vm2, %v1407_v22 }

// kernel: c3_forward.5
= control target key start
LH: loop header
LB: loop body
LE: loop exit
PB: predicated region body
PF: predicated region fallthrough
CT: control target
= control target key end

     0   :  { %vm408_vm0 = vcmask 1040384   ;;  %vm311_vm1 = vcmask 15360   ;;  %vm1768_vm2 = vcmask 31744   ;;  %s3429_s3 = inlined_call_operand.vmem [shape: bf16[2,4], index: 3, kind: input, shape index: {}]   ;;  %s3430_s2 = inlined_call_operand.vmem [shape: bf16[2,4], index: 2, kind: input, shape index: {}]   ;;  %s3431_s1 = inlined_call_operand.vmem [shape: bf16[512,2], index: 1, kind: input, shape index: {}]   ;;  %s3432_s0 = inlined_call_operand.vmem [shape: bf16[512,2], index: 0, kind: input, shape index: {}]   ;;  %s3433_s4 = inlined_call_operand.vmem [shape: f32[1,4], index: 4, kind: input, shape index: {}]   ;;  %s3434_s5 = inlined_call_operand.vmem [shape: f32[512,4], index: 5, kind: output, shape index: {}]  }
   0x1   :  { %v150_v0 = vld [vmem:[%s3429_s3] sm:$0x1]  ;;  %v2232_v6 = vld [vmem:[%s3431_s1 + $0x8] sm:$0xff]   ;;  %v2234_v8 = vld [vmem:[%s3431_s1 + $0x10] sm:$0xff]  }
   0x2   :  { %v85_v1 = vld [vmem:[%s3430_s2] sm:$0x1]  ;;  %2228 = vmatprep.subr.msk.bf16.mxu0 %vm408_vm0, %v150_v0  ;;  %v410_v2 = vsel %vm408_vm0, %v150_v0, 0  ;;  %v2233_v7 = vld [vmem:[%s3432_s0 + $0x8] sm:$0xff]   ;;  %v2235_v9 = vld [vmem:[%s3432_s0 + $0x10] sm:$0xff]  }
   0x3   :  { %2229 = vmatprep.subr.msk.bf16.mxu1 %vm408_vm0, %v85_v1  ;;  %v958_v3 = vsel %vm408_vm0, %v85_v1, 0  ;;  %v2230_v4 = vld [vmem:[%s3431_s1] sm:$0xff]   ;;  %2097 = vmatpush3.bf16.msra.mxu0 %v410_v2  ;;  %v2236_v10 = vld [vmem:[%s3431_s1 + $0x18] sm:$0xff]   ;;  %v2240_v14 = vld [vmem:[%s3431_s1 + $0x28] sm:$0xff]  }
   0x4   :  { %v2231_v5 = vld [vmem:[%s3432_s0] sm:$0xff]   ;;  %2163 = vmatpush3.bf16.msra.mxu1 %v958_v3  ;;  %2098 = vmatprep.mubr.msk.bf16.mxu0 %vm311_vm1, %v2230_v4  ;;  %v2237_v11 = vld [vmem:[%s3432_s0 + $0x18] sm:$0xff]   ;;  %v2241_v15 = vld [vmem:[%s3432_s0 + $0x28] sm:$0xff]  }
   0x5   :  { %2164 = vmatprep.mubr.msk.bf16.mxu1 %vm311_vm1, %v2231_v5  ;;  %v2238_v12 = vld [vmem:[%s3431_s1 + $0x20] sm:$0xff]   ;;  %v2242_v16 = vld [vmem:[%s3431_s1 + $0x30] sm:$0xff]   ;;  %v2244_v18 = vld [vmem:[%s3431_s1 + $0x38] sm:$0xff]  }
   0x6   :  { %2099 = vmatmul.mubr.msk.bf16.vlgmr.msra.gmra.mxu0 %vm311_vm1, %v2232_v6  ;;  %v2239_v13 = vld [vmem:[%s3432_s0 + $0x20] sm:$0xff]   ;;  %v2243_v17 = vld [vmem:[%s3432_s0 + $0x30] sm:$0xff]   ;;  %v2245_v19 = vld [vmem:[%s3432_s0 + $0x38] sm:$0xff]  }
   0x7   :  { %2165 = vmatmul.mubr.msk.bf16.vlgmr.msra.gmra.mxu1 %vm311_vm1, %v2233_v7  ;;  %2102 = vmatprep.mubr.msk.bf16.mxu0 %vm311_vm1, %v2234_v8  ;;  %v2246_v20 = vld [vmem:[%s3431_s1 + $0x40] sm:$0xff]   ;;  %v2248_v22 = vld [vmem:[%s3431_s1 + $0x48] sm:$0xff]   ;;  %v2250_v24 = vld [vmem:[%s3431_s1 + $0x50] sm:$0xff]  }
   0x8   :  { %2168 = vmatprep.mubr.msk.bf16.mxu1 %vm311_vm1, %v2235_v9  ;;  %v2247_v21 = vld [vmem:[%s3432_s0 + $0x40] sm:$0xff]   ;;  %v2249_v23 = vld [vmem:[%s3432_s0 + $0x48] sm:$0xff]   ;;  %v2251_v25 = vld [vmem:[%s3432_s0 + $0x50] sm:$0xff]  }
   0x9   :  { %v2252_v26 = vld [vmem:[%s3431_s1 + $0x58] sm:$0xff]   ;;  %v2254_v28 = vld [vmem:[%s3431_s1 + $0x60] sm:$0xff]   ;;  %v2256_v30 = vld [vmem:[%s3431_s1 + $0x68] sm:$0xff]  }
   0xa   :  { %v2253_v27 = vld [vmem:[%s3432_s0 + $0x58] sm:$0xff]   ;;  %v2255_v29 = vld [vmem:[%s3432_s0 + $0x60] sm:$0xff]   ;;  %v2257_v31 = vld [vmem:[%s3432_s0 + $0x68] sm:$0xff]  }
   0xb   :  { %v2258_v32 = vld [vmem:[%s3431_s1 + $0x70] sm:$0xff]   ;;  %v2260_v34 = vld [vmem:[%s3431_s1 + $0x78] sm:$0xff]   ;;  %v2262_v36 = vld [vmem:[%s3431_s1 + $0x80] sm:$0xff]  }
   0xc   :  { %v2259_v33 = vld [vmem:[%s3432_s0 + $0x70] sm:$0xff]   ;;  %v2261_v35 = vld [vmem:[%s3432_s0 + $0x78] sm:$0xff]   ;;  %v2263_v37 = vld [vmem:[%s3432_s0 + $0x80] sm:$0xff]  }
   0xd   :  { %v2264_v38 = vld [vmem:[%s3431_s1 + $0x88] sm:$0xff]   ;;  %v2266_v40 = vld [vmem:[%s3431_s1 + $0x90] sm:$0xff]   ;;  %v2268_v42 = vld [vmem:[%s3431_s1 + $0x98] sm:$0xff]  }
   0xe   :  { %2103 = vmatmul.mubr.msk.bf16.gmra.mxu0 %vm311_vm1, %v2236_v10  ;;  %v2265_v39 = vld [vmem:[%s3432_s0 + $0x88] sm:$0xff]   ;;  %v2267_v41 = vld [vmem:[%s3432_s0 + $0x90] sm:$0xff]   ;;  %v2269_v43 = vld [vmem:[%s3432_s0 + $0x98] sm:$0xff]  }
   0xf   :  { %2169 = vmatmul.mubr.msk.bf16.gmra.mxu1 %vm311_vm1, %v2237_v11  ;;  %2106 = vmatprep.mubr.msk.bf16.mxu0 %vm311_vm1, %v2238_v12  ;;  %v2270_v44 = vld [vmem:[%s3431_s1 + $0xa0] sm:$0xff]   ;;  %v2272_v46 = vld [vmem:[%s3431_s1 + $0xa8] sm:$0xff]   ;;  %v2274_v48 = vld [vmem:[%s3431_s1 + $0xb0] sm:$0xff]  }
  0x10   :  { %2172 = vmatprep.mubr.msk.bf16.mxu1 %vm311_vm1, %v2239_v13  ;;  %v2271_v45 = vld [vmem:[%s3432_s0 + $0xa0] sm:$0xff]   ;;  %v2273_v47 = vld [vmem:[%s3432_s0 + $0xa8] sm:$0xff]   ;;  %v2275_v49 = vld [vmem:[%s3432_s0 + $0xb0] sm:$0xff]  }
  0x11   :  { %v2276_v50 = vld [vmem:[%s3431_s1 + $0xb8] sm:$0xff]   ;;  %v2278_v52 = vld [vmem:[%s3431_s1 + $0xc0] sm:$0xff]   ;;  %v2280_v54 = vld [vmem:[%s3431_s1 + $0xc8] sm:$0xff]  }
  0x12   :  { %v2277_v51 = vld [vmem:[%s3432_s0 + $0xb8] sm:$0xff]   ;;  %v2279_v53 = vld [vmem:[%s3432_s0 + $0xc0] sm:$0xff]   ;;  %v2281_v55 = vld [vmem:[%s3432_s0 + $0xc8] sm:$0xff]  }
  0x13   :  { %v2282_v56 = vld [vmem:[%s3431_s1 + $0xd0] sm:$0xff]   ;;  %v2284_v58 = vld [vmem:[%s3431_s1 + $0xd8] sm:$0xff]   ;;  %v2286_v60 = vld [vmem:[%s3431_s1 + $0xe0] sm:$0xff]  }
  0x14   :  { %v2283_v57 = vld [vmem:[%s3432_s0 + $0xd0] sm:$0xff]   ;;  %v2285_v59 = vld [vmem:[%s3432_s0 + $0xd8] sm:$0xff]   ;;  %v2287_v61 = vld [vmem:[%s3432_s0 + $0xe0] sm:$0xff]  }
  0x15   :  { %v2288_v62 = vld [vmem:[%s3431_s1 + $0xe8] sm:$0xff]   ;;  %v2290_v0 = vld [vmem:[%s3431_s1 + $0xf0] sm:$0xff]   ;;  %v2292_v2 = vld [vmem:[%s3431_s1 + $0xf8] sm:$0xff]  }
  0x16   :  { %2107 = vmatmul.mubr.msk.bf16.gmra.mxu0 %vm311_vm1, %v2240_v14  ;;  %v2289_v63 = vld [vmem:[%s3432_s0 + $0xe8] sm:$0xff]   ;;  %v2291_v1 = vld [vmem:[%s3432_s0 + $0xf0] sm:$0xff]   ;;  %v2293_v3 = vld [vmem:[%s3432_s0 + $0xf8] sm:$0xff]  }
  0x17   :  { %2173 = vmatmul.mubr.msk.bf16.gmra.mxu1 %vm311_vm1, %v2241_v15  ;;  %2110 = vmatprep.mubr.msk.bf16.mxu0 %vm311_vm1, %v2242_v16  ;;  %v2846_v6 = vld [vmem:[%s3433_s4] ss:$0 sm:$0xff] }
  0x18   :  { %2176 = vmatprep.mubr.msk.bf16.mxu1 %vm311_vm1, %v2243_v17 }
  0x1e   :  { %2111 = vmatmul.mubr.msk.bf16.gmra.mxu0 %vm311_vm1, %v2244_v18 }
  0x1f   :  { %2177 = vmatmul.mubr.msk.bf16.gmra.mxu1 %vm311_vm1, %v2245_v19  ;;  %2114 = vmatprep.mubr.msk.bf16.mxu0 %vm311_vm1, %v2246_v20 }
  0x20   :  { %2180 = vmatprep.mubr.msk.bf16.mxu1 %vm311_vm1, %v2247_v21 }
  0x26   :  { %2115 = vmatmul.mubr.msk.bf16.gmra.mxu0 %vm311_vm1, %v2248_v22 }
  0x27   :  { %2181 = vmatmul.mubr.msk.bf16.gmra.mxu1 %vm311_vm1, %v2249_v23  ;;  %2118 = vmatprep.mubr.msk.bf16.mxu0 %vm311_vm1, %v2250_v24 }
  0x28   :  { %2184 = vmatprep.mubr.msk.bf16.mxu1 %vm311_vm1, %v2251_v25 }
  0x2e   :  { %2119 = vmatmul.mubr.msk.bf16.gmra.mxu0 %vm311_vm1, %v2252_v26 }
  0x2f   :  { %2185 = vmatmul.mubr.msk.bf16.gmra.mxu1 %vm311_vm1, %v2253_v27  ;;  %2122 = vmatprep.mubr.msk.bf16.mxu0 %vm311_vm1, %v2254_v28 }
  0x30   :  { %2188 = vmatprep.mubr.msk.bf16.mxu1 %vm311_vm1, %v2255_v29 }
  0x36   :  { %2123 = vmatmul.mubr.msk.bf16.gmra.mxu0 %vm311_vm1, %v2256_v30 }
  0x37   :  { %2189 = vmatmul.mubr.msk.bf16.gmra.mxu1 %vm311_vm1, %v2257_v31  ;;  %2126 = vmatprep.mubr.msk.bf16.mxu0 %vm311_vm1, %v2258_v32 }
  0x38   :  { %2192 = vmatprep.mubr.msk.bf16.mxu1 %vm311_vm1, %v2259_v33 }
  0x3e   :  { %2127 = vmatmul.mubr.msk.bf16.gmra.mxu0 %vm311_vm1, %v2260_v34 }
  0x3f   :  { %2193 = vmatmul.mubr.msk.bf16.gmra.mxu1 %vm311_vm1, %v2261_v35  ;;  %2130 = vmatprep.mubr.msk.bf16.mxu0 %vm311_vm1, %v2262_v36 }
  0x40   :  { %2196 = vmatprep.mubr.msk.bf16.mxu1 %vm311_vm1, %v2263_v37 }
  0x46   :  { %2131 = vmatmul.mubr.msk.bf16.gmra.mxu0 %vm311_vm1, %v2264_v38 }
  0x47   :  { %2197 = vmatmul.mubr.msk.bf16.gmra.mxu1 %vm311_vm1, %v2265_v39  ;;  %2134 = vmatprep.mubr.msk.bf16.mxu0 %vm311_vm1, %v2266_v40 }
  0x48   :  { %2200 = vmatprep.mubr.msk.bf16.mxu1 %vm311_vm1, %v2267_v41 }
  0x4e   :  { %2135 = vmatmul.mubr.msk.bf16.gmra.mxu0 %vm311_vm1, %v2268_v42 }
  0x4f   :  { %2201 = vmatmul.mubr.msk.bf16.gmra.mxu1 %vm311_vm1, %v2269_v43  ;;  %2138 = vmatprep.mubr.msk.bf16.mxu0 %vm311_vm1, %v2270_v44 }
  0x50   :  { %2204 = vmatprep.mubr.msk.bf16.mxu1 %vm311_vm1, %v2271_v45 }
  0x56   :  { %2139 = vmatmul.mubr.msk.bf16.gmra.mxu0 %vm311_vm1, %v2272_v46 }
  0x57   :  { %2205 = vmatmul.mubr.msk.bf16.gmra.mxu1 %vm311_vm1, %v2273_v47  ;;  %2142 = vmatprep.mubr.msk.bf16.mxu0 %vm311_vm1, %v2274_v48 }
  0x58   :  { %2208 = vmatprep.mubr.msk.bf16.mxu1 %vm311_vm1, %v2275_v49 }
  0x5e   :  { %2143 = vmatmul.mubr.msk.bf16.gmra.mxu0 %vm311_vm1, %v2276_v50 }
  0x5f   :  { %2209 = vmatmul.mubr.msk.bf16.gmra.mxu1 %vm311_vm1, %v2277_v51  ;;  %2146 = vmatprep.mubr.msk.bf16.mxu0 %vm311_vm1, %v2278_v52 }
  0x60   :  { %2212 = vmatprep.mubr.msk.bf16.mxu1 %vm311_vm1, %v2279_v53 }
  0x66   :  { %2147 = vmatmul.mubr.msk.bf16.gmra.mxu0 %vm311_vm1, %v2280_v54 }
  0x67   :  { %2213 = vmatmul.mubr.msk.bf16.gmra.mxu1 %vm311_vm1, %v2281_v55  ;;  %2150 = vmatprep.mubr.msk.bf16.mxu0 %vm311_vm1, %v2282_v56 }
  0x68   :  { %2216 = vmatprep.mubr.msk.bf16.mxu1 %vm311_vm1, %v2283_v57 }
  0x6e   :  { %2151 = vmatmul.mubr.msk.bf16.gmra.mxu0 %vm311_vm1, %v2284_v58 }
  0x6f   :  { %2217 = vmatmul.mubr.msk.bf16.gmra.mxu1 %vm311_vm1, %v2285_v59  ;;  %2154 = vmatprep.mubr.msk.bf16.mxu0 %vm311_vm1, %v2286_v60 }
  0x70   :  { %2220 = vmatprep.mubr.msk.bf16.mxu1 %vm311_vm1, %v2287_v61 }
  0x76   :  { %2155 = vmatmul.mubr.msk.bf16.gmra.mxu0 %vm311_vm1, %v2288_v62 }
  0x77   :  { %2221 = vmatmul.mubr.msk.bf16.gmra.mxu1 %vm311_vm1, %v2289_v63  ;;  %2158 = vmatprep.mubr.msk.bf16.mxu0 %vm311_vm1, %v2290_v0 }
  0x78   :  { %2224 = vmatprep.mubr.msk.bf16.mxu1 %vm311_vm1, %v2291_v1 }
  0x7e   :  { %2159 = vmatmul.mubr.msk.bf16.gmra.mxu0 %vm311_vm1, %v2292_v2 }
  0x7f   :  { %2225 = vmatmul.mubr.msk.bf16.gmra.mxu1 %vm311_vm1, %v2293_v3 }
  0xc6   :  { %v2100_v4 = vpop.f32.mrf.mxu0 }
  0xc7   :  { %v2166_v5 = vpop.f32.mrf.mxu1 }
  0xc8   :  { %v1003_v7 = vadd.f32 %v2166_v5, %v2100_v4  ;;  %v446_v8 = vpop.f32.mrf.mxu0 }
  0xc9   :  { %v994_v9 = vpop.f32.mrf.mxu1 }
  0xca   :  { %v2849_v10 = vadd.f32 %v2846_v6, %v1003_v7  ;;  %v995_v11 = vadd.f32 %v994_v9, %v446_v8  ;;  %v2101_v12 = vpop.f32.mrf.mxu0 }
  0xcb   :  { %v2167_v13 = vpop.f32.mrf.mxu1 }
  0xcc   :  { %v1968_v14 = vmul.f32 -1.442695, %v2849_v10  ;;  %v2853_v15 = vadd.f32 %v2846_v6, %v995_v11  ;;  %v1006_v16 = vadd.f32 %v2167_v13, %v2101_v12  ;;  %v449_v17 = vpop.f32.mrf.mxu0 }
  0xcd   :  { %v997_v18 = vpop.f32.mrf.mxu1 }
  0xce   :  { %2294 = vpow2.f32 %v1968_v14  ;;  %v1966_v19 = vmul.f32 -1.442695, %v2853_v15  ;;  %v2857_v20 = vadd.f32 %v2846_v6, %v1006_v16  ;;  %v998_v21 = vadd.f32 %v997_v18, %v449_v17  ;;  %v2104_v22 = vpop.f32.mrf.mxu0 }
  0xcf   :  { %v2170_v23 = vpop.f32.mrf.mxu1 }
  0xd0   :  { %2296 = vpow2.f32 %v1966_v19  ;;  %v1969_v24 = vmul.f32 -1.442695, %v2857_v20  ;;  %v2861_v25 = vadd.f32 %v2846_v6, %v998_v21  ;;  %v1019_v26 = vadd.f32 %v2170_v23, %v2104_v22  ;;  %v462_v27 = vpop.f32.mrf.mxu0 }
  0xd1   :  { %v1010_v28 = vpop.f32.mrf.mxu1 }
  0xd2   :  { %2298 = vpow2.f32 %v1969_v24  ;;  %v1967_v29 = vmul.f32 -1.442695, %v2861_v25  ;;  %v2865_v30 = vadd.f32 %v2846_v6, %v1019_v26  ;;  %v1011_v31 = vadd.f32 %v1010_v28, %v462_v27  ;;  %v2105_v32 = vpop.f32.mrf.mxu0 }
  0xd3   :  { %v2171_v33 = vpop.f32.mrf.mxu1 }
  0xd4   :  { %2300 = vpow2.f32 %v1967_v29  ;;  %v1972_v34 = vmul.f32 -1.442695, %v2865_v30  ;;  %v2869_v35 = vadd.f32 %v2846_v6, %v1011_v31  ;;  %v1022_v36 = vadd.f32 %v2171_v33, %v2105_v32  ;;  %v465_v37 = vpop.f32.mrf.mxu0 }
  0xd5   :  { %v1013_v38 = vpop.f32.mrf.mxu1 }
  0xd6   :  { %2302 = vpow2.f32 %v1972_v34  ;;  %v1970_v39 = vmul.f32 -1.442695, %v2869_v35  ;;  %v2873_v40 = vadd.f32 %v2846_v6, %v1022_v36  ;;  %v1014_v41 = vadd.f32 %v1013_v38, %v465_v37  ;;  %v2108_v42 = vpop.f32.mrf.mxu0 }
  0xd7   :  { %v2174_v43 = vpop.f32.mrf.mxu1 }
  0xd8   :  { %2304 = vpow2.f32 %v1970_v39  ;;  %v1973_v44 = vmul.f32 -1.442695, %v2873_v40  ;;  %v2877_v45 = vadd.f32 %v2846_v6, %v1014_v41  ;;  %v1035_v46 = vadd.f32 %v2174_v43, %v2108_v42  ;;  %v478_v47 = vpop.f32.mrf.mxu0 }
  0xd9   :  { %v1026_v48 = vpop.f32.mrf.mxu1 }
  0xda   :  { %2306 = vpow2.f32 %v1973_v44  ;;  %v1971_v49 = vmul.f32 -1.442695, %v2877_v45  ;;  %v2881_v50 = vadd.f32 %v2846_v6, %v1035_v46  ;;  %v1027_v51 = vadd.f32 %v1026_v48, %v478_v47  ;;  %v2109_v52 = vpop.f32.mrf.mxu0 }
  0xdb   :  { %v2295_v53 = vpop.eup %2294  ;;  %v2175_v54 = vpop.f32.mrf.mxu1 }
  0xdc   :  { %v1514_v55 = vadd.f32 1.0, %v2295_v53  ;;  %2308 = vpow2.f32 %v1971_v49  ;;  %v1976_v56 = vmul.f32 -1.442695, %v2881_v50  ;;  %v2885_v57 = vadd.f32 %v2846_v6, %v1027_v51  ;;  %v481_v58 = vpop.f32.mrf.mxu0 }
  0xdd   :  { %v2297_v59 = vpop.eup %2296  ;;  %v1038_v60 = vadd.f32 %v2175_v54, %v2109_v52  ;;  %v1029_v61 = vpop.f32.mrf.mxu1 }
  0xde   :  { %2310 = vrcp.f32 %v1514_v55  ;;  %v1512_v62 = vadd.f32 1.0, %v2297_v59  ;;  %v1974_v63 = vmul.f32 -1.442695, %v2885_v57  ;;  %v1030_v0 = vadd.f32 %v1029_v61, %v481_v58  ;;  %v2112_v1 = vpop.f32.mrf.mxu0 }
  0xdf   :  { %v2299_v2 = vpop.eup %2298  ;;  %2312 = vpow2.f32 %v1976_v56  ;;  %v2889_v3 = vadd.f32 %v2846_v6, %v1038_v60  ;;  %v2178_v4 = vpop.f32.mrf.mxu1 }
  0xe0   :  { %2314 = vrcp.f32 %v1512_v62  ;;  %v1515_v5 = vadd.f32 1.0, %v2299_v2  ;;  %v2892_v7 = vadd.f32 %v2846_v6, %v1030_v0  ;;  %v1051_v8 = vadd.f32 %v2178_v4, %v2112_v1  ;;  %v494_v9 = vpop.f32.mrf.mxu0 }
  0xe1   :  { %v2301_v11 = vpop.eup %2300  ;;  %2316 = vpow2.f32 %v1974_v63  ;;  %v1977_v12 = vmul.f32 -1.442695, %v2889_v3  ;;  %v1042_v13 = vpop.f32.mrf.mxu1 }
  0xe2   :  { %2318 = vrcp.f32 %v1515_v5  ;;  %v1513_v14 = vadd.f32 1.0, %v2301_v11  ;;  %v1975_v16 = vmul.f32 -1.442695, %v2892_v7  ;;  %v2897_v17 = vadd.f32 %v2846_v6, %v1051_v8  ;;  %v2113_v18 = vpop.f32.mrf.mxu0 }
  0xe3   :  { %v2303_v19 = vpop.eup %2302  ;;  %2320 = vpow2.f32 %v1977_v12  ;;  %v1043_v21 = vadd.f32 %v1042_v13, %v494_v9  ;;  %v2179_v22 = vpop.f32.mrf.mxu1 }
  0xe4   :  { %2322 = vrcp.f32 %v1513_v14  ;;  %v1518_v23 = vadd.f32 1.0, %v2303_v19  ;;  %v1980_v24 = vmul.f32 -1.442695, %v2897_v17  ;;  %v1054_v26 = vadd.f32 %v2179_v22, %v2113_v18  ;;  %v497_v27 = vpop.f32.mrf.mxu0 }
  0xe5   :  { %v2305_v28 = vpop.eup %2304  ;;  %2324 = vpow2.f32 %v1975_v16  ;;  %v2901_v29 = vadd.f32 %v2846_v6, %v1043_v21  ;;  %v1045_v31 = vpop.f32.mrf.mxu1 }
  0xe6   :  { %2326 = vrcp.f32 %v1518_v23  ;;  %v1516_v32 = vadd.f32 1.0, %v2305_v28  ;;  %v2904_v33 = vadd.f32 %v2846_v6, %v1054_v26  ;;  %v1046_v34 = vadd.f32 %v1045_v31, %v497_v27  ;;  %v2116_v36 = vpop.f32.mrf.mxu0 }
  0xe7   :  { %v2307_v37 = vpop.eup %2306  ;;  %2328 = vpow2.f32 %v1980_v24  ;;  %v1978_v38 = vmul.f32 -1.442695, %v2901_v29  ;;  %v2182_v39 = vpop.f32.mrf.mxu1 }
  0xe8   :  { %2330 = vrcp.f32 %v1516_v32  ;;  %v1519_v41 = vadd.f32 1.0, %v2307_v37  ;;  %v1981_v42 = vmul.f32 -1.442695, %v2904_v33  ;;  %v2909_v43 = vadd.f32 %v2846_v6, %v1046_v34  ;;  %v510_v44 = vpop.f32.mrf.mxu0 }
  0xe9   :  { %v2309_v46 = vpop.eup %2308  ;;  %2332 = vpow2.f32 %v1978_v38  ;;  %v1067_v47 = vadd.f32 %v2182_v39, %v2116_v36  ;;  %v1058_v48 = vpop.f32.mrf.mxu1 }
  0xea   :  { %2334 = vrcp.f32 %v1519_v41  ;;  %v1517_v49 = vadd.f32 1.0, %v2309_v46  ;;  %v1979_v51 = vmul.f32 -1.442695, %v2909_v43  ;;  %v1059_v52 = vadd.f32 %v1058_v48, %v510_v44  ;;  %v2117_v53 = vpop.f32.mrf.mxu0 }
  0xeb   :  { %v2311_v54 = vpop.eup %2310  ;;  %2336 = vpow2.f32 %v1981_v42  ;;  %v2913_v55 = vadd.f32 %v2846_v6, %v1067_v47  ;;  %v2183_v56 = vpop.f32.mrf.mxu1 }
  0xec   :  { %v2313_v58 = vpop.eup %2312  ;;  %v1706_v59 = vmul.f32 %v2311_v54, %v2849_v10  ;;  %2338 = vrcp.f32 %v1517_v49  ;;  %v2917_v60 = vadd.f32 %v2846_v6, %v1059_v52  ;;  %v1070_v61 = vadd.f32 %v2183_v56, %v2117_v53  ;;  %v513_v62 = vpop.f32.mrf.mxu0 }
  0xed   :  { %v2315_v63 = vpop.eup %2314  ;;  %v1522_v0 = vadd.f32 1.0, %v2313_v58  ;;  %2340 = vpow2.f32 %v1979_v51  ;;  %v1984_v1 = vmul.f32 -1.442695, %v2913_v55  ;;  %v1061_v2 = vpop.f32.mrf.mxu1 }
  0xee   :  { %v2317_v4 = vpop.eup %2316  ;;  %1771 = vst.msk [vmem:[%s3434_s5 + $0x10] sm:$0xff] %vm1768_vm2, %v1706_v59  ;;  %v1704_v10 = vmul.f32 %v2315_v63, %v2853_v15  ;;  %v1982_v5 = vmul.f32 -1.442695, %v2917_v60  ;;  %v2927_v8 = vadd.f32 %v2846_v6, %v1070_v61  ;;  %v1062_v9 = vadd.f32 %v1061_v2, %v513_v62  ;;  %v2120_v11 = vpop.f32.mrf.mxu0 }
  0xef   :  { %v2319_v12 = vpop.eup %2318  ;;  %2342 = vrcp.f32 %v1522_v0  ;;  %v1520_v13 = vadd.f32 1.0, %v2317_v4  ;;  %v2186_v14 = vpop.f32.mrf.mxu1 }
  0xf0   :  { %v2321_v16 = vpop.eup %2320  ;;  %1769 = vst.msk [vmem:[%s3434_s5] sm:$0xff] %vm1768_vm2, %v1704_v10  ;;  %v1707_v18 = vmul.f32 %v2319_v12, %v2857_v20  ;;  %2344 = vpow2.f32 %v1984_v1  ;;  %v1985_v15 = vmul.f32 -1.442695, %v2927_v8  ;;  %v2936_v19 = vadd.f32 %v2846_v6, %v1062_v9  ;;  %v526_v21 = vpop.f32.mrf.mxu0 }
  0xf1   :  { %v2323_v22 = vpop.eup %2322  ;;  %2346 = vrcp.f32 %v1520_v13  ;;  %v1523_v23 = vadd.f32 1.0, %v2321_v16  ;;  %v1083_v24 = vadd.f32 %v2186_v14, %v2120_v11  ;;  %v1074_v26 = vpop.f32.mrf.mxu1 }
  0xf2   :  { %v2325_v27 = vpop.eup %2324  ;;  %1772 = vst.msk [vmem:[%s3434_s5 + $0x18] sm:$0xff] %vm1768_vm2, %v1707_v18  ;;  %v1705_v20 = vmul.f32 %v2323_v22, %v2861_v25  ;;  %2348 = vpow2.f32 %v1982_v5  ;;  %v1983_v28 = vmul.f32 -1.442695, %v2936_v19  ;;  %v1075_v31 = vadd.f32 %v1074_v26, %v526_v21  ;;  %v2121_v32 = vpop.f32.mrf.mxu0 }
  0xf3   :  { %v2327_v34 = vpop.eup %2326  ;;  %2350 = vrcp.f32 %v1523_v23  ;;  %v1521_v36 = vadd.f32 1.0, %v2325_v27  ;;  %v2945_v37 = vadd.f32 %v2846_v6, %v1083_v24  ;;  %v2187_v38 = vpop.f32.mrf.mxu1 }
  0xf4   :  { %v2329_v39 = vpop.eup %2328  ;;  %1770 = vst.msk [vmem:[%s3434_s5 + $0x8] sm:$0xff] %vm1768_vm2, %v1705_v20  ;;  %v1710_v25 = vmul.f32 %v2327_v34, %v2865_v30  ;;  %2352 = vpow2.f32 %v1985_v15  ;;  %v2953_v41 = vadd.f32 %v2846_v6, %v1075_v31  ;;  %v1086_v42 = vadd.f32 %v2187_v38, %v2121_v32  ;;  %v529_v44 = vpop.f32.mrf.mxu0 }
  0xf5   :  { %v2331_v46 = vpop.eup %2330  ;;  %2354 = vrcp.f32 %v1521_v36  ;;  %v1526_v47 = vadd.f32 1.0, %v2329_v39  ;;  %v1988_v48 = vmul.f32 -1.442695, %v2945_v37  ;;  %v1077_v49 = vpop.f32.mrf.mxu1 }
  0xf6   :  { %v2333_v51 = vpop.eup %2332  ;;  %1775 = vst.msk [vmem:[%s3434_s5 + $0x30] sm:$0xff] %vm1768_vm2, %v1710_v25  ;;  %v1708_v30 = vmul.f32 %v2331_v46, %v2869_v35  ;;  %2356 = vpow2.f32 %v1983_v28  ;;  %v1986_v52 = vmul.f32 -1.442695, %v2953_v41  ;;  %v2963_v53 = vadd.f32 %v2846_v6, %v1086_v42  ;;  %v2124_v54 = vpop.f32.mrf.mxu0 }
  0xf7   :  { %v2335_v56 = vpop.eup %2334  ;;  %2358 = vrcp.f32 %v1526_v47  ;;  %v1524_v58 = vadd.f32 1.0, %v2333_v51  ;;  %v1078_v59 = vadd.f32 %v1077_v49, %v529_v44  ;;  %v2190_v61 = vpop.f32.mrf.mxu1 }
  0xf8   :  { %v2337_v62 = vpop.eup %2336  ;;  %1773 = vst.msk [vmem:[%s3434_s5 + $0x20] sm:$0xff] %vm1768_vm2, %v1708_v30  ;;  %v1711_v35 = vmul.f32 %v2335_v56, %v2873_v40  ;;  %2360 = vpow2.f32 %v1988_v48  ;;  %v1989_v63 = vmul.f32 -1.442695, %v2963_v53  ;;  %v1099_v0 = vadd.f32 %v2190_v61, %v2124_v54  ;;  %v542_v1 = vpop.f32.mrf.mxu0 }
  0xf9   :  { %v2339_v2 = vpop.eup %2338  ;;  %2362 = vrcp.f32 %v1524_v58  ;;  %v1527_v4 = vadd.f32 1.0, %v2337_v62  ;;  %v2972_v10 = vadd.f32 %v2846_v6, %v1078_v59  ;;  %v1090_v5 = vpop.f32.mrf.mxu1 }
  0xfa   :  { %v2341_v9 = vpop.eup %2340  ;;  %1776 = vst.msk [vmem:[%s3434_s5 + $0x38] sm:$0xff] %vm1768_vm2, %v1711_v35  ;;  %v1709_v40 = vmul.f32 %v2339_v2, %v2877_v45  ;;  %2364 = vpow2.f32 %v1986_v52  ;;  %v2980_v11 = vadd.f32 %v2846_v6, %v1099_v0  ;;  %v1091_v12 = vadd.f32 %v1090_v5, %v542_v1  ;;  %v2125_v13 = vpop.f32.mrf.mxu0 }
  0xfb   :  { %2366 = vrcp.f32 %v1527_v4  ;;  %v1525_v14 = vadd.f32 1.0, %v2341_v9  ;;  %v1987_v16 = vmul.f32 -1.442695, %v2972_v10  ;;  %v2191_v18 = vpop.f32.mrf.mxu1 }
  0xfc   :  { %v2343_v15 = vpop.eup %2342  ;;  %1774 = vst.msk [vmem:[%s3434_s5 + $0x28] sm:$0xff] %vm1768_vm2, %v1709_v40  ;;  %2368 = vpow2.f32 %v1989_v63  ;;  %v1992_v45 = vmul.f32 -1.442695, %v2980_v11  ;;  %v2989_v21 = vadd.f32 %v2846_v6, %v1091_v12  ;;  %v1102_v22 = vadd.f32 %v2191_v18, %v2125_v13  ;;  %v545_v23 = vpop.f32.mrf.mxu0 }
  0xfd   :  { %v2345_v24 = vpop.eup %2344  ;;  %v1714_v26 = vmul.f32 %v2343_v15, %v2881_v50  ;;  %2370 = vrcp.f32 %v1525_v14  ;;  %v1093_v27 = vpop.f32.mrf.mxu1 }
  0xfe   :  { %v2347_v20 = vpop.eup %2346  ;;  %v1530_v28 = vadd.f32 1.0, %v2345_v24  ;;  %2372 = vpow2.f32 %v1987_v16  ;;  %v1990_v31 = vmul.f32 -1.442695, %v2989_v21  ;;  %v2994_v32 = vadd.f32 %v2846_v6, %v1102_v22  ;;  %v2128_v34 = vpop.f32.mrf.mxu0 }
  0xff   :  { %v2349_v36 = vpop.eup %2348  ;;  %1779 = vst.msk [vmem:[%s3434_s5 + $0x50] sm:$0xff] %vm1768_vm2, %v1714_v26  ;;  %v1712_v38 = vmul.f32 %v2347_v20, %v2885_v57  ;;  %2374 = vpow2.f32 %v1992_v45  ;;  %v1094_v50 = vadd.f32 %v1093_v27, %v545_v23  ;;  %v2194_v39 = vpop.f32.mrf.mxu1 }
 0x100   :  { %v2351_v25 = vpop.eup %2350  ;;  %2376 = vrcp.f32 %v1530_v28  ;;  %v1528_v42 = vadd.f32 1.0, %v2349_v36  ;;  %v1993_v44 = vmul.f32 -1.442695, %v2994_v32  ;;  %v1115_v46 = vadd.f32 %v2194_v39, %v2128_v34  ;;  %v558_v47 = vpop.f32.mrf.mxu0 }
 0x101   :  { %v2353_v48 = vpop.eup %2352  ;;  %1777 = vst.msk [vmem:[%s3434_s5 + $0x40] sm:$0xff] %vm1768_vm2, %v1712_v38  ;;  %v1715_v49 = vmul.f32 %v2351_v25, %v2889_v3  ;;  %2378 = vpow2.f32 %v1990_v31  ;;  %v3008_v57 = vadd.f32 %v2846_v6, %v1094_v50  ;;  %v1106_v51 = vpop.f32.mrf.mxu1 }
 0x102   :  { %v2355_v30 = vpop.eup %2354  ;;  %2380 = vrcp.f32 %v1528_v42  ;;  %v1531_v52 = vadd.f32 1.0, %v2353_v48  ;;  %v3011_v54 = vadd.f32 %v2846_v6, %v1115_v46  ;;  %v1107_v56 = vadd.f32 %v1106_v51, %v558_v47  ;;  %v2129_v58 = vpop.f32.mrf.mxu0 }
 0x103   :  { %v2357_v59 = vpop.eup %2356  ;;  %1780 = vst.msk [vmem:[%s3434_s5 + $0x58] sm:$0xff] %vm1768_vm2, %v1715_v49  ;;  %v1713_v3 = vmul.f32 %v2355_v30, %v2892_v7  ;;  %2382 = vpow2.f32 %v1993_v44  ;;  %v1991_v61 = vmul.f32 -1.442695, %v3008_v57  ;;  %v2195_v62 = vpop.f32.mrf.mxu1 }
 0x104   :  { %v2359_v35 = vpop.eup %2358  ;;  %2384 = vrcp.f32 %v1531_v52  ;;  %v1529_v63 = vadd.f32 1.0, %v2357_v59  ;;  %v1996_v0 = vmul.f32 -1.442695, %v3011_v54  ;;  %v3021_v1 = vadd.f32 %v2846_v6, %v1107_v56  ;;  %v561_v2 = vpop.f32.mrf.mxu0 }
 0x105   :  { %v2361_v4 = vpop.eup %2360  ;;  %1778 = vst.msk [vmem:[%s3434_s5 + $0x48] sm:$0xff] %vm1768_vm2, %v1713_v3  ;;  %v1718_v7 = vmul.f32 %v2359_v35, %v2897_v17  ;;  %2386 = vpow2.f32 %v1991_v61  ;;  %v1118_v5 = vadd.f32 %v2195_v62, %v2129_v58  ;;  %v1109_v9 = vpop.f32.mrf.mxu1 }
 0x106   :  { %v2363_v40 = vpop.eup %2362  ;;  %2388 = vrcp.f32 %v1529_v63  ;;  %v1534_v12 = vadd.f32 1.0, %v2361_v4  ;;  %v1994_v13 = vmul.f32 -1.442695, %v3021_v1  ;;  %v1110_v14 = vadd.f32 %v1109_v9, %v561_v2  ;;  %v2132_v16 = vpop.f32.mrf.mxu0 }
 0x107   :  { %v2365_v18 = vpop.eup %2364  ;;  %1783 = vst.msk [vmem:[%s3434_s5 + $0x70] sm:$0xff] %vm1768_vm2, %v1718_v7  ;;  %v1716_v15 = vmul.f32 %v2363_v40, %v2901_v29  ;;  %2390 = vpow2.f32 %v1996_v0  ;;  %v3035_v17 = vadd.f32 %v2846_v6, %v1118_v5  ;;  %v2198_v45 = vpop.f32.mrf.mxu1 }
 0x108   :  { %v2367_v22 = vpop.eup %2366  ;;  %2392 = vrcp.f32 %v1534_v12  ;;  %v1532_v23 = vadd.f32 1.0, %v2365_v18  ;;  %v3038_v24 = vadd.f32 %v2846_v6, %v1110_v14  ;;  %v1131_v26 = vadd.f32 %v2198_v45, %v2132_v16  ;;  %v574_v27 = vpop.f32.mrf.mxu0 }
 0x109   :  { %v2369_v20 = vpop.eup %2368  ;;  %1781 = vst.msk [vmem:[%s3434_s5 + $0x60] sm:$0xff] %vm1768_vm2, %v1716_v15  ;;  %v1719_v29 = vmul.f32 %v2367_v22, %v2904_v33  ;;  %2394 = vpow2.f32 %v1994_v13  ;;  %v1997_v28 = vmul.f32 -1.442695, %v3035_v17  ;;  %v1122_v31 = vpop.f32.mrf.mxu1 }
 0x10a   :  { %v2371_v34 = vpop.eup %2370  ;;  %2396 = vrcp.f32 %v1532_v23  ;;  %v1535_v36 = vadd.f32 1.0, %v2369_v20  ;;  %v1995_v38 = vmul.f32 -1.442695, %v3038_v24  ;;  %v3048_v50 = vadd.f32 %v2846_v6, %v1131_v26  ;;  %v2133_v39 = vpop.f32.mrf.mxu0 }
 0x10b   :  { %v2373_v25 = vpop.eup %2372  ;;  %1784 = vst.msk [vmem:[%s3434_s5 + $0x78] sm:$0xff] %vm1768_vm2, %v1719_v29  ;;  %v1717_v33 = vmul.f32 %v2371_v34, %v2909_v43  ;;  %2398 = vpow2.f32 %v1997_v28  ;;  %v1123_v42 = vadd.f32 %v1122_v31, %v574_v27  ;;  %v2199_v44 = vpop.f32.mrf.mxu1 }
 0x10c   :  { %v2375_v46 = vpop.eup %2374  ;;  %2400 = vrcp.f32 %v1535_v36  ;;  %v1533_v47 = vadd.f32 1.0, %v2373_v25  ;;  %v2000_v48 = vmul.f32 -1.442695, %v3048_v50  ;;  %v1134_v49 = vadd.f32 %v2199_v44, %v2133_v39  ;;  %v577_v51 = vpop.f32.mrf.mxu0 }
 0x10d   :  { %v2377_v30 = vpop.eup %2376  ;;  %1782 = vst.msk [vmem:[%s3434_s5 + $0x68] sm:$0xff] %vm1768_vm2, %v1717_v33  ;;  %v1538_v52 = vadd.f32 1.0, %v2375_v46  ;;  %2402 = vpow2.f32 %v1995_v38  ;;  %v3061_v43 = vadd.f32 %v2846_v6, %v1123_v42  ;;  %v1125_v56 = vpop.f32.mrf.mxu1 }
 0x10e   :  { %v2379_v58 = vpop.eup %2378  ;;  %v1722_v59 = vmul.f32 %v2377_v30, %v2913_v55  ;;  %2404 = vrcp.f32 %v1533_v47  ;;  %v3065_v3 = vadd.f32 %v2846_v6, %v1134_v49  ;;  %v1126_v61 = vadd.f32 %v1125_v56, %v577_v51  ;;  %v2136_v62 = vpop.f32.mrf.mxu0 }
 0x10f   :  { %v2381_v35 = vpop.eup %2380  ;;  %2406 = vrcp.f32 %v1538_v52  ;;  %v1536_v63 = vadd.f32 1.0, %v2379_v58  ;;  %v1998_v0 = vmul.f32 -1.442695, %v3061_v43  ;;  %v2202_v2 = vpop.f32.mrf.mxu1 }
 0x110   :  { %v2383_v4 = vpop.eup %2382  ;;  %1787 = vst.msk [vmem:[%s3434_s5 + $0x90] sm:$0xff] %vm1768_vm2, %v1722_v59  ;;  %v1720_v55 = vmul.f32 %v2381_v35, %v2917_v60  ;;  %2408 = vpow2.f32 %v2000_v48  ;;  %v2001_v7 = vmul.f32 -1.442695, %v3065_v3  ;;  %v3075_v5 = vadd.f32 %v2846_v6, %v1126_v61  ;;  %v590_v9 = vpop.f32.mrf.mxu0 }
 0x111   :  { %v2385_v40 = vpop.eup %2384  ;;  %2410 = vrcp.f32 %v1536_v63  ;;  %v1539_v12 = vadd.f32 1.0, %v2383_v4  ;;  %v1147_v13 = vadd.f32 %v2202_v2, %v2136_v62  ;;  %v1138_v14 = vpop.f32.mrf.mxu1 }
 0x112   :  { %v2387_v16 = vpop.eup %2386  ;;  %1785 = vst.msk [vmem:[%s3434_s5 + $0x80] sm:$0xff] %vm1768_vm2, %v1720_v55  ;;  %v1723_v60 = vmul.f32 %v2385_v40, %v2927_v8  ;;  %2412 = vpow2.f32 %v1998_v0  ;;  %v1999_v18 = vmul.f32 -1.442695, %v3075_v5  ;;  %v1139_v15 = vadd.f32 %v1138_v14, %v590_v9  ;;  %v2137_v45 = vpop.f32.mrf.mxu0 }
 0x113   :  { %v2389_v22 = vpop.eup %2388  ;;  %2414 = vrcp.f32 %v1539_v12  ;;  %v1537_v23 = vadd.f32 1.0, %v2387_v16  ;;  %v3084_v26 = vadd.f32 %v2846_v6, %v1147_v13  ;;  %v2203_v27 = vpop.f32.mrf.mxu1 }
 0x114   :  { %v2391_v20 = vpop.eup %2390  ;;  %1788 = vst.msk [vmem:[%s3434_s5 + $0x98] sm:$0xff] %vm1768_vm2, %v1723_v60  ;;  %v1721_v8 = vmul.f32 %v2389_v22, %v2936_v19  ;;  %2416 = vpow2.f32 %v2001_v7  ;;  %v3092_v29 = vadd.f32 %v2846_v6, %v1139_v15  ;;  %v1150_v28 = vadd.f32 %v2203_v27, %v2137_v45  ;;  %v593_v31 = vpop.f32.mrf.mxu0 }
 0x115   :  { %v2393_v34 = vpop.eup %2392  ;;  %2418 = vrcp.f32 %v1537_v23  ;;  %v1542_v36 = vadd.f32 1.0, %v2391_v20  ;;  %v2004_v38 = vmul.f32 -1.442695, %v3084_v26  ;;  %v1141_v39 = vpop.f32.mrf.mxu1 }
 0x116   :  { %v2395_v25 = vpop.eup %2394  ;;  %1786 = vst.msk [vmem:[%s3434_s5 + $0x88] sm:$0xff] %vm1768_vm2, %v1721_v8  ;;  %v1726_v19 = vmul.f32 %v2393_v34, %v2945_v37  ;;  %2420 = vpow2.f32 %v1999_v18  ;;  %v2002_v33 = vmul.f32 -1.442695, %v3092_v29  ;;  %v3102_v42 = vadd.f32 %v2846_v6, %v1150_v28  ;;  %v2140_v44 = vpop.f32.mrf.mxu0 }
 0x117   :  { %v2397_v46 = vpop.eup %2396  ;;  %2422 = vrcp.f32 %v1542_v36  ;;  %v1540_v47 = vadd.f32 1.0, %v2395_v25  ;;  %v1142_v48 = vadd.f32 %v1141_v39, %v593_v31  ;;  %v2206_v49 = vpop.f32.mrf.mxu1 }
 0x118   :  { %v2399_v51 = vpop.eup %2398  ;;  %1791 = vst.msk [vmem:[%s3434_s5 + $0xb0] sm:$0xff] %vm1768_vm2, %v1726_v19  ;;  %v1724_v37 = vmul.f32 %v2397_v46, %v2953_v41  ;;  %2424 = vpow2.f32 %v2004_v38  ;;  %v2005_v30 = vmul.f32 -1.442695, %v3102_v42  ;;  %v1163_v52 = vadd.f32 %v2206_v49, %v2140_v44  ;;  %v606_v56 = vpop.f32.mrf.mxu0 }
 0x119   :  { %v2401_v58 = vpop.eup %2400  ;;  %2426 = vrcp.f32 %v1540_v47  ;;  %v1543_v59 = vadd.f32 1.0, %v2399_v51  ;;  %v3111_v61 = vadd.f32 %v2846_v6, %v1142_v48  ;;  %v1154_v62 = vpop.f32.mrf.mxu1 }
 0x11a   :  { %v2403_v35 = vpop.eup %2402  ;;  %1789 = vst.msk [vmem:[%s3434_s5 + $0xa0] sm:$0xff] %vm1768_vm2, %v1724_v37  ;;  %v1727_v41 = vmul.f32 %v2401_v58, %v2963_v53  ;;  %2428 = vpow2.f32 %v2002_v33  ;;  %v3119_v63 = vadd.f32 %v2846_v6, %v1163_v52  ;;  %v1155_v0 = vadd.f32 %v1154_v62, %v606_v56  ;;  %v2141_v2 = vpop.f32.mrf.mxu0 }
 0x11b   :  { %v2405_v4 = vpop.eup %2404  ;;  %2430 = vrcp.f32 %v1543_v59  ;;  %v1541_v55 = vadd.f32 1.0, %v2403_v35  ;;  %v2003_v7 = vmul.f32 -1.442695, %v3111_v61  ;;  %v2207_v9 = vpop.f32.mrf.mxu1 }
 0x11c   :  { %v2407_v40 = vpop.eup %2406  ;;  %1792 = vst.msk [vmem:[%s3434_s5 + $0xb8] sm:$0xff] %vm1768_vm2, %v1727_v41  ;;  %v1725_v53 = vmul.f32 %v2405_v4, %v2972_v10  ;;  %2432 = vpow2.f32 %v2005_v30  ;;  %v2008_v12 = vmul.f32 -1.442695, %v3119_v63  ;;  %v3129_v13 = vadd.f32 %v2846_v6, %v1155_v0  ;;  %v609_v14 = vpop.f32.mrf.mxu0 }
 0x11d   :  { %v2409_v16 = vpop.eup %2408  ;;  %v1730_v60 = vmul.f32 %v2407_v40, %v2980_v11  ;;  %2434 = vrcp.f32 %v1541_v55  ;;  %v1166_v18 = vadd.f32 %v2207_v9, %v2141_v2  ;;  %v1157_v15 = vpop.f32.mrf.mxu1 }
 0x11e   :  { %v2411_v45 = vpop.eup %2410  ;;  %1790 = vst.msk [vmem:[%s3434_s5 + $0xa8] sm:$0xff] %vm1768_vm2, %v1725_v53  ;;  %v1546_v10 = vadd.f32 1.0, %v2409_v16  ;;  %2436 = vpow2.f32 %v2003_v7  ;;  %v2006_v22 = vmul.f32 -1.442695, %v3129_v13  ;;  %v1158_v23 = vadd.f32 %v1157_v15, %v609_v14  ;;  %v2144_v27 = vpop.f32.mrf.mxu0 }
 0x11f   :  { %v2413_v20 = vpop.eup %2412  ;;  %1795 = vst.msk [vmem:[%s3434_s5 + $0xd0] sm:$0xff] %vm1768_vm2, %v1730_v60  ;;  %v1728_v11 = vmul.f32 %v2411_v45, %v2989_v21  ;;  %2438 = vpow2.f32 %v2008_v12  ;;  %v3143_v8 = vadd.f32 %v2846_v6, %v1166_v18  ;;  %v2210_v28 = vpop.f32.mrf.mxu1 }
 0x120   :  { %v2415_v31 = vpop.eup %2414  ;;  %2440 = vrcp.f32 %v1546_v10  ;;  %v1544_v34 = vadd.f32 1.0, %v2413_v20  ;;  %v3146_v36 = vadd.f32 %v2846_v6, %v1158_v23  ;;  %v1179_v38 = vadd.f32 %v2210_v28, %v2144_v27  ;;  %v622_v39 = vpop.f32.mrf.mxu0 }
 0x121   :  { %v2417_v25 = vpop.eup %2416  ;;  %1793 = vst.msk [vmem:[%s3434_s5 + $0xc0] sm:$0xff] %vm1768_vm2, %v1728_v11  ;;  %v1731_v21 = vmul.f32 %v2415_v31, %v2994_v32  ;;  %2442 = vpow2.f32 %v2006_v22  ;;  %v2009_v19 = vmul.f32 -1.442695, %v3143_v8  ;;  %v1170_v33 = vpop.f32.mrf.mxu1 }
 0x122   :  { %v2419_v44 = vpop.eup %2418  ;;  %2444 = vrcp.f32 %v1544_v34  ;;  %v1547_v46 = vadd.f32 1.0, %v2417_v25  ;;  %v2007_v47 = vmul.f32 -1.442695, %v3146_v36  ;;  %v3156_v48 = vadd.f32 %v2846_v6, %v1179_v38  ;;  %v2145_v49 = vpop.f32.mrf.mxu0 }
 0x123   :  { %v2421_v51 = vpop.eup %2420  ;;  %1796 = vst.msk [vmem:[%s3434_s5 + $0xd8] sm:$0xff] %vm1768_vm2, %v1731_v21  ;;  %v1729_v32 = vmul.f32 %v2419_v44, %v3008_v57  ;;  %2446 = vpow2.f32 %v2009_v19  ;;  %v1171_v37 = vadd.f32 %v1170_v33, %v622_v39  ;;  %v2211_v30 = vpop.f32.mrf.mxu1  ;;  %v3202_v21 = vld [vmem:[%s3433_s4] ss:$0 sm:$0xff] }
 0x124   :  { %v2423_v52 = vpop.eup %2422  ;;  %2448 = vrcp.f32 %v1547_v46  ;;  %v1545_v56 = vadd.f32 1.0, %v2421_v51  ;;  %v2012_v58 = vmul.f32 -1.442695, %v3156_v48  ;;  %v1182_v59 = vadd.f32 %v2211_v30, %v2145_v49  ;;  %v625_v62 = vpop.f32.mrf.mxu0 }
 0x125   :  { %v2425_v35 = vpop.eup %2424  ;;  %1794 = vst.msk [vmem:[%s3434_s5 + $0xc8] sm:$0xff] %vm1768_vm2, %v1729_v32  ;;  %v1734_v41 = vmul.f32 %v2423_v52, %v3011_v54  ;;  %2450 = vpow2.f32 %v2007_v47  ;;  %v3170_v57 = vadd.f32 %v2846_v6, %v1171_v37  ;;  %v1173_v0 = vpop.f32.mrf.mxu1 }
 0x126   :  { %v2427_v2 = vpop.eup %2426  ;;  %2452 = vrcp.f32 %v1545_v56  ;;  %v1550_v4 = vadd.f32 1.0, %v2425_v35  ;;  %v3173_v55 = vadd.f32 %v2846_v6, %v1182_v59  ;;  %v1174_v7 = vadd.f32 %v1173_v0, %v625_v62  ;;  %v2148_v9 = vpop.f32.mrf.mxu0 }
 0x127   :  { %v2429_v40 = vpop.eup %2428  ;;  %1799 = vst.msk [vmem:[%s3434_s5 + $0xf0] sm:$0xff] %vm1768_vm2, %v1734_v41  ;;  %v1732_v54 = vmul.f32 %v2427_v2, %v3021_v1  ;;  %2454 = vpow2.f32 %v2012_v58  ;;  %v2010_v53 = vmul.f32 -1.442695, %v3170_v57  ;;  %v2214_v12 = vpop.f32.mrf.mxu1 }
 0x128   :  { %v2431_v14 = vpop.eup %2430  ;;  %2456 = vrcp.f32 %v1550_v4  ;;  %v1548_v16 = vadd.f32 1.0, %v2429_v40  ;;  %v2013_v60 = vmul.f32 -1.442695, %v3173_v55  ;;  %v3183_v18 = vadd.f32 %v2846_v6, %v1174_v7  ;;  %v638_v15 = vpop.f32.mrf.mxu0 }
 0x129   :  { %v2433_v45 = vpop.eup %2432  ;;  %1797 = vst.msk [vmem:[%s3434_s5 + $0xe0] sm:$0xff] %vm1768_vm2, %v1732_v54  ;;  %v1735_v1 = vmul.f32 %v2431_v14, %v3035_v17  ;;  %2458 = vpow2.f32 %v2010_v53  ;;  %v1195_v10 = vadd.f32 %v2214_v12, %v2148_v9  ;;  %v1186_v22 = vpop.f32.mrf.mxu1 }
 0x12a   :  { %v2435_v23 = vpop.eup %2434  ;;  %2460 = vrcp.f32 %v1548_v16  ;;  %v1551_v27 = vadd.f32 1.0, %v2433_v45  ;;  %v2011_v20 = vmul.f32 -1.442695, %v3183_v18  ;;  %v1187_v11 = vadd.f32 %v1186_v22, %v638_v15  ;;  %v2149_v28 = vpop.f32.mrf.mxu0 }
 0x12b   :  { %v2437_v31 = vpop.eup %2436  ;;  %1800 = vst.msk [vmem:[%s3434_s5 + $0xf8] sm:$0xff] %vm1768_vm2, %v1735_v1  ;;  %v1733_v34 = vmul.f32 %v2435_v23, %v3038_v24  ;;  %2462 = vpow2.f32 %v2013_v60  ;;  %v3197_v17 = vadd.f32 %v2846_v6, %v1195_v10  ;;  %v2215_v38 = vpop.f32.mrf.mxu1 }
 0x12c   :  { %v2439_v39 = vpop.eup %2438  ;;  %2464 = vrcp.f32 %v1551_v27  ;;  %v1549_v25 = vadd.f32 1.0, %v2437_v31  ;;  %v3205_v19 = vadd.f32 %v3202_v21, %v1187_v11  ;;  %v1198_v33 = vadd.f32 %v2215_v38, %v2149_v28  ;;  %v641_v44 = vpop.f32.mrf.mxu0 }
 0x12d   :  { %v2441_v46 = vpop.eup %2440  ;;  %1798 = vst.msk [vmem:[%s3434_s5 + $0xe8] sm:$0xff] %vm1768_vm2, %v1733_v34  ;;  %v1554_v6 = vadd.f32 1.0, %v2439_v39  ;;  %2466 = vpow2.f32 %v2011_v20  ;;  %v2016_v24 = vmul.f32 -1.442695, %v3197_v17  ;;  %v1189_v47 = vpop.f32.mrf.mxu1 }
 0x12e   :  { %v2443_v49 = vpop.eup %2442  ;;  %v1738_v51 = vmul.f32 %v2441_v46, %v3048_v50  ;;  %2468 = vrcp.f32 %v1549_v25  ;;  %v2014_v32 = vmul.f32 -1.442695, %v3205_v19  ;;  %v3215_v37 = vadd.f32 %v3202_v21, %v1198_v33  ;;  %v2152_v30 = vpop.f32.mrf.mxu0 }
 0x12f   :  { %v2445_v52 = vpop.eup %2444  ;;  %2470 = vrcp.f32 %v1554_v6  ;;  %v1552_v56 = vadd.f32 1.0, %v2443_v49  ;;  %v1190_v58 = vadd.f32 %v1189_v47, %v641_v44  ;;  %v2218_v59 = vpop.f32.mrf.mxu1 }
 0x130   :  { %v2447_v62 = vpop.eup %2446  ;;  %1803 = vst.msk [vmem:[%s3434_s5 + $0x110] sm:$0xff] %vm1768_vm2, %v1738_v51  ;;  %v1736_v50 = vmul.f32 %v2445_v52, %v3061_v43  ;;  %2472 = vpow2.f32 %v2016_v24  ;;  %v2017_v35 = vmul.f32 -1.442695, %v3215_v37  ;;  %v1211_v41 = vadd.f32 %v2218_v59, %v2152_v30  ;;  %v654_v0 = vpop.f32.mrf.mxu0 }
 0x131   :  { %v2449_v2 = vpop.eup %2448  ;;  %2474 = vrcp.f32 %v1552_v56  ;;  %v1555_v4 = vadd.f32 1.0, %v2447_v62  ;;  %v3224_v7 = vadd.f32 %v3202_v21, %v1190_v58  ;;  %v1202_v9 = vpop.f32.mrf.mxu1 }
 0x132   :  { %v2451_v40 = vpop.eup %2450  ;;  %1801 = vst.msk [vmem:[%s3434_s5 + $0x100] sm:$0xff] %vm1768_vm2, %v1736_v50  ;;  %v1739_v43 = vmul.f32 %v2449_v2, %v3065_v3  ;;  %2476 = vpow2.f32 %v2014_v32  ;;  %v3232_v54 = vadd.f32 %v3202_v21, %v1211_v41  ;;  %v1203_v53 = vadd.f32 %v1202_v9, %v654_v0  ;;  %v2153_v12 = vpop.f32.mrf.mxu0 }
 0x133   :  { %v2453_v14 = vpop.eup %2452  ;;  %2478 = vrcp.f32 %v1555_v4  ;;  %v1553_v16 = vadd.f32 1.0, %v2451_v40  ;;  %v2015_v60 = vmul.f32 -1.442695, %v3224_v7  ;;  %v2219_v15 = vpop.f32.mrf.mxu1 }
 0x134   :  { %v2455_v45 = vpop.eup %2454  ;;  %1804 = vst.msk [vmem:[%s3434_s5 + $0x118] sm:$0xff] %vm1768_vm2, %v1739_v43  ;;  %v1737_v3 = vmul.f32 %v2453_v14, %v3075_v5  ;;  %2480 = vpow2.f32 %v2017_v35  ;;  %v2020_v1 = vmul.f32 -1.442695, %v3232_v54  ;;  %v3242_v10 = vadd.f32 %v3202_v21, %v1203_v53  ;;  %v657_v22 = vpop.f32.mrf.mxu0 }
 0x135   :  { %v2457_v23 = vpop.eup %2456  ;;  %2482 = vrcp.f32 %v1553_v16  ;;  %v1558_v27 = vadd.f32 1.0, %v2455_v45  ;;  %v1214_v20 = vadd.f32 %v2219_v15, %v2153_v12  ;;  %v1205_v11 = vpop.f32.mrf.mxu1 }
 0x136   :  { %v2459_v28 = vpop.eup %2458  ;;  %1802 = vst.msk [vmem:[%s3434_s5 + $0x108] sm:$0xff] %vm1768_vm2, %v1737_v3  ;;  %v1742_v5 = vmul.f32 %v2457_v23, %v3084_v26  ;;  %2484 = vpow2.f32 %v2015_v60  ;;  %v2018_v31 = vmul.f32 -1.442695, %v3242_v10  ;;  %v1206_v34 = vadd.f32 %v1205_v11, %v657_v22  ;;  %v2156_v38 = vpop.f32.mrf.mxu0 }
 0x137   :  { %v2461_v39 = vpop.eup %2460  ;;  %2486 = vrcp.f32 %v1558_v27  ;;  %v1556_v25 = vadd.f32 1.0, %v2459_v28  ;;  %v3251_v33 = vadd.f32 %v3202_v21, %v1214_v20  ;;  %v2222_v44 = vpop.f32.mrf.mxu1 }
 0x138   :  { %v2463_v46 = vpop.eup %2462  ;;  %1807 = vst.msk [vmem:[%s3434_s5 + $0x130] sm:$0xff] %vm1768_vm2, %v1742_v5  ;;  %v1740_v26 = vmul.f32 %v2461_v39, %v3092_v29  ;;  %2488 = vpow2.f32 %v2020_v1  ;;  %v3259_v6 = vadd.f32 %v3202_v21, %v1206_v34  ;;  %v1227_v24 = vadd.f32 %v2222_v44, %v2156_v38  ;;  %v670_v47 = vpop.f32.mrf.mxu0 }
 0x139   :  { %v2465_v49 = vpop.eup %2464  ;;  %2490 = vrcp.f32 %v1556_v25  ;;  %v1559_v51 = vadd.f32 1.0, %v2463_v46  ;;  %v2021_v32 = vmul.f32 -1.442695, %v3251_v33  ;;  %v1218_v30 = vpop.f32.mrf.mxu1 }
 0x13a   :  { %v2467_v52 = vpop.eup %2466  ;;  %1805 = vst.msk [vmem:[%s3434_s5 + $0x120] sm:$0xff] %vm1768_vm2, %v1740_v26  ;;  %v1743_v29 = vmul.f32 %v2465_v49, %v3102_v42  ;;  %2492 = vpow2.f32 %v2018_v31  ;;  %v2019_v56 = vmul.f32 -1.442695, %v3259_v6  ;;  %v3269_v58 = vadd.f32 %v3202_v21, %v1227_v24  ;;  %v2157_v59 = vpop.f32.mrf.mxu0 }
 0x13b   :  { %v2469_v62 = vpop.eup %2468  ;;  %2494 = vrcp.f32 %v1559_v51  ;;  %v1557_v50 = vadd.f32 1.0, %v2467_v52  ;;  %v1219_v35 = vadd.f32 %v1218_v30, %v670_v47  ;;  %v2223_v41 = vpop.f32.mrf.mxu1 }
 0x13c   :  { %v2471_v0 = vpop.eup %2470  ;;  %1808 = vst.msk [vmem:[%s3434_s5 + $0x138] sm:$0xff] %vm1768_vm2, %v1743_v29  ;;  %v1741_v42 = vmul.f32 %v2469_v62, %v3111_v61  ;;  %2496 = vpow2.f32 %v2021_v32  ;;  %v2024_v2 = vmul.f32 -1.442695, %v3269_v58  ;;  %v1230_v4 = vadd.f32 %v2223_v41, %v2157_v59  ;;  %v673_v9 = vpop.f32.mrf.mxu0 }
 0x13d   :  { %v2473_v40 = vpop.eup %2472  ;;  %v1746_v43 = vmul.f32 %v2471_v0, %v3119_v63  ;;  %2498 = vrcp.f32 %v1557_v50  ;;  %v3279_v53 = vadd.f32 %v3202_v21, %v1219_v35  ;;  %v1221_v12 = vpop.f32.mrf.mxu1 }
 0x13e   :  { %v2475_v14 = vpop.eup %2474  ;;  %1806 = vst.msk [vmem:[%s3434_s5 + $0x128] sm:$0xff] %vm1768_vm2, %v1741_v42  ;;  %v1562_v61 = vadd.f32 1.0, %v2473_v40  ;;  %2500 = vpow2.f32 %v2019_v56  ;;  %v3286_v16 = vadd.f32 %v3202_v21, %v1230_v4  ;;  %v1222_v60 = vadd.f32 %v1221_v12, %v673_v9  ;;  %v2160_v15 = vpop.f32.mrf.mxu0 }
 0x13f   :  { %v2477_v45 = vpop.eup %2476  ;;  %1811 = vst.msk [vmem:[%s3434_s5 + $0x150] sm:$0xff] %vm1768_vm2, %v1746_v43  ;;  %v1744_v63 = vmul.f32 %v2475_v14, %v3129_v13  ;;  %2502 = vpow2.f32 %v2024_v2  ;;  %v2022_v3 = vmul.f32 -1.442695, %v3279_v53  ;;  %v2226_v1 = vpop.f32.mrf.mxu1 }
 0x140   :  { %v2479_v22 = vpop.eup %2478  ;;  %2504 = vrcp.f32 %v1562_v61  ;;  %v1560_v23 = vadd.f32 1.0, %v2477_v45  ;;  %v2025_v27 = vmul.f32 -1.442695, %v3286_v16  ;;  %v3296_v20 = vadd.f32 %v3202_v21, %v1222_v60  ;;  %v686_v11 = vpop.f32.mrf.mxu0 }
 0x141   :  { %v2481_v28 = vpop.eup %2480  ;;  %1809 = vst.msk [vmem:[%s3434_s5 + $0x140] sm:$0xff] %vm1768_vm2, %v1744_v63  ;;  %v1747_v13 = vmul.f32 %v2479_v22, %v3143_v8  ;;  %2506 = vpow2.f32 %v2022_v3  ;;  %v1243_v5 = vadd.f32 %v2226_v1, %v2160_v15  ;;  %v1234_v31 = vpop.f32.mrf.mxu1 }
 0x142   :  { %v2483_v34 = vpop.eup %2482  ;;  %2508 = vrcp.f32 %v1560_v23  ;;  %v1563_v38 = vadd.f32 1.0, %v2481_v28  ;;  %v2023_v39 = vmul.f32 -1.442695, %v3296_v20  ;;  %v1235_v25 = vadd.f32 %v1234_v31, %v686_v11  ;;  %v2161_v44 = vpop.f32.mrf.mxu0 }
 0x143   :  { %v2485_v46 = vpop.eup %2484  ;;  %1812 = vst.msk [vmem:[%s3434_s5 + $0x158] sm:$0xff] %vm1768_vm2, %v1747_v13  ;;  %v1745_v26 = vmul.f32 %v2483_v34, %v3146_v36  ;;  %2510 = vpow2.f32 %v2025_v27  ;;  %v3310_v8 = vadd.f32 %v3202_v21, %v1243_v5  ;;  %v2227_v24 = vpop.f32.mrf.mxu1 }
 0x144   :  { %v2487_v47 = vpop.eup %2486  ;;  %2512 = vrcp.f32 %v1563_v38  ;;  %v1561_v49 = vadd.f32 1.0, %v2485_v46  ;;  %v3313_v51 = vadd.f32 %v3202_v21, %v1235_v25  ;;  %v1246_v32 = vadd.f32 %v2227_v24, %v2161_v44  ;;  %v689_v30 = vpop.f32.mrf.mxu0 }
 0x145   :  { %v2489_v52 = vpop.eup %2488  ;;  %1810 = vst.msk [vmem:[%s3434_s5 + $0x148] sm:$0xff] %vm1768_vm2, %v1745_v26  ;;  %v1750_v36 = vmul.f32 %v2487_v47, %v3156_v48  ;;  %2514 = vpow2.f32 %v2023_v39  ;;  %v2028_v29 = vmul.f32 -1.442695, %v3310_v8  ;;  %v1237_v56 = vpop.f32.mrf.mxu1 }
 0x146   :  { %v2491_v59 = vpop.eup %2490  ;;  %2516 = vrcp.f32 %v1561_v49  ;;  %v1566_v62 = vadd.f32 1.0, %v2489_v52  ;;  %v2026_v50 = vmul.f32 -1.442695, %v3313_v51  ;;  %v3323_v35 = vadd.f32 %v3202_v21, %v1246_v32 }
 0x147   :  { %v2493_v41 = vpop.eup %2492  ;;  %1815 = vst.msk [vmem:[%s3434_s5 + $0x170] sm:$0xff] %vm1768_vm2, %v1750_v36  ;;  %v1748_v48 = vmul.f32 %v2491_v59, %v3170_v57  ;;  %2518 = vpow2.f32 %v2028_v29  ;;  %v1238_v0 = vadd.f32 %v1237_v56, %v689_v30 }
 0x148   :  { %v2495_v42 = vpop.eup %2494  ;;  %2520 = vrcp.f32 %v1566_v62  ;;  %v1564_v2 = vadd.f32 1.0, %v2493_v41  ;;  %v2029_v4 = vmul.f32 -1.442695, %v3323_v35 }
 0x149   :  { %v2497_v9 = vpop.eup %2496  ;;  %1813 = vst.msk [vmem:[%s3434_s5 + $0x160] sm:$0xff] %vm1768_vm2, %v1748_v48  ;;  %v1751_v40 = vmul.f32 %v2495_v42, %v3173_v55  ;;  %2522 = vpow2.f32 %v2026_v50  ;;  %v3337_v43 = vadd.f32 %v3202_v21, %v1238_v0 }
 0x14a   :  { %v2499_v57 = vpop.eup %2498  ;;  %2524 = vrcp.f32 %v1564_v2  ;;  %v1567_v12 = vadd.f32 1.0, %v2497_v9 }
 0x14b   :  { %v2501_v14 = vpop.eup %2500  ;;  %1816 = vst.msk [vmem:[%s3434_s5 + $0x178] sm:$0xff] %vm1768_vm2, %v1751_v40  ;;  %v1749_v61 = vmul.f32 %v2499_v57, %v3183_v18  ;;  %2526 = vpow2.f32 %v2029_v4  ;;  %v2027_v60 = vmul.f32 -1.442695, %v3337_v43 }
 0x14c   :  { %v2503_v15 = vpop.eup %2502  ;;  %2528 = vrcp.f32 %v1567_v12  ;;  %v1565_v55 = vadd.f32 1.0, %v2501_v14 }
 0x14d   :  { %v2505_v45 = vpop.eup %2504  ;;  %1814 = vst.msk [vmem:[%s3434_s5 + $0x168] sm:$0xff] %vm1768_vm2, %v1749_v61  ;;  %v1570_v21 = vadd.f32 1.0, %v2503_v15  ;;  %2530 = vpow2.f32 %v2027_v60 }
 0x14e   :  { %v2507_v63 = vpop.eup %2506  ;;  %v1754_v3 = vmul.f32 %v2505_v45, %v3197_v17  ;;  %2532 = vrcp.f32 %v1565_v55 }
 0x14f   :  { %v2509_v1 = vpop.eup %2508  ;;  %2534 = vrcp.f32 %v1570_v21  ;;  %v1568_v18 = vadd.f32 1.0, %v2507_v63 }
 0x150   :  { %v2511_v22 = vpop.eup %2510  ;;  %1819 = vst.msk [vmem:[%s3434_s5 + $0x190] sm:$0xff] %vm1768_vm2, %v1754_v3  ;;  %v1752_v23 = vmul.f32 %v2509_v1, %v3205_v19 }
 0x151   :  { %v2513_v27 = vpop.eup %2512  ;;  %2536 = vrcp.f32 %v1568_v18  ;;  %v1571_v11 = vadd.f32 1.0, %v2511_v22 }
 0x152   :  { %v2515_v28 = vpop.eup %2514  ;;  %1817 = vst.msk [vmem:[%s3434_s5 + $0x180] sm:$0xff] %vm1768_vm2, %v1752_v23  ;;  %v1755_v17 = vmul.f32 %v2513_v27, %v3215_v37 }
 0x153   :  { %v2517_v13 = vpop.eup %2516  ;;  %2538 = vrcp.f32 %v1571_v11  ;;  %v1569_v5 = vadd.f32 1.0, %v2515_v28 }
 0x154   :  { %v2519_v31 = vpop.eup %2518  ;;  %1820 = vst.msk [vmem:[%s3434_s5 + $0x198] sm:$0xff] %vm1768_vm2, %v1755_v17  ;;  %v1753_v19 = vmul.f32 %v2517_v13, %v3224_v7 }
 0x155   :  { %v2521_v34 = vpop.eup %2520  ;;  %2540 = vrcp.f32 %v1569_v5  ;;  %v1574_v38 = vadd.f32 1.0, %v2519_v31 }
 0x156   :  { %v2523_v39 = vpop.eup %2522  ;;  %1818 = vst.msk [vmem:[%s3434_s5 + $0x188] sm:$0xff] %vm1768_vm2, %v1753_v19  ;;  %v1758_v37 = vmul.f32 %v2521_v34, %v3232_v54 }
 0x157   :  { %v2525_v25 = vpop.eup %2524  ;;  %2542 = vrcp.f32 %v1574_v38  ;;  %v1572_v44 = vadd.f32 1.0, %v2523_v39 }
 0x158   :  { %v2527_v46 = vpop.eup %2526  ;;  %1823 = vst.msk [vmem:[%s3434_s5 + $0x1b0] sm:$0xff] %vm1768_vm2, %v1758_v37  ;;  %v1756_v7 = vmul.f32 %v2525_v25, %v3242_v10 }
 0x159   :  { %v2529_v26 = vpop.eup %2528  ;;  %2544 = vrcp.f32 %v1572_v44  ;;  %v1575_v24 = vadd.f32 1.0, %v2527_v46 }
 0x15a   :  { %v2531_v47 = vpop.eup %2530  ;;  %1821 = vst.msk [vmem:[%s3434_s5 + $0x1a0] sm:$0xff] %vm1768_vm2, %v1756_v7  ;;  %v1759_v54 = vmul.f32 %v2529_v26, %v3251_v33 }
 0x15b   :  { %v2533_v49 = vpop.eup %2532  ;;  %2546 = vrcp.f32 %v1575_v24  ;;  %v1573_v32 = vadd.f32 1.0, %v2531_v47 }
 0x15c   :  { %v2535_v30 = vpop.eup %2534  ;;  %1824 = vst.msk [vmem:[%s3434_s5 + $0x1b8] sm:$0xff] %vm1768_vm2, %v1759_v54  ;;  %v1757_v10 = vmul.f32 %v2533_v49, %v3259_v6 }
 0x15d   :  { %v1762_v52 = vmul.f32 %v2535_v30, %v3269_v58  ;;  %2548 = vrcp.f32 %v1573_v32 }
 0x15e   :  { %v2537_v36 = vpop.eup %2536  ;;  %1822 = vst.msk [vmem:[%s3434_s5 + $0x1a8] sm:$0xff] %vm1768_vm2, %v1757_v10 }
 0x15f   :  { %1827 = vst.msk [vmem:[%s3434_s5 + $0x1d0] sm:$0xff] %vm1768_vm2, %v1762_v52  ;;  %v1760_v33 = vmul.f32 %v2537_v36, %v3279_v53 }
 0x160   :  { %v2539_v29 = vpop.eup %2538 }
 0x161   :  { %1825 = vst.msk [vmem:[%s3434_s5 + $0x1c0] sm:$0xff] %vm1768_vm2, %v1760_v33  ;;  %v1763_v6 = vmul.f32 %v2539_v29, %v3286_v16 }
 0x162   :  { %v2541_v58 = vpop.eup %2540 }
 0x163   :  { %1828 = vst.msk [vmem:[%s3434_s5 + $0x1d8] sm:$0xff] %vm1768_vm2, %v1763_v6  ;;  %v1761_v56 = vmul.f32 %v2541_v58, %v3296_v20 }
 0x164   :  { %v2543_v59 = vpop.eup %2542 }
 0x165   :  { %1826 = vst.msk [vmem:[%s3434_s5 + $0x1c8] sm:$0xff] %vm1768_vm2, %v1761_v56  ;;  %v1766_v53 = vmul.f32 %v2543_v59, %v3310_v8 }
 0x166   :  { %v2545_v62 = vpop.eup %2544 }
 0x167   :  { %1831 = vst.msk [vmem:[%s3434_s5 + $0x1f0] sm:$0xff] %vm1768_vm2, %v1766_v53  ;;  %v1764_v16 = vmul.f32 %v2545_v62, %v3313_v51 }
 0x168   :  { %v2547_v50 = vpop.eup %2546 }
 0x169   :  { %1829 = vst.msk [vmem:[%s3434_s5 + $0x1e0] sm:$0xff] %vm1768_vm2, %v1764_v16  ;;  %v1767_v20 = vmul.f32 %v2547_v50, %v3323_v35 }
 0x16a   :  { %v2549_v41 = vpop.eup %2548 }
 0x16b   :  { %1832 = vst.msk [vmem:[%s3434_s5 + $0x1f8] sm:$0xff] %vm1768_vm2, %v1767_v20  ;;  %v1765_v8 = vmul.f32 %v2549_v41, %v3337_v43 }
 0x16d   :  { %1830 = vst.msk [vmem:[%s3434_s5 + $0x1e8] sm:$0xff] %vm1768_vm2, %v1765_v8 }

// kernel: c3_forward.4
= control target key start
LH: loop header
LB: loop body
LE: loop exit
PB: predicated region body
PF: predicated region fallthrough
CT: control target
= control target key end

     0   :  { %s5837_s18 = smov 0   ;;  %s7684_s0 = inlined_call_operand.vmem [shape: bf16[2,16,16,2], index: 0, kind: input, shape index: {}]   ;;  %s7685_s1 = inlined_call_operand.vmem [shape: bf16[2,2], index: 1, kind: input, shape index: {}]   ;;  %s7686_s2 = inlined_call_operand.vmem [shape: f32[1,2], index: 2, kind: input, shape index: {}]   ;;  %s7687_s3 = inlined_call_operand.vmem [shape: bf16[3,6,2], index: 3, kind: input, shape index: {}]   ;;  %s7688_s4 = inlined_call_operand.vmem [shape: f32[1,2], index: 4, kind: input, shape index: {}]   ;;  %s7689_s5 = inlined_call_operand.vmem [shape: bf16[2,16,16,2], index: 5, kind: output, shape index: {}]  }
   0x1 LB: > { %s4694_s19 = sadd.s32 4294967295, %s5801_s18   ;;  %p4698_p0 = scmp.ge.s32.totalorder %s5801_s18, 1  ;;  %s5801_s18 = sphi %s5837_s18, %s15_s18  }
   0x2   : > { %p187_p1 = scmp.lt.s32.totalorder %s5801_s18, 3 }
   0x4   : > { %p188_p2 = pnand %p4698_p0, %p187_p1 }
   0x6   : > { %191 = sbr.rel (%p188_p2) target bundleno = 896 (0x380), region = 40 }
   0xb   : > { %v258_v0 = vld [vmem:[%s7685_s1] sm:$0x1]  ;;  %vm395_vm0 = vcmask 1040384   ;;  %p215_p3 = scmp.lt.s32.totalorder %s4694_s19, 1  ;;  %vm346_vm1 = vcmask 15360   ;;  %vm784_vm2 = vcmask 11264  }
   0xc   : > { %5331 = vmatprep.subr.msk.bf16.mxu0 %vm395_vm0, %v258_v0  ;;  %v397_v1 = vsel %vm395_vm0, %v258_v0, 0  ;;  %v5803_v18 = vmov 0   ;;  %vm787_vm3 = vcmask 8192   ;;  %vm1601_vm4 = vsmask.f32 7424  ;;  %s5804_s26 = smov 2  }
   0xd   : > { %5196 = vmatpush3.bf16.msra.mxu0 %v397_v1  ;;  %s7745_s19 = smov (!%p215_p3, %s4694_s19), 1  ;;  %792 = vst.msk [vmem:[#allocation2 + $0x18] sm:$0xf] %vm784_vm2, %v5803_v18  ;;  %785 = vst.msk [vmem:[#allocation2] sm:$0xf] %vm784_vm2, %v5803_v18  ;;  %vm1874_vm5 = vcmask 1046528  }
   0xe   : > { %s5061_s22 = sshll.u32 %s7745_s19, 7  ;;  %786 = vst.msk [vmem:[#allocation2 + $0x4] sm:$0xf] %vm784_vm2, %v5803_v18  ;;  %789 = vst.msk [vmem:[#allocation2 + $0xc] sm:$0xf] %vm784_vm2, %v5803_v18  ;;  %s5805_s27 = smov 4  }
   0xf   : > { %s5856_s25 = scalar_lea.vmem %s7684_s0, %s5061_s22  ;;  %790 = vst.msk [vmem:[#allocation2 + $0x10] sm:$0xf] %vm784_vm2, %v5803_v18  ;;  %793 = vst.msk [vmem:[#allocation2 + $0x1c] sm:$0xf] %vm784_vm2, %v5803_v18  ;;  %v5955_v35 = vld [vmem:[%s7686_s2] ss:$0 sm:$0xff]  ;;  %s7454_s15 = scalar_lea.vmem %s7689_s5, %s5061_s22 }
  0x10   : > { %v226_v2 = vld [vmem:[%s5856_s25] sm:$0xff]   ;;  %v228_v3 = vld [vmem:[%s5856_s25 + $0x8] sm:$0xff]   ;;  %v230_v4 = vld [vmem:[%s5856_s25 + $0x10] sm:$0xff]   ;;  %795 = vst.msk [vmem:[#allocation2 + $0x24] sm:$0xf] %vm784_vm2, %v5803_v18  ;;  %vm1987_vm12 = vcmask 31744  }
  0x11   : > { %5197 = vmatprep.mubr.msk.bf16.mxu0 %vm346_vm1, %v226_v2  ;;  %v232_v5 = vld [vmem:[%s5856_s25 + $0x18] sm:$0xff]   ;;  %v234_v6 = vld [vmem:[%s5856_s25 + $0x20] sm:$0xff]   ;;  %v236_v7 = vld [vmem:[%s5856_s25 + $0x28] sm:$0xff]   ;;  %796 = vst.msk [vmem:[#allocation2 + $0x28] sm:$0xf] %vm784_vm2, %v5803_v18  ;;  %vm2053_vm13 = vcmask 48128  }
  0x12   : > { %5198 = vmatmul.mubr.msk.bf16.vlgmr.msra.gmra.mxu0 %vm346_vm1, %v228_v3  ;;  %v238_v8 = vld [vmem:[%s5856_s25 + $0x30] sm:$0xff]   ;;  %v240_v9 = vld [vmem:[%s5856_s25 + $0x38] sm:$0xff]   ;;  %v242_v10 = vld [vmem:[%s5856_s25 + $0x40] sm:$0xff]   ;;  %798 = vst.msk [vmem:[#allocation2 + $0x30] sm:$0xf] %vm784_vm2, %v5803_v18  ;;  %vm2086_vm14 = vcmask 1042432  }
  0x13   : > { %5201 = vmatprep.mubr.msk.bf16.mxu0 %vm346_vm1, %v230_v4  ;;  %v244_v11 = vld [vmem:[%s5856_s25 + $0x48] sm:$0xff]   ;;  %v246_v12 = vld [vmem:[%s5856_s25 + $0x50] sm:$0xff]   ;;  %v248_v13 = vld [vmem:[%s5856_s25 + $0x58] sm:$0xff]   ;;  %799 = vst.msk [vmem:[#allocation2 + $0x34] sm:$0xf] %vm784_vm2, %v5803_v18 }
  0x14   : > { %v250_v14 = vld [vmem:[%s5856_s25 + $0x60] sm:$0xff]   ;;  %v252_v15 = vld [vmem:[%s5856_s25 + $0x68] sm:$0xff]   ;;  %v254_v16 = vld [vmem:[%s5856_s25 + $0x70] sm:$0xff]   ;;  %801 = vst.msk [vmem:[#allocation2 + $0x3c] sm:$0xf] %vm784_vm2, %v5803_v18 }
  0x15   : > { %v256_v17 = vld [vmem:[%s5856_s25 + $0x78] sm:$0xff]   ;;  %802 = vst.msk [vmem:[#allocation2 + $0x40] sm:$0xf] %vm784_vm2, %v5803_v18  ;;  %804 = vst.msk [vmem:[#allocation2 + $0x48] sm:$0xf] %vm784_vm2, %v5803_v18 }
  0x16   : > { %805 = vst.msk [vmem:[#allocation2 + $0x4c] sm:$0xf] %vm784_vm2, %v5803_v18  ;;  %807 = vst.msk [vmem:[#allocation2 + $0x54] sm:$0xf] %vm784_vm2, %v5803_v18  ;;  %v1409_v19 = vld [vmem:[#allocation2] sm:$0xf] }
  0x17   : > { %808 = vst.msk [vmem:[#allocation2 + $0x58] sm:$0xf] %vm784_vm2, %v5803_v18  ;;  %810 = vst.msk [vmem:[#allocation2 + $0x60] sm:$0xf] %vm784_vm2, %v5803_v18  ;;  %v1410_v20 = vld [vmem:[#allocation2 + $0x4] sm:$0xf] }
  0x18   : > { %811 = vst.msk [vmem:[#allocation2 + $0x64] sm:$0xf] %vm784_vm2, %v5803_v18  ;;  %813 = vst.msk [vmem:[#allocation2 + $0x6c] sm:$0xf] %vm784_vm2, %v5803_v18  ;;  %v5944_v21 = vcombine.low %v1409_v19, %v1410_v20  ;;  %v1457_v27 = vld [vmem:[#allocation2] sm:$0xe] }
  0x19   : > { %814 = vst.msk [vmem:[#allocation2 + $0x70] sm:$0xf] %vm784_vm2, %v5803_v18  ;;  %816 = vst.msk [vmem:[#allocation2 + $0x78] sm:$0xf] %vm784_vm2, %v5803_v18  ;;  %v4832_v30 = vcombine.low %v1457_v27, %v1410_v20  ;;  %vm1261_vm6 = vsmask.f32 7938 }
  0x1a   : > { %5202 = vmatmul.mubr.msk.bf16.gmra.mxu0 %vm346_vm1, %v232_v5  ;;  %817 = vst.msk [vmem:[#allocation2 + $0x7c] sm:$0xf] %vm784_vm2, %v5803_v18  ;;  %819 = vst.msk [vmem:[#allocation2 + $0x84] sm:$0xf] %vm784_vm2, %v5803_v18  ;;  %v1605_v23 = vshll.u32 %v5944_v21, 16  ;;  %v1603_v24 = vshrl.u32 %v5944_v21, 16 }
  0x1b   : > { %5205 = vmatprep.mubr.msk.bf16.mxu0 %vm346_vm1, %v234_v6  ;;  %820 = vst.msk [vmem:[#allocation2 + $0x88] sm:$0xf] %vm784_vm2, %v5803_v18  ;;  %822 = vst.msk [vmem:[#allocation2 + $0x90] sm:$0xf] %vm784_vm2, %v5803_v18  ;;  %v1875_v32 = vrot.slane %v4832_v30, 1 }
  0x1c   : > { %823 = vst.msk [vmem:[#allocation2 + $0x94] sm:$0xf] %vm784_vm2, %v5803_v18  ;;  %825 = vst.msk [vmem:[#allocation2 + $0x9c] sm:$0xf] %vm784_vm2, %v5803_v18  ;;  %v1607_v25 = vrot.slane %v1605_v23, 1 }
  0x1d   : > { %826 = vst.msk [vmem:[#allocation2 + $0xa0] sm:$0xf] %vm784_vm2, %v5803_v18  ;;  %828 = vst.msk [vmem:[#allocation2 + $0xa8] sm:$0xf] %vm784_vm2, %v5803_v18  ;;  %vm936_vm7 = vsmask.f32 256 }
  0x1e   : > { %829 = vst.msk [vmem:[#allocation2 + $0xac] sm:$0xf] %vm784_vm2, %v5803_v18  ;;  %831 = vst.msk [vmem:[#allocation2 + $0xb4] sm:$0xf] %vm784_vm2, %v5803_v18  ;;  %v1608_v28 = vor.u32 %v1607_v25, %v1603_v24  ;;  %vm937_vm8 = vsmask.f32 4368 }
  0x1f   : > { %832 = vst.msk [vmem:[#allocation2 + $0xb8] sm:$0xf] %vm784_vm2, %v5803_v18  ;;  %834 = vst.msk [vmem:[#allocation2 + $0xc0] sm:$0xf] %vm784_vm2, %v5803_v18 }
  0x20   : > { %835 = vst.msk [vmem:[#allocation2 + $0xc4] sm:$0xf] %vm784_vm2, %v5803_v18  ;;  %837 = vst.msk [vmem:[#allocation2 + $0xcc] sm:$0xf] %vm784_vm2, %v5803_v18 }
  0x21   : > { %838 = vst.msk [vmem:[#allocation2 + $0xd0] sm:$0xf] %vm784_vm2, %v5803_v18  ;;  %vm6045_vm9 = vmand %vm784_vm2, %vm1261_vm6 }
  0x22   : > { %5206 = vmatmul.mubr.msk.bf16.gmra.mxu0 %vm346_vm1, %v236_v7  ;;  %794 = vst.msk [vmem:[#allocation2 + $0x20] sm:$0x1] %vm787_vm3, %v5803_v18  ;;  %788 = vst.msk [vmem:[#allocation2 + $0x8] sm:$0x1] %vm787_vm3, %v5803_v18 }
  0x23   : > { %5209 = vmatprep.mubr.msk.bf16.mxu0 %vm346_vm1, %v238_v8  ;;  %791 = vst.msk [vmem:[#allocation2 + $0x14] sm:$0x1] %vm787_vm3, %v5803_v18  ;;  %797 = vst.msk [vmem:[#allocation2 + $0x2c] sm:$0x1] %vm787_vm3, %v5803_v18 }
  0x24   : > { %800 = vst.msk [vmem:[#allocation2 + $0x38] sm:$0x1] %vm787_vm3, %v5803_v18  ;;  %803 = vst.msk [vmem:[#allocation2 + $0x44] sm:$0x1] %vm787_vm3, %v5803_v18 }
  0x25   : > { %806 = vst.msk [vmem:[#allocation2 + $0x50] sm:$0x1] %vm787_vm3, %v5803_v18  ;;  %809 = vst.msk [vmem:[#allocation2 + $0x5c] sm:$0x1] %vm787_vm3, %v5803_v18 }
  0x26   : > { %812 = vst.msk [vmem:[#allocation2 + $0x68] sm:$0x1] %vm787_vm3, %v5803_v18  ;;  %815 = vst.msk [vmem:[#allocation2 + $0x74] sm:$0x1] %vm787_vm3, %v5803_v18 }
  0x27   : > { %818 = vst.msk [vmem:[#allocation2 + $0x80] sm:$0x1] %vm787_vm3, %v5803_v18  ;;  %821 = vst.msk [vmem:[#allocation2 + $0x8c] sm:$0x1] %vm787_vm3, %v5803_v18 }
  0x28   : > { %824 = vst.msk [vmem:[#allocation2 + $0x98] sm:$0x1] %vm787_vm3, %v5803_v18  ;;  %827 = vst.msk [vmem:[#allocation2 + $0xa4] sm:$0x1] %vm787_vm3, %v5803_v18 }
  0x29   : > { %830 = vst.msk [vmem:[#allocation2 + $0xb0] sm:$0x1] %vm787_vm3, %v5803_v18  ;;  %833 = vst.msk [vmem:[#allocation2 + $0xbc] sm:$0x1] %vm787_vm3, %v5803_v18 }
  0x2a   : > { %5210 = vmatmul.mubr.msk.bf16.gmra.mxu0 %vm346_vm1, %v240_v9  ;;  %836 = vst.msk [vmem:[#allocation2 + $0xc8] sm:$0x1] %vm787_vm3, %v5803_v18  ;;  %839 = vst.msk [vmem:[#allocation2 + $0xd4] sm:$0x1] %vm787_vm3, %v5803_v18 }
  0x2b   : > { %5213 = vmatprep.mubr.msk.bf16.mxu0 %vm346_vm1, %v242_v10  ;;  %v5364_v22 = vld [vmem:[#allocation2 + $0x8] ss:$0 sps:$4 sm:$0x11]   ;;  %vm6062_vm10 = vmor %vm936_vm7, %vm937_vm8 }
  0x2c   : > { %v1610_v26 = vshll.u32 %v5364_v22, 16  ;;  %v1876_v33 = vrot.slane %v5364_v22, 1  ;;  %vm6070_vm11 = vmand %vm787_vm3, %vm936_vm7 }
  0x2e   : > { %v1612_v29 = vrot.slane %v1610_v26, 1  ;;  %v1877_v34 = vsel %vm1874_vm5, %v1875_v32, %v1876_v33 }
  0x2f   : > { %1923 = vrot.lane.b32.xlu1 %v1877_v34, %s5805_s27 }
  0x30   : > { %v1613_v31 = vsel %vm1601_vm4, %v1608_v28, %v1612_v29 }
  0x31   : > { %1794 = vrot.lane.b32.xlu0 %v1613_v31, %s5804_s26 }
  0x32   : > { %5214 = vmatmul.mubr.msk.bf16.gmra.mxu0 %vm346_vm1, %v244_v11 }
  0x33   : > { %5217 = vmatprep.mubr.msk.bf16.mxu0 %vm346_vm1, %v246_v12 }
  0x3a   : > { %5218 = vmatmul.mubr.msk.bf16.gmra.mxu0 %vm346_vm1, %v248_v13 }
  0x3b   : > { %5221 = vmatprep.mubr.msk.bf16.mxu0 %vm346_vm1, %v250_v14 }
  0x42   : > { %5222 = vmatmul.mubr.msk.bf16.gmra.mxu0 %vm346_vm1, %v252_v15 }
  0x43   : > { %5225 = vmatprep.mubr.msk.bf16.mxu0 %vm346_vm1, %v254_v16 }
  0x4a   : > { %5226 = vmatmul.mubr.msk.bf16.gmra.mxu0 %vm346_vm1, %v256_v17 }
  0xd2   : > { %v5199_v36 = vpop.f32.mrf.mxu0 }
  0xd3   : > { %v5958_v37 = vadd.f32 %v5199_v36, %v5955_v35 }
  0xd4   : > { %v433_v38 = vpop.f32.mrf.mxu0 }
  0xd5   : > { %v4738_v39 = vmul.f32 -1.442695, %v5958_v37  ;;  %v5962_v40 = vadd.f32 %v5955_v35, %v433_v38 }
  0xd6   : > { %v5200_v41 = vpop.f32.mrf.mxu0 }
  0xd7   : > { %5523 = vpow2.f32 %v4738_v39  ;;  %v4736_v42 = vmul.f32 -1.442695, %v5962_v40  ;;  %v5966_v43 = vadd.f32 %v5200_v41, %v5955_v35 }
  0xd8   : > { %v436_v44 = vpop.f32.mrf.mxu0 }
  0xd9   : > { %5525 = vpow2.f32 %v4736_v42  ;;  %v4739_v45 = vmul.f32 -1.442695, %v5966_v43  ;;  %v5970_v46 = vadd.f32 %v5955_v35, %v436_v44 }
  0xda   : > { %v5203_v47 = vpop.f32.mrf.mxu0 }
  0xdb   : > { %5527 = vpow2.f32 %v4739_v45  ;;  %v4737_v48 = vmul.f32 -1.442695, %v5970_v46  ;;  %v5974_v49 = vadd.f32 %v5203_v47, %v5955_v35 }
  0xdc   : > { %v449_v50 = vpop.f32.mrf.mxu0 }
  0xdd   : > { %5529 = vpow2.f32 %v4737_v48  ;;  %v4742_v51 = vmul.f32 -1.442695, %v5974_v49  ;;  %v5978_v52 = vadd.f32 %v5955_v35, %v449_v50 }
  0xde   : > { %v5204_v53 = vpop.f32.mrf.mxu0 }
  0xdf   : > { %5531 = vpow2.f32 %v4742_v51  ;;  %v4740_v54 = vmul.f32 -1.442695, %v5978_v52  ;;  %v5982_v55 = vadd.f32 %v5204_v53, %v5955_v35 }
  0xe0   : > { %v452_v56 = vpop.f32.mrf.mxu0 }
  0xe1   : > { %5533 = vpow2.f32 %v4740_v54  ;;  %v4743_v57 = vmul.f32 -1.442695, %v5982_v55  ;;  %v5986_v58 = vadd.f32 %v5955_v35, %v452_v56 }
  0xe2   : > { %v5207_v59 = vpop.f32.mrf.mxu0 }
  0xe3   : > { %5535 = vpow2.f32 %v4743_v57  ;;  %v4741_v60 = vmul.f32 -1.442695, %v5986_v58  ;;  %v5990_v61 = vadd.f32 %v5207_v59, %v5955_v35 }
  0xe4   : > { %v5524_v62 = vpop.eup %5523  ;;  %v465_v63 = vpop.f32.mrf.mxu0 }
  0xe5   : > { %v658_v0 = vadd.f32 1.0, %v5524_v62  ;;  %5537 = vpow2.f32 %v4741_v60  ;;  %v4746_v1 = vmul.f32 -1.442695, %v5990_v61  ;;  %v5994_v2 = vadd.f32 %v5955_v35, %v465_v63 }
  0xe6   : > { %v5526_v3 = vpop.eup %5525  ;;  %v5208_v4 = vpop.f32.mrf.mxu0 }
  0xe7   : > { %5539 = vrcp.f32 %v658_v0  ;;  %v656_v5 = vadd.f32 1.0, %v5526_v3  ;;  %v4744_v6 = vmul.f32 -1.442695, %v5994_v2  ;;  %v5998_v7 = vadd.f32 %v5208_v4, %v5955_v35 }
  0xe8   : > { %v5528_v8 = vpop.eup %5527  ;;  %5541 = vpow2.f32 %v4746_v1  ;;  %v468_v9 = vpop.f32.mrf.mxu0 }
  0xe9   : > { %5543 = vrcp.f32 %v656_v5  ;;  %v659_v10 = vadd.f32 1.0, %v5528_v8  ;;  %v4747_v11 = vmul.f32 -1.442695, %v5998_v7  ;;  %v6002_v12 = vadd.f32 %v5955_v35, %v468_v9 }
  0xea   : > { %v5530_v13 = vpop.eup %5529  ;;  %5545 = vpow2.f32 %v4744_v6  ;;  %v5211_v14 = vpop.f32.mrf.mxu0 }
  0xeb   : > { %5547 = vrcp.f32 %v659_v10  ;;  %v657_v15 = vadd.f32 1.0, %v5530_v13  ;;  %v4745_v16 = vmul.f32 -1.442695, %v6002_v12  ;;  %v6006_v17 = vadd.f32 %v5211_v14, %v5955_v35 }
  0xec   : > { %v5532_v18 = vpop.eup %5531  ;;  %5549 = vpow2.f32 %v4747_v11  ;;  %v481_v19 = vpop.f32.mrf.mxu0 }
  0xed   : > { %5551 = vrcp.f32 %v657_v15  ;;  %v662_v20 = vadd.f32 1.0, %v5532_v18  ;;  %v4750_v22 = vmul.f32 -1.442695, %v6006_v17  ;;  %v6010_v23 = vadd.f32 %v5955_v35, %v481_v19 }
  0xee   : > { %v5534_v24 = vpop.eup %5533  ;;  %5553 = vpow2.f32 %v4745_v16  ;;  %v5212_v25 = vpop.f32.mrf.mxu0 }
  0xef   : > { %5555 = vrcp.f32 %v662_v20  ;;  %v660_v26 = vadd.f32 1.0, %v5534_v24  ;;  %v4748_v27 = vmul.f32 -1.442695, %v6010_v23  ;;  %v6014_v28 = vadd.f32 %v5212_v25, %v5955_v35 }
  0xf0   : > { %v5536_v29 = vpop.eup %5535  ;;  %5557 = vpow2.f32 %v4750_v22  ;;  %v484_v30 = vpop.f32.mrf.mxu0 }
  0xf1   : > { %5559 = vrcp.f32 %v660_v26  ;;  %v663_v31 = vadd.f32 1.0, %v5536_v29  ;;  %v4751_v32 = vmul.f32 -1.442695, %v6014_v28  ;;  %v6018_v33 = vadd.f32 %v5955_v35, %v484_v30 }
  0xf2   : > { %v5538_v34 = vpop.eup %5537  ;;  %5561 = vpow2.f32 %v4748_v27  ;;  %v5215_v36 = vpop.f32.mrf.mxu0 }
  0xf3   : > { %5563 = vrcp.f32 %v663_v31  ;;  %v661_v38 = vadd.f32 1.0, %v5538_v34  ;;  %v4749_v39 = vmul.f32 -1.442695, %v6018_v33  ;;  %v6022_v41 = vadd.f32 %v5215_v36, %v5955_v35 }
  0xf4   : > { %v5540_v42 = vpop.eup %5539  ;;  %5565 = vpow2.f32 %v4751_v32  ;;  %v497_v44 = vpop.f32.mrf.mxu0  ;;  %v1263_v32 = vld [vmem:[#allocation2 + $0xc] sm:$0xf] }
  0xf5   : > { %v5542_v45 = vpop.eup %5541  ;;  %v754_v47 = vmul.f32 %v5540_v42, %v5958_v37  ;;  %5567 = vrcp.f32 %v661_v38  ;;  %v4754_v48 = vmul.f32 -1.442695, %v6022_v41  ;;  %v6027_v50 = vadd.f32 %v5955_v35, %v497_v44 }
  0xf6   : > { %v5544_v51 = vpop.eup %5543  ;;  %v666_v53 = vadd.f32 1.0, %v5542_v45  ;;  %5569 = vpow2.f32 %v4749_v39  ;;  %v5216_v54 = vpop.f32.mrf.mxu0 }
  0xf7   : > { %v5546_v56 = vpop.eup %5545  ;;  %v5065_v57 = vpack.c.bf16 %v754_v47, %v754_v47  ;;  %v752_v59 = vmul.f32 %v5544_v51, %v5962_v40  ;;  %5571 = vpow2.f32 %v4754_v48  ;;  %v6031_v62 = vmul.f32 -1.442695, %v6027_v50 }
  0xf8   : > { %v5548_v60 = vpop.eup %5547  ;;  %5573 = vrcp.f32 %v666_v53  ;;  %v664_v37 = vadd.f32 1.0, %v5546_v56  ;;  %v6034_v63 = vadd.f32 %v5216_v54, %v5955_v35  ;;  %v500_v0 = vpop.f32.mrf.mxu0  ;;  %v1276_v53 = vld [vmem:[#allocation2 + $0x20] sm:$0x1] }
  0xf9   : > { %v5550_v1 = vpop.eup %5549  ;;  %v957_v3 = vshrl.u32 %v5065_v57, 16  ;;  %v960_v4 = vshll.u32 %v5065_v57, 16  ;;  %v5063_v5 = vpack.c.bf16 %v752_v59, %v752_v59  ;;  %v755_v6 = vmul.f32 %v5548_v60, %v5966_v43  ;;  %v1272_v43 = vld [vmem:[#allocation2 + $0x18] sm:$0xf] }
  0xfa   : > { %v5552_v8 = vpop.eup %5551  ;;  %5575 = vrcp.f32 %v664_v37  ;;  %v667_v40 = vadd.f32 1.0, %v5550_v1  ;;  %v6038_v9 = vmul.f32 -1.442695, %v6034_v63  ;;  %v6041_v10 = vadd.f32 %v5955_v35, %v500_v0  ;;  %v6066_v48 = vpop.f32.mrf.mxu0 }
  0xfb   : > { %v5554_v11 = vpop.eup %5553  ;;  %v959_v13 = vrot.slane %v957_v3, 7  ;;  %v940_v14 = vshrl.u32 %v5063_v5, 16  ;;  %v943_v15 = vshll.u32 %v5063_v5, 16  ;;  %v5066_v16 = vpack.c.bf16 %v755_v6, %v755_v6 }
  0xfc   : > { %v5556_v18 = vpop.eup %5555  ;;  %v753_v20 = vmul.f32 %v5552_v8, %v5970_v46  ;;  %5577 = vrcp.f32 %v667_v40  ;;  %v665_v22 = vadd.f32 1.0, %v5554_v11  ;;  %v6051_v24 = vmul.f32 -1.442695, %v6041_v10 }
  0xfd   : > { %v6053_v25 = vpop.eup %5557  ;;  %v962_v26 = vor.u32 %v960_v4, %v959_v13  ;;  %v963_v27 = vrot.slane %v959_v13, 4  ;;  %v942_v29 = vrot.slane %v940_v14, 7  ;;  %v965_v30 = vshrl.u32 %v5066_v16, 16  ;;  %v1269_v14 = vld [vmem:[#allocation2 + $0x14] sm:$0x1] }
  0xfe   : > { %v5560_v31 = vpop.eup %5559  ;;  %v968_v34 = vshll.u32 %v5066_v16, 16  ;;  %v5064_v36 = vpack.c.bf16 %v753_v20, %v753_v20  ;;  %v758_v38 = vmul.f32 %v5556_v18, %v5974_v49  ;;  %5579 = vrcp.f32 %v665_v22  ;;  %v6087_v18 = vpop.f32.mrf.mxu0 }
  0xff   : > { %v6056_v39 = vpop.eup %5561  ;;  %v1273_v46 = vsel %vm6045_vm9, %v962_v26, %v1272_v43  ;;  %v945_v42 = vor.u32 %v943_v15, %v942_v29  ;;  %v946_v44 = vrot.slane %v942_v29, 4  ;;  %v967_v47 = vrot.slane %v965_v30, 7 }
 0x100   : > { %v5564_v51 = vpop.eup %5563  ;;  %1274 = vst [vmem:[#allocation2 + $0x18] sm:$0xf] %v1273_v46  ;;  %v948_v54 = vshrl.u32 %v5064_v36, 16  ;;  %v951_v56 = vshll.u32 %v5064_v36, 16  ;;  %v5069_v57 = vpack.c.bf16 %v758_v38, %v758_v38  ;;  %v756_v59 = vmul.f32 %v5560_v31, %v5978_v52 }
 0x101   : > { %v6075_v60 = vpop.eup %5565  ;;  %v1264_v37 = vsel %vm6045_vm9, %v945_v42, %v1263_v32  ;;  %v970_v0 = vor.u32 %v968_v34, %v967_v47  ;;  %v972_v1 = vrot.slane %v967_v47, 4  ;;  %v759_v3 = vmul.f32 %v5564_v51, %v5982_v55 }
 0x102   : > { %v5568_v4 = vpop.eup %5567  ;;  %1265 = vst [vmem:[#allocation2 + $0xc] sm:$0xf] %v1264_v37  ;;  %v950_v5 = vrot.slane %v948_v54, 7  ;;  %v991_v6 = vshrl.u32 %v5069_v57, 16  ;;  %v994_v8 = vshll.u32 %v5069_v57, 16  ;;  %v5067_v40 = vpack.c.bf16 %v756_v59, %v756_v59 }
 0x103   : > { %v6080_v11 = vpop.eup %5569  ;;  %v971_v52 = vsel %vm6062_vm10, %v963_v27, %v970_v0  ;;  %v1277_v13 = vsel %vm6070_vm11, %v972_v1, %v1276_v53  ;;  %v5070_v15 = vpack.c.bf16 %v759_v3, %v759_v3  ;;  %v757_v16 = vmul.f32 %v5568_v4, %v5986_v58  ;;  %v1286_v27 = vld [vmem:[#allocation2 + $0x30] sm:$0xf]  ;;  %v1279_v59 = vld [vmem:[#allocation2 + $0x24] sm:$0xf] }
 0x104   : > { %v6089_v55 = vpop.eup %5571  ;;  %1275 = vst.msk [vmem:[#allocation2 + $0x1c] sm:$0xf] %vm784_vm2, %v971_v52  ;;  %1278 = vst [vmem:[#allocation2 + $0x20] sm:$0x1] %v1277_v13  ;;  %v953_v43 = vor.u32 %v951_v56, %v950_v5  ;;  %v955_v20 = vrot.slane %v950_v5, 4  ;;  %v993_v22 = vrot.slane %v991_v6, 7  ;;  %v6097_v56 = vpop.f32.mrf.mxu0 }
 0x105   : > { %v974_v26 = vshrl.u32 %v5067_v40, 16  ;;  %v5574_v29 = vpop.eup %5573  ;;  %v977_v30 = vshll.u32 %v5067_v40, 16  ;;  %v999_v31 = vshrl.u32 %v5070_v15, 16  ;;  %v1002_v32 = vshll.u32 %v5070_v15, 16 }
 0x106   : > { %v5068_v34 = vpack.c.bf16 %v757_v16, %v757_v16  ;;  %v954_v58 = vsel %vm6062_vm10, %v946_v44, %v953_v43  ;;  %v1270_v36 = vsel %vm6070_vm11, %v955_v20, %v1269_v14  ;;  %v996_v38 = vor.u32 %v994_v8, %v993_v22  ;;  %v1290_v44 = vld [vmem:[#allocation2 + $0x38] sm:$0x1]  ;;  %v6111_v43 = vpop.f32.mrf.mxu0 }
 0x107   : > { %v997_v46 = vrot.slane %v993_v22, 4  ;;  %v5576_v42 = vpop.eup %5575  ;;  %1266 = vst.msk [vmem:[#allocation2 + $0x10] sm:$0xf] %vm784_vm2, %v954_v58  ;;  %1271 = vst [vmem:[#allocation2 + $0x14] sm:$0x1] %v1270_v36  ;;  %v976_v47 = vrot.slane %v974_v26, 7  ;;  %v762_v37 = vmul.f32 %v5574_v29, %v5990_v61 }
 0x108   : > { %v1001_v51 = vrot.slane %v999_v31, 7  ;;  %v982_v53 = vshrl.u32 %v5068_v34, 16  ;;  %v985_v54 = vshll.u32 %v5068_v34, 16  ;;  %v1287_v57 = vsel %vm6045_vm9, %v996_v38, %v1286_v27 }
 0x109   : > { %v760_v0 = vmul.f32 %v5576_v42, %v5994_v2  ;;  %v670_v1 = vadd.f32 1.0, %v6053_v25  ;;  %v5578_v3 = vpop.eup %5577  ;;  %1288 = vst [vmem:[#allocation2 + $0x30] sm:$0xf] %v1287_v57  ;;  %v979_v4 = vor.u32 %v977_v30, %v976_v47  ;;  %v980_v5 = vrot.slane %v976_v47, 4  ;;  %v1283_v25 = vld [vmem:[#allocation2 + $0x2c] sm:$0x1] }
 0x10a   : > { %v1004_v6 = vor.u32 %v1002_v32, %v1001_v51  ;;  %v1006_v8 = vrot.slane %v1001_v51, 4  ;;  %v984_v40 = vrot.slane %v982_v53, 7  ;;  %v5073_v52 = vpack.c.bf16 %v762_v37, %v762_v37  ;;  %v5223_v32 = vpop.f32.mrf.mxu0  ;;  %v1293_v57 = vld [vmem:[#allocation2 + $0x3c] sm:$0xf] }
 0x10b   : > { %v5071_v13 = vpack.c.bf16 %v760_v0, %v760_v0  ;;  %v763_v14 = vmul.f32 %v5578_v3, %v5998_v7  ;;  %v5580_v15 = vpop.eup %5579  ;;  %v1280_v16 = vsel %vm6045_vm9, %v979_v4, %v1279_v59  ;;  %5581 = vrcp.f32 %v670_v1  ;;  %v1304_v4 = vld [vmem:[#allocation2 + $0x50] sm:$0x1] }
 0x10c   : > { %v1005_v61 = vsel %vm6062_vm10, %v997_v46, %v1004_v6  ;;  %v1291_v2 = vsel %vm6070_vm11, %v1006_v8, %v1290_v44  ;;  %1281 = vst [vmem:[#allocation2 + $0x24] sm:$0xf] %v1280_v16  ;;  %v987_v20 = vor.u32 %v985_v54, %v984_v40  ;;  %v989_v7 = vrot.slane %v984_v40, 4  ;;  %v1300_v46 = vld [vmem:[#allocation2 + $0x48] sm:$0xf]  ;;  %v529_v3 = vpop.f32.mrf.mxu0 }
 0x10d   : > { %1289 = vst.msk [vmem:[#allocation2 + $0x34] sm:$0xf] %vm784_vm2, %v1005_v61  ;;  %1292 = vst [vmem:[#allocation2 + $0x38] sm:$0x1] %v1291_v2  ;;  %v1025_v22 = vshrl.u32 %v5073_v52, 16  ;;  %v1028_v26 = vshll.u32 %v5073_v52, 16  ;;  %v5074_v30 = vpack.c.bf16 %v763_v14, %v763_v14  ;;  %v761_v31 = vmul.f32 %v5580_v15, %v6002_v12 }
 0x10e   : > { %v1008_v29 = vshrl.u32 %v5071_v13, 16  ;;  %v1011_v27 = vshll.u32 %v5071_v13, 16  ;;  %v988_v34 = vsel %vm6062_vm10, %v980_v5, %v987_v20  ;;  %v1284_v58 = vsel %vm6070_vm11, %v989_v7, %v1283_v25  ;;  %v1297_v13 = vld [vmem:[#allocation2 + $0x44] sm:$0x1]  ;;  %v5224_v20 = vpop.f32.mrf.mxu0  ;;  %v1414_v7 = vld [vmem:[#allocation2 + $0x1c] sm:$0xf] }
 0x10f   : > { %v1027_v36 = vrot.slane %v1025_v22, 7  ;;  %v668_v38 = vadd.f32 1.0, %v6056_v39  ;;  %1282 = vst.msk [vmem:[#allocation2 + $0x28] sm:$0xf] %vm784_vm2, %v988_v34  ;;  %1285 = vst [vmem:[#allocation2 + $0x2c] sm:$0x1] %v1284_v58  ;;  %v5072_v53 = vpack.c.bf16 %v761_v31, %v761_v31  ;;  %v6130_v15 = vadd.f32 %v6066_v48, %v5955_v35 }
 0x110   : > { %v1010_v42 = vrot.slane %v1008_v29, 7  ;;  %v1033_v47 = vshrl.u32 %v5074_v30, 16  ;;  %v1036_v51 = vshll.u32 %v5074_v30, 16  ;;  %v671_v59 = vadd.f32 1.0, %v6075_v60 }
 0x111   : > { %v1030_v54 = vor.u32 %v1028_v26, %v1027_v36  ;;  %v1031_v12 = vrot.slane %v1027_v36, 4  ;;  %5583 = vrcp.f32 %v668_v38  ;;  %v1016_v1 = vshrl.u32 %v5072_v53, 16  ;;  %v1413_v36 = vld [vmem:[#allocation2 + $0x18] sm:$0xf] }
 0x112   : > { %v1013_v44 = vor.u32 %v1011_v27, %v1010_v42  ;;  %v1014_v37 = vrot.slane %v1010_v42, 4  ;;  %v1035_v0 = vrot.slane %v1033_v47, 7  ;;  %v1019_v5 = vshll.u32 %v5072_v53, 16  ;;  %v6156_v27 = vld [vmem:[#allocation2 + $0x20] ss:$0 sps:$4 sm:$0x11]  }
 0x113   : > { %v1301_v39 = vsel %vm6045_vm9, %v1030_v54, %v1300_v46  ;;  %5585 = vrcp.f32 %v671_v59  ;;  %v669_v6 = vadd.f32 1.0, %v6080_v11  ;;  %v1018_v60 = vrot.slane %v1016_v1, 7  ;;  %v1459_v38 = vld [vmem:[#allocation2 + $0x18] sm:$0xe]  ;;  %v1412_v46 = vld [vmem:[#allocation2 + $0x10] sm:$0xf] }
 0x114   : > { %1302 = vst [vmem:[#allocation2 + $0x48] sm:$0xf] %v1301_v39  ;;  %v1294_v8 = vsel %vm6045_vm9, %v1013_v44, %v1293_v57  ;;  %v1038_v40 = vor.u32 %v1036_v51, %v1035_v0  ;;  %v1040_v52 = vrot.slane %v1035_v0, 4  ;;  %v674_v14 = vadd.f32 1.0, %v6089_v55  ;;  %v1458_v59 = vld [vmem:[#allocation2 + $0xc] sm:$0xe] }
 0x115   : > { %1295 = vst [vmem:[#allocation2 + $0x3c] sm:$0xf] %v1294_v8  ;;  %5587 = vrcp.f32 %v669_v6  ;;  %v6134_v16 = vadd.f32 %v5955_v35, %v6087_v18  ;;  %v1021_v2 = vor.u32 %v1019_v5, %v1018_v60  ;;  %v1023_v25 = vrot.slane %v1018_v60, 4  ;;  %v6177_v53 = vld [vmem:[#allocation2 + $0x14] ss:$0 sps:$4 sm:$0x11]  }
 0x116   : > { %v1039_v11 = vsel %vm6062_vm10, %v1031_v12, %v1038_v40  ;;  %v1305_v61 = vsel %vm6070_vm11, %v1040_v52, %v1304_v4  ;;  %5589 = vrcp.f32 %v674_v14  ;;  %v4758_v48 = vmul.f32 -1.442695, %v6130_v15  ;;  %v1411_v5 = vld [vmem:[#allocation2 + $0xc] sm:$0xf] }
 0x117   : > { %1303 = vst.msk [vmem:[#allocation2 + $0x4c] sm:$0xf] %vm784_vm2, %v1039_v11  ;;  %1306 = vst [vmem:[#allocation2 + $0x50] sm:$0x1] %v1305_v61  ;;  %v4756_v55 = vmul.f32 -1.442695, %v6134_v16  ;;  %v6145_v18 = vadd.f32 %v6097_v56, %v5955_v35  ;;  %v1022_v22 = vsel %vm6062_vm10, %v1014_v37, %v1021_v2  ;;  %v1298_v26 = vsel %vm6070_vm11, %v1023_v25, %v1297_v13 }
 0x118   : > { %5591 = vpow2.f32 %v6031_v62  ;;  %v6154_v29 = vadd.f32 %v5955_v35, %v6111_v43  ;;  %v5582_v30 = vpop.eup %5581  ;;  %1296 = vst.msk [vmem:[#allocation2 + $0x40] sm:$0xf] %vm784_vm2, %v1022_v22  ;;  %1299 = vst [vmem:[#allocation2 + $0x44] sm:$0x1] %v1298_v26  ;;  %v6162_v31 = vadd.f32 %v5223_v32, %v5955_v35  ;;  %v6165_v34 = vadd.f32 %v5955_v35, %v529_v3  ;;  %v1314_v13 = vld [vmem:[#allocation2 + $0x60] sm:$0xf] }
 0x119   : > { %5593 = vpow2.f32 %v6038_v9  ;;  %v4759_v56 = vmul.f32 -1.442695, %v6145_v18  ;;  %v766_v62 = vmul.f32 %v5582_v30, %v6006_v17  ;;  %v6171_v58 = vadd.f32 %v5224_v20, %v5955_v35  ;;  %v532_v9 = vpop.f32.mrf.mxu0  ;;  %v6191_v60 = vld [vmem:[#allocation2 + $0x20] ss:$0 sps:$4 sm:$0x11]  }
 0x11a   : > { %5595 = vpow2.f32 %v6051_v24  ;;  %v4757_v43 = vmul.f32 -1.442695, %v6154_v29  ;;  %v4762_v32 = vmul.f32 -1.442695, %v6162_v31  ;;  %v4760_v42 = vmul.f32 -1.442695, %v6165_v34 }
 0x11b   : > { %5597 = vpow2.f32 %v4758_v48  ;;  %v4834_v47 = vcombine.low %v1459_v38, %v1414_v7  ;;  %v5077_v51 = vpack.c.bf16 %v766_v62, %v766_v62  ;;  %v4763_v17 = vmul.f32 -1.442695, %v6171_v58  ;;  %v2318_v61 = vld [vmem:[#allocation2 + $0x1c] sm:$0xf] }
 0x11c   : > { %5599 = vpow2.f32 %v4756_v55  ;;  %v1882_v24 = vrot.slane %v6156_v27, 1  ;;  %v6179_v12 = vcombine.low %v1413_v36, %v1414_v7  ;;  %v6182_v57 = vadd.f32 %v5955_v35, %v532_v9  ;;  %v2317_v55 = vld [vmem:[#allocation2 + $0x18] sm:$0xf] }
 0x11d   : > { %5601 = vpow2.f32 %v4759_v56  ;;  %v1881_v54 = vrot.slane %v4834_v47, 1  ;;  %v1059_v37 = vshrl.u32 %v5077_v51, 16  ;;  %v1062_v0 = vshll.u32 %v5077_v51, 16 }
 0x11e   : > { %v5584_v44 = vpop.eup %5583  ;;  %5603 = vpow2.f32 %v4757_v43  ;;  %v4833_v1 = vcombine.low %v1458_v59, %v1412_v46  ;;  %v4761_v4 = vmul.f32 -1.442695, %v6182_v57  ;;  %v1879_v52 = vrot.slane %v6177_v53, 1 }
 0x11f   : > { %v764_v3 = vmul.f32 %v5584_v44, %v6010_v23  ;;  %5605 = vpow2.f32 %v4762_v32  ;;  %v1883_v39 = vsel %vm1874_vm5, %v1881_v54, %v1882_v24  ;;  %v6187_v8 = vrot.slane %v1059_v37, 7 }
 0x120   : > { %v5586_v6 = vpop.eup %5585  ;;  %5607 = vpow2.f32 %v4760_v42  ;;  %1927 = vrot.lane.b32.xlu0 %v1883_v39, %s5805_s27  ;;  %v1878_v40 = vrot.slane %v4833_v1, 1  ;;  %v6194_v11 = vcombine.low %v1411_v5, %v1412_v46  ;;  %v6203_v43 = vcombine.low %v2317_v55, %v2318_v61  ;;  %v5227_v55 = vpop.f32.mrf.mxu0 }
 0x121   : > { %v5075_v14 = vpack.c.bf16 %v764_v3, %v764_v3  ;;  %v767_v23 = vmul.f32 %v5586_v6, %v6014_v28  ;;  %5609 = vpow2.f32 %v4763_v17  ;;  %v1064_v25 = vor.u32 %v1062_v0, %v6187_v8  ;;  %v2364_v28 = vld [vmem:[#allocation2 + $0x18] sm:$0xe] }
 0x122   : > { %v5588_v2 = vpop.eup %5587  ;;  %v1065_v20 = vrot.slane %v6187_v8, 4  ;;  %5611 = vpow2.f32 %v4761_v4  ;;  %v1880_v48 = vsel %vm1874_vm5, %v1878_v40, %v1879_v52  ;;  %v4897_v36 = vcombine.low %v2364_v28, %v2318_v61  ;;  %v1318_v4 = vld [vmem:[#allocation2 + $0x68] sm:$0x1]  ;;  %v1311_v61 = vld [vmem:[#allocation2 + $0x5c] sm:$0x1] }
 0x123   : > { %v1042_v7 = vshrl.u32 %v5075_v14, 16  ;;  %v1045_v22 = vshll.u32 %v5075_v14, 16  ;;  %v5078_v26 = vpack.c.bf16 %v767_v23, %v767_v23  ;;  %v765_v30 = vmul.f32 %v5588_v2, %v6018_v33  ;;  %1925 = vrot.lane.b32.xlu1 %v1880_v48, %s5805_s27  ;;  %v5590_v56 = vpop.eup %5589  ;;  %v1307_v33 = vld [vmem:[#allocation2 + $0x54] sm:$0xf] }
 0x124   : > { %v1315_v62 = vsel %vm6045_vm9, %v1064_v25, %v1314_v13  ;;  %v2783_v38 = vrot.slane %v6191_v60, 1  ;;  %v770_v17 = vmul.f32 %v5590_v56, %v6022_v41  ;;  %v2782_v54 = vrot.slane %v4897_v36, 1  ;;  %v1328_v36 = vld [vmem:[#allocation2 + $0x78] sm:$0xf] }
 0x125   : > { %v5592_v9 = vpop.eup %5591  ;;  %1316 = vst [vmem:[#allocation2 + $0x60] sm:$0xf] %v1315_v62  ;;  %v1044_v46 = vrot.slane %v1042_v7, 7  ;;  %v1067_v32 = vshrl.u32 %v5078_v26, 16  ;;  %v1070_v42 = vshll.u32 %v5078_v26, 16  ;;  %v5076_v47 = vpack.c.bf16 %v765_v30, %v765_v30 }
 0x126   : > { %v5594_v51 = vpop.eup %5593  ;;  %v672_v24 = vadd.f32 1.0, %v5592_v9  ;;  %v2520_v59 = vshrl.u32 %v6203_v43, 16  ;;  %v5081_v6 = vpack.c.bf16 %v770_v17, %v770_v17 }
 0x127   : > { %v5596_v44 = vpop.eup %5595  ;;  %v1047_v37 = vor.u32 %v1045_v22, %v1044_v46  ;;  %v1048_v0 = vrot.slane %v1044_v46, 4  ;;  %v1069_v1 = vrot.slane %v1067_v32, 7  ;;  %v1050_v3 = vshrl.u32 %v5076_v47, 16 }
 0x128   : > { %v5598_v39 = vpop.eup %5597  ;;  %v1053_v5 = vshll.u32 %v5076_v47, 16  ;;  %5613 = vrcp.f32 %v672_v24  ;;  %v675_v8 = vadd.f32 1.0, %v5594_v51  ;;  %v1093_v2 = vshrl.u32 %v5081_v6, 16 }
 0x129   : > { %v5600_v40 = vpop.eup %5599  ;;  %v1308_v52 = vsel %vm6045_vm9, %v1047_v37, %v1307_v33  ;;  %v1072_v41 = vor.u32 %v1070_v42, %v1069_v1  ;;  %v1074_v13 = vrot.slane %v1069_v1, 4  ;;  %v1052_v14 = vrot.slane %v1050_v3, 7  ;;  %v6221_v33 = vld [vmem:[#allocation2 + $0x20] ss:$0 sps:$4 sm:$0x11]   ;;  %v545_v3 = vpop.f32.mrf.mxu0 }
 0x12a   : > { %v5602_v23 = vpop.eup %5601  ;;  %1309 = vst [vmem:[#allocation2 + $0x54] sm:$0xf] %v1308_v52  ;;  %v1096_v25 = vshll.u32 %v5081_v6, 16  ;;  %5615 = vrcp.f32 %v675_v8  ;;  %v673_v48 = vadd.f32 1.0, %v5596_v44  ;;  %v6215_v62 = vrot.slane %v1093_v2, 7 }
 0x12b   : > { %v5604_v7 = vpop.eup %5603  ;;  %v1073_v22 = vsel %vm6062_vm10, %v1065_v20, %v1072_v41  ;;  %v1319_v26 = vsel %vm6070_vm11, %v1074_v13, %v1318_v4  ;;  %v1055_v30 = vor.u32 %v1053_v5, %v1052_v14  ;;  %v1057_v28 = vrot.slane %v1052_v14, 4  ;;  %v3219_v1 = vld [vmem:[#allocation2 + $0x1c] sm:$0xf]  ;;  %v3218_v6 = vld [vmem:[#allocation2 + $0x18] sm:$0xf] }
 0x12c   : > { %v5606_v56 = vpop.eup %5605  ;;  %1317 = vst.msk [vmem:[#allocation2 + $0x64] sm:$0xf] %vm784_vm2, %v1073_v22  ;;  %1320 = vst [vmem:[#allocation2 + $0x68] sm:$0x1] %v1319_v26  ;;  %5617 = vrcp.f32 %v673_v48  ;;  %v678_v9 = vadd.f32 1.0, %v5598_v39  ;;  %v676_v46 = vadd.f32 1.0, %v5600_v40  ;;  %v1098_v24 = vor.u32 %v1096_v25, %v6215_v62  ;;  %v5228_v22 = vpop.f32.mrf.mxu0 }
 0x12d   : > { %v5608_v32 = vpop.eup %5607  ;;  %v1056_v42 = vsel %vm6062_vm10, %v1048_v0, %v1055_v30  ;;  %v1312_v20 = vsel %vm6070_vm11, %v1057_v28, %v1311_v61  ;;  %v679_v47 = vadd.f32 1.0, %v5602_v23  ;;  %v677_v51 = vadd.f32 1.0, %v5604_v7  ;;  %v3266_v41 = vld [vmem:[#allocation2 + $0x18] sm:$0xe]  ;;  %v2322_v13 = vld [vmem:[#allocation2 + $0x34] sm:$0xf] }
 0x12e   : > { %v5610_v17 = vpop.eup %5609  ;;  %1310 = vst.msk [vmem:[#allocation2 + $0x58] sm:$0xf] %vm784_vm2, %v1056_v42  ;;  %1313 = vst [vmem:[#allocation2 + $0x5c] sm:$0x1] %v1312_v20  ;;  %v1099_v44 = vrot.slane %v6215_v62, 4  ;;  %5619 = vrcp.f32 %v678_v9  ;;  %v682_v37 = vadd.f32 1.0, %v5606_v56  ;;  %v2784_v5 = vsel %vm1874_vm5, %v2782_v54, %v2783_v38 }
 0x12f   : > { %v5612_v0 = vpop.eup %5611  ;;  %5621 = vrcp.f32 %v676_v46  ;;  %v680_v39 = vadd.f32 1.0, %v5608_v32  ;;  %v683_v4 = vadd.f32 1.0, %v5610_v17  ;;  %v1329_v8 = vsel %vm6045_vm9, %v1098_v24, %v1328_v36  ;;  %2829 = vrot.lane.b32.xlu0 %v2784_v5, %s5805_s27  ;;  %v6239_v54 = vld [vmem:[#allocation2 + $0x38] ss:$0 sps:$4 sm:$0x11]   ;;  %v548_v24 = vpop.f32.mrf.mxu0 }
 0x130   : > { %5623 = vrcp.f32 %v679_v47  ;;  %v681_v40 = vadd.f32 1.0, %v5612_v0  ;;  %v2522_v52 = vshll.u32 %v6203_v43, 16  ;;  %1330 = vst [vmem:[#allocation2 + $0x78] sm:$0xf] %v1329_v8  ;;  %v2527_v14 = vshll.u32 %v6191_v60, 16 }
 0x131   : > { %5625 = vrcp.f32 %v677_v51  ;;  %v6235_v23 = vadd.f32 %v5227_v55, %v5955_v35  ;;  %v6237_v38 = vcombine.low %v3218_v6, %v3219_v1  ;;  %v4961_v2 = vcombine.low %v3266_v41, %v3219_v1  ;;  %v2321_v48 = vld [vmem:[#allocation2 + $0x30] sm:$0xf]  ;;  %v6250_v9 = vld [vmem:[#allocation2 + $0x14] ss:$0 sps:$4 sm:$0x11]  }
 0x132   : > { %5627 = vrcp.f32 %v682_v37  ;;  %v2524_v61 = vrot.slane %v2522_v52, 1  ;;  %v3683_v25 = vrot.slane %v6221_v33, 1  ;;  %v2366_v7 = vld [vmem:[#allocation2 + $0x30] sm:$0xe]  ;;  %v2529_v26 = vrot.slane %v2527_v14, 1 }
 0x133   : > { %5629 = vrcp.f32 %v680_v39  ;;  %v4766_v30 = vmul.f32 -1.442695, %v6235_v23  ;;  %v6244_v60 = vadd.f32 %v5955_v35, %v545_v3  ;;  %v2316_v55 = vld [vmem:[#allocation2 + $0x10] sm:$0xf]  ;;  %v3682_v56 = vrot.slane %v4961_v2, 1 }
 0x134   : > { %5631 = vrcp.f32 %v683_v4  ;;  %v2525_v28 = vor.u32 %v2524_v61, %v2520_v59  ;;  %v6248_v36 = vcombine.low %v2321_v48, %v2322_v13  ;;  %v4899_v42 = vcombine.low %v2366_v7, %v2322_v13  ;;  %v2363_v59 = vld [vmem:[#allocation2 + $0xc] sm:$0xe]  ;;  %v6266_v8 = vld [vmem:[#allocation2 + $0x28] sm:$0xf]  ;;  %v1415_v48 = vld [vmem:[#allocation2 + $0x24] sm:$0xf] }
 0x135   : > { %v5614_v46 = vpop.eup %5613  ;;  %5633 = vrcp.f32 %v681_v40  ;;  %v4764_v32 = vmul.f32 -1.442695, %v6244_v60  ;;  %v2789_v20 = vrot.slane %v6239_v54, 1  ;;  %v3684_v17 = vsel %vm1874_vm5, %v3682_v56, %v3683_v25  ;;  %v2315_v39 = vld [vmem:[#allocation2 + $0xc] sm:$0xf] }
 0x136   : > { %v768_v47 = vmul.f32 %v5614_v46, %v6027_v50  ;;  %v2530_v51 = vsel %vm1601_vm4, %v2525_v28, %v2529_v26  ;;  %5635 = vpow2.f32 %v4766_v30  ;;  %3730 = vrot.lane.b32.xlu0 %v3684_v17, %s5805_s27  ;;  %v2788_v1 = vrot.slane %v4899_v42, 1  ;;  %v1321_v42 = vld [vmem:[#allocation2 + $0x6c] sm:$0xf] }
 0x137   : > { %v5616_v37 = vpop.eup %5615  ;;  %2701 = vrot.lane.b32.xlu1 %v2530_v51, %s5804_s26  ;;  %5637 = vpow2.f32 %v4764_v32  ;;  %v6260_v3 = vadd.f32 %v5228_v22, %v5955_v35  ;;  %v4896_v0 = vcombine.low %v2363_v59, %v2316_v55  ;;  %v2780_v5 = vrot.slane %v6250_v9, 1 }
 0x138   : > { %v5079_v50 = vpack.c.bf16 %v768_v47, %v768_v47  ;;  %v771_v4 = vmul.f32 %v5616_v37, %v6034_v63  ;;  %v6264_v6 = vcombine.low %v2315_v39, %v2316_v55  ;;  %v2790_v52 = vsel %vm1874_vm5, %v2788_v1, %v2789_v20  ;;  %v1332_v39 = vld [vmem:[#allocation2 + $0x80] sm:$0x1] }
 0x139   : > { %v5618_v40 = vpop.eup %5617  ;;  %v4767_v41 = vmul.f32 -1.442695, %v6260_v3  ;;  %v2779_v13 = vrot.slane %v4896_v0, 1  ;;  %v6271_v14 = vadd.f32 %v5955_v35, %v548_v24  ;;  %v6278_v30 = vcombine.low %v1415_v48, %v6266_v8 }
 0x13a   : > { %v1076_v61 = vshrl.u32 %v5079_v50, 16  ;;  %v1079_v2 = vshll.u32 %v5079_v50, 16  ;;  %v5082_v25 = vpack.c.bf16 %v771_v4, %v771_v4  ;;  %v769_v63 = vmul.f32 %v5618_v40, %v6041_v10  ;;  %v6281_v10 = vld [vmem:[#allocation2 + $0x24] sm:$0xe] }
 0x13b   : > { %v5620_v7 = vpop.eup %5619  ;;  %2833 = vrot.lane.b32.xlu1 %v2790_v52, %s5805_s27  ;;  %5639 = vpow2.f32 %v4767_v41  ;;  %v2781_v22 = vsel %vm1874_vm5, %v2779_v13, %v2780_v5  ;;  %v4765_v26 = vmul.f32 -1.442695, %v6271_v14  ;;  %v4835_v51 = vcombine.low %v6281_v10, %v6266_v8 }
 0x13c   : > { %v5622_v55 = vpop.eup %5621  ;;  %v1078_v35 = vrot.slane %v1076_v61, 7  ;;  %v1101_v28 = vshrl.u32 %v5082_v25, 16  ;;  %v1104_v56 = vshll.u32 %v5082_v25, 16  ;;  %v5080_v46 = vpack.c.bf16 %v769_v63, %v769_v63  ;;  %2827 = vrot.lane.b32.xlu0 %v2781_v22, %s5805_s27 }
 0x13d   : > { %v5624_v32 = vpop.eup %5623  ;;  %v774_v20 = vmul.f32 %v5620_v7, %v6130_v15  ;;  %v772_v47 = vmul.f32 %v5622_v55, %v6134_v16  ;;  %5641 = vpow2.f32 %v4765_v26  ;;  %v1627_v8 = vshrl.u32 %v6179_v12, 16 }
 0x13e   : > { %v5626_v17 = vpop.eup %5625  ;;  %v1081_v59 = vor.u32 %v1079_v2, %v1078_v35  ;;  %v1082_v24 = vrot.slane %v1078_v35, 4  ;;  %v1103_v37 = vrot.slane %v1101_v28, 7  ;;  %v1084_v1 = vshrl.u32 %v5080_v46, 16  ;;  %v1325_v2 = vld [vmem:[#allocation2 + $0x74] sm:$0x1] }
 0x13f   : > { %v5628_v0 = vpop.eup %5627  ;;  %v1087_v50 = vshll.u32 %v5080_v46, 16  ;;  %v5085_v4 = vpack.c.bf16 %v774_v20, %v774_v20  ;;  %v5083_v5 = vpack.c.bf16 %v772_v47, %v772_v47  ;;  %v775_v40 = vmul.f32 %v5624_v32, %v6145_v18  ;;  %v1342_v47 = vld [vmem:[#allocation2 + $0x90] sm:$0xf] }
 0x140   : > { %v5630_v52 = vpop.eup %5629  ;;  %v1322_v15 = vsel %vm6045_vm9, %v1081_v59, %v1321_v42  ;;  %v1106_v16 = vor.u32 %v1104_v56, %v1103_v37  ;;  %v1108_v41 = vrot.slane %v1103_v37, 4  ;;  %v1086_v13 = vrot.slane %v1084_v1, 7  ;;  %v1335_v59 = vld [vmem:[#allocation2 + $0x84] sm:$0xf] }
 0x141   : > { %v5632_v61 = vpop.eup %5631  ;;  %1323 = vst [vmem:[#allocation2 + $0x6c] sm:$0xf] %v1322_v15  ;;  %v1127_v25 = vshrl.u32 %v5085_v4, 16  ;;  %v1130_v63 = vshll.u32 %v5085_v4, 16  ;;  %v1110_v48 = vshrl.u32 %v5083_v5, 16  ;;  %v1113_v7 = vshll.u32 %v5083_v5, 16 }
 0x142   : > { %v5634_v22 = vpop.eup %5633  ;;  %v1107_v18 = vsel %vm6062_vm10, %v1099_v44, %v1106_v16  ;;  %v1333_v26 = vsel %vm6070_vm11, %v1108_v41, %v1332_v39  ;;  %v1089_v55 = vor.u32 %v1087_v50, %v1086_v13  ;;  %v1091_v35 = vrot.slane %v1086_v13, 4  ;;  %v1346_v41 = vld [vmem:[#allocation2 + $0x98] sm:$0x1] }
 0x143   : > { %v6296_v28 = vpop.eup %5635  ;;  %1331 = vst.msk [vmem:[#allocation2 + $0x7c] sm:$0xf] %vm784_vm2, %v1107_v18  ;;  %1334 = vst [vmem:[#allocation2 + $0x80] sm:$0x1] %v1333_v26  ;;  %v1129_v56 = vrot.slane %v1127_v25, 7  ;;  %v1112_v46 = vrot.slane %v1110_v48, 7  ;;  %v5086_v32 = vpack.c.bf16 %v775_v40, %v775_v40  ;;  %v773_v42 = vmul.f32 %v5626_v17, %v6154_v29 }
 0x144   : > { %v6300_v20 = vpop.eup %5637  ;;  %v1090_v62 = vsel %vm6062_vm10, %v1082_v24, %v1089_v55  ;;  %v1326_v44 = vsel %vm6070_vm11, %v1091_v35, %v1325_v2  ;;  %v778_v37 = vmul.f32 %v5628_v0, %v6162_v31  ;;  %v776_v1 = vmul.f32 %v5630_v52, %v6165_v34 }
 0x145   : > { %1324 = vst.msk [vmem:[#allocation2 + $0x70] sm:$0xf] %vm784_vm2, %v1090_v62  ;;  %1327 = vst [vmem:[#allocation2 + $0x74] sm:$0x1] %v1326_v44  ;;  %v1132_v39 = vor.u32 %v1130_v63, %v1129_v56  ;;  %v1133_v50 = vrot.slane %v1129_v56, 4  ;;  %v1115_v29 = vor.u32 %v1113_v7, %v1112_v46  ;;  %v1116_v17 = vrot.slane %v1112_v46, 4 }
 0x146   : > { %v1135_v4 = vshrl.u32 %v5086_v32, 16  ;;  %v1138_v5 = vshll.u32 %v5086_v32, 16  ;;  %v5084_v40 = vpack.c.bf16 %v773_v42, %v773_v42  ;;  %v5089_v24 = vpack.c.bf16 %v778_v37, %v778_v37  ;;  %v1339_v63 = vld [vmem:[#allocation2 + $0x8c] sm:$0x1]  ;;  %v1356_v42 = vld [vmem:[#allocation2 + $0xa8] sm:$0xf] }
 0x147   : > { %v1343_v15 = vsel %vm6045_vm9, %v1132_v39, %v1342_v47  ;;  %v1336_v16 = vsel %vm6045_vm9, %v1115_v29, %v1335_v59  ;;  %v5087_v31 = vpack.c.bf16 %v776_v1, %v776_v1  ;;  %v779_v34 = vmul.f32 %v5632_v61, %v6171_v58  ;;  %v1349_v39 = vld [vmem:[#allocation2 + $0x9c] sm:$0xf] }
 0x148   : > { %v5640_v0 = vpop.eup %5639  ;;  %1344 = vst [vmem:[#allocation2 + $0x90] sm:$0xf] %v1343_v15  ;;  %1337 = vst [vmem:[#allocation2 + $0x84] sm:$0xf] %v1336_v16  ;;  %v1137_v52 = vrot.slane %v1135_v4, 7  ;;  %v1118_v13 = vshrl.u32 %v5084_v40, 16  ;;  %v777_v44 = vmul.f32 %v5634_v22, %v6182_v57 }
 0x149   : > { %v1121_v2 = vshll.u32 %v5084_v40, 16  ;;  %v1161_v25 = vshrl.u32 %v5089_v24, 16  ;;  %v1164_v48 = vshll.u32 %v5089_v24, 16  ;;  %v1144_v7 = vshrl.u32 %v5087_v31, 16 }
 0x14a   : > { %v1147_v18 = vshll.u32 %v5087_v31, 16  ;;  %v5090_v26 = vpack.c.bf16 %v779_v34, %v779_v34  ;;  %v5642_v55 = vpop.eup %5641  ;;  %v1140_v35 = vor.u32 %v1138_v5, %v1137_v52  ;;  %v1142_v56 = vrot.slane %v1137_v52, 4 }
 0x14b   : > { %v1120_v46 = vrot.slane %v1118_v13, 7  ;;  %v1163_v32 = vrot.slane %v1161_v25, 7  ;;  %v1146_v58 = vrot.slane %v1144_v7, 7  ;;  %v5088_v15 = vpack.c.bf16 %v777_v44, %v777_v44 }
 0x14c   : > { %v1169_v61 = vshrl.u32 %v5090_v26, 16  ;;  %v1172_v62 = vshll.u32 %v5090_v26, 16  ;;  %v1141_v47 = vsel %vm6062_vm10, %v1133_v50, %v1140_v35  ;;  %v1347_v59 = vsel %vm6070_vm11, %v1142_v56, %v1346_v41  ;;  %v1360_v50 = vld [vmem:[#allocation2 + $0xb0] sm:$0x1]  ;;  %v3221_v35 = vld [vmem:[#allocation2 + $0x28] sm:$0xf] }
 0x14d   : > { %v1123_v37 = vor.u32 %v1121_v2, %v1120_v46  ;;  %v1125_v1 = vrot.slane %v1120_v46, 4  ;;  %1345 = vst.msk [vmem:[#allocation2 + $0x94] sm:$0xf] %vm784_vm2, %v1141_v47  ;;  %1348 = vst [vmem:[#allocation2 + $0x98] sm:$0x1] %v1347_v59  ;;  %v1166_v29 = vor.u32 %v1164_v48, %v1163_v32  ;;  %v1167_v4 = vrot.slane %v1163_v32, 4 }
 0x14e   : > { %v1149_v5 = vor.u32 %v1147_v18, %v1146_v58  ;;  %v1150_v40 = vrot.slane %v1146_v58, 4  ;;  %v1171_v22 = vrot.slane %v1169_v61, 7  ;;  %v686_v34 = vadd.f32 1.0, %v6296_v28  ;;  %v6340_v56 = vld [vmem:[#allocation2 + $0x2c] ss:$0 sps:$4 sm:$0x11]  }
 0x14f   : > { %v1124_v24 = vsel %vm6062_vm10, %v1116_v17, %v1123_v37  ;;  %v1340_v57 = vsel %vm6070_vm11, %v1125_v1, %v1339_v63  ;;  %v1357_v16 = vsel %vm6045_vm9, %v1166_v29, %v1356_v42  ;;  %v684_v52 = vadd.f32 1.0, %v6300_v20  ;;  %v6331_v17 = vld [vmem:[#allocation2 + $0x2c] ss:$0 sps:$4 sm:$0x11]   ;;  %v1353_v63 = vld [vmem:[#allocation2 + $0xa4] sm:$0x1] }
 0x150   : > { %1338 = vst.msk [vmem:[#allocation2 + $0x88] sm:$0xf] %vm784_vm2, %v1124_v24  ;;  %1341 = vst [vmem:[#allocation2 + $0x8c] sm:$0x1] %v1340_v57  ;;  %v1350_v31 = vsel %vm6045_vm9, %v1149_v5, %v1349_v39  ;;  %v1174_v41 = vor.u32 %v1172_v62, %v1171_v22  ;;  %v1176_v13 = vrot.slane %v1171_v22, 4  ;;  %v1152_v2 = vshrl.u32 %v5088_v15, 16 }
 0x151   : > { %1358 = vst [vmem:[#allocation2 + $0xa8] sm:$0xf] %v1357_v16  ;;  %1351 = vst [vmem:[#allocation2 + $0x9c] sm:$0xf] %v1350_v31  ;;  %v1155_v25 = vshll.u32 %v5088_v15, 16  ;;  %5643 = vrcp.f32 %v686_v34  ;;  %v687_v48 = vadd.f32 1.0, %v5640_v0 }
 0x152   : > { %v685_v7 = vadd.f32 1.0, %v5642_v55  ;;  %v1884_v18 = vrot.slane %v4835_v51, 1  ;;  %v1175_v28 = vsel %vm6062_vm10, %v1167_v4, %v1174_v41  ;;  %v1361_v20 = vsel %vm6070_vm11, %v1176_v13, %v1360_v50  ;;  %v3220_v51 = vld [vmem:[#allocation2 + $0x24] sm:$0xf] }
 0x153   : > { %v1154_v26 = vrot.slane %v1152_v2, 7  ;;  %5645 = vrcp.f32 %v684_v52  ;;  %1359 = vst.msk [vmem:[#allocation2 + $0xac] sm:$0xf] %vm784_vm2, %v1175_v28  ;;  %1362 = vst [vmem:[#allocation2 + $0xb0] sm:$0x1] %v1361_v20  ;;  %v1885_v0 = vrot.slane %v6331_v17, 1  ;;  %v6348_v62 = vcombine.low %v3220_v51, %v3221_v35 }
 0x154   : > { %5647 = vrcp.f32 %v687_v48  ;;  %v1629_v10 = vshll.u32 %v6179_v12, 16  ;;  %v1634_v32 = vshll.u32 %v6156_v27, 16  ;;  %v3267_v42 = vld [vmem:[#allocation2 + $0x24] sm:$0xe]  ;;  %v3686_v1 = vrot.slane %v6340_v56, 1 }
 0x155   : > { %v1157_v55 = vor.u32 %v1155_v25, %v1154_v26  ;;  %v1159_v46 = vrot.slane %v1154_v26, 4  ;;  %5649 = vrcp.f32 %v685_v7  ;;  %v1886_v58 = vsel %vm1874_vm5, %v1884_v18, %v1885_v0 }
 0x156   : > { %v1631_v61 = vrot.slane %v1629_v10, 1  ;;  %v4962_v44 = vcombine.low %v3267_v42, %v3221_v35  ;;  %1929 = vrot.lane.b32.xlu1 %v1886_v58, %s5805_s27  ;;  %v1636_v37 = vrot.slane %v1634_v32, 1  ;;  %v3411_v29 = vshrl.u32 %v6237_v38, 16 }
 0x157   : > { %v1158_v47 = vsel %vm6062_vm10, %v1150_v40, %v1157_v55  ;;  %v1354_v59 = vsel %vm6070_vm11, %v1159_v46, %v1353_v63  ;;  %v3413_v4 = vshll.u32 %v6237_v38, 16  ;;  %v3418_v5 = vshll.u32 %v6221_v33, 16 }
 0x158   : > { %1352 = vst.msk [vmem:[#allocation2 + $0xa0] sm:$0xf] %vm784_vm2, %v1158_v47  ;;  %1355 = vst [vmem:[#allocation2 + $0xa4] sm:$0x1] %v1354_v59  ;;  %v1632_v27 = vor.u32 %v1631_v61, %v1627_v8  ;;  %v3685_v39 = vrot.slane %v4962_v44, 1  ;;  %v2544_v40 = vshrl.u32 %v6248_v36, 16 }
 0x159   : > { %v2546_v24 = vshll.u32 %v6248_v36, 16  ;;  %v2551_v57 = vshll.u32 %v6239_v54, 16  ;;  %v3415_v15 = vrot.slane %v3413_v4, 1  ;;  %v1615_v16 = vshrl.u32 %v6194_v11, 16 }
 0x15a   : > { %v1637_v22 = vsel %vm1601_vm4, %v1632_v27, %v1636_v37  ;;  %v3687_v50 = vsel %vm1874_vm5, %v3685_v39, %v3686_v1  ;;  %v3420_v31 = vrot.slane %v3418_v5, 1  ;;  %v1617_v52 = vshll.u32 %v6194_v11, 16 }
 0x15b   : > { %1798 = vrot.lane.b32.xlu0 %v1637_v22, %s5804_s26  ;;  %3732 = vrot.lane.b32.xlu1 %v3687_v50, %s5805_s27  ;;  %v2548_v34 = vrot.slane %v2546_v24, 1  ;;  %v2553_v33 = vrot.slane %v2551_v57, 1  ;;  %v3416_v41 = vor.u32 %v3415_v15, %v3411_v29  ;;  %v1622_v13 = vshll.u32 %v6177_v53, 16  ;;  %v1418_v57 = vld [vmem:[#allocation2 + $0x34] sm:$0xf] }
 0x15c   : > { %v1639_v54 = vshrl.u32 %v6278_v30, 16  ;;  %v1641_v2 = vshll.u32 %v6278_v30, 16  ;;  %v1619_v63 = vrot.slane %v1617_v52, 1  ;;  %v1646_v48 = vshll.u32 %v6331_v17, 16 }
 0x15d   : > { %v2549_v25 = vor.u32 %v2548_v34, %v2544_v40  ;;  %v2508_v7 = vshrl.u32 %v6264_v6, 16  ;;  %v3421_v18 = vsel %vm1601_vm4, %v3416_v41, %v3420_v31  ;;  %v1624_v28 = vrot.slane %v1622_v13, 1  ;;  %v6392_v31 = vld [vmem:[#allocation2 + $0x38] ss:$0 sps:$4 sm:$0x11]  }
 0x15e   : > { %v1643_v20 = vrot.slane %v1641_v2, 1  ;;  %v2510_v26 = vshll.u32 %v6264_v6, 16  ;;  %v5644_v35 = vpop.eup %5643  ;;  %v1620_v0 = vor.u32 %v1619_v63, %v1615_v16  ;;  %v1648_v8 = vrot.slane %v1646_v48, 1  ;;  %v1363_v34 = vld [vmem:[#allocation2 + $0xb4] sm:$0xf] }
 0x15f   : > { %3602 = vrot.lane.b32.xlu0 %v3421_v18, %s5804_s26  ;;  %v2554_v53 = vsel %vm1601_vm4, %v2549_v25, %v2553_v33  ;;  %v2515_v10 = vshll.u32 %v6250_v9, 16  ;;  %v782_v17 = vmul.f32 %v5644_v35, %v6235_v23  ;;  %v3423_v32 = vshrl.u32 %v6348_v62, 16  ;;  %v1461_v41 = vld [vmem:[#allocation2 + $0x30] sm:$0xe] }
 0x160   : > { %v5646_v51 = vpop.eup %5645  ;;  %2705 = vrot.lane.b32.xlu1 %v2554_v53, %s5804_s26  ;;  %v1644_v55 = vor.u32 %v1643_v20, %v1639_v54  ;;  %v2512_v46 = vrot.slane %v2510_v26, 1  ;;  %v1625_v61 = vsel %vm1601_vm4, %v1620_v0, %v1624_v28  ;;  %v3425_v47 = vshll.u32 %v6348_v62, 16  ;;  %v1374_v54 = vld [vmem:[#allocation2 + $0xc8] sm:$0x1]  ;;  %v1367_v28 = vld [vmem:[#allocation2 + $0xbc] sm:$0x1] }
 0x161   : > { %v5648_v42 = vpop.eup %5647  ;;  %v780_v58 = vmul.f32 %v5646_v51, %v6244_v60  ;;  %v2517_v44 = vrot.slane %v2515_v10, 1  ;;  %v5093_v37 = vpack.c.bf16 %v782_v17, %v782_v17  ;;  %v3430_v60 = vshll.u32 %v6340_v56, 16  ;;  %v6395_v63 = vld [vmem:[#allocation2 + $0x50] ss:$0 sps:$4 sm:$0x11]  }
 0x162   : > { %v5650_v59 = vpop.eup %5649  ;;  %v783_v9 = vmul.f32 %v5648_v42, %v6260_v3  ;;  %v1649_v23 = vsel %vm1601_vm4, %v1644_v55, %v1648_v8  ;;  %v2513_v1 = vor.u32 %v2512_v46, %v2508_v7  ;;  %v3427_v29 = vrot.slane %v3425_v47, 1  ;;  %v1370_v3 = vld [vmem:[#allocation2 + $0xc0] sm:$0xf]  ;;  %v2326_v26 = vld [vmem:[#allocation2 + $0x4c] sm:$0xf] }
 0x163   : > { %v5091_v27 = vpack.c.bf16 %v780_v58, %v780_v58  ;;  %v781_v39 = vmul.f32 %v5650_v59, %v6271_v14  ;;  %1796 = vrot.lane.b32.xlu0 %v1625_v61, %s5804_s26  ;;  %v1195_v4 = vshrl.u32 %v5093_v37, 16  ;;  %v1198_v5 = vshll.u32 %v5093_v37, 16  ;;  %v2368_v10 = vld [vmem:[#allocation2 + $0x48] sm:$0xe]  ;;  %v1417_v47 = vld [vmem:[#allocation2 + $0x30] sm:$0xf] }
 0x164   : > { %v5094_v40 = vpack.c.bf16 %v783_v9, %v783_v9  ;;  %1800 = vrot.lane.b32.xlu1 %v1649_v23, %s5804_s26  ;;  %v2518_v24 = vsel %vm1601_vm4, %v2513_v1, %v2517_v44  ;;  %v3428_v16 = vor.u32 %v3427_v29, %v3423_v32  ;;  %v3432_v56 = vrot.slane %v3430_v60, 1  ;;  %v6399_v51 = vld [vmem:[#allocation2 + $0x38] ss:$0 sps:$4 sm:$0x11]   ;;  %v3223_v37 = vld [vmem:[#allocation2 + $0x34] sm:$0xf] }
 0x165   : > { %v1178_v22 = vshrl.u32 %v5091_v27, 16  ;;  %v1181_v50 = vshll.u32 %v5091_v27, 16  ;;  %v5092_v15 = vpack.c.bf16 %v781_v39, %v781_v39  ;;  %v1197_v14 = vrot.slane %v1195_v4, 7  ;;  %v6404_v42 = vld [vmem:[#allocation2 + $0x44] ss:$0 sps:$4 sm:$0x11]  }
 0x166   : > { %v1203_v33 = vshrl.u32 %v5094_v40, 16  ;;  %v1206_v52 = vshll.u32 %v5094_v40, 16  ;;  %v3433_v20 = vsel %vm1601_vm4, %v3428_v16, %v3432_v56  ;;  %v4836_v8 = vcombine.low %v1461_v41, %v1418_v57  ;;  %v3268_v27 = vld [vmem:[#allocation2 + $0x30] sm:$0xe]  ;;  %v1420_v39 = vld [vmem:[#allocation2 + $0x40] sm:$0xf] }
 0x167   : > { %v1180_v13 = vrot.slane %v1178_v22, 7  ;;  %v1186_v2 = vshrl.u32 %v5092_v15, 16  ;;  %v1189_v25 = vshll.u32 %v5092_v15, 16  ;;  %2699 = vrot.lane.b32.xlu0 %v2518_v24, %s5804_s26  ;;  %v1200_v48 = vor.u32 %v1198_v5, %v1197_v14  ;;  %v1462_v29 = vld [vmem:[#allocation2 + $0x3c] sm:$0xe] }
 0x168   : > { %v1201_v7 = vrot.slane %v1197_v14, 4  ;;  %v1205_v18 = vrot.slane %v1203_v33, 7  ;;  %3604 = vrot.lane.b32.xlu1 %v3433_v20, %s5804_s26  ;;  %v1888_v32 = vrot.slane %v6392_v31, 1  ;;  %v1887_v59 = vrot.slane %v4836_v8, 1  ;;  %v2325_v5 = vld [vmem:[#allocation2 + $0x48] sm:$0xf] }
 0x169   : > { %v1183_v35 = vor.u32 %v1181_v50, %v1180_v13  ;;  %v1184_v53 = vrot.slane %v1180_v13, 4  ;;  %v1188_v0 = vrot.slane %v1186_v2, 7  ;;  %v1371_v17 = vsel %vm6045_vm9, %v1200_v48, %v1370_v3  ;;  %v2320_v24 = vld [vmem:[#allocation2 + $0x28] sm:$0xf]  ;;  %v3222_v50 = vld [vmem:[#allocation2 + $0x30] sm:$0xf] }
 0x16a   : > { %v1208_v55 = vor.u32 %v1206_v52, %v1205_v18  ;;  %v1210_v46 = vrot.slane %v1205_v18, 4  ;;  %1372 = vst [vmem:[#allocation2 + $0xc0] sm:$0xf] %v1371_v17  ;;  %v4901_v1 = vcombine.low %v2368_v10, %v2326_v26  ;;  %v1889_v4 = vsel %vm1874_vm5, %v1887_v59, %v1888_v32  ;;  %v6419_v3 = vld [vmem:[#allocation2 + $0x2c] ss:$0 sps:$4 sm:$0x11]  }
 0x16b   : > { %v1364_v58 = vsel %vm6045_vm9, %v1183_v35, %v1363_v34  ;;  %v1191_v61 = vor.u32 %v1189_v25, %v1188_v0  ;;  %v1193_v44 = vrot.slane %v1188_v0, 4  ;;  %v2795_v40 = vrot.slane %v6395_v63, 1  ;;  %1931 = vrot.lane.b32.xlu0 %v1889_v4, %s5805_s27  ;;  %v3225_v16 = vld [vmem:[#allocation2 + $0x40] sm:$0xf]  ;;  %v2365_v33 = vld [vmem:[#allocation2 + $0x24] sm:$0xe] }
 0x16c   : > { %1365 = vst [vmem:[#allocation2 + $0xb4] sm:$0xf] %v1364_v58  ;;  %v1209_v9 = vsel %vm6062_vm10, %v1201_v7, %v1208_v55  ;;  %v1375_v23 = vsel %vm6070_vm11, %v1210_v46, %v1374_v54  ;;  %v6422_v22 = vcombine.low %v1417_v47, %v1418_v57  ;;  %v2794_v45 = vrot.slane %v4901_v1, 1  ;;  %v6427_v52 = vld [vmem:[#allocation2 + $0x44] ss:$0 sps:$4 sm:$0x11]  }
 0x16d   : > { %1373 = vst.msk [vmem:[#allocation2 + $0xc4] sm:$0xf] %vm784_vm2, %v1209_v9  ;;  %1376 = vst [vmem:[#allocation2 + $0xc8] sm:$0x1] %v1375_v23  ;;  %v1192_v19 = vsel %vm6062_vm10, %v1184_v53, %v1191_v61  ;;  %v1368_v60 = vsel %vm6070_vm11, %v1193_v44, %v1367_v28  ;;  %v4963_v15 = vcombine.low %v3268_v27, %v3223_v37  ;;  %v3689_v49 = vrot.slane %v6399_v51, 1 }
 0x16e   : > { %1366 = vst.msk [vmem:[#allocation2 + $0xb8] sm:$0xf] %vm784_vm2, %v1192_v19  ;;  %1369 = vst [vmem:[#allocation2 + $0xbc] sm:$0x1] %v1368_v60  ;;  %v4837_v14 = vcombine.low %v1462_v29, %v1420_v39  ;;  %v1891_v34 = vrot.slane %v6404_v42, 1  ;;  %v6429_v56 = vcombine.low %v2325_v5, %v2326_v26  ;;  %v2796_v41 = vsel %vm1874_vm5, %v2794_v45, %v2795_v40 }
 0x16f   : > { %v3688_v57 = vrot.slane %v4963_v15, 1  ;;  %v4898_v13 = vcombine.low %v2365_v33, %v2320_v24  ;;  %v3269_v54 = vld [vmem:[#allocation2 + $0x3c] sm:$0xe]  ;;  %2837 = vrot.lane.b32.xlu1 %v2796_v41, %s5805_s27  ;;  %v6433_v2 = vcombine.low %v3222_v50, %v3223_v37  ;;  %v2786_v20 = vrot.slane %v6419_v3, 1  ;;  %v2319_v0 = vld [vmem:[#allocation2 + $0x24] sm:$0xf] }
 0x170   : > { %v1890_v25 = vrot.slane %v4837_v14, 1  ;;  %v4964_v48 = vcombine.low %v3269_v54, %v3225_v16  ;;  %v1419_v18 = vld [vmem:[#allocation2 + $0x3c] sm:$0xf]  ;;  %v1653_v26 = vshll.u32 %v6422_v22, 16  ;;  %v3692_v8 = vrot.slane %v6427_v52, 1 }
 0x171   : > { %v3690_v7 = vsel %vm1874_vm5, %v3688_v57, %v3689_v49  ;;  %v2785_v28 = vrot.slane %v4898_v13, 1  ;;  %v6439_v35 = vcombine.low %v1419_v18, %v1420_v39  ;;  %v1651_v10 = vshrl.u32 %v6422_v22, 16  ;;  %v3224_v17 = vld [vmem:[#allocation2 + $0x3c] sm:$0xf]  ;;  %v1422_v49 = vld [vmem:[#allocation2 + $0x4c] sm:$0xf] }
 0x172   : > { %3734 = vrot.lane.b32.xlu0 %v3690_v7, %s5805_s27  ;;  %v1892_v53 = vsel %vm1874_vm5, %v1890_v25, %v1891_v34  ;;  %v3691_v55 = vrot.slane %v4964_v48, 1  ;;  %v1655_v46 = vrot.slane %v1653_v26, 1  ;;  %v1658_v32 = vshll.u32 %v6392_v31, 16  ;;  %v1463_v13 = vld [vmem:[#allocation2 + $0x48] sm:$0xe] }
 0x173   : > { %v2570_v58 = vshll.u32 %v6429_v56, 16  ;;  %1933 = vrot.lane.b32.xlu1 %v1892_v53, %s5805_s27  ;;  %v6447_v61 = vcombine.low %v2319_v0, %v2320_v24  ;;  %v6449_v44 = vcombine.low %v3224_v17, %v3225_v16  ;;  %v2575_v47 = vshll.u32 %v6395_v63, 16  ;;  %v6471_v25 = vld [vmem:[#allocation2 + $0x50] ss:$0 sps:$4 sm:$0x11]  }
 0x174   : > { %v3437_v59 = vshll.u32 %v6433_v2, 16  ;;  %v2787_v37 = vsel %vm1874_vm5, %v2785_v28, %v2786_v20  ;;  %v1656_v9 = vor.u32 %v1655_v46, %v1651_v10  ;;  %v2568_v23 = vshrl.u32 %v6429_v56, 16  ;;  %v2330_v7 = vld [vmem:[#allocation2 + $0x64] sm:$0xf]  ;;  %v2370_v53 = vld [vmem:[#allocation2 + $0x60] sm:$0xe] }
 0x175   : > { %v2572_v1 = vrot.slane %v2570_v58, 1  ;;  %v3442_v27 = vshll.u32 %v6399_v51, 16  ;;  %v1665_v39 = vshll.u32 %v6439_v35, 16  ;;  %v3693_v29 = vsel %vm1874_vm5, %v3691_v55, %v3692_v8  ;;  %v6477_v0 = vld [vmem:[#allocation2 + $0x68] ss:$0 sps:$4 sm:$0x11]  }
 0x176   : > { %2831 = vrot.lane.b32.xlu0 %v2787_v37, %s5805_s27  ;;  %v3439_v31 = vrot.slane %v3437_v59, 1  ;;  %v1660_v19 = vrot.slane %v1658_v32, 1  ;;  %v3435_v63 = vshrl.u32 %v6433_v2, 16  ;;  %v2577_v4 = vrot.slane %v2575_v47, 1  ;;  %v3227_v8 = vld [vmem:[#allocation2 + $0x4c] sm:$0xf] }
 0x177   : > { %v2573_v60 = vor.u32 %v2572_v1, %v2568_v23  ;;  %3736 = vrot.lane.b32.xlu1 %v3693_v29, %s5805_s27  ;;  %v1667_v5 = vrot.slane %v1665_v39, 1  ;;  %v1670_v40 = vshll.u32 %v6404_v42, 16  ;;  %v2534_v24 = vshll.u32 %v6447_v61, 16  ;;  %v2329_v46 = vld [vmem:[#allocation2 + $0x60] sm:$0xf] }
 0x178   : > { %v1661_v45 = vsel %vm1601_vm4, %v1656_v9, %v1660_v19  ;;  %v3440_v50 = vor.u32 %v3439_v31, %v3435_v63  ;;  %v1663_v51 = vshrl.u32 %v6439_v35, 16  ;;  %v3449_v15 = vshll.u32 %v6449_v44, 16  ;;  %v3270_v58 = vld [vmem:[#allocation2 + $0x48] sm:$0xe]  ;;  %v1424_v37 = vld [vmem:[#allocation2 + $0x58] sm:$0xf] }
 0x179   : > { %v3444_v16 = vrot.slane %v3442_v27, 1  ;;  %v2532_v14 = vshrl.u32 %v6447_v61, 16  ;;  %v2536_v34 = vrot.slane %v2534_v24, 1  ;;  %v2578_v33 = vsel %vm1601_vm4, %v2573_v60, %v2577_v4  ;;  %v6480_v47 = vld [vmem:[#allocation2 + $0x50] ss:$0 sps:$4 sm:$0x11]  }
 0x17a   : > { %1802 = vrot.lane.b32.xlu0 %v1661_v45, %s5804_s26  ;;  %v1668_v41 = vor.u32 %v1667_v5, %v1663_v51  ;;  %v2539_v42 = vshll.u32 %v6419_v3, 16  ;;  %v3451_v57 = vrot.slane %v3449_v15, 1  ;;  %v1672_v54 = vrot.slane %v1670_v40, 1  ;;  %v1421_v3 = vld [vmem:[#allocation2 + $0x48] sm:$0xf] }
 0x17b   : > { %2709 = vrot.lane.b32.xlu1 %v2578_v33, %s5804_s26  ;;  %v4838_v48 = vcombine.low %v1463_v13, %v1422_v49  ;;  %v3445_v18 = vsel %vm1601_vm4, %v3440_v50, %v3444_v16  ;;  %v2537_v28 = vor.u32 %v2536_v34, %v2532_v14  ;;  %v3447_v20 = vshrl.u32 %v6449_v44, 16  ;;  %v3226_v31 = vld [vmem:[#allocation2 + $0x48] sm:$0xf]  ;;  %v6487_v39 = vld [vmem:[#allocation2 + $0x5c] ss:$0 sps:$4 sm:$0x11]  }
 0x17c   : > { %v3454_v26 = vshll.u32 %v6427_v52, 16  ;;  %v1673_v10 = vsel %vm1601_vm4, %v1668_v41, %v1672_v54  ;;  %v2541_v17 = vrot.slane %v2539_v42, 1  ;;  %v4903_v32 = vcombine.low %v2370_v53, %v2330_v7  ;;  %v1464_v19 = vld [vmem:[#allocation2 + $0x54] sm:$0xe]  ;;  %v2324_v60 = vld [vmem:[#allocation2 + $0x40] sm:$0xf] }
 0x17d   : > { %v3452_v55 = vor.u32 %v3451_v57, %v3447_v20  ;;  %v1893_v59 = vrot.slane %v4838_v48, 1  ;;  %v1894_v52 = vrot.slane %v6471_v25, 1  ;;  %v6485_v1 = vcombine.low %v1421_v3, %v1422_v49  ;;  %v1423_v40 = vld [vmem:[#allocation2 + $0x54] sm:$0xf]  ;;  %v3229_v45 = vld [vmem:[#allocation2 + $0x58] sm:$0xf] }
 0x17e   : > { %3606 = vrot.lane.b32.xlu0 %v3445_v18, %s5804_s26  ;;  %v2542_v9 = vsel %vm1601_vm4, %v2537_v28, %v2541_v17  ;;  %v3456_v23 = vrot.slane %v3454_v26, 1  ;;  %v4965_v27 = vcombine.low %v3270_v58, %v3227_v8  ;;  %v6490_v29 = vcombine.low %v2329_v46, %v2330_v7  ;;  %v2367_v15 = vld [vmem:[#allocation2 + $0x3c] sm:$0xe]  ;;  %v6498_v49 = vld [vmem:[#allocation2 + $0x44] ss:$0 sps:$4 sm:$0x11]  }
 0x17f   : > { %1804 = vrot.lane.b32.xlu1 %v1673_v10, %s5804_s26  ;;  %v2800_v4 = vrot.slane %v4903_v32, 1  ;;  %v2801_v5 = vrot.slane %v6477_v0, 1  ;;  %v4839_v24 = vcombine.low %v1464_v19, %v1424_v37  ;;  %v1895_v50 = vsel %vm1874_vm5, %v1893_v59, %v1894_v52  ;;  %v3271_v33 = vld [vmem:[#allocation2 + $0x54] sm:$0xe]  ;;  %v2323_v57 = vld [vmem:[#allocation2 + $0x3c] sm:$0xf] }
 0x180   : > { %7712 = vst [vmem:[#allocation4_spill] sm:$0xff] %v6490_v29  ;;  %v3457_v63 = vsel %vm1601_vm4, %v3452_v55, %v3456_v23  ;;  %v6496_v51 = vcombine.low %v3226_v31, %v3227_v8  ;;  %v3694_v16 = vrot.slane %v4965_v27, 1  ;;  %v3695_v14 = vrot.slane %v6480_v47, 1  ;;  %v6505_v13 = vld [vmem:[#allocation2 + $0x5c] ss:$0 sps:$4 sm:$0x11]  }
 0x181   : > { %v4900_v34 = vcombine.low %v2367_v15, %v2324_v60  ;;  %v1677_v41 = vshll.u32 %v6485_v1, 16  ;;  %v6503_v42 = vcombine.low %v1423_v40, %v1424_v37  ;;  %v4966_v54 = vcombine.low %v3271_v33, %v3229_v45  ;;  %v3228_v8 = vld [vmem:[#allocation2 + $0x54] sm:$0xf] }
 0x182   : > { %2703 = vrot.lane.b32.xlu0 %v2542_v9, %s5804_s26  ;;  %v2802_v48 = vsel %vm1874_vm5, %v2800_v4, %v2801_v5  ;;  %v1896_v7 = vrot.slane %v4839_v24, 1  ;;  %v1897_v18 = vrot.slane %v6487_v39, 1  ;;  %v2594_v28 = vshll.u32 %v6490_v29, 16 }
 0x183   : > { %3608 = vrot.lane.b32.xlu1 %v3457_v63, %s5804_s26  ;;  %v6511_v20 = vcombine.low %v2323_v57, %v2324_v60  ;;  %v2792_v26 = vrot.slane %v6498_v49, 1  ;;  %v3696_v53 = vsel %vm1874_vm5, %v3694_v16, %v3695_v14  ;;  %v2791_v3 = vrot.slane %v4900_v34, 1  ;;  %v1427_v16 = vld [vmem:[#allocation2 + $0x6c] sm:$0xf]  ;;  %v1428_v14 = vld [vmem:[#allocation2 + $0x70] sm:$0xf] }
 0x184   : > { %v1679_v10 = vrot.slane %v1677_v41, 1  ;;  %v3461_v17 = vshll.u32 %v6496_v51, 16  ;;  %v6517_v55 = vcombine.low %v3228_v8, %v3229_v45  ;;  %v3697_v46 = vrot.slane %v4966_v54, 1  ;;  %v1425_v57 = vld [vmem:[#allocation2 + $0x60] sm:$0xf] }
 0x185   : > { %v3698_v32 = vrot.slane %v6505_v13, 1  ;;  %v1675_v58 = vshrl.u32 %v6485_v1, 16  ;;  %v1898_v59 = vsel %vm1874_vm5, %v1896_v7, %v1897_v18  ;;  %v1682_v52 = vshll.u32 %v6471_v25, 16  ;;  %v1426_v54 = vld [vmem:[#allocation2 + $0x64] sm:$0xf] }
 0x186   : > { %1935 = vrot.lane.b32.xlu0 %v1895_v50, %s5805_s27  ;;  %v2596_v37 = vrot.slane %v2594_v28, 1  ;;  %v1689_v9 = vshll.u32 %v6503_v42, 16  ;;  %v2592_v23 = vshrl.u32 %v6490_v29, 16  ;;  %v2599_v31 = vshll.u32 %v6477_v0, 16  ;;  %v1465_v28 = vld [vmem:[#allocation2 + $0x60] sm:$0xe] }
 0x187   : > { %2841 = vrot.lane.b32.xlu1 %v2802_v48, %s5805_s27  ;;  %v2793_v27 = vsel %vm1874_vm5, %v2791_v3, %v2792_v26  ;;  %v1680_v19 = vor.u32 %v1679_v10, %v1675_v58  ;;  %v3463_v60 = vrot.slane %v3461_v17, 1  ;;  %v2558_v63 = vshll.u32 %v6511_v20, 16  ;;  %v6542_v8 = vld [vmem:[#allocation2 + $0x68] ss:$0 sps:$4 sm:$0x11]  }
 0x188   : > { %v3699_v4 = vsel %vm1874_vm5, %v3697_v46, %v3698_v32  ;;  %v3466_v25 = vshll.u32 %v6480_v47, 16  ;;  %v3473_v5 = vshll.u32 %v6517_v55, 16  ;;  %v1684_v40 = vrot.slane %v1682_v52, 1  ;;  %v1466_v10 = vld [vmem:[#allocation2 + $0x6c] sm:$0xe] }
 0x189   : > { %v2597_v24 = vor.u32 %v2596_v37, %v2592_v23  ;;  %v3459_v45 = vshrl.u32 %v6496_v51, 16  ;;  %v1691_v50 = vrot.slane %v1689_v9, 1  ;;  %v2601_v0 = vrot.slane %v2599_v31, 1  ;;  %v2328_v9 = vld [vmem:[#allocation2 + $0x58] sm:$0xf] }
 0x18a   : > { %3738 = vrot.lane.b32.xlu0 %v3696_v53, %s5805_s27  ;;  %v1687_v15 = vshrl.u32 %v6503_v42, 16  ;;  %v1685_v34 = vsel %vm1601_vm4, %v1680_v19, %v1684_v40  ;;  %v1694_v41 = vshll.u32 %v6487_v39, 16  ;;  %v2560_v47 = vrot.slane %v2558_v63, 1  ;;  %v5430_v23 = vld [vmem:[#allocation2 + $0x74] ss:$0 sps:$4 sm:$0x11]  }
 0x18b   : > { %1937 = vrot.lane.b32.xlu1 %v1898_v59, %s5805_s27  ;;  %v3464_v33 = vor.u32 %v3463_v60, %v3459_v45  ;;  %v3468_v48 = vrot.slane %v3466_v25, 1  ;;  %v2556_v7 = vshrl.u32 %v6511_v20, 16  ;;  %v3475_v18 = vrot.slane %v3473_v5, 1  ;;  %v2369_v19 = vld [vmem:[#allocation2 + $0x54] sm:$0xe] }
 0x18c   : > { %v2602_v26 = vsel %vm1601_vm4, %v2597_v24, %v2601_v0  ;;  %v1692_v53 = vor.u32 %v1691_v50, %v1687_v15  ;;  %v2563_v3 = vshll.u32 %v6498_v49, 16  ;;  %v6544_v17 = vcombine.low %v1427_v16, %v1428_v14  ;;  %v6555_v25 = vld [vmem:[#allocation2 + $0x7c] sm:$0xf] }
 0x18d   : > { %v3471_v39 = vshrl.u32 %v6517_v55, 16  ;;  %v3478_v46 = vshll.u32 %v6505_v13, 16  ;;  %v6549_v32 = vcombine.low %v1425_v57, %v1426_v54  ;;  %v4840_v58 = vcombine.low %v1465_v28, %v1426_v54  ;;  %v5433_v15 = vld [vmem:[#allocation2 + $0x5c] ss:$0 sps:$4 sm:$0x11]  }
 0x18e   : > { %2835 = vrot.lane.b32.xlu0 %v2793_v27, %s5805_s27  ;;  %v3469_v59 = vsel %vm1601_vm4, %v3464_v33, %v3468_v48  ;;  %v1696_v52 = vrot.slane %v1694_v41, 1  ;;  %v2561_v37 = vor.u32 %v2560_v47, %v2556_v7  ;;  %v4841_v31 = vcombine.low %v1466_v10, %v1428_v14  ;;  %v2327_v27 = vld [vmem:[#allocation2 + $0x54] sm:$0xf]  ;;  %v1431_v41 = vld [vmem:[#allocation2 + $0x84] sm:$0xf] }
 0x18f   : > { %3740 = vrot.lane.b32.xlu1 %v3699_v4, %s5805_s27  ;;  %7713 = vst [vmem:[#allocation5_spill] sm:$0xff] %v6549_v32  ;;  %v3476_v49 = vor.u32 %v3475_v18, %v3471_v39  ;;  %v2565_v63 = vrot.slane %v2563_v3, 1  ;;  %v1713_v13 = vshll.u32 %v6544_v17, 16  ;;  %v2333_v4 = vld [vmem:[#allocation2 + $0x78] sm:$0xf]  ;;  %v3480_v5 = vrot.slane %v3478_v46, 1 }
 0x190   : > { %v1697_v60 = vsel %vm1601_vm4, %v1692_v53, %v1696_v52  ;;  %v1899_v40 = vrot.slane %v4840_v58, 1  ;;  %v1900_v24 = vrot.slane %v6542_v8, 1  ;;  %v1701_v45 = vshll.u32 %v6549_v32, 16  ;;  %v1468_v47 = vld [vmem:[#allocation2 + $0x84] sm:$0xe] }
 0x191   : > { %v2566_v50 = vsel %vm1601_vm4, %v2561_v37, %v2565_v63  ;;  %v6561_v0 = vcombine.low %v2327_v27, %v2328_v9  ;;  %v4902_v16 = vcombine.low %v2369_v19, %v2328_v9  ;;  %v3481_v14 = vsel %vm1601_vm4, %v3476_v49, %v3480_v5  ;;  %v1429_v18 = vld [vmem:[#allocation2 + $0x78] sm:$0xf]  ;;  %v6569_v28 = vld [vmem:[#allocation2 + $0x7c] sm:$0xf]  ;;  %v1432_v3 = vld [vmem:[#allocation2 + $0x88] sm:$0xf] }
 0x192   : > { %1806 = vrot.lane.b32.xlu0 %v1685_v34, %s5804_s26  ;;  %v1902_v34 = vrot.slane %v4841_v31, 1  ;;  %v1903_v33 = vrot.slane %v5430_v23, 1  ;;  %v1711_v57 = vshrl.u32 %v6544_v17, 16  ;;  %v1715_v54 = vrot.slane %v1713_v13, 1 }
 0x193   : > { %2713 = vrot.lane.b32.xlu1 %v2602_v26, %s5804_s26  ;;  %7714 = vst [vmem:[#allocation6_spill] sm:$0xff] %v6561_v0  ;;  %v1718_v48 = vshll.u32 %v5430_v23, 16  ;;  %v6567_v7 = vcombine.low %v2333_v4, %v6555_v25  ;;  %v1901_v26 = vsel %vm1874_vm5, %v1899_v40, %v1900_v24  ;;  %v1703_v53 = vrot.slane %v1701_v45, 1  ;;  %v6573_v46 = vld [vmem:[#allocation2 + $0x8c] ss:$0 sps:$4 sm:$0x11]  }
 0x194   : > { %v2797_v10 = vrot.slane %v4902_v16, 1  ;;  %v2798_v39 = vrot.slane %v5433_v15, 1  ;;  %v4843_v58 = vcombine.low %v1468_v47, %v1432_v3  ;;  %v1904_v52 = vsel %vm1874_vm5, %v1902_v34, %v1903_v33  ;;  %v6580_v49 = vld [vmem:[#allocation2 + $0x80] ss:$0 sps:$4 sm:$0x11]   ;;  %v1795_v34 = vpop.permute.xlu0 %1794 }
 0x195   : > { %7715 = vst [vmem:[#allocation7_spill] sm:$0xff] %v6567_v7  ;;  %v1699_v37 = vshrl.u32 %v6549_v32, 16  ;;  %v1706_v9 = vshll.u32 %v6542_v8, 16  ;;  %v1716_v23 = vor.u32 %v1715_v54, %v1711_v57  ;;  %v1720_v31 = vrot.slane %v1718_v48, 1  ;;  %v1467_v24 = vld [vmem:[#allocation2 + $0x78] sm:$0xe] }
 0x196   : > { %3610 = vrot.lane.b32.xlu0 %v3469_v59, %s5804_s26  ;;  %v2582_v59 = vshll.u32 %v6561_v0, 16  ;;  %v6582_v27 = vcombine.low %v1431_v41, %v1432_v3  ;;  %v2618_v19 = vshll.u32 %v6567_v7, 16  ;;  %v2587_v63 = vshll.u32 %v5433_v15, 16 }
 0x197   : > { %1808 = vrot.lane.b32.xlu1 %v1697_v60, %s5804_s26  ;;  %v1704_v60 = vor.u32 %v1703_v53, %v1699_v37  ;;  %v6587_v13 = vcombine.low %v1429_v18, %v6569_v28  ;;  %v2799_v4 = vsel %vm1874_vm5, %v2797_v10, %v2798_v39  ;;  %v1908_v5 = vrot.slane %v4843_v58, 1  ;;  %v1437_v18 = vld [vmem:[#allocation2 + $0xa8] sm:$0xf]  ;;  %v1470_v39 = vld [vmem:[#allocation2 + $0x9c] sm:$0xe] }
 0x198   : > { %7716 = vst [vmem:[#allocation8_spill] sm:$0xff] %v6582_v27  ;;  %v1909_v8 = vrot.slane %v6573_v46, 1  ;;  %v2584_v40 = vrot.slane %v2582_v59, 1  ;;  %v1708_v45 = vrot.slane %v1706_v9, 1  ;;  %v2623_v16 = vshll.u32 %v6580_v49, 16 }
 0x199   : > { %7717 = vst [vmem:[#allocation9_spill] sm:$0xff] %v6587_v13  ;;  %v1721_v15 = vsel %vm1601_vm4, %v1716_v23, %v1720_v31  ;;  %v2616_v33 = vshrl.u32 %v6567_v7, 16  ;;  %v2620_v41 = vrot.slane %v2618_v19, 1  ;;  %v1737_v47 = vshll.u32 %v6582_v27, 16  ;;  %v1433_v58 = vld [vmem:[#allocation2 + $0x90] sm:$0xf] }
 0x19a   : > { %2707 = vrot.lane.b32.xlu0 %v2566_v50, %s5804_s26  ;;  %v2580_v50 = vshrl.u32 %v6561_v0, 16  ;;  %v1709_v57 = vsel %vm1601_vm4, %v1704_v60, %v1708_v45  ;;  %v2589_v54 = vrot.slane %v2587_v63, 1  ;;  %v1725_v48 = vshll.u32 %v6587_v13, 16  ;;  %v1435_v31 = vld [vmem:[#allocation2 + $0x9c] sm:$0xf] }
 0x19b   : > { %3612 = vrot.lane.b32.xlu1 %v3481_v14, %s5804_s26  ;;  %v5441_v14 = vld [vmem:[#allocation2 + $0x80] ss:$0 sps:$4 sm:$0x11]   ;;  %v1910_v53 = vsel %vm1874_vm5, %v1908_v5, %v1909_v8  ;;  %v4842_v10 = vcombine.low %v1467_v24, %v6569_v28  ;;  %v1956_v59 = vsel %vm346_vm1, %v5944_v21, %v1795_v34  ;;  %v2625_v37 = vrot.slane %v2623_v16, 1  ;;  %v1434_v19 = vld [vmem:[#allocation2 + $0x94] sm:$0xf] }
 0x19c   : > { %v2585_v3 = vor.u32 %v2584_v40, %v2580_v50  ;;  %v1906_v9 = vrot.slane %v5441_v14, 1  ;;  %v1742_v23 = vshll.u32 %v6573_v46, 16  ;;  %v2621_v60 = vor.u32 %v2620_v41, %v2616_v33  ;;  %v1436_v28 = vld [vmem:[#allocation2 + $0xa0] sm:$0xf]  ;;  %v1469_v5 = vld [vmem:[#allocation2 + $0x90] sm:$0xe] }
 0x19d   : > { %v1735_v63 = vshrl.u32 %v6582_v27, 16  ;;  %v1723_v21 = vshrl.u32 %v6587_v13, 16  ;;  %v1727_v40 = vrot.slane %v1725_v48, 1  ;;  %v1730_v24 = vshll.u32 %v5441_v14, 16  ;;  %v2374_v13 = vld [vmem:[#allocation2 + $0x90] sm:$0xe] }
 0x19e   : > { %1939 = vrot.lane.b32.xlu0 %v1901_v26, %s5805_s27  ;;  %v6600_v26 = vld [vmem:[#allocation2 + $0xac] sm:$0xf]  ;;  %v6614_v45 = vld [vmem:[#allocation2 + $0xa4] ss:$0 sps:$4 sm:$0x11]   ;;  %v2590_v50 = vsel %vm1601_vm4, %v2585_v3, %v2589_v54  ;;  %v1905_v16 = vrot.slane %v4842_v10, 1  ;;  %v6618_v34 = vcombine.low %v1433_v58, %v1434_v19  ;;  %v4845_v41 = vcombine.low %v1470_v39, %v1436_v28 }
 0x19f   : > { %1941 = vrot.lane.b32.xlu1 %v1904_v52, %s5805_s27  ;;  %v1924_v52 = vpop.permute.xlu1 %1923  ;;  %v6610_v8 = vcombine.low %v1437_v18, %v6600_v26  ;;  %v1744_v33 = vrot.slane %v1742_v23, 1  ;;  %v2626_v14 = vsel %vm1601_vm4, %v2621_v60, %v2625_v37  ;;  %v6627_v18 = vcombine.low %v1435_v31, %v1436_v28  ;;  %v5447_v10 = vld [vmem:[#allocation2 + $0x98] ss:$0 sps:$4 sm:$0x11]   ;;  %v1439_v60 = vld [vmem:[#allocation2 + $0xb4] sm:$0xf] }
 0x1a0   : > { %v1989_v46 = vsel %vm1987_vm12, %v1956_v59, %v1924_v52  ;;  %7719 = vst [vmem:[#allocation11_spill] sm:$0xff] %v6618_v34  ;;  %v1732_v3 = vrot.slane %v1730_v24, 1  ;;  %v4844_v58 = vcombine.low %v1469_v5, %v1434_v19  ;;  %v1907_v39 = vsel %vm1874_vm5, %v1905_v16, %v1906_v9  ;;  %v1440_v28 = vld [vmem:[#allocation2 + $0xb8] sm:$0xf] }
 0x1a1   : > { %7718 = vst [vmem:[#allocation10_spill] sm:$0xff] %v6610_v8  ;;  %5231 = vmatprep.mubr.msk.bf16.mxu1 %vm2053_vm13, %v1989_v46  ;;  %7720 = vst [vmem:[#allocation12_spill] sm:$0xff] %v6627_v18  ;;  %v1773_v54 = vshll.u32 %v6610_v8, 16  ;;  %v1749_v59 = vshll.u32 %v6618_v34, 16  ;;  %v1914_v37 = vrot.slane %v4845_v41, 1  ;;  %v1915_v23 = vrot.slane %v6614_v45, 1 }
 0x1a2   : > { %2839 = vrot.lane.b32.xlu0 %v2799_v4, %s5805_s27  ;;  %v1739_v4 = vrot.slane %v1737_v47, 1  ;;  %v2331_v47 = vld [vmem:[#allocation2 + $0x6c] sm:$0xf]  ;;  %v1761_v9 = vshll.u32 %v6627_v18, 16  ;;  %v1747_v46 = vshrl.u32 %v6618_v34, 16  ;;  %v1754_v16 = vshll.u32 %v5447_v10, 16 }
 0x1a3   : > { %1812 = vrot.lane.b32.xlu1 %v1721_v15, %s5804_s26  ;;  %v6620_v15 = vld [vmem:[#allocation2 + $0xb0] ss:$0 sps:$4 sm:$0x11]   ;;  %v1775_v19 = vrot.slane %v1773_v54, 1  ;;  %v1916_v41 = vsel %vm1874_vm5, %v1914_v37, %v1915_v23  ;;  %v1759_v54 = vshrl.u32 %v6627_v18, 16 }
 0x1a4   : > { %v1740_v48 = vor.u32 %v1739_v4, %v1735_v63  ;;  %v1778_v31 = vshll.u32 %v6620_v15, 16  ;;  %v1771_v4 = vshrl.u32 %v6610_v8, 16  ;;  %v6644_v24 = vld [vmem:[#allocation2 + $0x74] ss:$0 sps:$4 sm:$0x11]   ;;  %v1756_v23 = vrot.slane %v1754_v16, 1 }
 0x1a5   : > { %v4912_v8 = vld [vmem:[%s7687_s3 + $0x4] sm:$0x7]  ;;  %v6745_v18 = vld [vmem:[#allocation2 + $0x7c] sm:$0xf] }
 0x1a6   : > { %1810 = vrot.lane.b32.xlu0 %v1709_v57, %s5804_s26  ;;  %v6623_v57 = vld [vmem:[#allocation2 + $0x70] sm:$0xf]  ;;  %v1745_v63 = vsel %vm1601_vm4, %v1740_v48, %v1744_v33  ;;  %v1776_v48 = vor.u32 %v1775_v19, %v1771_v4  ;;  %v5454_v4 = vld [vmem:[#allocation2 + $0xbc] ss:$0 sps:$4 sm:$0x11]   ;;  %v6661_v19 = vpop.permute.xlu1 %1925  ;;  %5333 = vmatprep.subr.msk.bf16.mxu0 %vm2086_vm14, %v4912_v8 }
 0x1a7   : > { %1945 = vrot.lane.b32.xlu1 %v1910_v53, %s5805_s27  ;;  %v1728_v53 = vor.u32 %v1727_v40, %v1723_v21  ;;  %v6634_v52 = vcombine.low %v2331_v47, %v6623_v57  ;;  %v1911_v21 = vrot.slane %v4844_v58, 1  ;;  %v1912_v40 = vrot.slane %v5447_v10, 1 }
 0x1a8   : > { %v1780_v47 = vrot.slane %v1778_v31, 1  ;;  %v2611_v10 = vshll.u32 %v6644_v24, 16 }
 0x1a9   : > { %7721 = vst [vmem:[#allocation13_spill] sm:$0xff] %v6634_v52  ;;  %v1733_v5 = vsel %vm1601_vm4, %v1728_v53, %v1732_v3  ;;  %v2606_v33 = vshll.u32 %v6634_v52, 16  ;;  %v1763_v53 = vrot.slane %v1761_v9, 1  ;;  %v1766_v3 = vshll.u32 %v6614_v45, 16  ;;  %v3230_v9 = vld [vmem:[#allocation2 + $0x60] sm:$0xf] }
 0x1aa   : > { %2711 = vrot.lane.b32.xlu0 %v2590_v50, %s5804_s26  ;;  %v1751_v50 = vrot.slane %v1749_v59, 1  ;;  %v1913_v58 = vsel %vm1874_vm5, %v1911_v21, %v1912_v40  ;;  %v1472_v59 = vld [vmem:[#allocation2 + $0xb4] sm:$0xe]  ;;  %v2604_v31 = vshrl.u32 %v6634_v52, 16  ;;  %v1781_v21 = vsel %vm1601_vm4, %v1776_v48, %v1780_v47  ;;  %v2337_v52 = vld [vmem:[#allocation2 + $0x90] sm:$0xf] }
 0x1ab   : > { %2717 = vrot.lane.b32.xlu1 %v2626_v14, %s5804_s26  ;;  %v6650_v14 = vcombine.low %v1439_v60, %v1440_v28  ;;  %v2608_v60 = vrot.slane %v2606_v33, 1  ;;  %v1764_v40 = vor.u32 %v1763_v53, %v1759_v54  ;;  %v4847_v7 = vcombine.low %v1472_v59, %v1440_v28  ;;  %v1471_v54 = vld [vmem:[#allocation2 + $0xa8] sm:$0xe] }
 0x1ac   : > { %v1752_v37 = vor.u32 %v1751_v50, %v1747_v46  ;;  %v3232_v46 = vld [vmem:[#allocation2 + $0x6c] sm:$0xf]  ;;  %v6667_v50 = vld [vmem:[#allocation2 + $0x70] sm:$0xf]  ;;  %v2613_v16 = vrot.slane %v2611_v10, 1  ;;  %v1921_v28 = vrot.slane %v5454_v4, 1 }
 0x1ad   : > { %7722 = vst [vmem:[#allocation14_spill] sm:$0xff] %v6650_v14  ;;  %v1785_v45 = vshll.u32 %v6650_v14, 16  ;;  %v2609_v48 = vor.u32 %v2608_v60, %v2604_v31  ;;  %v1790_v59 = vshll.u32 %v5454_v4, 16  ;;  %v2372_v31 = vld [vmem:[#allocation2 + $0x78] sm:$0xe]  ;;  %v6692_v60 = vcombine.low %v3232_v46, %v6667_v50 }
 0x1ae   : > { %1943 = vrot.lane.b32.xlu0 %v1907_v39, %s5805_s27  ;;  %v6657_v39 = vpop.permute.xlu0 %1927  ;;  %v1757_v47 = vsel %vm1601_vm4, %v1752_v37, %v1756_v23  ;;  %v1920_v23 = vrot.slane %v4847_v7, 1  ;;  %v6702_v7 = vld [vmem:[#allocation2 + $0x68] ss:$0 sps:$4 sm:$0x11]  }
 0x1af   : > { %1816 = vrot.lane.b32.xlu1 %v1745_v63, %s5804_s26  ;;  %v2371_v63 = vld [vmem:[#allocation2 + $0x6c] sm:$0xe]  ;;  %v1787_v10 = vrot.slane %v1785_v45, 1  ;;  %7724 = vst [vmem:[#allocation16_spill] sm:$0xff] %v6692_v60  ;;  %v2804_v45 = vrot.slane %v6644_v24, 1  ;;  %v1792_v24 = vrot.slane %v1790_v59, 1 }
 0x1b0   : > { %v4904_v33 = vcombine.low %v2371_v63, %v6623_v57  ;;  %v1783_v57 = vshrl.u32 %v6650_v14, 16  ;;  %v6688_v63 = vld [vmem:[%s7687_s3 + $0x8] sm:$0x7] }
 0x1b2   : > { %1814 = vrot.lane.b32.xlu0 %v1733_v5, %s5804_s26  ;;  %v6664_v5 = vld [vmem:[#allocation2 + $0x64] sm:$0xf]  ;;  %v2803_v4 = vrot.slane %v4904_v33, 1  ;;  %v1788_v33 = vor.u32 %v1787_v10, %v1783_v57  ;;  %v2990_v57 = vsel %vm2086_vm14, %v4912_v8, 0  ;;  %v2807_v10 = vrot.slane %v6580_v49, 1 }
 0x1b3   : > { %1949 = vrot.lane.b32.xlu1 %v1916_v41, %s5805_s27  ;;  %v1768_v41 = vrot.slane %v1766_v3, 1  ;;  %v6679_v53 = vcombine.low %v3230_v9, %v6664_v5  ;;  %v6682_v3 = vpop.permute.xlu0 %2829  ;;  %5264 = vmatpush3.bf16.msra.mxu0 %v2990_v57  ;;  %v3495_v49 = vshrl.u32 %v6692_v60, 16 }
 0x1b5   : > { %7723 = vst [vmem:[#allocation15_spill] sm:$0xff] %v6679_v53  ;;  %v1769_v37 = vsel %vm1601_vm4, %v1764_v40, %v1768_v41  ;;  %v4846_v40 = vcombine.low %v1471_v54, %v6600_v26  ;;  %v2614_v41 = vsel %vm1601_vm4, %v2609_v48, %v2613_v16  ;;  %v3485_v46 = vshll.u32 %v6679_v53, 16  ;;  %v6712_v26 = vld [vmem:[#allocation2 + $0x88] sm:$0xf] }
 0x1b6   : > { %1947 = vrot.lane.b32.xlu0 %v1913_v58, %s5805_s27  ;;  %v2052_v58 = vld [vmem:[%s7687_s3] sm:$0x7]  ;;  %v1922_v54 = vsel %vm1874_vm5, %v1920_v23, %v1921_v28  ;;  %v3497_v16 = vshll.u32 %v6692_v60, 16  ;;  %v2805_v48 = vsel %vm1874_vm5, %v2803_v4, %v2804_v45  ;;  %v1793_v23 = vsel %vm1601_vm4, %v1788_v33, %v1792_v24  ;;  %v6740_v33 = vld [vmem:[#allocation2 + $0x8c] ss:$0 sps:$4 sm:$0x11]  }
 0x1b7   : > { %1822 = vrot.lane.b32.xlu1 %v1781_v21, %s5804_s26  ;;  %5332 = vmatprep.subr.msk.bf16.mxu1 %vm2086_vm14, %v2052_v58  ;;  %v2088_v9 = vsel %vm2086_vm14, %v2052_v58, 0  ;;  %v6699_v21 = vpop.permute.xlu1 %2701  ;;  %v4905_v58 = vcombine.low %v2372_v31, %v6555_v25  ;;  %v6718_v14 = vpop.permute.xlu0 %3730  ;;  %v1918_v25 = vrot.slane %v6620_v15, 1  ;;  %v3487_v59 = vrot.slane %v3485_v46, 1  ;;  %v3273_v46 = vld [vmem:[#allocation2 + $0x6c] sm:$0xe] }
 0x1b8   : > { %5230 = vmatpush3.bf16.msra.mxu1 %v2088_v9  ;;  %v1917_v9 = vrot.slane %v4846_v40, 1  ;;  %v3490_v45 = vshll.u32 %v6702_v7, 16  ;;  %v3483_v15 = vshrl.u32 %v6679_v53, 16  ;;  %v3499_v40 = vrot.slane %v3497_v16, 1  ;;  %v3234_v53 = vld [vmem:[#allocation2 + $0x78] sm:$0xf] }
 0x1b9   : > { %5334 = vmatprep.subr.msk.bf16.mxu1 %vm2086_vm14, %v6688_v63  ;;  %v2806_v31 = vrot.slane %v4905_v58, 1  ;;  %v6751_v60 = vld [vmem:[#allocation2 + $0x98] ss:$0 sps:$4 sm:$0x11]  }
 0x1ba   : > { %1818 = vrot.lane.b32.xlu0 %v1757_v47, %s5804_s26  ;;  %v6706_v47 = vld [vmem:[#allocation2 + $0x74] ss:$0 sps:$4 sm:$0x11]   ;;  %v1919_v24 = vsel %vm1874_vm5, %v1917_v9, %v1918_v25  ;;  %v3488_v58 = vor.u32 %v3487_v59, %v3483_v15  ;;  %v3492_v16 = vrot.slane %v3490_v45, 1  ;;  %v3500_v9 = vor.u32 %v3499_v40, %v3495_v49  ;;  %v3236_v59 = vld [vmem:[#allocation2 + $0x84] sm:$0xf] }
 0x1bb   : > { %1820 = vrot.lane.b32.xlu1 %v1769_v37, %s5804_s26  ;;  %v2335_v37 = vld [vmem:[#allocation2 + $0x84] sm:$0xf]  ;;  %v6730_v4 = vpop.permute.xlu1 %2833  ;;  %v3502_v8 = vshll.u32 %v6706_v47, 16  ;;  %v2808_v34 = vsel %vm1874_vm5, %v2806_v31, %v2807_v10  ;;  %v6755_v15 = vld [vmem:[#allocation2 + $0x88] sm:$0xf]  ;;  %v3701_v45 = vrot.slane %v6702_v7, 1 }
 0x1bc   : > { %v6726_v28 = vcombine.low %v2335_v37, %v6712_v26  ;;  %v3493_v10 = vsel %vm1601_vm4, %v3488_v58, %v3492_v16  ;;  %v6770_v7 = vcombine.low %v3236_v59, %v6755_v15  ;;  %v2647_v58 = vshll.u32 %v6751_v60, 16 }
 0x1bd   : > { %v3504_v25 = vrot.slane %v3502_v8, 1 }
 0x1be   : > { %2715 = vrot.lane.b32.xlu0 %v2614_v41, %s5804_s26  ;;  %v6720_v41 = vld [vmem:[#allocation2 + $0x94] sm:$0xf]  ;;  %7725 = vst [vmem:[#allocation17_spill] sm:$0xff] %v6726_v28  ;;  %v2630_v57 = vshll.u32 %v6726_v28, 16  ;;  %v2628_v8 = vshrl.u32 %v6726_v28, 16  ;;  %7727 = vst [vmem:[#allocation19_spill] sm:$0xff] %v6770_v7 }
 0x1bf   : > { %1953 = vrot.lane.b32.xlu1 %v1922_v54, %s5805_s27  ;;  %v6737_v37 = vcombine.low %v2337_v52, %v6720_v41  ;;  %v3272_v54 = vld [vmem:[#allocation2 + $0x60] sm:$0xe]  ;;  %v6748_v52 = vpop.permute.xlu0 %2827  ;;  %v3505_v27 = vsel %vm1601_vm4, %v3500_v9, %v3504_v25  ;;  %v4907_v25 = vcombine.low %v2374_v13, %v6720_v41  ;;  %v2649_v32 = vrot.slane %v2647_v58, 1  ;;  %v3274_v58 = vld [vmem:[#allocation2 + $0x78] sm:$0xe] }
 0x1c0   : > { %v2632_v49 = vrot.slane %v2630_v57, 1  ;;  %v6788_v28 = vld [vmem:[#allocation2 + $0xa0] sm:$0xf]  ;;  %v2862_v13 = vsel %vm346_vm1, %v6203_v43, %v6699_v21  ;;  %v2810_v41 = vrot.slane %v6740_v33, 1  ;;  %v2813_v21 = vrot.slane %v6751_v60, 1 }
 0x1c1   : > { %7726 = vst [vmem:[#allocation18_spill] sm:$0xff] %v6737_v37  ;;  %v4969_v60 = vcombine.low %v3274_v58, %v6745_v18 }
 0x1c2   : > { %2843 = vrot.lane.b32.xlu0 %v2805_v48, %s5805_s27  ;;  %v4967_v48 = vcombine.low %v3272_v54, %v6664_v5  ;;  %v2642_v5 = vshll.u32 %v6737_v37, 16 }
 0x1c3   : > { %1824 = vrot.lane.b32.xlu1 %v1793_v23, %s5804_s26  ;;  %v4968_v23 = vcombine.low %v3273_v46, %v6667_v50  ;;  %v6763_v50 = vcombine.low %v3234_v53, %v6745_v18  ;;  %v2373_v46 = vld [vmem:[#allocation2 + $0x84] sm:$0xe]  ;;  %v2640_v53 = vshrl.u32 %v6737_v37, 16  ;;  %v3521_v37 = vshll.u32 %v6770_v7, 16 }
 0x1c4   : > { %v3700_v31 = vrot.slane %v4967_v48, 1  ;;  %v2644_v0 = vrot.slane %v2642_v5, 1  ;;  %v6775_v48 = vld [vmem:[#allocation2 + $0x80] ss:$0 sps:$4 sm:$0x11]   ;;  %v4906_v9 = vcombine.low %v2373_v46, %v6712_v26 }
 0x1c5   : > { %v3703_v40 = vrot.slane %v4968_v23, 1  ;;  %v3509_v23 = vshll.u32 %v6763_v50, 16  ;;  %v6784_v5 = vld [vmem:[#allocation2 + $0x8c] ss:$0 sps:$4 sm:$0x11]  }
 0x1c6   : > { %1951 = vrot.lane.b32.xlu0 %v1919_v24, %s5805_s27  ;;  %v2635_v24 = vshll.u32 %v6740_v33, 16  ;;  %v3702_v59 = vsel %vm1874_vm5, %v3700_v31, %v3701_v45  ;;  %v2645_v29 = vor.u32 %v2644_v0, %v2640_v53  ;;  %v3514_v45 = vshll.u32 %v6775_v48, 16  ;;  %v2341_v31 = vld [vmem:[#allocation2 + $0xa8] sm:$0xf]  ;;  %v6800_v46 = vld [vmem:[#allocation2 + $0xac] sm:$0xf] }
 0x1c7   : > { %2845 = vrot.lane.b32.xlu1 %v2808_v34, %s5805_s27  ;;  %v3704_v34 = vrot.slane %v6706_v47, 1  ;;  %v2812_v53 = vrot.slane %v4907_v25, 1  ;;  %v3519_v33 = vshrl.u32 %v6770_v7, 16 }
 0x1c8   : > { %v6758_v54 = vpop.permute.xlu1 %1929  ;;  %v2637_v47 = vrot.slane %v2635_v24, 1 }
 0x1c9   : > { %v3705_v24 = vsel %vm1874_vm5, %v3703_v40, %v3704_v34  ;;  %v2809_v34 = vrot.slane %v4906_v9, 1  ;;  %v6814_v9 = vcombine.low %v2341_v31, %v6800_v46  ;;  %v2814_v18 = vsel %vm1874_vm5, %v2812_v53, %v2813_v21  ;;  %v3240_v53 = vld [vmem:[#allocation2 + $0x9c] sm:$0xf] }
 0x1ca   : > { %3614 = vrot.lane.b32.xlu0 %v3493_v10, %s5804_s26  ;;  %v2633_v10 = vor.u32 %v2632_v49, %v2628_v8  ;;  %v3507_v8 = vshrl.u32 %v6763_v50, 16  ;;  %v3511_v49 = vrot.slane %v3509_v23, 1  ;;  %v3523_v23 = vrot.slane %v3521_v37, 1  ;;  %v6821_v37 = vld [vmem:[#allocation2 + $0xa4] ss:$0 sps:$4 sm:$0x11]  }
 0x1cb   : > { %3616 = vrot.lane.b32.xlu1 %v3505_v27, %s5804_s26  ;;  %v2339_v27 = vld [vmem:[#allocation2 + $0x9c] sm:$0xf]  ;;  %v2666_v58 = vshll.u32 %v6814_v9, 16  ;;  %v3706_v21 = vrot.slane %v4969_v60, 1 }
 0x1cc   : > { %v2638_v0 = vsel %vm1601_vm4, %v2633_v10, %v2637_v47  ;;  %v6806_v43 = vcombine.low %v2339_v27, %v6788_v28  ;;  %v2650_v47 = vsel %vm1601_vm4, %v2645_v29, %v2649_v32  ;;  %v3516_v10 = vrot.slane %v3514_v45, 1 }
 0x1cd   : > { %v1799_v57 = vpop.permute.xlu0 %1798  ;;  %v6778_v16 = vpop.permute.xlu1 %3732  ;;  %v2894_v29 = vsel %vm1987_vm12, %v2862_v13, %v6682_v3  ;;  %v2811_v32 = vsel %vm1874_vm5, %v2809_v34, %v2810_v41  ;;  %v3238_v3 = vld [vmem:[#allocation2 + $0x90] sm:$0xf]  ;;  %v6835_v13 = vld [vmem:[#allocation2 + $0x94] sm:$0xf]  ;;  %v3707_v41 = vrot.slane %v6775_v48, 1  ;;  %v3710_v34 = vrot.slane %v6784_v5, 1 }
 0x1ce   : > { %3742 = vrot.lane.b32.xlu0 %v3702_v59, %s5805_s27  ;;  %v3275_v59 = vld [vmem:[#allocation2 + $0x84] sm:$0xe]  ;;  %v1960_v25 = vsel %vm346_vm1, %v6179_v12, %v1799_v57  ;;  %v2654_v12 = vshll.u32 %v6806_v43, 16  ;;  %v6829_v57 = vld [vmem:[#allocation2 + $0xb0] ss:$0 sps:$4 sm:$0x11]  }
 0x1cf   : > { %3744 = vrot.lane.b32.xlu1 %v3705_v24, %s5805_s27  ;;  %v3526_v24 = vshll.u32 %v6784_v5, 16  ;;  %v4970_v7 = vcombine.low %v3275_v59, %v6755_v15  ;;  %v2652_v48 = vshrl.u32 %v6806_v43, 16  ;;  %v2671_v60 = vshll.u32 %v6829_v57, 16 }
 0x1d0   : > { %v2656_v5 = vrot.slane %v2654_v12, 1  ;;  %v2376_v12 = vld [vmem:[#allocation2 + $0xa8] sm:$0xe] }
 0x1d1   : > { %v6796_v26 = vpop.permute.xlu0 %3602 }
 0x1d2   : > { %v6803_v40 = vpop.permute.xlu1 %2705  ;;  %2719 = vrot.lane.b32.xlu0 %v2638_v0, %s5804_s26  ;;  %v3512_v0 = vor.u32 %v3511_v49, %v3507_v8  ;;  %v3524_v8 = vor.u32 %v3523_v23, %v3519_v33  ;;  %v3528_v49 = vrot.slane %v3526_v24, 1  ;;  %v3709_v33 = vrot.slane %v4970_v7, 1  ;;  %v6847_v24 = vld [vmem:[#allocation2 + $0xa0] sm:$0xf] }
 0x1d3   : > { %2721 = vrot.lane.b32.xlu1 %v2650_v47, %s5804_s26  ;;  %v2659_v23 = vshll.u32 %v6821_v37, 16  ;;  %v2375_v47 = vld [vmem:[#allocation2 + $0x9c] sm:$0xe] }
 0x1d5   : > { %v1797_v27 = vpop.permute.xlu0 %1796 }
 0x1d6   : > { %v1958_v45 = vsel %vm346_vm1, %v6194_v11, %v1797_v27  ;;  %v1801_v31 = vpop.permute.xlu1 %1800  ;;  %2847 = vrot.lane.b32.xlu0 %v2811_v32, %s5805_s27  ;;  %v1993_v11 = vsel %vm1987_vm12, %v1960_v25, %v6657_v39  ;;  %v6853_v25 = vcombine.low %v3238_v3, %v6835_v13 }
 0x1d7   : > { %v1991_v15 = vsel %vm1987_vm12, %v1958_v45, %v6661_v19  ;;  %2849 = vrot.lane.b32.xlu1 %v2814_v18, %s5805_s27  ;;  %v3517_v19 = vsel %vm1601_vm4, %v3512_v0, %v3516_v10  ;;  %v3529_v10 = vsel %vm1601_vm4, %v3524_v8, %v3528_v49  ;;  %v2664_v0 = vshrl.u32 %v6814_v9, 16  ;;  %v6877_v8 = vld [vmem:[#allocation2 + $0x98] ss:$0 sps:$4 sm:$0x11]  }
 0x1d8   : > { %5232 = vmatmul.mubr.msk.bf16.vlgmr.msra.gmra.mxu1 %vm2053_vm13, %v1991_v15  ;;  %v2668_v45 = vrot.slane %v2666_v58, 1  ;;  %v6867_v18 = vcombine.low %v3240_v53, %v6847_v24  ;;  %v2661_v15 = vrot.slane %v2659_v23, 1  ;;  %v3533_v49 = vshll.u32 %v6853_v25, 16 }
 0x1d9   : > { %5235 = vmatprep.mubr.msk.bf16.mxu1 %vm2053_vm13, %v1993_v11  ;;  %v2700_v59 = vpop.permute.xlu0 %2699  ;;  %v6884_v11 = vld [vmem:[#allocation2 + $0xa4] ss:$0 sps:$4 sm:$0x11]   ;;  %v2673_v53 = vrot.slane %v2671_v60, 1  ;;  %v2819_v23 = vrot.slane %v6829_v57, 1 }
 0x1da   : > { %v2860_v39 = vsel %vm346_vm1, %v6264_v6, %v2700_v59  ;;  %3618 = vrot.lane.b32.xlu0 %v3517_v19, %s5804_s26  ;;  %v3605_v27 = vpop.permute.xlu1 %3604  ;;  %v1962_v6 = vsel %vm346_vm1, %v6278_v30, %v1801_v31  ;;  %v4908_v30 = vcombine.low %v2375_v47, %v6788_v28  ;;  %v3708_v31 = vsel %vm1874_vm5, %v3706_v21, %v3707_v41  ;;  %v2345_v59 = vld [vmem:[#allocation2 + $0xc0] sm:$0xf]  ;;  %v6891_v21 = vld [vmem:[#allocation2 + $0xc4] sm:$0xf] }
 0x1db   : > { %v2892_v7 = vsel %vm1987_vm12, %v2860_v39, %v6748_v52  ;;  %v3765_v32 = vsel %vm346_vm1, %v6348_v62, %v3605_v27  ;;  %3620 = vrot.lane.b32.xlu1 %v3529_v10, %s5804_s26  ;;  %v2657_v62 = vor.u32 %v2656_v5, %v2652_v48  ;;  %v1995_v3 = vsel %vm1987_vm12, %v1962_v6, %v6758_v54  ;;  %v3242_v27 = vld [vmem:[#allocation2 + $0xa8] sm:$0xf] }
 0x1dc   : > { %5265 = vmatprep.mubr.msk.bf16.mxu0 %vm2053_vm13, %v2892_v7  ;;  %v6872_v52 = vsel %vm1987_vm12, %v3765_v32, %v6778_v16  ;;  %v4909_v16 = vcombine.low %v2376_v12, %v6800_v46  ;;  %v3711_v28 = vsel %vm1874_vm5, %v3709_v33, %v3710_v34  ;;  %v2669_v41 = vor.u32 %v2668_v45, %v2664_v0  ;;  %v6909_v7 = vld [vmem:[#allocation2 + $0xac] sm:$0xf]  ;;  %v3277_v32 = vld [vmem:[#allocation2 + $0x9c] sm:$0xe]  ;;  %v2343_v45 = vld [vmem:[#allocation2 + $0xb4] sm:$0xf] }
 0x1dd   : > { %5266 = vmatmul.mubr.msk.bf16.vlgmr.msra.gmra.mxu0 %vm2053_vm13, %v2894_v29  ;;  %v3276_v29 = vld [vmem:[#allocation2 + $0x90] sm:$0xe]  ;;  %v6887_v58 = vpop.permute.xlu0 %1931  ;;  %v3545_v19 = vshll.u32 %v6867_v18, 16  ;;  %v2815_v54 = vrot.slane %v4908_v30, 1  ;;  %v2816_v46 = vrot.slane %v6821_v37, 1  ;;  %v3531_v34 = vshrl.u32 %v6853_v25, 16 }
 0x1de   : > { %3746 = vrot.lane.b32.xlu0 %v3708_v31, %s5805_s27  ;;  %v3763_v33 = vsel %vm346_vm1, %v6237_v38, %v6796_v26  ;;  %v2662_v39 = vsel %vm1601_vm4, %v2657_v62, %v2661_v15  ;;  %v3535_v48 = vrot.slane %v3533_v49, 1  ;;  %v3538_v5 = vshll.u32 %v6877_v8, 16  ;;  %v2344_v12 = vld [vmem:[#allocation2 + $0xb8] sm:$0xf]  ;;  %v2377_v15 = vld [vmem:[#allocation2 + $0xb4] sm:$0xe] }
 0x1df   : > { %3748 = vrot.lane.b32.xlu1 %v3711_v28, %s5805_s27  ;;  %v2818_v10 = vrot.slane %v4909_v16, 1  ;;  %v4971_v37 = vcombine.low %v3276_v29, %v6835_v13  ;;  %v6907_v57 = vcombine.low %v2345_v59, %v6891_v21  ;;  %v3893_v38 = vsel %vm2086_vm14, %v6688_v63, 0 }
 0x1e0   : > { %5236 = vmatmul.mubr.msk.bf16.gmra.mxu1 %vm2053_vm13, %v1995_v3  ;;  %v2674_v26 = vsel %vm1601_vm4, %v2669_v41, %v2673_v53  ;;  %v3543_v0 = vshrl.u32 %v6867_v18, 16  ;;  %v3547_v60 = vrot.slane %v3545_v19, 1  ;;  %v3550_v6 = vshll.u32 %v6884_v11, 16  ;;  %v6932_v41 = vld [vmem:[#allocation2 + $0xbc] ss:$0 sps:$4 sm:$0x11]  }
 0x1e1   : > { %v6902_v47 = vpop.permute.xlu1 %2837  ;;  %5298 = vmatpush3.bf16.msra.mxu1 %v3893_v38  ;;  %v6921_v30 = vsel %vm1987_vm12, %v3763_v33, %v6718_v14  ;;  %v2817_v63 = vsel %vm1874_vm5, %v2815_v54, %v2816_v46  ;;  %v3536_v31 = vor.u32 %v3535_v48, %v3531_v34  ;;  %v3540_v62 = vrot.slane %v3538_v5, 1  ;;  %v6934_v14 = vld [vmem:[#allocation2 + $0xc8] ss:$0 sps:$4 sm:$0x11]  }
 0x1e2   : > { %2723 = vrot.lane.b32.xlu0 %v2662_v39, %s5804_s26  ;;  %v6925_v49 = vcombine.low %v3242_v27, %v6909_v7  ;;  %v2820_v16 = vsel %vm1874_vm5, %v2818_v10, %v2819_v23  ;;  %v3712_v29 = vrot.slane %v4971_v37, 1  ;;  %v3713_v28 = vrot.slane %v6877_v8, 1  ;;  %v6940_v34 = vld [vmem:[#allocation2 + $0xb0] ss:$0 sps:$4 sm:$0x11]  }
 0x1e3   : > { %2725 = vrot.lane.b32.xlu1 %v2674_v26, %s5804_s26  ;;  %v2690_v53 = vshll.u32 %v6907_v57, 16  ;;  %v3548_v19 = vor.u32 %v3547_v60, %v3543_v0  ;;  %v3552_v59 = vrot.slane %v3550_v6, 1  ;;  %v4972_v54 = vcombine.low %v3277_v32, %v6847_v24  ;;  %v3244_v8 = vld [vmem:[#allocation2 + $0xb4] sm:$0xf]  ;;  %v6945_v39 = vld [vmem:[#allocation2 + $0xb8] sm:$0xf] }
 0x1e4   : > { %v6917_v13 = vpop.permute.xlu0 %3734  ;;  %v6938_v46 = vcombine.low %v2343_v45, %v2344_v12  ;;  %v4910_v33 = vcombine.low %v2377_v15, %v2344_v12  ;;  %v3541_v48 = vsel %vm1601_vm4, %v3536_v31, %v3540_v62  ;;  %v3716_v5 = vrot.slane %v6884_v11, 1  ;;  %v2378_v37 = vld [vmem:[#allocation2 + $0xc0] sm:$0xe]  ;;  %v6965_v15 = vld [vmem:[#allocation2 + $0xbc] ss:$0 sps:$4 sm:$0x11]  }
 0x1e5   : > { %v6927_v3 = vpop.permute.xlu1 %1933  ;;  %v3557_v10 = vshll.u32 %v6925_v49, 16  ;;  %v3714_v27 = vsel %vm1874_vm5, %v3712_v29, %v3713_v28  ;;  %v2688_v38 = vshrl.u32 %v6907_v57, 16  ;;  %v2692_v26 = vrot.slane %v2690_v53, 1 }
 0x1e6   : > { %2851 = vrot.lane.b32.xlu0 %v2817_v63, %s5805_s27  ;;  %v2695_v0 = vshll.u32 %v6934_v14, 16  ;;  %v3553_v60 = vsel %vm1601_vm4, %v3548_v19, %v3552_v59  ;;  %v3715_v6 = vrot.slane %v4972_v54, 1  ;;  %v2678_v32 = vshll.u32 %v6938_v46, 16  ;;  %v3246_v19 = vld [vmem:[#allocation2 + $0xc0] sm:$0xf] }
 0x1e7   : > { %2853 = vrot.lane.b32.xlu1 %v2820_v16, %s5805_s27  ;;  %v6959_v11 = vcombine.low %v3244_v8, %v6945_v39  ;;  %v2821_v12 = vrot.slane %v4910_v33, 1  ;;  %v2822_v63 = vrot.slane %v6932_v41, 1  ;;  %v3562_v31 = vshll.u32 %v6940_v34, 16  ;;  %v6973_v59 = vld [vmem:[#allocation2 + $0xc4] sm:$0xf] }
 0x1e8   : > { %v6943_v23 = vpop.permute.xlu0 %2831  ;;  %v4911_v62 = vcombine.low %v2378_v37, %v6891_v21  ;;  %v2866_v16 = vsel %vm346_vm1, %v6248_v36, %v6803_v40  ;;  %v3555_v28 = vshrl.u32 %v6925_v49, 16  ;;  %v3559_v53 = vrot.slane %v3557_v10, 1  ;;  %v3248_v40 = vld [vmem:[#allocation2 + $0xcc] sm:$0xf] }
 0x1e9   : > { %v6950_v24 = vpop.permute.xlu1 %3736  ;;  %v2693_v33 = vor.u32 %v2692_v26, %v2688_v38  ;;  %v2697_v8 = vrot.slane %v2695_v0, 1  ;;  %v2683_v36 = vshll.u32 %v6932_v41, 16  ;;  %v2676_v10 = vshrl.u32 %v6938_v46, 16 }
 0x1ea   : > { %3622 = vrot.lane.b32.xlu0 %v3541_v48, %s5804_s26  ;;  %v6981_v48 = vld [vmem:[#allocation2 + $0xd0] sm:$0xf]  ;;  %v2680_v37 = vrot.slane %v2678_v32, 1  ;;  %v3564_v38 = vrot.slane %v3562_v31, 1  ;;  %v2824_v26 = vrot.slane %v4911_v62, 1  ;;  %v2825_v41 = vrot.slane %v6934_v14, 1 }
 0x1eb   : > { %3624 = vrot.lane.b32.xlu1 %v3553_v60, %s5804_s26  ;;  %v3569_v60 = vshll.u32 %v6959_v11, 16  ;;  %v3574_v31 = vshll.u32 %v6965_v15, 16 }
 0x1ec   : > { %v1803_v45 = vpop.permute.xlu0 %1802  ;;  %v2681_v62 = vor.u32 %v2680_v37, %v2676_v10  ;;  %v7021_v10 = vld [vmem:[#allocation2 + $0xd4] ss:$0 sps:$4 sm:$0x11]  }
 0x1ed   : > { %v1964_v29 = vsel %vm346_vm1, %v6422_v22, %v1803_v45  ;;  %v6975_v54 = vpop.permute.xlu1 %2709  ;;  %v3717_v22 = vsel %vm1874_vm5, %v3715_v6, %v3716_v5  ;;  %v3560_v45 = vor.u32 %v3559_v53, %v3555_v28  ;;  %v6993_v5 = vcombine.low %v3246_v19, %v6973_v59 }
 0x1ee   : > { %3750 = vrot.lane.b32.xlu0 %v3714_v27, %s5805_s27  ;;  %v1997_v21 = vsel %vm1987_vm12, %v1964_v29, %v6887_v58  ;;  %v2823_v58 = vsel %vm1874_vm5, %v2821_v12, %v2822_v63  ;;  %v3278_v29 = vld [vmem:[#allocation2 + $0xa8] sm:$0xe]  ;;  %v6996_v6 = vcombine.low %v3248_v40, %v6981_v48  ;;  %v2698_v12 = vsel %vm1601_vm4, %v2693_v33, %v2697_v8 }
 0x1ef   : > { %5239 = vmatprep.mubr.msk.bf16.mxu1 %vm2053_vm13, %v1997_v21  ;;  %3752 = vrot.lane.b32.xlu1 %v3717_v22, %s5805_s27  ;;  %v2685_v63 = vrot.slane %v2683_v36, 1  ;;  %v3567_v28 = vshrl.u32 %v6959_v11, 16  ;;  %v3571_v53 = vrot.slane %v3569_v60, 1  ;;  %v2898_v33 = vsel %vm1987_vm12, %v2866_v16, %v6730_v4  ;;  %v7014_v36 = vld [vmem:[#allocation2 + $0xc8] ss:$0 sps:$4 sm:$0x11]  }
 0x1f0   : > { %v3607_v27 = vpop.permute.xlu0 %3606  ;;  %v4973_v8 = vcombine.low %v3278_v29, %v6909_v7  ;;  %v3565_v40 = vsel %vm1601_vm4, %v3560_v45, %v3564_v38  ;;  %v3581_v22 = vshll.u32 %v6993_v5, 16  ;;  %v2826_v7 = vsel %vm1874_vm5, %v2824_v26, %v2825_v41 }
 0x1f1   : > { %v3767_v0 = vsel %vm346_vm1, %v6433_v2, %v3607_v27  ;;  %v1805_v32 = vpop.permute.xlu1 %1804  ;;  %v3576_v16 = vrot.slane %v3574_v31, 1  ;;  %v2686_v27 = vsel %vm1601_vm4, %v2681_v62, %v2685_v63  ;;  %v3579_v41 = vshrl.u32 %v6993_v5, 16  ;;  %v3281_v63 = vld [vmem:[#allocation2 + $0xcc] sm:$0xe] }
 0x1f2   : > { %2855 = vrot.lane.b32.xlu0 %v2823_v58, %s5805_s27  ;;  %v7003_v14 = vsel %vm1987_vm12, %v3767_v0, %v6917_v13  ;;  %v1966_v2 = vsel %vm346_vm1, %v6439_v35, %v1805_v32  ;;  %v3279_v13 = vld [vmem:[#allocation2 + $0xb4] sm:$0xe]  ;;  %v3572_v58 = vor.u32 %v3571_v53, %v3567_v28  ;;  %v3718_v26 = vrot.slane %v4973_v8, 1  ;;  %v3280_v32 = vld [vmem:[#allocation2 + $0xc0] sm:$0xe] }
 0x1f3   : > { %2729 = vrot.lane.b32.xlu1 %v2698_v12, %s5804_s26  ;;  %v1999_v21 = vsel %vm1987_vm12, %v1966_v2, %v6927_v3  ;;  %v3593_v3 = vshll.u32 %v6996_v6, 16  ;;  %v4974_v38 = vcombine.low %v3279_v13, %v6945_v39  ;;  %v3583_v0 = vrot.slane %v3581_v22, 1 }
 0x1f4   : > { %v2704_v19 = vpop.permute.xlu0 %2703  ;;  %5240 = vmatmul.mubr.msk.bf16.gmra.mxu1 %vm2053_vm13, %v1999_v21  ;;  %v3591_v45 = vshrl.u32 %v6996_v6, 16  ;;  %v3598_v39 = vshll.u32 %v7021_v10, 16  ;;  %v3577_v31 = vsel %vm1601_vm4, %v3572_v58, %v3576_v16  ;;  %v3722_v62 = vrot.slane %v6965_v15, 1 }
 0x1f5   : > { %v2864_v35 = vsel %vm346_vm1, %v6447_v61, %v2704_v19  ;;  %v3609_v37 = vpop.permute.xlu1 %3608  ;;  %v3719_v61 = vrot.slane %v6940_v34, 1  ;;  %v3586_v34 = vshll.u32 %v7014_v36, 16  ;;  %v3595_v29 = vrot.slane %v3593_v3, 1 }
 0x1f6   : > { %3626 = vrot.lane.b32.xlu0 %v3565_v40, %s5804_s26  ;;  %v2896_v4 = vsel %vm1987_vm12, %v2864_v35, %v6943_v23  ;;  %v3769_v60 = vsel %vm346_vm1, %v6449_v44, %v3609_v37  ;;  %v3721_v2 = vrot.slane %v4974_v38, 1  ;;  %v4975_v19 = vcombine.low %v3280_v32, %v6973_v59 }
 0x1f7   : > { %5269 = vmatprep.mubr.msk.bf16.mxu0 %vm2053_vm13, %v2896_v4  ;;  %2857 = vrot.lane.b32.xlu1 %v2826_v7, %s5805_s27  ;;  %v7042_v44 = vsel %vm1987_vm12, %v3769_v60, %v6950_v24  ;;  %v3720_v28 = vsel %vm1874_vm5, %v3718_v26, %v3719_v61  ;;  %v3588_v53 = vrot.slane %v3586_v34, 1  ;;  %v3584_v21 = vor.u32 %v3583_v0, %v3579_v41 }
 0x1f8   : > { %5270 = vmatmul.mubr.msk.bf16.gmra.mxu0 %vm2053_vm13, %v2898_v33  ;;  %v7036_v23 = vpop.permute.xlu0 %1935  ;;  %v3596_v33 = vor.u32 %v3595_v29, %v3591_v45  ;;  %v3600_v8 = vrot.slane %v3598_v39, 1  ;;  %v4976_v13 = vcombine.low %v3281_v63, %v6981_v48  ;;  %v5806_v35 = vmov 0.0  }
 0x1f9   : > { %v7046_v12 = vpop.permute.xlu1 %2841  ;;  %1379 = vst.msk [vmem:[#allocation3 + $0x10] sm:$0xff] %vm346_vm1, %v5806_v35  ;;  %1377 = vst.msk [vmem:[#allocation3] sm:$0xff] %vm346_vm1, %v5806_v35  ;;  %v3723_v59 = vsel %vm1874_vm5, %v3721_v2, %v3722_v62  ;;  %v3725_v40 = vrot.slane %v7014_v36, 1  ;;  %v3728_v22 = vrot.slane %v7021_v10, 1  ;;  %v3589_v3 = vsel %vm1601_vm4, %v3584_v21, %v3588_v53 }
 0x1fa   : > { %2727 = vrot.lane.b32.xlu0 %v2686_v27, %s5804_s26  ;;  %1378 = vst.msk [vmem:[#allocation3 + $0x8] sm:$0xff] %vm346_vm1, %v5806_v35  ;;  %1380 = vst.msk [vmem:[#allocation3 + $0x18] sm:$0xff] %vm346_vm1, %v5806_v35  ;;  %v3601_v37 = vsel %vm1601_vm4, %v3596_v33, %v3600_v8  ;;  %v3724_v4 = vrot.slane %v4975_v19, 1  ;;  %v3727_v7 = vrot.slane %v4976_v13, 1  ;;  %v7729_v19 = vld [vmem:[#allocation4_spill] sm:$0xff]  ;;  %v7730_v8 = vld [vmem:[#allocation6_spill] sm:$0xff] }
 0x1fb   : > { %3628 = vrot.lane.b32.xlu1 %v3577_v31, %s5804_s26  ;;  %1381 = vst.msk [vmem:[#allocation3 + $0x20] sm:$0xff] %vm346_vm1, %v5806_v35  ;;  %1382 = vst.msk [vmem:[#allocation3 + $0x28] sm:$0xff] %vm346_vm1, %v5806_v35 }
 0x1fc   : > { %v7052_v24 = vpop.permute.xlu0 %3738  ;;  %1383 = vst.msk [vmem:[#allocation3 + $0x30] sm:$0xff] %vm346_vm1, %v5806_v35  ;;  %1384 = vst.msk [vmem:[#allocation3 + $0x38] sm:$0xff] %vm346_vm1, %v5806_v35  ;;  %v3726_v27 = vsel %vm1874_vm5, %v3724_v4, %v3725_v40  ;;  %v3729_v36 = vsel %vm1874_vm5, %v3727_v7, %v3728_v22  ;;  %v7731_v40 = vld [vmem:[#allocation8_spill] sm:$0xff] }
 0x1fd   : > { %1385 = vst.msk [vmem:[#allocation3 + $0x40] sm:$0xff] %vm346_vm1, %v5806_v35  ;;  %1386 = vst.msk [vmem:[#allocation3 + $0x48] sm:$0xff] %vm346_vm1, %v5806_v35  ;;  %v1938_v15 = vpop.permute.xlu1 %1937 }
 0x1fe   : > { %1387 = vst.msk [vmem:[#allocation3 + $0x50] sm:$0xff] %vm346_vm1, %v5806_v35  ;;  %1388 = vst.msk [vmem:[#allocation3 + $0x58] sm:$0xff] %vm346_vm1, %v5806_v35  ;;  %3754 = vrot.lane.b32.xlu0 %v3720_v28, %s5805_s27 }
 0x1ff   : > { %1389 = vst.msk [vmem:[#allocation3 + $0x60] sm:$0xff] %vm346_vm1, %v5806_v35  ;;  %1390 = vst.msk [vmem:[#allocation3 + $0x68] sm:$0xff] %vm346_vm1, %v5806_v35  ;;  %3756 = vrot.lane.b32.xlu1 %v3723_v59, %s5805_s27 }
 0x200   : > { %1391 = vst.msk [vmem:[#allocation3 + $0x70] sm:$0xff] %vm346_vm1, %v5806_v35  ;;  %1392 = vst.msk [vmem:[#allocation3 + $0x78] sm:$0xff] %vm346_vm1, %v5806_v35  ;;  %v2836_v48 = vpop.permute.xlu0 %2835 }
 0x201   : > { %1393 = vst.msk [vmem:[#allocation3 + $0x80] sm:$0xff] %vm346_vm1, %v5806_v35  ;;  %1394 = vst.msk [vmem:[#allocation3 + $0x88] sm:$0xff] %vm346_vm1, %v5806_v35  ;;  %v3741_v16 = vpop.permute.xlu1 %3740 }
 0x202   : > { %1395 = vst.msk [vmem:[#allocation3 + $0x90] sm:$0xff] %vm346_vm1, %v5806_v35  ;;  %1396 = vst.msk [vmem:[#allocation3 + $0x98] sm:$0xff] %vm346_vm1, %v5806_v35  ;;  %3630 = vrot.lane.b32.xlu0 %v3589_v3, %s5804_s26 }
 0x203   : > { %1397 = vst.msk [vmem:[#allocation3 + $0xa0] sm:$0xff] %vm346_vm1, %v5806_v35  ;;  %1398 = vst.msk [vmem:[#allocation3 + $0xa8] sm:$0xff] %vm346_vm1, %v5806_v35  ;;  %3632 = vrot.lane.b32.xlu1 %v3601_v37, %s5804_s26  ;;  %v7732_v37 = vld [vmem:[#allocation9_spill] sm:$0xff] }
 0x204   : > { %1399 = vst.msk [vmem:[#allocation3 + $0xb0] sm:$0xff] %vm346_vm1, %v5806_v35  ;;  %1400 = vst.msk [vmem:[#allocation3 + $0xb8] sm:$0xff] %vm346_vm1, %v5806_v35  ;;  %v1807_v61 = vpop.permute.xlu0 %1806 }
 0x205   : > { %1401 = vst.msk [vmem:[#allocation3 + $0xc0] sm:$0xff] %vm346_vm1, %v5806_v35  ;;  %1402 = vst.msk [vmem:[#allocation3 + $0xc8] sm:$0xff] %vm346_vm1, %v5806_v35  ;;  %v1968_v60 = vsel %vm346_vm1, %v6485_v1, %v1807_v61  ;;  %v2714_v10 = vpop.permute.xlu1 %2713 }
 0x206   : > { %1403 = vst.msk [vmem:[#allocation3 + $0xd0] sm:$0xff] %vm346_vm1, %v5806_v35  ;;  %1404 = vst.msk [vmem:[#allocation3 + $0xd8] sm:$0xff] %vm346_vm1, %v5806_v35  ;;  %3758 = vrot.lane.b32.xlu0 %v3726_v27, %s5805_s27  ;;  %v2001_v58 = vsel %vm1987_vm12, %v1968_v60, %v7036_v23  ;;  %v2870_v23 = vsel %vm346_vm1, %v6429_v56, %v6975_v54  ;;  %v2874_v21 = vsel %vm346_vm1, %v7729_v19, %v2714_v10 }
 0x207   : > { %1405 = vst.msk [vmem:[#allocation3 + $0xe0] sm:$0xff] %vm346_vm1, %v5806_v35  ;;  %1406 = vst.msk [vmem:[#allocation3 + $0xe8] sm:$0xff] %vm346_vm1, %v5806_v35  ;;  %5243 = vmatprep.mubr.msk.bf16.mxu1 %vm2053_vm13, %v2001_v58  ;;  %3760 = vrot.lane.b32.xlu1 %v3729_v36, %s5805_s27  ;;  %v7733_v36 = vld [vmem:[#allocation11_spill] sm:$0xff] }
 0x208   : > { %1407 = vst.msk [vmem:[#allocation3 + $0xf0] sm:$0xff] %vm346_vm1, %v5806_v35  ;;  %1408 = vst.msk [vmem:[#allocation3 + $0xf8] sm:$0xff] %vm346_vm1, %v5806_v35  ;;  %v3611_v38 = vpop.permute.xlu0 %3610 }
 0x209   : > { %v3771_v26 = vsel %vm346_vm1, %v6496_v51, %v3611_v38  ;;  %v1809_v41 = vpop.permute.xlu1 %1808 }
 0x20a   : > { %v7111_v1 = vsel %vm1987_vm12, %v3771_v26, %v7052_v24  ;;  %v1970_v34 = vsel %vm346_vm1, %v6503_v42, %v1809_v41  ;;  %v2902_v42 = vsel %vm1987_vm12, %v2870_v23, %v6902_v47  ;;  %v7728_v24 = vld [vmem:[#allocation5_spill] sm:$0xff]  ;;  %v7734_v26 = vld [vmem:[#allocation12_spill] sm:$0xff] }
 0x20b   : > { %v2003_v45 = vsel %vm1987_vm12, %v1970_v34, %v1938_v15  ;;  %v2906_v15 = vsel %vm1987_vm12, %v2874_v21, %v7046_v12 }
 0x20c   : > { %v2708_v0 = vpop.permute.xlu0 %2707  ;;  %5244 = vmatmul.mubr.msk.bf16.gmra.mxu1 %vm2053_vm13, %v2003_v45  ;;  %v7735_v45 = vld [vmem:[#allocation13_spill] sm:$0xff] }
 0x20d   : > { %v2868_v29 = vsel %vm346_vm1, %v6511_v20, %v2708_v0  ;;  %v3613_v51 = vpop.permute.xlu1 %3612 }
 0x20e   : > { %v2900_v39 = vsel %vm1987_vm12, %v2868_v29, %v2836_v48  ;;  %v3773_v32 = vsel %vm346_vm1, %v6517_v55, %v3613_v51 }
 0x20f   : > { %5273 = vmatprep.mubr.msk.bf16.mxu0 %vm2053_vm13, %v2900_v39  ;;  %v7130_v54 = vsel %vm1987_vm12, %v3773_v32, %v3741_v16 }
 0x210   : > { %5274 = vmatmul.mubr.msk.bf16.gmra.mxu0 %vm2053_vm13, %v2902_v42  ;;  %v1940_v56 = vpop.permute.xlu0 %1939  ;;  %v7736_v42 = vld [vmem:[#allocation14_spill] sm:$0xff] }
 0x211   : > { %v1942_v20 = vpop.permute.xlu1 %1941 }
 0x214   : > { %v2840_v63 = vpop.permute.xlu0 %2839 }
 0x215   : > { %v1813_v31 = vpop.permute.xlu1 %1812 }
 0x216   : > { %v1974_v2 = vsel %vm346_vm1, %v6544_v17, %v1813_v31 }
 0x217   : > { %v2007_v47 = vsel %vm1987_vm12, %v1974_v2, %v1942_v20  ;;  %v7737_v20 = vld [vmem:[#allocation10_spill] sm:$0xff] }
 0x218   : > { %v1811_v62 = vpop.permute.xlu0 %1810 }
 0x219   : > { %v1972_v55 = vsel %vm346_vm1, %v7728_v24, %v1811_v62  ;;  %v1946_v28 = vpop.permute.xlu1 %1945  ;;  %v7738_v62 = vld [vmem:[#allocation7_spill] sm:$0xff] }
 0x21a   : > { %v2005_v53 = vsel %vm1987_vm12, %v1972_v55, %v1940_v56 }
 0x21b   : > { %5247 = vmatprep.mubr.msk.bf16.mxu1 %vm2053_vm13, %v2005_v53 }
 0x21c   : > { %5248 = vmatmul.mubr.msk.bf16.gmra.mxu1 %vm2053_vm13, %v2007_v47  ;;  %v2712_v33 = vpop.permute.xlu0 %2711 }
 0x21d   : > { %v2872_v17 = vsel %vm346_vm1, %v7730_v8, %v2712_v33  ;;  %v2718_v13 = vpop.permute.xlu1 %2717 }
 0x21e   : > { %v2904_v35 = vsel %vm1987_vm12, %v2872_v17, %v2840_v63  ;;  %v2878_v24 = vsel %vm346_vm1, %v7738_v62, %v2718_v13  ;;  %v7739_v13 = vld [vmem:[#allocation17_spill] sm:$0xff] }
 0x21f   : > { %5277 = vmatprep.mubr.msk.bf16.mxu0 %vm2053_vm13, %v2904_v35 }
 0x220   : > { %5278 = vmatmul.mubr.msk.bf16.gmra.mxu0 %vm2053_vm13, %v2906_v15  ;;  %v1944_v59 = vpop.permute.xlu0 %1943 }
 0x221   : > { %v1817_v48 = vpop.permute.xlu1 %1816 }
 0x222   : > { %v1978_v22 = vsel %vm346_vm1, %v7731_v40, %v1817_v48  ;;  %v7740_v48 = vld [vmem:[#allocation18_spill] sm:$0xff] }
 0x223   : > { %v2011_v61 = vsel %vm1987_vm12, %v1978_v22, %v1946_v28 }
 0x224   : > { %v1815_v3 = vpop.permute.xlu0 %1814 }
 0x225   : > { %v1976_v4 = vsel %vm346_vm1, %v7732_v37, %v1815_v3  ;;  %v1950_v7 = vpop.permute.xlu1 %1949  ;;  %v7741_v37 = vld [vmem:[#allocation15_spill] sm:$0xff] }
 0x226   : > { %v2009_v16 = vsel %vm1987_vm12, %v1976_v4, %v1944_v59 }
 0x227   : > { %5251 = vmatprep.mubr.msk.bf16.mxu1 %vm2053_vm13, %v2009_v16 }
 0x228   : > { %5252 = vmatmul.mubr.msk.bf16.gmra.mxu1 %vm2053_vm13, %v2011_v61  ;;  %v1948_v12 = vpop.permute.xlu0 %1947 }
 0x229   : > { %v1823_v60 = vpop.permute.xlu1 %1822 }
 0x22a   : > { %v1984_v63 = vsel %vm346_vm1, %v7737_v20, %v1823_v60  ;;  %v7742_v60 = vld [vmem:[#allocation16_spill] sm:$0xff] }
 0x22c   : > { %v1819_v27 = vpop.permute.xlu0 %1818 }
 0x22d   : > { %v1980_v10 = vsel %vm346_vm1, %v7733_v36, %v1819_v27  ;;  %v1821_v58 = vpop.permute.xlu1 %1820 }
 0x22e   : > { %v2013_v38 = vsel %vm1987_vm12, %v1980_v10, %v1948_v12  ;;  %v1982_v41 = vsel %vm346_vm1, %v7734_v26, %v1821_v58 }
 0x22f   : > { %5255 = vmatprep.mubr.msk.bf16.mxu1 %vm2053_vm13, %v2013_v38  ;;  %v2015_v23 = vsel %vm1987_vm12, %v1982_v41, %v1950_v7 }
 0x230   : > { %v2716_v34 = vpop.permute.xlu0 %2715  ;;  %5256 = vmatmul.mubr.msk.bf16.gmra.mxu1 %vm2053_vm13, %v2015_v23 }
 0x231   : > { %v1954_v0 = vpop.permute.xlu1 %1953  ;;  %v2876_v29 = vsel %vm346_vm1, %v7735_v45, %v2716_v34 }
 0x234   : > { %v2844_v51 = vpop.permute.xlu0 %2843 }
 0x235   : > { %v2908_v39 = vsel %vm1987_vm12, %v2876_v29, %v2844_v51  ;;  %v1825_v32 = vpop.permute.xlu1 %1824 }
 0x236   : > { %5281 = vmatprep.mubr.msk.bf16.mxu0 %vm2053_vm13, %v2908_v39  ;;  %v1986_v56 = vsel %vm346_vm1, %v7736_v42, %v1825_v32 }
 0x237   : > { %v2019_v28 = vsel %vm1987_vm12, %v1986_v56, %v1954_v0 }
 0x238   : > { %v1952_v31 = vpop.permute.xlu0 %1951 }
 0x239   : > { %v2017_v2 = vsel %vm1987_vm12, %v1984_v63, %v1952_v31  ;;  %v2846_v55 = vpop.permute.xlu1 %2845 }
 0x23a   : > { %5259 = vmatprep.mubr.msk.bf16.mxu1 %vm2053_vm13, %v2017_v2  ;;  %v2910_v53 = vsel %vm1987_vm12, %v2878_v24, %v2846_v55 }
 0x23b   : > { %5260 = vmatmul.mubr.msk.bf16.gmra.mxu1 %vm2053_vm13, %v2019_v28  ;;  %5282 = vmatmul.mubr.msk.bf16.gmra.mxu0 %vm2053_vm13, %v2910_v53 }
 0x23c   : > { %5299 = vmatprep.mubr.msk.bf16.mxu1 %vm2053_vm13, %v6921_v30  ;;  %v3615_v47 = vpop.permute.xlu0 %3614 }
 0x23d   : > { %v3617_v19 = vpop.permute.xlu1 %3616  ;;  %v3775_v4 = vsel %vm346_vm1, %v7741_v37, %v3615_v47  ;;  %v2026_v37 = vld [vmem:[#allocation3 + $0x30] sm:$0xff] }
 0x23e   : > { %v3777_v27 = vsel %vm346_vm1, %v7742_v60, %v3617_v19  ;;  %v2027_v60 = vld [vmem:[#allocation3 + $0x38] sm:$0xff] }
 0x240   : > { %v3743_v21 = vpop.permute.xlu0 %3742 }
 0x241   : > { %v3745_v33 = vpop.permute.xlu1 %3744  ;;  %v3807_v16 = vsel %vm1987_vm12, %v3775_v4, %v3743_v21 }
 0x242   : > { %v3809_v10 = vsel %vm1987_vm12, %v3777_v27, %v3745_v33 }
 0x243   : > { %5300 = vmatmul.mubr.msk.bf16.vlgmr.msra.gmra.mxu1 %vm2053_vm13, %v6872_v52 }
 0x244   : > { %5303 = vmatprep.mubr.msk.bf16.mxu1 %vm2053_vm13, %v7003_v14  ;;  %v2720_v8 = vpop.permute.xlu0 %2719 }
 0x245   : > { %v2722_v17 = vpop.permute.xlu1 %2721  ;;  %v2880_v35 = vsel %vm346_vm1, %v7739_v13, %v2720_v8 }
 0x246   : > { %v2882_v30 = vsel %vm346_vm1, %v7740_v48, %v2722_v17 }
 0x248   : > { %v2848_v15 = vpop.permute.xlu0 %2847 }
 0x249   : > { %v2912_v59 = vsel %vm1987_vm12, %v2880_v35, %v2848_v15  ;;  %v2850_v40 = vpop.permute.xlu1 %2849  ;;  %v2022_v35 = vld [vmem:[#allocation3 + $0x10] sm:$0xff] }
 0x24a   : > { %5285 = vmatprep.mubr.msk.bf16.mxu0 %vm2053_vm13, %v2912_v59  ;;  %v2914_v22 = vsel %vm1987_vm12, %v2882_v30, %v2850_v40  ;;  %v2020_v59 = vld [vmem:[#allocation3] sm:$0xff]  ;;  %v2023_v40 = vld [vmem:[#allocation3 + $0x18] sm:$0xff] }
 0x24b   : > { %5304 = vmatmul.mubr.msk.bf16.gmra.mxu1 %vm2053_vm13, %v7042_v44  ;;  %5286 = vmatmul.mubr.msk.bf16.gmra.mxu0 %vm2053_vm13, %v2914_v22 }
 0x24c   : > { %5307 = vmatprep.mubr.msk.bf16.mxu1 %vm2053_vm13, %v7111_v1  ;;  %v3619_v52 = vpop.permute.xlu0 %3618 }
 0x24d   : > { %v3621_v14 = vpop.permute.xlu1 %3620  ;;  %v3779_v58 = vsel %vm346_vm1, %v6763_v50, %v3619_v52  ;;  %v7743_v50 = vld [vmem:[#allocation19_spill] sm:$0xff]  ;;  %v2021_v52 = vld [vmem:[#allocation3 + $0x8] sm:$0xff] }
 0x24e   : > { %v3781_v0 = vsel %vm346_vm1, %v7743_v50, %v3621_v14 }
 0x250   : > { %v3747_v3 = vpop.permute.xlu0 %3746 }
 0x251   : > { %v3749_v7 = vpop.permute.xlu1 %3748  ;;  %v3811_v26 = vsel %vm1987_vm12, %v3779_v58, %v3747_v3 }
 0x253   : > { %5308 = vmatmul.mubr.msk.bf16.gmra.mxu1 %vm2053_vm13, %v7130_v54 }
 0x254   : > { %5311 = vmatprep.mubr.msk.bf16.mxu1 %vm2053_vm13, %v3807_v16  ;;  %v2724_v44 = vpop.permute.xlu0 %2723 }
 0x255   : > { %v2726_v61 = vpop.permute.xlu1 %2725  ;;  %v2884_v12 = vsel %vm346_vm1, %v6806_v43, %v2724_v44  ;;  %v2024_v44 = vld [vmem:[#allocation3 + $0x20] sm:$0xff] }
 0x256   : > { %v2886_v54 = vsel %vm346_vm1, %v6814_v9, %v2726_v61  ;;  %v3813_v9 = vsel %vm1987_vm12, %v3781_v0, %v3749_v7 }
 0x258   : > { %v2852_v1 = vpop.permute.xlu0 %2851 }
 0x259   : > { %v2916_v36 = vsel %vm1987_vm12, %v2884_v12, %v2852_v1  ;;  %v2854_v38 = vpop.permute.xlu1 %2853 }
 0x25a   : > { %5289 = vmatprep.mubr.msk.bf16.mxu0 %vm2053_vm13, %v2916_v36  ;;  %v2918_v43 = vsel %vm1987_vm12, %v2886_v54, %v2854_v38  ;;  %v2025_v38 = vld [vmem:[#allocation3 + $0x28] sm:$0xff] }
 0x25b   : > { %5312 = vmatmul.mubr.msk.bf16.gmra.mxu1 %vm2053_vm13, %v3809_v10  ;;  %5290 = vmatmul.mubr.msk.bf16.gmra.mxu0 %vm2053_vm13, %v2918_v43 }
 0x25c   : > { %5315 = vmatprep.mubr.msk.bf16.mxu1 %vm2053_vm13, %v3811_v26  ;;  %v3623_v41 = vpop.permute.xlu0 %3622 }
 0x25d   : > { %v3625_v34 = vpop.permute.xlu1 %3624  ;;  %v3783_v45 = vsel %vm346_vm1, %v6853_v25, %v3623_v41 }
 0x25e   : > { %v3785_v56 = vsel %vm346_vm1, %v6867_v18, %v3625_v34 }
 0x260   : > { %v3751_v23 = vpop.permute.xlu0 %3750 }
 0x261   : > { %v3753_v29 = vpop.permute.xlu1 %3752  ;;  %v3815_v51 = vsel %vm1987_vm12, %v3783_v45, %v3751_v23 }
 0x262   : > { %v3817_v20 = vsel %vm1987_vm12, %v3785_v56, %v3753_v29  ;;  %v2030_v29 = vld [vmem:[#allocation3 + $0x50] sm:$0xff]  ;;  %v2031_v56 = vld [vmem:[#allocation3 + $0x58] sm:$0xff] }
 0x263   : > { %5316 = vmatmul.mubr.msk.bf16.gmra.mxu1 %vm2053_vm13, %v3813_v9 }
 0x264   : > { %5319 = vmatprep.mubr.msk.bf16.mxu1 %vm2053_vm13, %v3815_v51  ;;  %v2856_v39 = vpop.permute.xlu0 %2855 }
 0x265   : > { %v2730_v32 = vpop.permute.xlu1 %2729 }
 0x266   : > { %v2890_v2 = vsel %vm346_vm1, %v6907_v57, %v2730_v32 }
 0x268   : > { %v3627_v42 = vpop.permute.xlu0 %3626 }
 0x269   : > { %v2858_v63 = vpop.permute.xlu1 %2857  ;;  %v3787_v18 = vsel %vm346_vm1, %v6925_v49, %v3627_v42 }
 0x26a   : > { %v2922_v55 = vsel %vm1987_vm12, %v2890_v2, %v2858_v63 }
 0x26b   : > { %5320 = vmatmul.mubr.msk.bf16.gmra.mxu1 %vm2053_vm13, %v3817_v20 }
 0x26c   : > { %v2728_v31 = vpop.permute.xlu0 %2727 }
 0x26d   : > { %v2888_v25 = vsel %vm346_vm1, %v6938_v46, %v2728_v31  ;;  %v3629_v62 = vpop.permute.xlu1 %3628 }
 0x26e   : > { %v2920_v24 = vsel %vm1987_vm12, %v2888_v25, %v2856_v39  ;;  %v3789_v46 = vsel %vm346_vm1, %v6959_v11, %v3629_v62  ;;  %v2028_v39 = vld [vmem:[#allocation3 + $0x40] sm:$0xff]  ;;  %v2029_v62 = vld [vmem:[#allocation3 + $0x48] sm:$0xff] }
 0x26f   : > { %5293 = vmatprep.mubr.msk.bf16.mxu0 %vm2053_vm13, %v2920_v24 }
 0x270   : > { %5294 = vmatmul.mubr.msk.bf16.gmra.mxu0 %vm2053_vm13, %v2922_v55  ;;  %v3755_v28 = vpop.permute.xlu0 %3754 }
 0x271   : > { %v3819_v53 = vsel %vm1987_vm12, %v3787_v18, %v3755_v28  ;;  %v3757_v47 = vpop.permute.xlu1 %3756 }
 0x272   : > { %5323 = vmatprep.mubr.msk.bf16.mxu1 %vm2053_vm13, %v3819_v53  ;;  %v3821_v57 = vsel %vm1987_vm12, %v3789_v46, %v3757_v47 }
 0x273   : > { %5324 = vmatmul.mubr.msk.bf16.gmra.mxu1 %vm2053_vm13, %v3821_v57 }
 0x274   : > { %v3631_v19 = vpop.permute.xlu0 %3630 }
 0x275   : > { %v3633_v21 = vpop.permute.xlu1 %3632  ;;  %v3791_v49 = vsel %vm346_vm1, %v6993_v5, %v3631_v19 }
 0x276   : > { %v3793_v17 = vsel %vm346_vm1, %v6996_v6, %v3633_v21 }
 0x278   : > { %v3759_v33 = vpop.permute.xlu0 %3758 }
 0x279   : > { %v3823_v8 = vsel %vm1987_vm12, %v3791_v49, %v3759_v33  ;;  %v3761_v13 = vpop.permute.xlu1 %3760 }
 0x27a   : > { %5327 = vmatprep.mubr.msk.bf16.mxu1 %vm2053_vm13, %v3823_v8  ;;  %v3825_v11 = vsel %vm1987_vm12, %v3793_v17, %v3761_v13  ;;  %v2034_v8 = vld [vmem:[#allocation3 + $0x70] sm:$0xff]  ;;  %v2032_v13 = vld [vmem:[#allocation3 + $0x60] sm:$0xff] }
 0x27b   : > { %5328 = vmatmul.mubr.msk.bf16.gmra.mxu1 %vm2053_vm13, %v3825_v11 }
 0x298   : > { %v5233_v15 = vpop.f32.mrf.mxu1 }
 0x299   : > { %v2253_v48 = vadd.f32 %v5233_v15, %v2022_v35  ;;  %v2035_v15 = vld [vmem:[#allocation3 + $0x78] sm:$0xff] }
 0x29a   : > { %v2124_v30 = vpop.f32.mrf.mxu1 }
 0x29b   : > { %2285 = vst.msk [vmem:[#allocation3 + $0x10] sm:$0xff] %vm346_vm1, %v2253_v48  ;;  %v2251_v5 = vadd.f32 %v2124_v30, %v2020_v59 }
 0x29c   : > { %v5234_v22 = vpop.f32.mrf.mxu1 }
 0x29d   : > { %2283 = vst.msk [vmem:[#allocation3] sm:$0xff] %vm346_vm1, %v2251_v5  ;;  %v2254_v6 = vadd.f32 %v5234_v22, %v2023_v40  ;;  %v5267_v14 = vpop.f32.mrf.mxu0  ;;  %v2033_v22 = vld [vmem:[#allocation3 + $0x68] sm:$0xff] }
 0x29e   : > { %v2127_v3 = vpop.f32.mrf.mxu1 }
 0x29f   : > { %2286 = vst.msk [vmem:[#allocation3 + $0x18] sm:$0xff] %vm346_vm1, %v2254_v6  ;;  %v2252_v4 = vadd.f32 %v2127_v3, %v2021_v52  ;;  %v3026_v7 = vpop.f32.mrf.mxu0 }
 0x2a0   : > { %v5237_v16 = vpop.f32.mrf.mxu1 }
 0x2a1   : > { %2284 = vst.msk [vmem:[#allocation3 + $0x8] sm:$0xff] %vm346_vm1, %v2252_v4  ;;  %v2257_v61 = vadd.f32 %v5237_v16, %v2026_v37  ;;  %v5268_v58 = vpop.f32.mrf.mxu0 }
 0x2a2   : > { %v2925_v12 = vld [vmem:[#allocation3 + $0x10] sm:$0xff]  ;;  %v2140_v1 = vpop.f32.mrf.mxu1 }
 0x2a3   : > { %v3155_v27 = vadd.f32 %v5267_v14, %v2925_v12  ;;  %2289 = vst.msk [vmem:[#allocation3 + $0x30] sm:$0xff] %vm346_vm1, %v2257_v61  ;;  %v2255_v36 = vadd.f32 %v2140_v1, %v2024_v44  ;;  %v3029_v9 = vpop.f32.mrf.mxu0 }
 0x2a4   : > { %v2923_v10 = vld [vmem:[#allocation3] sm:$0xff]  ;;  %v5238_v54 = vpop.f32.mrf.mxu1 }
 0x2a5   : > { %3187 = vst.msk [vmem:[#allocation3 + $0x10] sm:$0xff] %vm346_vm1, %v3155_v27  ;;  %v3153_v26 = vadd.f32 %v3026_v7, %v2923_v10  ;;  %2287 = vst.msk [vmem:[#allocation3 + $0x20] sm:$0xff] %vm346_vm1, %v2255_v36  ;;  %v2258_v43 = vadd.f32 %v5238_v54, %v2027_v60  ;;  %v2038_v60 = vld [vmem:[#allocation3 + $0x90] sm:$0xff]  ;;  %v2036_v36 = vld [vmem:[#allocation3 + $0x80] sm:$0xff] }
 0x2a6   : > { %v2926_v41 = vld [vmem:[#allocation3 + $0x18] sm:$0xff]  ;;  %v2143_v34 = vpop.f32.mrf.mxu1 }
 0x2a7   : > { %3185 = vst.msk [vmem:[#allocation3] sm:$0xff] %vm346_vm1, %v3153_v26  ;;  %v3156_v23 = vadd.f32 %v5268_v58, %v2926_v41  ;;  %2290 = vst.msk [vmem:[#allocation3 + $0x38] sm:$0xff] %vm346_vm1, %v2258_v43  ;;  %v2256_v50 = vadd.f32 %v2143_v34, %v2025_v38  ;;  %v2039_v54 = vld [vmem:[#allocation3 + $0x98] sm:$0xff]  ;;  %v2037_v34 = vld [vmem:[#allocation3 + $0x88] sm:$0xff] }
 0x2a8   : > { %v2924_v0 = vld [vmem:[#allocation3 + $0x8] sm:$0xff] }
 0x2a9   : > { %3188 = vst.msk [vmem:[#allocation3 + $0x18] sm:$0xff] %vm346_vm1, %v3156_v23  ;;  %v3154_v45 = vadd.f32 %v3029_v9, %v2924_v0  ;;  %2288 = vst.msk [vmem:[#allocation3 + $0x28] sm:$0xff] %vm346_vm1, %v2256_v50 }
 0x2aa   : > { %v2929_v63 = vld [vmem:[#allocation3 + $0x30] sm:$0xff] }
 0x2ab   : > { %3186 = vst.msk [vmem:[#allocation3 + $0x8] sm:$0xff] %vm346_vm1, %v3154_v45 }
 0x2ac   : > { %v2927_v55 = vld [vmem:[#allocation3 + $0x20] sm:$0xff] }
 0x2ae   : > { %v2930_v47 = vld [vmem:[#allocation3 + $0x38] sm:$0xff] }
 0x2b0   : > { %v2928_v21 = vld [vmem:[#allocation3 + $0x28] sm:$0xff] }
 0x2b4   : > { %v5241_v51 = vpop.f32.mrf.mxu1 }
 0x2b5   : > { %v2261_v32 = vadd.f32 %v5241_v51, %v2030_v29 }
 0x2b6   : > { %v2156_v42 = vpop.f32.mrf.mxu1 }
 0x2b7   : > { %2293 = vst.msk [vmem:[#allocation3 + $0x50] sm:$0xff] %vm346_vm1, %v2261_v32  ;;  %v2259_v20 = vadd.f32 %v2156_v42, %v2028_v39 }
 0x2b8   : > { %v5271_v31 = vpop.f32.mrf.mxu0  ;;  %v5242_v2 = vpop.f32.mrf.mxu1 }
 0x2b9   : > { %v3159_v25 = vadd.f32 %v5271_v31, %v2929_v63  ;;  %2291 = vst.msk [vmem:[#allocation3 + $0x40] sm:$0xff] %vm346_vm1, %v2259_v20  ;;  %v2262_v24 = vadd.f32 %v5242_v2, %v2031_v56  ;;  %v2042_v63 = vld [vmem:[#allocation3 + $0xb0] sm:$0xff]  ;;  %v2040_v2 = vld [vmem:[#allocation3 + $0xa0] sm:$0xff] }
 0x2ba   : > { %v3042_v18 = vpop.f32.mrf.mxu0  ;;  %v2159_v53 = vpop.f32.mrf.mxu1 }
 0x2bb   : > { %3191 = vst.msk [vmem:[#allocation3 + $0x30] sm:$0xff] %vm346_vm1, %v3159_v25  ;;  %v3157_v28 = vadd.f32 %v3042_v18, %v2927_v55  ;;  %2294 = vst.msk [vmem:[#allocation3 + $0x58] sm:$0xff] %vm346_vm1, %v2262_v24  ;;  %v2260_v46 = vadd.f32 %v2159_v53, %v2029_v62  ;;  %v2043_v55 = vld [vmem:[#allocation3 + $0xb8] sm:$0xff]  ;;  %v2041_v53 = vld [vmem:[#allocation3 + $0xa8] sm:$0xff] }
 0x2bc   : > { %v5272_v57 = vpop.f32.mrf.mxu0 }
 0x2bd   : > { %3189 = vst.msk [vmem:[#allocation3 + $0x20] sm:$0xff] %vm346_vm1, %v3157_v28  ;;  %v3160_v19 = vadd.f32 %v5272_v57, %v2930_v47  ;;  %2292 = vst.msk [vmem:[#allocation3 + $0x48] sm:$0xff] %vm346_vm1, %v2260_v46 }
 0x2be   : > { %v3045_v49 = vpop.f32.mrf.mxu0  ;;  %v2933_v48 = vld [vmem:[#allocation3 + $0x50] sm:$0xff] }
 0x2bf   : > { %3192 = vst.msk [vmem:[#allocation3 + $0x38] sm:$0xff] %vm346_vm1, %v3160_v19  ;;  %v3158_v33 = vadd.f32 %v3045_v49, %v2928_v21  ;;  %v2046_v19 = vld [vmem:[#allocation3 + $0xd0] sm:$0xff]  ;;  %v2044_v49 = vld [vmem:[#allocation3 + $0xc0] sm:$0xff] }
 0x2c0   : > { %v2931_v6 = vld [vmem:[#allocation3 + $0x40] sm:$0xff] }
 0x2c1   : > { %3190 = vst.msk [vmem:[#allocation3 + $0x28] sm:$0xff] %vm346_vm1, %v3158_v33 }
 0x2c2   : > { %v2934_v7 = vld [vmem:[#allocation3 + $0x58] sm:$0xff] }
 0x2c4   : > { %v2932_v61 = vld [vmem:[#allocation3 + $0x48] sm:$0xff] }
 0x2cc   : > { %v5245_v17 = vpop.f32.mrf.mxu1 }
 0x2cd   : > { %v2265_v11 = vadd.f32 %v5245_v17, %v2034_v8  ;;  %v2047_v17 = vld [vmem:[#allocation3 + $0xd8] sm:$0xff] }
 0x2ce   : > { %v2172_v35 = vpop.f32.mrf.mxu1 }
 0x2cf   : > { %2297 = vst.msk [vmem:[#allocation3 + $0x70] sm:$0xff] %vm346_vm1, %v2265_v11  ;;  %v2263_v59 = vadd.f32 %v2172_v35, %v2032_v13  ;;  %v2045_v35 = vld [vmem:[#allocation3 + $0xc8] sm:$0xff] }
 0x2d0   : > { %v5275_v30 = vpop.f32.mrf.mxu0  ;;  %v5246_v5 = vpop.f32.mrf.mxu1 }
 0x2d1   : > { %v3163_v40 = vadd.f32 %v5275_v30, %v2933_v48  ;;  %2295 = vst.msk [vmem:[#allocation3 + $0x60] sm:$0xff] %vm346_vm1, %v2263_v59  ;;  %v2266_v52 = vadd.f32 %v5246_v5, %v2035_v15  ;;  %v2050_v30 = vld [vmem:[#allocation3 + $0xf0] sm:$0xff]  ;;  %v2048_v5 = vld [vmem:[#allocation3 + $0xe0] sm:$0xff] }
 0x2d2   : > { %v3058_v14 = vpop.f32.mrf.mxu0  ;;  %v2175_v37 = vpop.f32.mrf.mxu1 }
 0x2d3   : > { %3195 = vst.msk [vmem:[#allocation3 + $0x50] sm:$0xff] %vm346_vm1, %v3163_v40  ;;  %v3161_v3 = vadd.f32 %v3058_v14, %v2931_v6  ;;  %2298 = vst.msk [vmem:[#allocation3 + $0x78] sm:$0xff] %vm346_vm1, %v2266_v52  ;;  %v2264_v4 = vadd.f32 %v2175_v37, %v2033_v22  ;;  %v2051_v37 = vld [vmem:[#allocation3 + $0xf8] sm:$0xff] }
 0x2d4   : > { %v5276_v16 = vpop.f32.mrf.mxu0 }
 0x2d5   : > { %3193 = vst.msk [vmem:[#allocation3 + $0x40] sm:$0xff] %vm346_vm1, %v3161_v3  ;;  %v3164_v44 = vadd.f32 %v5276_v16, %v2934_v7  ;;  %2296 = vst.msk [vmem:[#allocation3 + $0x68] sm:$0xff] %vm346_vm1, %v2264_v4 }
 0x2d6   : > { %v3061_v12 = vpop.f32.mrf.mxu0  ;;  %v2937_v43 = vld [vmem:[#allocation3 + $0x70] sm:$0xff] }
 0x2d7   : > { %3196 = vst.msk [vmem:[#allocation3 + $0x58] sm:$0xff] %vm346_vm1, %v3164_v44  ;;  %v3162_v1 = vadd.f32 %v3061_v12, %v2932_v61  ;;  %v2049_v12 = vld [vmem:[#allocation3 + $0xe8] sm:$0xff] }
 0x2d8   : > { %v2935_v9 = vld [vmem:[#allocation3 + $0x60] sm:$0xff] }
 0x2d9   : > { %3194 = vst.msk [vmem:[#allocation3 + $0x48] sm:$0xff] %vm346_vm1, %v3162_v1 }
 0x2da   : > { %v2938_v39 = vld [vmem:[#allocation3 + $0x78] sm:$0xff] }
 0x2dc   : > { %v5249_v27 = vpop.f32.mrf.mxu1  ;;  %v2936_v56 = vld [vmem:[#allocation3 + $0x68] sm:$0xff] }
 0x2dd   : > { %v2269_v10 = vadd.f32 %v5249_v27, %v2038_v60 }
 0x2de   : > { %v2188_v58 = vpop.f32.mrf.mxu1 }
 0x2df   : > { %2301 = vst.msk [vmem:[#allocation3 + $0x90] sm:$0xff] %vm346_vm1, %v2269_v10  ;;  %v2267_v38 = vadd.f32 %v2188_v58, %v2036_v36 }
 0x2e0   : > { %v5250_v26 = vpop.f32.mrf.mxu1  ;;  %v5279_v41 = vpop.f32.mrf.mxu0 }
 0x2e1   : > { %2299 = vst.msk [vmem:[#allocation3 + $0x80] sm:$0xff] %vm346_vm1, %v2267_v38  ;;  %v2270_v23 = vadd.f32 %v5250_v26, %v2039_v54  ;;  %v3167_v50 = vadd.f32 %v5279_v41, %v2937_v43  ;;  %v3828_v43 = vld [vmem:[#allocation3 + $0x10] sm:$0xff] }
 0x2e2   : > { %v2191_v0 = vpop.f32.mrf.mxu1  ;;  %v3074_v45 = vpop.f32.mrf.mxu0 }
 0x2e3   : > { %2302 = vst.msk [vmem:[#allocation3 + $0x98] sm:$0xff] %vm346_vm1, %v2270_v23  ;;  %3199 = vst.msk [vmem:[#allocation3 + $0x70] sm:$0xff] %vm346_vm1, %v3167_v50  ;;  %v2268_v29 = vadd.f32 %v2191_v0, %v2037_v34  ;;  %v3165_v51 = vadd.f32 %v3074_v45, %v2935_v9  ;;  %v3826_v23 = vld [vmem:[#allocation3] sm:$0xff]  ;;  %v3829_v9 = vld [vmem:[#allocation3 + $0x18] sm:$0xff] }
 0x2e4   : > { %v5280_v32 = vpop.f32.mrf.mxu0 }
 0x2e5   : > { %2300 = vst.msk [vmem:[#allocation3 + $0x88] sm:$0xff] %vm346_vm1, %v2268_v29  ;;  %3197 = vst.msk [vmem:[#allocation3 + $0x60] sm:$0xff] %vm346_vm1, %v3165_v51  ;;  %v3168_v42 = vadd.f32 %v5280_v32, %v2938_v39  ;;  %v3827_v51 = vld [vmem:[#allocation3 + $0x8] sm:$0xff] }
 0x2e6   : > { %v3077_v20 = vpop.f32.mrf.mxu0  ;;  %v2941_v52 = vld [vmem:[#allocation3 + $0x90] sm:$0xff] }
 0x2e7   : > { %3200 = vst.msk [vmem:[#allocation3 + $0x78] sm:$0xff] %vm346_vm1, %v3168_v42  ;;  %v3166_v31 = vadd.f32 %v3077_v20, %v2936_v56  ;;  %v7315_v42 = vld [vmem:[%s7688_s4] ss:$0 sm:$0xff]  ;;  %v3832_v56 = vld [vmem:[#allocation3 + $0x30] sm:$0xff] }
 0x2e8   : > { %v5253_v25 = vpop.f32.mrf.mxu1  ;;  %v2939_v7 = vld [vmem:[#allocation3 + $0x80] sm:$0xff] }
 0x2e9   : > { %3198 = vst.msk [vmem:[#allocation3 + $0x68] sm:$0xff] %vm346_vm1, %v3166_v31  ;;  %v2273_v62 = vadd.f32 %v5253_v25, %v2042_v63 }
 0x2ea   : > { %v2204_v24 = vpop.f32.mrf.mxu1  ;;  %v2942_v60 = vld [vmem:[#allocation3 + $0x98] sm:$0xff] }
 0x2eb   : > { %2305 = vst.msk [vmem:[#allocation3 + $0xb0] sm:$0xff] %vm346_vm1, %v2273_v62  ;;  %v2271_v18 = vadd.f32 %v2204_v24, %v2040_v2  ;;  %v3830_v24 = vld [vmem:[#allocation3 + $0x20] sm:$0xff] }
 0x2ec   : > { %v5254_v28 = vpop.f32.mrf.mxu1  ;;  %v2940_v54 = vld [vmem:[#allocation3 + $0x88] sm:$0xff] }
 0x2ed   : > { %2303 = vst.msk [vmem:[#allocation3 + $0xa0] sm:$0xff] %vm346_vm1, %v2271_v18  ;;  %v2274_v46 = vadd.f32 %v5254_v28, %v2043_v55 }
 0x2ee   : > { %v2207_v47 = vpop.f32.mrf.mxu1 }
 0x2ef   : > { %2306 = vst.msk [vmem:[#allocation3 + $0xb8] sm:$0xff] %vm346_vm1, %v2274_v46  ;;  %v2272_v57 = vadd.f32 %v2207_v47, %v2041_v53 }
 0x2f0   : > { %v5257_v21 = vpop.f32.mrf.mxu1 }
 0x2f1   : > { %2304 = vst.msk [vmem:[#allocation3 + $0xa8] sm:$0xff] %vm346_vm1, %v2272_v57  ;;  %v2277_v33 = vadd.f32 %v5257_v21, %v2046_v19  ;;  %v3833_v19 = vld [vmem:[#allocation3 + $0x38] sm:$0xff] }
 0x2f2   : > { %v2220_v8 = vpop.f32.mrf.mxu1  ;;  %v2945_v31 = vld [vmem:[#allocation3 + $0xb0] sm:$0xff] }
 0x2f3   : > { %2309 = vst.msk [vmem:[#allocation3 + $0xd0] sm:$0xff] %vm346_vm1, %v2277_v33  ;;  %v2275_v13 = vadd.f32 %v2220_v8, %v2044_v49 }
 0x2f4   : > { %v5258_v11 = vpop.f32.mrf.mxu1  ;;  %v2943_v53 = vld [vmem:[#allocation3 + $0xa0] sm:$0xff] }
 0x2f5   : > { %2307 = vst.msk [vmem:[#allocation3 + $0xc0] sm:$0xff] %vm346_vm1, %v2275_v13  ;;  %v2278_v15 = vadd.f32 %v5258_v11, %v2047_v17 }
 0x2f6   : > { %v2223_v59 = vpop.f32.mrf.mxu1  ;;  %v2946_v17 = vld [vmem:[#allocation3 + $0xb8] sm:$0xff] }
 0x2f7   : > { %2310 = vst.msk [vmem:[#allocation3 + $0xd8] sm:$0xff] %vm346_vm1, %v2278_v15  ;;  %v2276_v48 = vadd.f32 %v2223_v59, %v2045_v35  ;;  %v3831_v15 = vld [vmem:[#allocation3 + $0x28] sm:$0xff] }
 0x2f9   : > { %2308 = vst.msk [vmem:[#allocation3 + $0xc8] sm:$0xff] %vm346_vm1, %v2276_v48 }
 0x2fb   : > { %v5261_v40 = vpop.f32.mrf.mxu1  ;;  %v5283_v6 = vpop.f32.mrf.mxu0 }
 0x2fc   : > { %v2281_v22 = vadd.f32 %v5261_v40, %v2050_v30  ;;  %v3171_v14 = vadd.f32 %v5283_v6, %v2941_v52 }
 0x2fd   : > { %v2236_v3 = vpop.f32.mrf.mxu1  ;;  %v3090_v16 = vpop.f32.mrf.mxu0 }
 0x2fe   : > { %2313 = vst.msk [vmem:[#allocation3 + $0xf0] sm:$0xff] %vm346_vm1, %v2281_v22  ;;  %v2279_v4 = vadd.f32 %v2236_v3, %v2048_v5  ;;  %3203 = vst.msk [vmem:[#allocation3 + $0x90] sm:$0xff] %vm346_vm1, %v3171_v14  ;;  %v3169_v44 = vadd.f32 %v3090_v16, %v2939_v7  ;;  %v2944_v5 = vld [vmem:[#allocation3 + $0xa8] sm:$0xff]  ;;  %v3836_v14 = vld [vmem:[#allocation3 + $0x50] sm:$0xff] }
 0x2ff   : > { %v5262_v61 = vpop.f32.mrf.mxu1  ;;  %v5284_v27 = vpop.f32.mrf.mxu0 }
 0x300   : > { %2311 = vst.msk [vmem:[#allocation3 + $0xe0] sm:$0xff] %vm346_vm1, %v2279_v4  ;;  %v2282_v1 = vadd.f32 %v5262_v61, %v2051_v37  ;;  %3201 = vst.msk [vmem:[#allocation3 + $0x80] sm:$0xff] %vm346_vm1, %v3169_v44  ;;  %v3172_v36 = vadd.f32 %v5284_v27, %v2942_v60  ;;  %v3834_v44 = vld [vmem:[#allocation3 + $0x40] sm:$0xff] }
 0x301   : > { %v2239_v10 = vpop.f32.mrf.mxu1  ;;  %v3093_v38 = vpop.f32.mrf.mxu0 }
 0x302   : > { %2314 = vst.msk [vmem:[#allocation3 + $0xf8] sm:$0xff] %vm346_vm1, %v2282_v1  ;;  %v2280_v58 = vadd.f32 %v2239_v10, %v2049_v12  ;;  %3204 = vst.msk [vmem:[#allocation3 + $0x98] sm:$0xff] %vm346_vm1, %v3172_v36  ;;  %v3170_v26 = vadd.f32 %v3093_v38, %v2940_v54  ;;  %v3837_v36 = vld [vmem:[#allocation3 + $0x58] sm:$0xff] }
 0x303   : > { %v5301_v41 = vpop.f32.mrf.mxu1 }
 0x304   : > { %2312 = vst.msk [vmem:[#allocation3 + $0xe8] sm:$0xff] %vm346_vm1, %v2280_v58  ;;  %v4058_v34 = vadd.f32 %v5301_v41, %v3828_v43  ;;  %3202 = vst.msk [vmem:[#allocation3 + $0x88] sm:$0xff] %vm346_vm1, %v3170_v26  ;;  %v3835_v43 = vld [vmem:[#allocation3 + $0x48] sm:$0xff] }
 0x305   : > { %v3929_v50 = vpop.f32.mrf.mxu1 }
 0x306   : > { %4090 = vst.msk [vmem:[#allocation3 + $0x10] sm:$0xff] %vm346_vm1, %v4058_v34  ;;  %v4056_v0 = vadd.f32 %v3929_v50, %v3826_v23 }
 0x307   : > { %v5302_v45 = vpop.f32.mrf.mxu1 }
 0x308   : > { %4088 = vst.msk [vmem:[#allocation3] sm:$0xff] %vm346_vm1, %v4056_v0  ;;  %v4059_v29 = vadd.f32 %v5302_v45, %v3829_v9  ;;  %v3840_v9 = vld [vmem:[#allocation3 + $0x70] sm:$0xff] }
 0x309   : > { %v3932_v39 = vpop.f32.mrf.mxu1 }
 0x30a   : > { %4091 = vst.msk [vmem:[#allocation3 + $0x18] sm:$0xff] %vm346_vm1, %v4059_v29  ;;  %v4057_v32 = vadd.f32 %v3932_v39, %v3827_v51 }
 0x30b   : > { %v5305_v20 = vpop.f32.mrf.mxu1  ;;  %v5287_v25 = vpop.f32.mrf.mxu0 }
 0x30c   : > { %4089 = vst.msk [vmem:[#allocation3 + $0x8] sm:$0xff] %vm346_vm1, %v4057_v32  ;;  %v4062_v63 = vadd.f32 %v5305_v20, %v3832_v56  ;;  %v3175_v62 = vadd.f32 %v5287_v25, %v2945_v31  ;;  %v2949_v32 = vld [vmem:[#allocation3 + $0xd0] sm:$0xff]  ;;  %v3838_v31 = vld [vmem:[#allocation3 + $0x60] sm:$0xff] }
 0x30d   : > { %v4122_v2 = vld [vmem:[#allocation3 + $0x10] sm:$0xff]  ;;  %v3945_v55 = vpop.f32.mrf.mxu1  ;;  %v3106_v46 = vpop.f32.mrf.mxu0 }
 0x30e   : > { %v7319_v18 = vadd.f32 %v7315_v42, %v4122_v2  ;;  %4094 = vst.msk [vmem:[#allocation3 + $0x30] sm:$0xff] %vm346_vm1, %v4062_v63  ;;  %v4060_v28 = vadd.f32 %v3945_v55, %v3830_v24  ;;  %3207 = vst.msk [vmem:[#allocation3 + $0xb0] sm:$0xff] %vm346_vm1, %v3175_v62  ;;  %v3173_v57 = vadd.f32 %v3106_v46, %v2943_v53  ;;  %v2947_v55 = vld [vmem:[#allocation3 + $0xc0] sm:$0xff] }
 0x30f   : > { %v4120_v47 = vld [vmem:[#allocation3] sm:$0xff]  ;;  %v5306_v21 = vpop.f32.mrf.mxu1  ;;  %v5288_v13 = vpop.f32.mrf.mxu0 }
 0x310   : > { %v4997_v49 = vmul.f32 -1.442695, %v7319_v18  ;;  %v7325_v33 = vadd.f32 %v7315_v42, %v4120_v47  ;;  %4092 = vst.msk [vmem:[#allocation3 + $0x20] sm:$0xff] %vm346_vm1, %v4060_v28  ;;  %v4063_v8 = vadd.f32 %v5306_v21, %v3833_v19  ;;  %3205 = vst.msk [vmem:[#allocation3 + $0xa0] sm:$0xff] %vm346_vm1, %v3173_v57  ;;  %v3176_v35 = vadd.f32 %v5288_v13, %v2946_v17  ;;  %v2950_v17 = vld [vmem:[#allocation3 + $0xd8] sm:$0xff] }
 0x311   : > { %v4123_v11 = vld [vmem:[#allocation3 + $0x18] sm:$0xff]  ;;  %v3948_v59 = vpop.f32.mrf.mxu1  ;;  %v3109_v22 = vpop.f32.mrf.mxu0 }
 0x312   : > { %5651 = vpow2.f32 %v4997_v49  ;;  %v4995_v48 = vmul.f32 -1.442695, %v7325_v33  ;;  %v7331_v30 = vadd.f32 %v7315_v42, %v4123_v11  ;;  %4095 = vst.msk [vmem:[#allocation3 + $0x38] sm:$0xff] %vm346_vm1, %v4063_v8  ;;  %v4061_v40 = vadd.f32 %v3948_v59, %v3831_v15  ;;  %3208 = vst.msk [vmem:[#allocation3 + $0xb8] sm:$0xff] %vm346_vm1, %v3176_v35  ;;  %v3841_v8 = vld [vmem:[#allocation3 + $0x78] sm:$0xff] }
 0x313   : > { %v4121_v52 = vld [vmem:[#allocation3 + $0x8] sm:$0xff]  ;;  %v3174_v6 = vadd.f32 %v3109_v22, %v2944_v5  ;;  %v5309_v3 = vpop.f32.mrf.mxu1 }
 0x314   : > { %5653 = vpow2.f32 %v4995_v48  ;;  %v4998_v37 = vmul.f32 -1.442695, %v7331_v30  ;;  %v7337_v4 = vadd.f32 %v7315_v42, %v4121_v52  ;;  %4093 = vst.msk [vmem:[#allocation3 + $0x28] sm:$0xff] %vm346_vm1, %v4061_v40  ;;  %v4066_v7 = vadd.f32 %v5309_v3, %v3836_v14  ;;  %v3839_v52 = vld [vmem:[#allocation3 + $0x68] sm:$0xff] }
 0x315   : > { %v4126_v16 = vld [vmem:[#allocation3 + $0x30] sm:$0xff]  ;;  %3206 = vst.msk [vmem:[#allocation3 + $0xa8] sm:$0xff] %vm346_vm1, %v3174_v6  ;;  %v3961_v61 = vpop.f32.mrf.mxu1  ;;  %v2948_v6 = vld [vmem:[#allocation3 + $0xc8] sm:$0xff] }
 0x316   : > { %5655 = vpow2.f32 %v4998_v37  ;;  %v4996_v12 = vmul.f32 -1.442695, %v7337_v4  ;;  %v7343_v1 = vadd.f32 %v7315_v42, %v4126_v16  ;;  %4098 = vst.msk [vmem:[#allocation3 + $0x50] sm:$0xff] %vm346_vm1, %v4066_v7  ;;  %v4064_v60 = vadd.f32 %v3961_v61, %v3834_v44 }
 0x317   : > { %v4124_v27 = vld [vmem:[#allocation3 + $0x20] sm:$0xff]  ;;  %v5310_v10 = vpop.f32.mrf.mxu1 }
 0x318   : > { %5657 = vpow2.f32 %v4996_v12  ;;  %v5001_v58 = vmul.f32 -1.442695, %v7343_v1  ;;  %v7348_v54 = vadd.f32 %v7315_v42, %v4124_v27  ;;  %4096 = vst.msk [vmem:[#allocation3 + $0x40] sm:$0xff] %vm346_vm1, %v4064_v60  ;;  %v4067_v38 = vadd.f32 %v5310_v10, %v3837_v36  ;;  %v3844_v27 = vld [vmem:[#allocation3 + $0x90] sm:$0xff] }
 0x319   : > { %v4127_v26 = vld [vmem:[#allocation3 + $0x38] sm:$0xff]  ;;  %v3964_v41 = vpop.f32.mrf.mxu1 }
 0x31a   : > { %5659 = vpow2.f32 %v5001_v58  ;;  %v4999_v34 = vmul.f32 -1.442695, %v7348_v54  ;;  %v7353_v23 = vadd.f32 %v7315_v42, %v4127_v26  ;;  %4099 = vst.msk [vmem:[#allocation3 + $0x58] sm:$0xff] %vm346_vm1, %v4067_v38  ;;  %v4065_v50 = vadd.f32 %v3964_v41, %v3835_v43 }
 0x31b   : > { %v4125_v0 = vld [vmem:[#allocation3 + $0x28] sm:$0xff]  ;;  %v5313_v45 = vpop.f32.mrf.mxu1  ;;  %v5291_v56 = vpop.f32.mrf.mxu0 }
 0x31c   : > { %5661 = vpow2.f32 %v4999_v34  ;;  %v5002_v29 = vmul.f32 -1.442695, %v7353_v23  ;;  %v7358_v51 = vadd.f32 %v7315_v42, %v4125_v0  ;;  %4097 = vst.msk [vmem:[#allocation3 + $0x48] sm:$0xff] %vm346_vm1, %v4065_v50  ;;  %v4070_v39 = vadd.f32 %v5313_v45, %v3840_v9  ;;  %v3842_v34 = vld [vmem:[#allocation3 + $0x80] sm:$0xff]  ;;  %v7390_v0 = vld [vmem:[%s5856_s25] sm:$0xff]  }
 0x31d   : > { %v4130_v20 = vld [vmem:[#allocation3 + $0x50] sm:$0xff]  ;;  %v3179_v63 = vadd.f32 %v5291_v56, %v2949_v32  ;;  %v3977_v25 = vpop.f32.mrf.mxu1  ;;  %v3122_v28 = vpop.f32.mrf.mxu0  ;;  %v4415_v9 = vunpack.c.l.bf16 %v7390_v0  ;;  %v4416_v45 = vunpack.c.h.bf16 %v7390_v0 }
 0x31e   : > { %5663 = vpow2.f32 %v5002_v29  ;;  %v5000_v2 = vmul.f32 -1.442695, %v7358_v51  ;;  %v7363_v62 = vadd.f32 %v7315_v42, %v4130_v20  ;;  %4102 = vst.msk [vmem:[#allocation3 + $0x70] sm:$0xff] %vm346_vm1, %v4070_v39  ;;  %v4068_v24 = vadd.f32 %v3977_v25, %v3838_v31  ;;  %v3845_v31 = vld [vmem:[#allocation3 + $0x98] sm:$0xff] }
 0x31f   : > { %v5652_v53 = vpop.eup %5651  ;;  %v4128_v46 = vld [vmem:[#allocation3 + $0x40] sm:$0xff]  ;;  %3211 = vst.msk [vmem:[#allocation3 + $0xd0] sm:$0xff] %vm346_vm1, %v3179_v63  ;;  %v3177_v47 = vadd.f32 %v3122_v28, %v2947_v55  ;;  %v5314_v57 = vpop.f32.mrf.mxu1 }
 0x320   : > { %v4289_v19 = vadd.f32 1.0, %v5652_v53  ;;  %5665 = vpow2.f32 %v5000_v2  ;;  %v5005_v21 = vmul.f32 -1.442695, %v7363_v62  ;;  %v7369_v49 = vadd.f32 %v7315_v42, %v4128_v46  ;;  %4100 = vst.msk [vmem:[#allocation3 + $0x60] sm:$0xff] %vm346_vm1, %v4068_v24  ;;  %v5292_v13 = vpop.f32.mrf.mxu0  ;;  %v7400_v2 = vld [vmem:[%s5856_s25 + $0x8] sm:$0xff]   ;;  %v3843_v53 = vld [vmem:[#allocation3 + $0x88] sm:$0xff] }
 0x321   : > { %v5654_v11 = vpop.eup %5653  ;;  %v4131_v35 = vld [vmem:[#allocation3 + $0x58] sm:$0xff]  ;;  %3209 = vst.msk [vmem:[#allocation3 + $0xc0] sm:$0xff] %vm346_vm1, %v3177_v47  ;;  %v4071_v15 = vadd.f32 %v5314_v57, %v3841_v8  ;;  %v3180_v59 = vadd.f32 %v5292_v13, %v2950_v17  ;;  %v3980_v48 = vpop.f32.mrf.mxu1  ;;  %v4417_v24 = vunpack.c.l.bf16 %v7400_v2  ;;  %v4418_v55 = vunpack.c.h.bf16 %v7400_v2 }
 0x322   : > { %5667 = vrcp.f32 %v4289_v19  ;;  %v4287_v40 = vadd.f32 1.0, %v5654_v11  ;;  %v5003_v5 = vmul.f32 -1.442695, %v7369_v49  ;;  %v7375_v22 = vadd.f32 %v7315_v42, %v4131_v35  ;;  %v3125_v14 = vpop.f32.mrf.mxu0  ;;  %v7407_v17 = vld [vmem:[%s5856_s25 + $0x10] sm:$0xff]  }
 0x323   : > { %v5656_v3 = vpop.eup %5655  ;;  %5669 = vpow2.f32 %v5005_v21  ;;  %v4129_v37 = vld [vmem:[#allocation3 + $0x48] sm:$0xff]  ;;  %4103 = vst.msk [vmem:[#allocation3 + $0x78] sm:$0xff] %vm346_vm1, %v4071_v15  ;;  %3212 = vst.msk [vmem:[#allocation3 + $0xd8] sm:$0xff] %vm346_vm1, %v3180_v59  ;;  %v4069_v7 = vadd.f32 %v3980_v48, %v3839_v52  ;;  %v3178_v16 = vadd.f32 %v3125_v14, %v2948_v6  ;;  %v5317_v44 = vpop.f32.mrf.mxu1  ;;  %v4419_v13 = vunpack.c.l.bf16 %v7407_v17  ;;  %v3848_v15 = vld [vmem:[#allocation3 + $0xb0] sm:$0xff] }
 0x324   : > { %5671 = vrcp.f32 %v4287_v40  ;;  %v4290_v61 = vadd.f32 1.0, %v5656_v3  ;;  %v5006_v12 = vmul.f32 -1.442695, %v7375_v22  ;;  %v7381_v60 = vadd.f32 %v7315_v42, %v4129_v37  ;;  %v7416_v48 = vld [vmem:[%s5856_s25 + $0x18] sm:$0xff]  }
 0x325   : > { %v5658_v36 = vpop.eup %5657  ;;  %5673 = vpow2.f32 %v5003_v5  ;;  %v4134_v10 = vld [vmem:[#allocation3 + $0x70] sm:$0xff]  ;;  %4101 = vst.msk [vmem:[#allocation3 + $0x68] sm:$0xff] %vm346_vm1, %v4069_v7  ;;  %3210 = vst.msk [vmem:[#allocation3 + $0xc8] sm:$0xff] %vm346_vm1, %v3178_v16  ;;  %v4074_v58 = vadd.f32 %v5317_v44, %v3844_v27  ;;  %v3993_v38 = vpop.f32.mrf.mxu1  ;;  %v4420_v11 = vunpack.c.h.bf16 %v7407_v17  ;;  %v4421_v40 = vunpack.c.l.bf16 %v7416_v48  ;;  %v3846_v16 = vld [vmem:[#allocation3 + $0xa0] sm:$0xff] }
 0x326   : > { %5675 = vrcp.f32 %v4290_v61  ;;  %v4288_v26 = vadd.f32 1.0, %v5658_v36  ;;  %v5004_v43 = vmul.f32 -1.442695, %v7381_v60  ;;  %v7387_v41 = vadd.f32 %v7315_v42, %v4134_v10  ;;  %v7426_v61 = vld [vmem:[%s5856_s25 + $0x20] sm:$0xff]  }
 0x327   : > { %v5660_v50 = vpop.eup %5659  ;;  %5677 = vpow2.f32 %v5006_v12  ;;  %v4132_v29 = vld [vmem:[#allocation3 + $0x60] sm:$0xff]  ;;  %4106 = vst.msk [vmem:[#allocation3 + $0x90] sm:$0xff] %vm346_vm1, %v4074_v58  ;;  %v4072_v39 = vadd.f32 %v3993_v38, %v3842_v34  ;;  %v5318_v32 = vpop.f32.mrf.mxu1  ;;  %v4422_v3 = vunpack.c.h.bf16 %v7416_v48  ;;  %v4423_v12 = vunpack.c.l.bf16 %v7426_v61  ;;  %v7431_v38 = vld [vmem:[%s5856_s25 + $0x28] sm:$0xff]  }
 0x328   : > { %5679 = vrcp.f32 %v4288_v26  ;;  %v4293_v56 = vadd.f32 1.0, %v5660_v50  ;;  %v5009_v20 = vmul.f32 -1.442695, %v7387_v41  ;;  %v7397_v63 = vadd.f32 %v7315_v42, %v4132_v29  ;;  %v3849_v50 = vld [vmem:[#allocation3 + $0xb8] sm:$0xff] }
 0x329   : > { %v5662_v25 = vpop.eup %5661  ;;  %5681 = vpow2.f32 %v5004_v43  ;;  %4104 = vst.msk [vmem:[#allocation3 + $0x80] sm:$0xff] %vm346_vm1, %v4072_v39  ;;  %v4075_v28 = vadd.f32 %v5318_v32, %v3845_v31  ;;  %v3996_v46 = vpop.f32.mrf.mxu1  ;;  %v4425_v26 = vunpack.c.l.bf16 %v7431_v38  ;;  %v4426_v32 = vunpack.c.h.bf16 %v7431_v38 }
 0x32a   : > { %5683 = vrcp.f32 %v4293_v56  ;;  %v4291_v47 = vadd.f32 1.0, %v5662_v25  ;;  %v5007_v57 = vmul.f32 -1.442695, %v7397_v63  ;;  %v4135_v19 = vld [vmem:[#allocation3 + $0x78] sm:$0xff]  ;;  %v4073_v21 = vadd.f32 %v3996_v46, %v3843_v53 }
 0x32b   : > { %v5664_v8 = vpop.eup %5663  ;;  %5685 = vpow2.f32 %v5009_v20  ;;  %v7412_v35 = vadd.f32 %v7315_v42, %v4135_v19  ;;  %4107 = vst.msk [vmem:[#allocation3 + $0x98] sm:$0xff] %vm346_vm1, %v4075_v28  ;;  %v5321_v59 = vpop.f32.mrf.mxu1  ;;  %v3847_v19 = vld [vmem:[#allocation3 + $0xa8] sm:$0xff] }
 0x32c   : > { %5687 = vrcp.f32 %v4291_v47  ;;  %v4294_v5 = vadd.f32 1.0, %v5664_v8  ;;  %v4133_v52 = vld [vmem:[#allocation3 + $0x68] sm:$0xff]  ;;  %4105 = vst.msk [vmem:[#allocation3 + $0x88] sm:$0xff] %vm346_vm1, %v4073_v21  ;;  %v4078_v6 = vadd.f32 %v5321_v59, %v3848_v15 }
 0x32d   : > { %v5666_v14 = vpop.eup %5665  ;;  %5689 = vpow2.f32 %v5007_v57  ;;  %v5010_v37 = vmul.f32 -1.442695, %v7412_v35  ;;  %v7423_v7 = vadd.f32 %v7315_v42, %v4133_v52  ;;  %v4009_v44 = vpop.f32.mrf.mxu1  ;;  %v2953_v57 = vld [vmem:[#allocation3 + $0xf0] sm:$0xff] }
 0x32e   : > { %5691 = vrcp.f32 %v4294_v5  ;;  %v4292_v27 = vadd.f32 1.0, %v5666_v14  ;;  %v4138_v36 = vld [vmem:[#allocation3 + $0x90] sm:$0xff]  ;;  %4110 = vst.msk [vmem:[#allocation3 + $0xb0] sm:$0xff] %vm346_vm1, %v4078_v6  ;;  %v4076_v10 = vadd.f32 %v4009_v44, %v3846_v16 }
 0x32f   : > { %v5668_v58 = vpop.eup %5667  ;;  %5693 = vpow2.f32 %v5010_v37  ;;  %v5008_v43 = vmul.f32 -1.442695, %v7423_v7  ;;  %v7436_v34 = vadd.f32 %v7315_v42, %v4138_v36  ;;  %v5322_v29 = vpop.f32.mrf.mxu1 }
 0x330   : > { %v5670_v39 = vpop.eup %5669  ;;  %v4385_v56 = vmul.f32 %v5668_v58, %v7319_v18  ;;  %5695 = vrcp.f32 %v4292_v27  ;;  %v4136_v20 = vld [vmem:[#allocation3 + $0x80] sm:$0xff]  ;;  %4108 = vst.msk [vmem:[#allocation3 + $0xa0] sm:$0xff] %vm346_vm1, %v4076_v10  ;;  %v4079_v31 = vadd.f32 %v5322_v29, %v3849_v50  ;;  %v5295_v25 = vpop.f32.mrf.mxu0 }
 0x331   : > { %v5672_v28 = vpop.eup %5671  ;;  %v4297_v53 = vadd.f32 1.0, %v5670_v39  ;;  %5697 = vpow2.f32 %v5008_v43  ;;  %v5013_v46 = vmul.f32 -1.442695, %v7436_v34  ;;  %v7443_v47 = vadd.f32 %v7315_v42, %v4136_v20  ;;  %v4012_v21 = vpop.f32.mrf.mxu1 }
 0x332   : > { %v5674_v8 = vpop.eup %5673  ;;  %v4449_v18 = vadd.f32 %v4417_v24, %v4385_v56  ;;  %v4383_v15 = vmul.f32 %v5672_v28, %v7325_v33  ;;  %v4139_v59 = vld [vmem:[#allocation3 + $0x98] sm:$0xff]  ;;  %4111 = vst.msk [vmem:[#allocation3 + $0xb8] sm:$0xff] %vm346_vm1, %v4079_v31  ;;  %v3183_v5 = vadd.f32 %v5295_v25, %v2953_v57  ;;  %v4077_v52 = vadd.f32 %v4012_v21, %v3847_v19  ;;  %v3138_v31 = vpop.f32.mrf.mxu0 }
 0x333   : > { %v5676_v6 = vpop.eup %5675  ;;  %5699 = vrcp.f32 %v4297_v53  ;;  %v4295_v14 = vadd.f32 1.0, %v5674_v8  ;;  %v5011_v37 = vmul.f32 -1.442695, %v7443_v47  ;;  %v7458_v24 = vadd.f32 %v7315_v42, %v4139_v59  ;;  %v4137_v33 = vld [vmem:[#allocation3 + $0x88] sm:$0xff]  ;;  %v7465_v10 = vpop.f32.mrf.mxu1 }
 0x334   : > { %v5678_v16 = vpop.eup %5677  ;;  %v5097_v44 = vpack.c.bf16 %v4449_v18, %v4449_v18  ;;  %v4447_v27 = vadd.f32 %v4415_v9, %v4383_v15  ;;  %v4386_v36 = vmul.f32 %v5676_v6, %v7331_v30  ;;  %5701 = vpow2.f32 %v5013_v46  ;;  %3215 = vst.msk [vmem:[#allocation3 + $0xf0] sm:$0xff] %vm346_vm1, %v3183_v5  ;;  %4109 = vst.msk [vmem:[#allocation3 + $0xa8] sm:$0xff] %vm346_vm1, %v4077_v52 }
 0x335   : > { %v5680_v58 = vpop.eup %5679  ;;  %5703 = vrcp.f32 %v4295_v14  ;;  %v4298_v43 = vadd.f32 1.0, %v5678_v16  ;;  %v5014_v50 = vmul.f32 -1.442695, %v7458_v24  ;;  %v7469_v29 = vadd.f32 %v7315_v42, %v4137_v33  ;;  %v4142_v39 = vld [vmem:[#allocation3 + $0xb0] sm:$0xff]  ;;  %v7476_v25 = vpop.f32.mrf.mxu1 }
 0x336   : > { %v5682_v9 = vpop.eup %5681  ;;  %4609 = vst.msk [vmem:[%s7454_s15 + $0x8] sm:$0xf] %vm784_vm2, %v5097_v44  ;;  %v5095_v30 = vpack.c.bf16 %v4447_v27, %v4447_v27  ;;  %v4450_v56 = vadd.f32 %v4418_v55, %v4386_v36  ;;  %v4384_v20 = vmul.f32 %v5680_v58, %v7337_v4  ;;  %5705 = vpow2.f32 %v5011_v37  ;;  %v5296_v14 = vpop.f32.mrf.mxu0 }
 0x337   : > { %v5684_v28 = vpop.eup %5683  ;;  %5707 = vrcp.f32 %v4298_v43  ;;  %v4296_v53 = vadd.f32 1.0, %v5682_v9  ;;  %v5012_v46 = vmul.f32 -1.442695, %v7469_v29  ;;  %v7480_v57 = vadd.f32 %v7315_v42, %v4142_v39  ;;  %v4140_v19 = vld [vmem:[#allocation3 + $0xa0] sm:$0xff]  ;;  %v7487_v8 = vpop.f32.mrf.mxu1 }
 0x338   : > { %v5686_v21 = vpop.eup %5685  ;;  %4607 = vst.msk [vmem:[%s7454_s15] sm:$0xf] %vm784_vm2, %v5095_v30  ;;  %v5098_v2 = vpack.c.bf16 %v4450_v56, %v4450_v56  ;;  %v4448_v4 = vadd.f32 %v4416_v45, %v4384_v20  ;;  %v4389_v55 = vmul.f32 %v5684_v28, %v7343_v1  ;;  %5709 = vpow2.f32 %v5014_v50 }
 0x339   : > { %v5688_v18 = vpop.eup %5687  ;;  %5711 = vrcp.f32 %v4296_v53  ;;  %v4301_v15 = vadd.f32 1.0, %v5686_v21  ;;  %v5017_v59 = vmul.f32 -1.442695, %v7480_v57  ;;  %v7491_v5 = vadd.f32 %v7315_v42, %v4140_v19  ;;  %v4143_v52 = vld [vmem:[#allocation3 + $0xb8] sm:$0xff]  ;;  %v7498_v37 = vpop.f32.mrf.mxu1  ;;  %v2951_v53 = vld [vmem:[#allocation3 + $0xe0] sm:$0xff] }
 0x33a   : > { %v5690_v6 = vpop.eup %5689  ;;  %4610 = vst.msk [vmem:[%s7454_s15 + $0xc] sm:$0xf] %vm784_vm2, %v5098_v2  ;;  %v5096_v0 = vpack.c.bf16 %v4448_v4, %v4448_v4  ;;  %v4453_v1 = vadd.f32 %v4421_v40, %v4389_v55  ;;  %v4387_v45 = vmul.f32 %v5688_v18, %v7348_v54  ;;  %5713 = vpow2.f32 %v5012_v46  ;;  %v3141_v46 = vpop.f32.mrf.mxu0  ;;  %v2954_v4 = vld [vmem:[#allocation3 + $0xf8] sm:$0xff] }
 0x33b   : > { %v5692_v33 = vpop.eup %5691  ;;  %5715 = vrcp.f32 %v4301_v15  ;;  %v4299_v16 = vadd.f32 1.0, %v5690_v6  ;;  %v5015_v44 = vmul.f32 -1.442695, %v7491_v5  ;;  %v7502_v27 = vadd.f32 %v7315_v42, %v4143_v52  ;;  %v4141_v36 = vld [vmem:[#allocation3 + $0xa8] sm:$0xff]  ;;  %v5329_v56 = vpop.f32.mrf.mxu1 }
 0x33c   : > { %v5694_v58 = vpop.eup %5693  ;;  %4608 = vst.msk [vmem:[%s7454_s15 + $0x4] sm:$0xf] %vm784_vm2, %v5096_v0  ;;  %v5101_v40 = vpack.c.bf16 %v4453_v1, %v4453_v1  ;;  %v4451_v54 = vadd.f32 %v4419_v13, %v4387_v45  ;;  %v4390_v43 = vmul.f32 %v5692_v33, %v7353_v23  ;;  %5717 = vpow2.f32 %v5017_v59  ;;  %v2952_v15 = vld [vmem:[#allocation3 + $0xe8] sm:$0xff]  ;;  %v3850_v0 = vld [vmem:[#allocation3 + $0xc0] sm:$0xff] }
 0x33d   : > { %v5696_v50 = vpop.eup %5695  ;;  %5719 = vrcp.f32 %v4299_v16  ;;  %v4302_v39 = vadd.f32 1.0, %v5694_v58  ;;  %v5018_v9 = vmul.f32 -1.442695, %v7502_v27  ;;  %v7511_v30 = vadd.f32 %v7315_v42, %v4141_v36  ;;  %v4041_v1 = vpop.f32.mrf.mxu1  ;;  %v3851_v33 = vld [vmem:[#allocation3 + $0xc8] sm:$0xff] }
 0x33e   : > { %v5698_v20 = vpop.eup %5697  ;;  %4613 = vst.msk [vmem:[%s7454_s15 + $0x18] sm:$0xf] %vm784_vm2, %v5101_v40  ;;  %v5099_v28 = vpack.c.bf16 %v4451_v54, %v4451_v54  ;;  %v4454_v13 = vadd.f32 %v4422_v3, %v4390_v43  ;;  %v4388_v23 = vmul.f32 %v5696_v50, %v7358_v51  ;;  %5721 = vpow2.f32 %v5015_v44  ;;  %v3852_v51 = vld [vmem:[#allocation3 + $0xd0] sm:$0xff] }
 0x33f   : > { %5723 = vrcp.f32 %v4302_v39  ;;  %v4300_v19 = vadd.f32 1.0, %v5698_v20  ;;  %v5016_v21 = vmul.f32 -1.442695, %v7511_v30  ;;  %v3181_v2 = vadd.f32 %v3138_v31, %v2951_v53  ;;  %v3856_v40 = vld [vmem:[#allocation3 + $0xf0] sm:$0xff]  ;;  %v5330_v39 = vpop.f32.mrf.mxu1  ;;  %v7547_v20 = vld [vmem:[%s5856_s25 + $0x30] sm:$0xff]  }
 0x340   : > { %v5700_v55 = vpop.eup %5699  ;;  %4611 = vst.msk [vmem:[%s7454_s15 + $0x10] sm:$0xf] %vm784_vm2, %v5099_v28  ;;  %v5102_v18 = vpack.c.bf16 %v4454_v13, %v4454_v13  ;;  %v4452_v48 = vadd.f32 %v4420_v11, %v4388_v23  ;;  %5725 = vpow2.f32 %v5018_v9  ;;  %v3184_v3 = vadd.f32 %v5296_v14, %v2954_v4 }
 0x341   : > { %v5702_v59 = vpop.eup %5701  ;;  %v4393_v52 = vmul.f32 %v5700_v55, %v7363_v62  ;;  %5727 = vrcp.f32 %v4300_v19  ;;  %3213 = vst.msk [vmem:[#allocation3 + $0xe0] sm:$0xff] %vm346_vm1, %v3181_v2  ;;  %v4082_v31 = vadd.f32 %v7465_v10, %v3852_v51  ;;  %v3182_v6 = vadd.f32 %v3141_v46, %v2952_v15  ;;  %v3853_v62 = vld [vmem:[#allocation3 + $0xd8] sm:$0xff]  ;;  %v7559_v2 = vld [vmem:[%s5856_s25 + $0x40] sm:$0xff]   ;;  %v4044_v15 = vpop.f32.mrf.mxu1 }
 0x342   : > { %v5704_v45 = vpop.eup %5703  ;;  %4614 = vst.msk [vmem:[%s7454_s15 + $0x1c] sm:$0xf] %vm784_vm2, %v5102_v18  ;;  %v5100_v17 = vpack.c.bf16 %v4452_v48, %v4452_v48  ;;  %v4305_v11 = vadd.f32 1.0, %v5702_v59  ;;  %5729 = vpow2.f32 %v5016_v21  ;;  %v4080_v14 = vadd.f32 %v7476_v25, %v3850_v0 }
 0x343   : > { %3216 = vst.msk [vmem:[#allocation3 + $0xf8] sm:$0xff] %vm346_vm1, %v3184_v3  ;;  %v5706_v16 = vpop.eup %5705  ;;  %v4457_v10 = vadd.f32 %v4425_v26, %v4393_v52  ;;  %v4391_v44 = vmul.f32 %v5704_v45, %v7369_v49  ;;  %4114 = vst.msk [vmem:[#allocation3 + $0xd0] sm:$0xff] %vm346_vm1, %v4082_v31  ;;  %v4083_v36 = vadd.f32 %v7487_v8, %v3853_v62  ;;  %v4424_v49 = vunpack.c.h.bf16 %v7426_v61  ;;  %v7566_v52 = vld [vmem:[%s5856_s25 + $0x48] sm:$0xff]  }
 0x344   : > { %3214 = vst.msk [vmem:[#allocation3 + $0xe8] sm:$0xff] %vm346_vm1, %v3182_v6  ;;  %v4081_v58 = vadd.f32 %v7498_v37, %v3851_v33  ;;  %v5708_v54 = vpop.eup %5707  ;;  %5731 = vrcp.f32 %v4305_v11  ;;  %v4303_v25 = vadd.f32 1.0, %v5706_v16  ;;  %4112 = vst.msk [vmem:[#allocation3 + $0xc0] sm:$0xff] %vm346_vm1, %v4080_v14  ;;  %v4086_v26 = vadd.f32 %v5329_v56, %v3856_v40 }
 0x345   : > { %4612 = vst.msk [vmem:[%s7454_s15 + $0x14] sm:$0xf] %vm784_vm2, %v5100_v17  ;;  %v5710_v43 = vpop.eup %5709  ;;  %v5105_v50 = vpack.c.bf16 %v4457_v10, %v4457_v10  ;;  %v4455_v8 = vadd.f32 %v4423_v12, %v4391_v44  ;;  %v4394_v37 = vmul.f32 %v5708_v54, %v7375_v22  ;;  %v4427_v56 = vunpack.c.l.bf16 %v7547_v20  ;;  %v5786_v22 = vld [vmem:[%s5856_s25 + $0x38] sm:$0xff]  }
 0x346   : > { %4115 = vst.msk [vmem:[#allocation3 + $0xd8] sm:$0xff] %vm346_vm1, %v4083_v36  ;;  %4113 = vst.msk [vmem:[#allocation3 + $0xc8] sm:$0xff] %vm346_vm1, %v4081_v58  ;;  %v5712_v9 = vpop.eup %5711  ;;  %v4428_v28 = vunpack.c.h.bf16 %v7547_v20  ;;  %5733 = vrcp.f32 %v4303_v25  ;;  %v4306_v13 = vadd.f32 1.0, %v5710_v43  ;;  %v4429_v12 = vunpack.c.l.bf16 %v5786_v22 }
 0x347   : > { %4118 = vst.msk [vmem:[#allocation3 + $0xf0] sm:$0xff] %vm346_vm1, %v4086_v26  ;;  %v5714_v61 = vpop.eup %5713  ;;  %v5103_v23 = vpack.c.bf16 %v4455_v8, %v4455_v8  ;;  %v4458_v53 = vadd.f32 %v4426_v32, %v4394_v37  ;;  %v4392_v46 = vmul.f32 %v5712_v9, %v7381_v60  ;;  %v4430_v21 = vunpack.c.h.bf16 %v5786_v22 }
 0x348   : > { %4617 = vst.msk [vmem:[%s7454_s15 + $0x28] sm:$0xf] %vm784_vm2, %v5105_v50  ;;  %v5716_v19 = vpop.eup %5715  ;;  %v4431_v4 = vunpack.c.l.bf16 %v7559_v2  ;;  %5735 = vrcp.f32 %v4306_v13  ;;  %v4304_v55 = vadd.f32 1.0, %v5714_v61  ;;  %v3854_v18 = vld [vmem:[#allocation3 + $0xe0] sm:$0xff]  ;;  %v4433_v31 = vunpack.c.l.bf16 %v7566_v52 }
 0x349   : > { %v5718_v48 = vpop.eup %5717  ;;  %4615 = vst.msk [vmem:[%s7454_s15 + $0x20] sm:$0xf] %vm784_vm2, %v5103_v23  ;;  %v5106_v3 = vpack.c.bf16 %v4458_v53, %v4458_v53  ;;  %v4456_v51 = vadd.f32 %v4424_v49, %v4392_v46  ;;  %v4397_v38 = vmul.f32 %v5716_v19, %v7387_v41  ;;  %v4084_v32 = vadd.f32 %v4041_v1, %v3854_v18 }
 0x34a   : > { %v3857_v60 = vld [vmem:[#allocation3 + $0xf8] sm:$0xff]  ;;  %v5720_v59 = vpop.eup %5719  ;;  %5737 = vrcp.f32 %v4304_v55  ;;  %v4309_v6 = vadd.f32 1.0, %v5718_v48  ;;  %v4146_v0 = vld [vmem:[#allocation3 + $0xd0] sm:$0xff] }
 0x34b   : > { %v4087_v45 = vadd.f32 %v5330_v39, %v3857_v60  ;;  %v5722_v17 = vpop.eup %5721  ;;  %4618 = vst.msk [vmem:[%s7454_s15 + $0x2c] sm:$0xf] %vm784_vm2, %v5106_v3  ;;  %v5104_v11 = vpack.c.bf16 %v4456_v51, %v4456_v51  ;;  %v4461_v14 = vadd.f32 %v4429_v12, %v4397_v38  ;;  %v4395_v41 = vmul.f32 %v5720_v59, %v7397_v63  ;;  %v4144_v62 = vld [vmem:[#allocation3 + $0xc0] sm:$0xff]  ;;  %v3855_v33 = vld [vmem:[#allocation3 + $0xe8] sm:$0xff] }
 0x34c   : > { %v7573_v1 = vadd.f32 %v7315_v42, %v4146_v0  ;;  %4116 = vst.msk [vmem:[#allocation3 + $0xe0] sm:$0xff] %vm346_vm1, %v4084_v32  ;;  %v5724_v16 = vpop.eup %5723  ;;  %5739 = vrcp.f32 %v4309_v6  ;;  %v4307_v10 = vadd.f32 1.0, %v5722_v17  ;;  %v7577_v44 = vadd.f32 %v7315_v42, %v4144_v62  ;;  %v5789_v17 = vld [vmem:[%s5856_s25 + $0x58] sm:$0xff]  }
 0x34d   : > { %v4147_v36 = vld [vmem:[#allocation3 + $0xd8] sm:$0xff]  ;;  %4119 = vst.msk [vmem:[#allocation3 + $0xf8] sm:$0xff] %vm346_vm1, %v4087_v45  ;;  %v4085_v58 = vadd.f32 %v4044_v15, %v3855_v33  ;;  %v5726_v40 = vpop.eup %5725  ;;  %v5109_v63 = vpack.c.bf16 %v4461_v14, %v4461_v14  ;;  %v4459_v54 = vadd.f32 %v4427_v56, %v4395_v41  ;;  %v4398_v25 = vmul.f32 %v5724_v16, %v7412_v35  ;;  %v4145_v43 = vld [vmem:[#allocation3 + $0xc8] sm:$0xff] }
 0x34e   : > { %4616 = vst.msk [vmem:[%s7454_s15 + $0x24] sm:$0xf] %vm784_vm2, %v5104_v11  ;;  %v5021_v26 = vmul.f32 -1.442695, %v7573_v1  ;;  %v5728_v49 = vpop.eup %5727  ;;  %5741 = vrcp.f32 %v4307_v10  ;;  %v4310_v50 = vadd.f32 1.0, %v5726_v40  ;;  %v7586_v37 = vadd.f32 %v7315_v42, %v4147_v36  ;;  %v4150_v39 = vld [vmem:[#allocation3 + $0xf0] sm:$0xff] }
 0x34f   : > { %v5019_v8 = vmul.f32 -1.442695, %v7577_v44  ;;  %4117 = vst.msk [vmem:[#allocation3 + $0xe8] sm:$0xff] %vm346_vm1, %v4085_v58  ;;  %v5730_v9 = vpop.eup %5729  ;;  %v5107_v56 = vpack.c.bf16 %v4459_v54, %v4459_v54  ;;  %v4462_v35 = vadd.f32 %v4430_v21, %v4398_v25  ;;  %v4396_v13 = vmul.f32 %v5728_v49, %v7423_v7  ;;  %v5790_v33 = vld [vmem:[%s5856_s25 + $0x50] sm:$0xff]  }
 0x350   : > { %4621 = vst.msk [vmem:[%s7454_s15 + $0x38] sm:$0xf] %vm784_vm2, %v5109_v63  ;;  %5743 = vpow2.f32 %v5021_v26  ;;  %v4308_v61 = vadd.f32 1.0, %v5730_v9  ;;  %v5022_v22 = vmul.f32 -1.442695, %v7586_v37  ;;  %v7594_v12 = vadd.f32 %v7315_v42, %v4145_v43 }
 0x351   : > { %5745 = vrcp.f32 %v4310_v50  ;;  %v5732_v23 = vpop.eup %5731  ;;  %4619 = vst.msk [vmem:[%s7454_s15 + $0x30] sm:$0xf] %vm784_vm2, %v5107_v56  ;;  %v5110_v53 = vpack.c.bf16 %v4462_v35, %v4462_v35  ;;  %v4460_v46 = vadd.f32 %v4428_v28, %v4396_v13  ;;  %v7601_v19 = vadd.f32 %v7315_v42, %v4150_v39 }
 0x352   : > { %5747 = vpow2.f32 %v5019_v8  ;;  %v4434_v7 = vunpack.c.h.bf16 %v7566_v52  ;;  %v4401_v21 = vmul.f32 %v5732_v23, %v7436_v34  ;;  %v5020_v55 = vmul.f32 -1.442695, %v7594_v12 }
 0x353   : > { %5749 = vrcp.f32 %v4308_v61  ;;  %v4148_v18 = vld [vmem:[#allocation3 + $0xe0] sm:$0xff]  ;;  %v5734_v48 = vpop.eup %5733  ;;  %4622 = vst.msk [vmem:[%s7454_s15 + $0x3c] sm:$0xf] %vm784_vm2, %v5110_v53  ;;  %v5108_v3 = vpack.c.bf16 %v4460_v46, %v4460_v46  ;;  %v5025_v20 = vmul.f32 -1.442695, %v7601_v19  ;;  %v4432_v15 = vunpack.c.h.bf16 %v7559_v2 }
 0x354   : > { %5751 = vpow2.f32 %v5022_v22  ;;  %v7610_v28 = vadd.f32 %v7315_v42, %v4148_v18  ;;  %v4151_v51 = vld [vmem:[#allocation3 + $0xf8] sm:$0xff]  ;;  %v4465_v34 = vadd.f32 %v4433_v31, %v4401_v21  ;;  %v4399_v38 = vmul.f32 %v5734_v48, %v7443_v47 }
 0x355   : > { %5753 = vpow2.f32 %v5020_v55  ;;  %v7616_v32 = vadd.f32 %v7315_v42, %v4151_v51  ;;  %v5736_v60 = vpop.eup %5735  ;;  %4620 = vst.msk [vmem:[%s7454_s15 + $0x34] sm:$0xf] %vm784_vm2, %v5108_v3  ;;  %v4437_v11 = vunpack.c.l.bf16 %v5789_v17  ;;  %v4435_v16 = vunpack.c.l.bf16 %v5790_v33 }
 0x356   : > { %5755 = vpow2.f32 %v5025_v20  ;;  %v5023_v59 = vmul.f32 -1.442695, %v7610_v28  ;;  %v4149_v6 = vld [vmem:[#allocation3 + $0xe8] sm:$0xff]  ;;  %v5113_v0 = vpack.c.bf16 %v4465_v34, %v4465_v34  ;;  %v4463_v52 = vadd.f32 %v4431_v4, %v4399_v38  ;;  %v5791_v34 = vld [vmem:[%s5856_s25 + $0x68] sm:$0xff]  }
 0x357   : > { %v4402_v47 = vmul.f32 %v5736_v60, %v7458_v24  ;;  %v5026_v31 = vmul.f32 -1.442695, %v7616_v32  ;;  %v5738_v45 = vpop.eup %5737  ;;  %v7628_v14 = vadd.f32 %v7315_v42, %v4149_v6  ;;  %v4438_v63 = vunpack.c.h.bf16 %v5789_v17 }
 0x358   : > { %5757 = vpow2.f32 %v5023_v59  ;;  %4625 = vst.msk [vmem:[%s7454_s15 + $0x48] sm:$0xf] %vm784_vm2, %v5113_v0  ;;  %v5111_v41 = vpack.c.bf16 %v4463_v52, %v4463_v52  ;;  %v4400_v2 = vmul.f32 %v5738_v45, %v7469_v29  ;;  %v4436_v50 = vunpack.c.h.bf16 %v5790_v33 }
 0x359   : > { %v4466_v62 = vadd.f32 %v4434_v7, %v4402_v47  ;;  %5759 = vpow2.f32 %v5026_v31  ;;  %v5740_v4 = vpop.eup %5739  ;;  %v5024_v24 = vmul.f32 -1.442695, %v7628_v14  ;;  %v4441_v38 = vunpack.c.l.bf16 %v5791_v34 }
 0x35a   : > { %4623 = vst.msk [vmem:[%s7454_s15 + $0x40] sm:$0xf] %vm784_vm2, %v5111_v41  ;;  %v4464_v36 = vadd.f32 %v4432_v15, %v4400_v2  ;;  %v4405_v42 = vmul.f32 %v5740_v4, %v7480_v57  ;;  %v5792_v15 = vld [vmem:[%s5856_s25 + $0x60] sm:$0xff]   ;;  %v4442_v52 = vunpack.c.h.bf16 %v5791_v34  ;;  %v5793_v41 = vld [vmem:[%s5856_s25 + $0x78] sm:$0xff]  }
 0x35b   : > { %v5114_v10 = vpack.c.bf16 %v4466_v62, %v4466_v62  ;;  %v5742_v58 = vpop.eup %5741  ;;  %5761 = vpow2.f32 %v5024_v24  ;;  %v4439_v59 = vunpack.c.l.bf16 %v5792_v15  ;;  %v4440_v17 = vunpack.c.h.bf16 %v5792_v15 }
 0x35c   : > { %v5112_v29 = vpack.c.bf16 %v4464_v36, %v4464_v36  ;;  %v4469_v54 = vadd.f32 %v4437_v11, %v4405_v42  ;;  %v4403_v25 = vmul.f32 %v5742_v58, %v7491_v5  ;;  %v4445_v62 = vunpack.c.l.bf16 %v5793_v41 }
 0x35d   : > { %v5744_v40 = vpop.eup %5743  ;;  %4626 = vst.msk [vmem:[%s7454_s15 + $0x4c] sm:$0xf] %vm784_vm2, %v5114_v10 }
 0x35e   : > { %v5746_v26 = vpop.eup %5745  ;;  %v4313_v43 = vadd.f32 1.0, %v5744_v40  ;;  %4624 = vst.msk [vmem:[%s7454_s15 + $0x44] sm:$0xf] %vm784_vm2, %v5112_v29  ;;  %v5117_v8 = vpack.c.bf16 %v4469_v54, %v4469_v54  ;;  %v4467_v57 = vadd.f32 %v4435_v16, %v4403_v25  ;;  %v4446_v40 = vunpack.c.h.bf16 %v5793_v41 }
 0x35f   : > { %v5748_v49 = vpop.eup %5747  ;;  %v4406_v39 = vmul.f32 %v5746_v26, %v7502_v27 }
 0x360   : > { %v5750_v9 = vpop.eup %5749  ;;  %5763 = vrcp.f32 %v4313_v43  ;;  %v4311_v56 = vadd.f32 1.0, %v5748_v49  ;;  %4629 = vst.msk [vmem:[%s7454_s15 + $0x58] sm:$0xf] %vm784_vm2, %v5117_v8  ;;  %v5115_v13 = vpack.c.bf16 %v4467_v57, %v4467_v57 }
 0x361   : > { %v5752_v35 = vpop.eup %5751  ;;  %v4470_v5 = vadd.f32 %v4438_v63, %v4406_v39  ;;  %v4404_v61 = vmul.f32 %v5750_v9, %v7511_v30 }
 0x362   : > { %v5754_v22 = vpop.eup %5753  ;;  %5765 = vrcp.f32 %v4311_v56  ;;  %v4314_v23 = vadd.f32 1.0, %v5752_v35  ;;  %4627 = vst.msk [vmem:[%s7454_s15 + $0x50] sm:$0xf] %vm784_vm2, %v5115_v13 }
 0x363   : > { %v5756_v53 = vpop.eup %5755  ;;  %v5118_v46 = vpack.c.bf16 %v4470_v5, %v4470_v5  ;;  %v4468_v27 = vadd.f32 %v4436_v50, %v4404_v61  ;;  %v4312_v7 = vadd.f32 1.0, %v5754_v22 }
 0x364   : > { %5767 = vrcp.f32 %v4314_v23  ;;  %v4317_v21 = vadd.f32 1.0, %v5756_v53 }
 0x365   : > { %v5758_v55 = vpop.eup %5757  ;;  %4630 = vst.msk [vmem:[%s7454_s15 + $0x5c] sm:$0xf] %vm784_vm2, %v5118_v46  ;;  %v5116_v18 = vpack.c.bf16 %v4468_v27, %v4468_v27  ;;  %5769 = vrcp.f32 %v4312_v7 }
 0x366   : > { %v5760_v30 = vpop.eup %5759  ;;  %5771 = vrcp.f32 %v4317_v21  ;;  %v4315_v48 = vadd.f32 1.0, %v5758_v55 }
 0x367   : > { %4628 = vst.msk [vmem:[%s7454_s15 + $0x54] sm:$0xf] %vm784_vm2, %v5116_v18  ;;  %v4318_v3 = vadd.f32 1.0, %v5760_v30 }
 0x368   : > { %5773 = vrcp.f32 %v4315_v48  ;;  %v5762_v20 = vpop.eup %5761 }
 0x369   : > { %5775 = vrcp.f32 %v4318_v3  ;;  %v4316_v51 = vadd.f32 1.0, %v5762_v20 }
 0x36b   : > { %5777 = vrcp.f32 %v4316_v51 }
 0x36d   : > { %v5764_v60 = vpop.eup %5763 }
 0x36e   : > { %v4409_v6 = vmul.f32 %v5764_v60, %v7573_v1  ;;  %v5794_v1 = vld [vmem:[%s5856_s25 + $0x70] sm:$0xff]  }
 0x36f   : > { %v5766_v0 = vpop.eup %5765  ;;  %v4443_v10 = vunpack.c.l.bf16 %v5794_v1  ;;  %v4444_v43 = vunpack.c.h.bf16 %v5794_v1 }
 0x370   : > { %v4473_v47 = vadd.f32 %v4441_v38, %v4409_v6  ;;  %v4407_v31 = vmul.f32 %v5766_v0, %v7577_v44 }
 0x371   : > { %v5768_v45 = vpop.eup %5767 }
 0x372   : > { %v5770_v11 = vpop.eup %5769  ;;  %v5121_v2 = vpack.c.bf16 %v4473_v47, %v4473_v47  ;;  %v4471_v4 = vadd.f32 %v4439_v59, %v4407_v31  ;;  %v4410_v24 = vmul.f32 %v5768_v45, %v7586_v37 }
 0x373   : > { %v5772_v33 = vpop.eup %5771  ;;  %v4408_v16 = vmul.f32 %v5770_v11, %v7594_v12 }
 0x374   : > { %4633 = vst.msk [vmem:[%s7454_s15 + $0x68] sm:$0xf] %vm784_vm2, %v5121_v2  ;;  %v5119_v36 = vpack.c.bf16 %v4471_v4, %v4471_v4  ;;  %v4474_v44 = vadd.f32 %v4442_v52, %v4410_v24  ;;  %v4413_v42 = vmul.f32 %v5772_v33, %v7601_v19 }
 0x375   : > { %v5774_v58 = vpop.eup %5773  ;;  %v4472_v63 = vadd.f32 %v4440_v17, %v4408_v16 }
 0x376   : > { %v5776_v29 = vpop.eup %5775  ;;  %4631 = vst.msk [vmem:[%s7454_s15 + $0x60] sm:$0xf] %vm784_vm2, %v5119_v36  ;;  %v5122_v37 = vpack.c.bf16 %v4474_v44, %v4474_v44  ;;  %v4477_v12 = vadd.f32 %v4445_v62, %v4413_v42  ;;  %v4411_v54 = vmul.f32 %v5774_v58, %v7610_v28 }
 0x377   : > { %v5120_v25 = vpack.c.bf16 %v4472_v63, %v4472_v63  ;;  %v4414_v26 = vmul.f32 %v5776_v29, %v7616_v32 }
 0x378   : > { %4634 = vst.msk [vmem:[%s7454_s15 + $0x6c] sm:$0xf] %vm784_vm2, %v5122_v37  ;;  %v5125_v19 = vpack.c.bf16 %v4477_v12, %v4477_v12  ;;  %v4475_v49 = vadd.f32 %v4443_v10, %v4411_v54  ;;  %v5778_v50 = vpop.eup %5777 }
 0x379   : > { %4632 = vst.msk [vmem:[%s7454_s15 + $0x64] sm:$0xf] %vm784_vm2, %v5120_v25  ;;  %v4478_v8 = vadd.f32 %v4446_v40, %v4414_v26  ;;  %v4412_v39 = vmul.f32 %v5778_v50, %v7628_v14 }
 0x37a   : > { %4637 = vst.msk [vmem:[%s7454_s15 + $0x78] sm:$0xf] %vm784_vm2, %v5125_v19  ;;  %v5123_v57 = vpack.c.bf16 %v4475_v49, %v4475_v49 }
 0x37b   : > { %v5126_v28 = vpack.c.bf16 %v4478_v8, %v4478_v8  ;;  %v4476_v9 = vadd.f32 %v4444_v43, %v4412_v39 }
 0x37c   : > { %4635 = vst.msk [vmem:[%s7454_s15 + $0x70] sm:$0xf] %vm784_vm2, %v5123_v57 }
 0x37d   : > { %4638 = vst.msk [vmem:[%s7454_s15 + $0x7c] sm:$0xf] %vm784_vm2, %v5126_v28  ;;  %v5124_v32 = vpack.c.bf16 %v4476_v9, %v4476_v9 }
 0x37f   : > { %4636 = vst.msk [vmem:[%s7454_s15 + $0x74] sm:$0xf] %vm784_vm2, %v5124_v32 }
 0x380 PF: > { %s15_s18 = sadd.s32 1, %s5801_s18  }
 0x381   : > { %p12_p4 = scmp.ge.s32.totalorder %s15_s18, 4  }
 0x383   :  { %14 = sbr.rel (!%p12_p4) target bundleno = 1 (0x1), region = 74 }

</bundles_post_ra>
